<compile_context>
chip_gen: v7x
topology: tpu7x:2x2x1
jax: 0.10.0
libtpu: 0.0.40
codegen_flags: <defaults>
</compile_context>

<pallas_src>
import functools

import jax
import jax.numpy as jnp
from jax.experimental import pallas as pl
from jax.experimental.pallas import tpu as pltpu


def _conv_block_kernel(x_ref, w1_ref, w2_ref, b1_ref, b2_ref, o_ref,
                       xpad_ref, mid_ref, *, stride, ho, wo):
    """Fused ConvBnRelu -> ConvBn for a tile of Bt images (NHWC layout in VMEM).

    x_ref:    (Bt, H, W, Cin)        bf16 input tile
    w1_ref:   (9*Cin, Cb)            bf16 conv1 weights, BN1 scale folded in
    w2_ref:   (9*Cb,  Cb)            bf16 conv2 weights, BN2 scale folded in
    b1_ref:   (1, Cb)                f32 folded BN1 bias
    b2_ref:   (1, Cb)                f32 folded BN2 bias
    o_ref:    (Bt, Cb, Ho*Wo)        f32 output tile (lane-dense, channel-major)
    xpad_ref: (Bt, H+2,  W+2,  Cin)  bf16 VMEM scratch (padded input)
    mid_ref:  (Bt, Ho+2, Wo+2, Cb)   bf16 VMEM scratch (padded intermediate)
    """
    bt, h, w, cin = x_ref.shape
    cb = o_ref.shape[1]
    hw = ho * wo
    bf16 = xpad_ref.dtype

    # ---- zero ONLY the 1-pixel padding ring of both scratches (interiors are
    #      fully overwritten below); done every step for megacore safety.
    for b in range(bt):
        xpad_ref[b, 0:1, :, :] = jnp.zeros((1, w + 2, cin), bf16)
        xpad_ref[b, h + 1:h + 2, :, :] = jnp.zeros((1, w + 2, cin), bf16)
        xpad_ref[b, :, 0:1, :] = jnp.zeros((h + 2, 1, cin), bf16)
        xpad_ref[b, :, w + 1:w + 2, :] = jnp.zeros((h + 2, 1, cin), bf16)
        mid_ref[b, 0:1, :, :] = jnp.zeros((1, wo + 2, cb), bf16)
        mid_ref[b, ho + 1:ho + 2, :, :] = jnp.zeros((1, wo + 2, cb), bf16)
        mid_ref[b, :, 0:1, :] = jnp.zeros((ho + 2, 1, cb), bf16)
        mid_ref[b, :, wo + 1:wo + 2, :] = jnp.zeros((ho + 2, 1, cb), bf16)

    # ---- stage 1: write interior of padded input (already bf16).
    for b in range(bt):
        xpad_ref[b, 1:h + 1, 1:w + 1, :] = x_ref[b].astype(bf16)

    def im2col(src_ref, b, cc, s):
        """Lane-concat im2col: (Ho*Wo, 9*cc) patch matrix for image b."""
        taps = []
        if s == 1:
            for kh in range(3):
                for kw in range(3):
                    p = src_ref[b, kh:kh + ho, kw:kw + wo, :]
                    taps.append(p.reshape(hw, cc))
        else:
            # TODO(synk): ref-side strided reads for stride > 1.
            xv = src_ref[b]
            for kh in range(3):
                for kw in range(3):
                    p = xv[kh:kh + (ho - 1) * s + 1:s,
                           kw:kw + (wo - 1) * s + 1:s, :]
                    taps.append(p.reshape(hw, cc))
        return jnp.concatenate(taps, axis=-1)

    # ---- conv1 (+ folded BN1 scale) as ONE matmul over K = 9*Cin.
    p1 = [im2col(xpad_ref, b, cin, stride) for b in range(bt)]
    patches1 = p1[0] if bt == 1 else jnp.concatenate(p1, axis=0)   # (Bt*hw, 9*Cin)
    acc1 = jnp.dot(patches1, w1_ref[...], preferred_element_type=jnp.float32)
    y1 = jnp.maximum(acc1 + b1_ref[...], 0.0)                      # BN1 bias + ReLU

    # ---- stage 2: intermediate stays in VMEM (no HBM round-trip).
    for b in range(bt):
        mid_ref[b, 1:ho + 1, 1:wo + 1, :] = (
            y1[b * hw:(b + 1) * hw, :].reshape(ho, wo, cb).astype(bf16))

    p2 = [im2col(mid_ref, b, cb, 1) for b in range(bt)]
    patches2 = p2[0] if bt == 1 else jnp.concatenate(p2, axis=0)   # (Bt*hw, 9*Cb)
    acc2 = jnp.dot(patches2, w2_ref[...], preferred_element_type=jnp.float32)
    y2 = acc2 + b2_ref[...]                                        # BN2 bias, no ReLU

    # ---- lane-dense store: (hw, Cb) -> (Cb, hw) so the output last dim is 256.
    for b in range(bt):
        o_ref[b] = jnp.transpose(y2[b * hw:(b + 1) * hw, :]).astype(o_ref.dtype)


def conv_block_forward_nhwc(x_nhwc, params, *, stride=1, batch_tile=None):
    """Fused ConvBlock forward. NHWC input; returns (N, Cb, Ho*Wo) channel-major."""
    n, h, w, cin = x_nhwc.shape
    cb = params["b1"].shape[-1]
    ho = (h - 1) // stride + 1      # = (H + 2*1 - 3)//stride + 1
    wo = (w - 1) // stride + 1

    if batch_tile is None:
        # Amortize per-grid-step overhead while keeping the parallel grid
        # length >= 2 (feeds both v7x TensorCores; neutral on v5e/v6e).
        batch_tile = max(1, n // 2)
        while n % batch_tile:
            batch_tile -= 1
    bt = batch_tile
    assert n % bt == 0

    x_bf16 = x_nhwc.astype(jnp.bfloat16)
    kernel = functools.partial(_conv_block_kernel, stride=stride, ho=ho, wo=wo)

    out = pl.pallas_call(
        kernel,
        out_shape=jax.ShapeDtypeStruct((n, cb, ho * wo), jnp.float32),
        grid_spec=pltpu.PrefetchScalarGridSpec(
            num_scalar_prefetch=0,
            grid=(n // bt,),
            in_specs=[
                pl.BlockSpec((bt, h, w, cin), lambda b: (b, 0, 0, 0)),
                pl.BlockSpec((9 * cin, cb), lambda b: (0, 0)),
                pl.BlockSpec((9 * cb, cb), lambda b: (0, 0)),
                pl.BlockSpec((1, cb), lambda b: (0, 0)),
                pl.BlockSpec((1, cb), lambda b: (0, 0)),
            ],
            out_specs=pl.BlockSpec((bt, cb, ho * wo), lambda b: (b, 0, 0)),
            scratch_shapes=[
                pltpu.VMEM((bt, h + 2, w + 2, cin), jnp.bfloat16),   # padded input
                pltpu.VMEM((bt, ho + 2, wo + 2, cb), jnp.bfloat16),  # padded mid
            ],
        ),
        compiler_params=pltpu.CompilerParams(
            dimension_semantics=("parallel",),
            vmem_limit_bytes=32 * 1024 * 1024,
        ),
    )(x_bf16, params["w1"], params["w2"], params["b1"], params["b2"])
    return out      # (N, Cb, Ho*Wo), already channel-major


def conv_block_forward(x_nchw, params, *, stride=1):
    """PyTorch-parity entry point: NCHW in / NCHW out."""
    n, _, h, w = x_nchw.shape
    ho = (h - 1) // stride + 1
    wo = (w - 1) // stride + 1
    # Single layout pass: NCHW -> NHWC with the bf16 cast fused in.
    x_nhwc = jnp.transpose(x_nchw, (0, 2, 3, 1)).astype(jnp.bfloat16)
    out = conv_block_forward_nhwc(x_nhwc, params, stride=stride)
    # Output is already channel-major: only a free reshape remains.
    return out.reshape(n, out.shape[1], ho, wo)


def make_params(key, input_channel, block_base_channel, *, eps=1e-5):
    """Deterministic parameters matching ConvBlock shapes (BN in inference form)."""
    cin, cb = input_channel, block_base_channel
    k1, k2, k3, k4 = jax.random.split(key, 4)
    w1_oihw = 0.1 * jax.random.normal(k1, (cb, cin, 3, 3), jnp.float32)
    w2_oihw = 0.1 * jax.random.normal(k2, (cb, cb, 3, 3), jnp.float32)

    def bn_params(k, c):
        kg, kb, km, kv = jax.random.split(k, 4)
        gamma = 1.0 + 0.1 * jax.random.normal(kg, (c,), jnp.float32)
        beta = 0.1 * jax.random.normal(kb, (c,), jnp.float32)
        mean = 0.1 * jax.random.normal(km, (c,), jnp.float32)
        var = 1.0 + 0.1 * jax.random.uniform(kv, (c,), jnp.float32)
        return gamma, beta, mean, var

    bn1, bn2 = bn_params(k3, cb), bn_params(k4, cb)

    def fold(bn):
        gamma, beta, mean, var = bn
        scale = gamma * jax.lax.rsqrt(var + eps)
        return scale, beta - mean * scale

    s1, bias1 = fold(bn1)
    s2, bias2 = fold(bn2)

    def pack_w(w_oihw, ci, co, scale):
        # OIHW -> HWIO -> (9*Cin, Cout); K index = (3*kh + kw)*Cin + ci.
        # BN scale folded per output channel (exact: conv is linear); bf16 for MXU.
        w = jnp.transpose(w_oihw, (2, 3, 1, 0)).reshape(9 * ci, co)
        return (w * scale[None, :]).astype(jnp.bfloat16)

    return {
        # kernel-side packed params
        "w1": pack_w(w1_oihw, cin, cb, s1),
        "w2": pack_w(w2_oihw, cb, cb, s2),
        "b1": bias1.reshape(1, cb),
        "b2": bias2.reshape(1, cb),
        # reference-side params
        "w1_oihw": w1_oihw, "w2_oihw": w2_oihw,
        "bn1": bn1, "bn2": bn2, "eps": eps,
    }


def conv_block_reference(x_nchw, params, *, stride=1):
    """Pure-JAX reference: lax.conv + UNFOLDED f32 BN (module semantics).

    Conv operands are cast to bf16 to mirror the kernel's MXU operand precision.
    """
    eps = params["eps"]

    def conv(x, w_oihw, s):
        return jax.lax.conv_general_dilated(
            x.astype(jnp.bfloat16), w_oihw.astype(jnp.bfloat16),
            (s, s), ((1, 1), (1, 1)),
            dimension_numbers=("NCHW", "OIHW", "NCHW"),
            preferred_element_type=jnp.float32)

    def bn(y, bn_p):
        gamma, beta, mean, var = bn_p
        inv = gamma / jnp.sqrt(var + eps)
        return ((y - mean[None, :, None, None]) * inv[None, :, None, None]
                + beta[None, :, None, None])

    y = jnp.maximum(bn(conv(x_nchw, params["w1_oihw"], stride), params["bn1"]), 0.0)
    y = bn(conv(y, params["w2_oihw"], 1), params["bn2"])
    return y


if __name__ == "__main__":
    key = jax.random.PRNGKey(0)
    kx, kp = jax.random.split(key)

    batch, cin, spatial = 2, 4, 16
    block_base_channel = 8
    stride = 1

    x = jax.random.normal(kx, (batch, cin, spatial, spatial), jnp.float32)
    params = make_params(kp, cin, block_base_channel)

    out = jax.block_until_ready(conv_block_forward(x, params, stride=stride))
    ref = jax.block_until_ready(conv_block_reference(x, params, stride=stride))

    assert out.shape == ref.shape == (batch, block_base_channel, spatial, spatial)
    max_err = float(jnp.max(jnp.abs(out - ref)))
    # bf16 MXU operands + BN scale folded into the bf16 weights (reference keeps
    # unfolded f32 BN) => small expected deviation; tolerance set accordingly.
    assert jnp.allclose(out, ref, atol=2e-2, rtol=2e-2), f"max err {max_err}"

    print("KERNEL_OK")
</pallas_src>

<mosaic_0001>
module attributes {stable_mosaic.version = 11 : i64} {
  func.func @_conv_block_kernel(%arg0: i32, %arg1: memref<1x16x16x4xbf16, #tpu.memory_space<vmem>>, %arg2: memref<36x8xbf16, #tpu.memory_space<vmem>>, %arg3: memref<72x8xbf16, #tpu.memory_space<vmem>>, %arg4: memref<1x8xf32, #tpu.memory_space<vmem>>, %arg5: memref<1x8xf32, #tpu.memory_space<vmem>>, %arg6: memref<1x8x256xf32, #tpu.memory_space<vmem>>, %arg7: memref<1x18x18x4xbf16, #tpu.memory_space<vmem>>, %arg8: memref<1x18x18x8xbf16, #tpu.memory_space<vmem>>) attributes {dimension_semantics = [#tpu.dimension_semantics<parallel>], iteration_bounds = array<i64: 2>, scalar_prefetch = 0 : i64, scratch_operands = 2 : i64, tpu.core_type = #tpu.core_type<tc>, window_params = [{transform_indices = @transform_0, window_bounds = array<i64: 1, 16, 16, 4>}, {pipeline_mode = #tpu.pipeline_mode<synchronous>, transform_indices = @transform_1, window_bounds = array<i64: 36, 8>}, {pipeline_mode = #tpu.pipeline_mode<synchronous>, transform_indices = @transform_2, window_bounds = array<i64: 72, 8>}, {pipeline_mode = #tpu.pipeline_mode<synchronous>, transform_indices = @transform_3, window_bounds = array<i64: 1, 8>}, {pipeline_mode = #tpu.pipeline_mode<synchronous>, transform_indices = @transform_4, window_bounds = array<i64: 1, 8>}, {transform_indices = @transform_5, window_bounds = array<i64: 1, 8, 256>}]} {
    %cst = arith.constant 0.000000e+00 : bf16
    %0 = vector.broadcast %cst : bf16 to vector<1x18x4xbf16>
    %c0 = arith.constant 0 : index
    %c0_0 = arith.constant 0 : index
    %c0_1 = arith.constant 0 : index
    %c0_2 = arith.constant 0 : index
    %1 = vector.load %arg7[%c0, %c0_0, %c0_1, %c0_2] : memref<1x18x18x4xbf16, #tpu.memory_space<vmem>>, vector<1x1x18x4xbf16>
    %2 = vector.shape_cast %1 : vector<1x1x18x4xbf16> to vector<1x18x4xbf16>
    %3 = vector.shape_cast %0 : vector<1x18x4xbf16> to vector<1x1x18x4xbf16>
    tpu.vector_store %arg7[%c0, %c0_0, %c0_1, %c0_2], %3 {strides = array<i32>} : memref<1x18x18x4xbf16, #tpu.memory_space<vmem>>, vector<1x1x18x4xbf16>,
    %cst_3 = arith.constant 0.000000e+00 : bf16
    %4 = vector.broadcast %cst_3 : bf16 to vector<1x18x4xbf16>
    %c0_4 = arith.constant 0 : index
    %c17 = arith.constant 17 : index
    %c0_5 = arith.constant 0 : index
    %c0_6 = arith.constant 0 : index
    %5 = vector.load %arg7[%c0_4, %c17, %c0_5, %c0_6] : memref<1x18x18x4xbf16, #tpu.memory_space<vmem>>, vector<1x1x18x4xbf16>
    %6 = vector.shape_cast %5 : vector<1x1x18x4xbf16> to vector<1x18x4xbf16>
    %7 = vector.shape_cast %4 : vector<1x18x4xbf16> to vector<1x1x18x4xbf16>
    tpu.vector_store %arg7[%c0_4, %c17, %c0_5, %c0_6], %7 {strides = array<i32>} : memref<1x18x18x4xbf16, #tpu.memory_space<vmem>>, vector<1x1x18x4xbf16>,
    %cst_7 = arith.constant 0.000000e+00 : bf16
    %8 = vector.broadcast %cst_7 : bf16 to vector<18x1x4xbf16>
    %c0_8 = arith.constant 0 : index
    %c0_9 = arith.constant 0 : index
    %c0_10 = arith.constant 0 : index
    %c0_11 = arith.constant 0 : index
    %9 = vector.load %arg7[%c0_8, %c0_9, %c0_10, %c0_11] : memref<1x18x18x4xbf16, #tpu.memory_space<vmem>>, vector<1x18x1x4xbf16>
    %10 = vector.shape_cast %9 : vector<1x18x1x4xbf16> to vector<18x1x4xbf16>
    %11 = vector.shape_cast %8 : vector<18x1x4xbf16> to vector<1x18x1x4xbf16>
    tpu.vector_store %arg7[%c0_8, %c0_9, %c0_10, %c0_11], %11 {strides = array<i32>} : memref<1x18x18x4xbf16, #tpu.memory_space<vmem>>, vector<1x18x1x4xbf16>,
    %cst_12 = arith.constant 0.000000e+00 : bf16
    %12 = vector.broadcast %cst_12 : bf16 to vector<18x1x4xbf16>
    %c0_13 = arith.constant 0 : index
    %c0_14 = arith.constant 0 : index
    %c17_15 = arith.constant 17 : index
    %c0_16 = arith.constant 0 : index
    %13 = vector.load %arg7[%c0_13, %c0_14, %c17_15, %c0_16] : memref<1x18x18x4xbf16, #tpu.memory_space<vmem>>, vector<1x18x1x4xbf16>
    %14 = vector.shape_cast %13 : vector<1x18x1x4xbf16> to vector<18x1x4xbf16>
    %15 = vector.shape_cast %12 : vector<18x1x4xbf16> to vector<1x18x1x4xbf16>
    tpu.vector_store %arg7[%c0_13, %c0_14, %c17_15, %c0_16], %15 {strides = array<i32>} : memref<1x18x18x4xbf16, #tpu.memory_space<vmem>>, vector<1x18x1x4xbf16>,
    %cst_17 = arith.constant 0.000000e+00 : bf16
    %16 = vector.broadcast %cst_17 : bf16 to vector<1x18x8xbf16>
    %c0_18 = arith.constant 0 : index
    %c0_19 = arith.constant 0 : index
    %c0_20 = arith.constant 0 : index
    %c0_21 = arith.constant 0 : index
    %17 = vector.load %arg8[%c0_18, %c0_19, %c0_20, %c0_21] : memref<1x18x18x8xbf16, #tpu.memory_space<vmem>>, vector<1x1x18x8xbf16>
    %18 = vector.shape_cast %17 : vector<1x1x18x8xbf16> to vector<1x18x8xbf16>
    %19 = vector.shape_cast %16 : vector<1x18x8xbf16> to vector<1x1x18x8xbf16>
    tpu.vector_store %arg8[%c0_18, %c0_19, %c0_20, %c0_21], %19 {strides = array<i32>} : memref<1x18x18x8xbf16, #tpu.memory_space<vmem>>, vector<1x1x18x8xbf16>,
    %cst_22 = arith.constant 0.000000e+00 : bf16
    %20 = vector.broadcast %cst_22 : bf16 to vector<1x18x8xbf16>
    %c0_23 = arith.constant 0 : index
    %c17_24 = arith.constant 17 : index
    %c0_25 = arith.constant 0 : index
    %c0_26 = arith.constant 0 : index
    %21 = vector.load %arg8[%c0_23, %c17_24, %c0_25, %c0_26] : memref<1x18x18x8xbf16, #tpu.memory_space<vmem>>, vector<1x1x18x8xbf16>
    %22 = vector.shape_cast %21 : vector<1x1x18x8xbf16> to vector<1x18x8xbf16>
    %23 = vector.shape_cast %20 : vector<1x18x8xbf16> to vector<1x1x18x8xbf16>
    tpu.vector_store %arg8[%c0_23, %c17_24, %c0_25, %c0_26], %23 {strides = array<i32>} : memref<1x18x18x8xbf16, #tpu.memory_space<vmem>>, vector<1x1x18x8xbf16>,
    %cst_27 = arith.constant 0.000000e+00 : bf16
    %24 = vector.broadcast %cst_27 : bf16 to vector<18x1x8xbf16>
    %c0_28 = arith.constant 0 : index
    %c0_29 = arith.constant 0 : index
    %c0_30 = arith.constant 0 : index
    %c0_31 = arith.constant 0 : index
    %25 = vector.load %arg8[%c0_28, %c0_29, %c0_30, %c0_31] : memref<1x18x18x8xbf16, #tpu.memory_space<vmem>>, vector<1x18x1x8xbf16>
    %26 = vector.shape_cast %25 : vector<1x18x1x8xbf16> to vector<18x1x8xbf16>
    %27 = vector.shape_cast %24 : vector<18x1x8xbf16> to vector<1x18x1x8xbf16>
    tpu.vector_store %arg8[%c0_28, %c0_29, %c0_30, %c0_31], %27 {strides = array<i32>} : memref<1x18x18x8xbf16, #tpu.memory_space<vmem>>, vector<1x18x1x8xbf16>,
    %cst_32 = arith.constant 0.000000e+00 : bf16
    %28 = vector.broadcast %cst_32 : bf16 to vector<18x1x8xbf16>
    %c0_33 = arith.constant 0 : index
    %c0_34 = arith.constant 0 : index
    %c17_35 = arith.constant 17 : index
    %c0_36 = arith.constant 0 : index
    %29 = vector.load %arg8[%c0_33, %c0_34, %c17_35, %c0_36] : memref<1x18x18x8xbf16, #tpu.memory_space<vmem>>, vector<1x18x1x8xbf16>
    %30 = vector.shape_cast %29 : vector<1x18x1x8xbf16> to vector<18x1x8xbf16>
    %31 = vector.shape_cast %28 : vector<18x1x8xbf16> to vector<1x18x1x8xbf16>
    tpu.vector_store %arg8[%c0_33, %c0_34, %c17_35, %c0_36], %31 {strides = array<i32>} : memref<1x18x18x8xbf16, #tpu.memory_space<vmem>>, vector<1x18x1x8xbf16>,
    %c0_37 = arith.constant 0 : index
    %c0_38 = arith.constant 0 : index
    %c0_39 = arith.constant 0 : index
    %c0_40 = arith.constant 0 : index
    %32 = vector.load %arg1[%c0_37, %c0_38, %c0_39, %c0_40] : memref<1x16x16x4xbf16, #tpu.memory_space<vmem>>, vector<1x16x16x4xbf16>
    %33 = vector.shape_cast %32 : vector<1x16x16x4xbf16> to vector<16x16x4xbf16>
    %c0_41 = arith.constant 0 : index
    %c1 = arith.constant 1 : index
    %c1_42 = arith.constant 1 : index
    %c0_43 = arith.constant 0 : index
    %34 = vector.load %arg7[%c0_41, %c1, %c1_42, %c0_43] : memref<1x18x18x4xbf16, #tpu.memory_space<vmem>>, vector<1x16x16x4xbf16>
    %35 = vector.shape_cast %34 : vector<1x16x16x4xbf16> to vector<16x16x4xbf16>
    %36 = vector.shape_cast %33 : vector<16x16x4xbf16> to vector<1x16x16x4xbf16>
    tpu.vector_store %arg7[%c0_41, %c1, %c1_42, %c0_43], %36 {strides = array<i32>} : memref<1x18x18x4xbf16, #tpu.memory_space<vmem>>, vector<1x16x16x4xbf16>,
    %c0_44 = arith.constant 0 : index
    %c0_45 = arith.constant 0 : index
    %c0_46 = arith.constant 0 : index
    %c0_47 = arith.constant 0 : index
    %37 = vector.load %arg7[%c0_44, %c0_45, %c0_46, %c0_47] : memref<1x18x18x4xbf16, #tpu.memory_space<vmem>>, vector<1x16x16x4xbf16>
    %38 = vector.shape_cast %37 : vector<1x16x16x4xbf16> to vector<16x16x4xbf16>
    %39 = vector.shape_cast %38 : vector<16x16x4xbf16> to vector<256x4xbf16>
    %c0_48 = arith.constant 0 : index
    %c0_49 = arith.constant 0 : index
    %c1_50 = arith.constant 1 : index
    %c0_51 = arith.constant 0 : index
    %40 = vector.load %arg7[%c0_48, %c0_49, %c1_50, %c0_51] : memref<1x18x18x4xbf16, #tpu.memory_space<vmem>>, vector<1x16x16x4xbf16>
    %41 = vector.shape_cast %40 : vector<1x16x16x4xbf16> to vector<16x16x4xbf16>
    %42 = vector.shape_cast %41 : vector<16x16x4xbf16> to vector<256x4xbf16>
    %c0_52 = arith.constant 0 : index
    %c0_53 = arith.constant 0 : index
    %c2 = arith.constant 2 : index
    %c0_54 = arith.constant 0 : index
    %43 = vector.load %arg7[%c0_52, %c0_53, %c2, %c0_54] : memref<1x18x18x4xbf16, #tpu.memory_space<vmem>>, vector<1x16x16x4xbf16>
    %44 = vector.shape_cast %43 : vector<1x16x16x4xbf16> to vector<16x16x4xbf16>
    %45 = vector.shape_cast %44 : vector<16x16x4xbf16> to vector<256x4xbf16>
    %c0_55 = arith.constant 0 : index
    %c1_56 = arith.constant 1 : index
    %c0_57 = arith.constant 0 : index
    %c0_58 = arith.constant 0 : index
    %46 = vector.load %arg7[%c0_55, %c1_56, %c0_57, %c0_58] : memref<1x18x18x4xbf16, #tpu.memory_space<vmem>>, vector<1x16x16x4xbf16>
    %47 = vector.shape_cast %46 : vector<1x16x16x4xbf16> to vector<16x16x4xbf16>
    %48 = vector.shape_cast %47 : vector<16x16x4xbf16> to vector<256x4xbf16>
    %c0_59 = arith.constant 0 : index
    %c1_60 = arith.constant 1 : index
    %c1_61 = arith.constant 1 : index
    %c0_62 = arith.constant 0 : index
    %49 = vector.load %arg7[%c0_59, %c1_60, %c1_61, %c0_62] : memref<1x18x18x4xbf16, #tpu.memory_space<vmem>>, vector<1x16x16x4xbf16>
    %50 = vector.shape_cast %49 : vector<1x16x16x4xbf16> to vector<16x16x4xbf16>
    %51 = vector.shape_cast %50 : vector<16x16x4xbf16> to vector<256x4xbf16>
    %c0_63 = arith.constant 0 : index
    %c1_64 = arith.constant 1 : index
    %c2_65 = arith.constant 2 : index
    %c0_66 = arith.constant 0 : index
    %52 = vector.load %arg7[%c0_63, %c1_64, %c2_65, %c0_66] : memref<1x18x18x4xbf16, #tpu.memory_space<vmem>>, vector<1x16x16x4xbf16>
    %53 = vector.shape_cast %52 : vector<1x16x16x4xbf16> to vector<16x16x4xbf16>
    %54 = vector.shape_cast %53 : vector<16x16x4xbf16> to vector<256x4xbf16>
    %c0_67 = arith.constant 0 : index
    %c2_68 = arith.constant 2 : index
    %c0_69 = arith.constant 0 : index
    %c0_70 = arith.constant 0 : index
    %55 = vector.load %arg7[%c0_67, %c2_68, %c0_69, %c0_70] : memref<1x18x18x4xbf16, #tpu.memory_space<vmem>>, vector<1x16x16x4xbf16>
    %56 = vector.shape_cast %55 : vector<1x16x16x4xbf16> to vector<16x16x4xbf16>
    %57 = vector.shape_cast %56 : vector<16x16x4xbf16> to vector<256x4xbf16>
    %c0_71 = arith.constant 0 : index
    %c2_72 = arith.constant 2 : index
    %c1_73 = arith.constant 1 : index
    %c0_74 = arith.constant 0 : index
    %58 = vector.load %arg7[%c0_71, %c2_72, %c1_73, %c0_74] : memref<1x18x18x4xbf16, #tpu.memory_space<vmem>>, vector<1x16x16x4xbf16>
    %59 = vector.shape_cast %58 : vector<1x16x16x4xbf16> to vector<16x16x4xbf16>
    %60 = vector.shape_cast %59 : vector<16x16x4xbf16> to vector<256x4xbf16>
    %c0_75 = arith.constant 0 : index
    %c2_76 = arith.constant 2 : index
    %c2_77 = arith.constant 2 : index
    %c0_78 = arith.constant 0 : index
    %61 = vector.load %arg7[%c0_75, %c2_76, %c2_77, %c0_78] : memref<1x18x18x4xbf16, #tpu.memory_space<vmem>>, vector<1x16x16x4xbf16>
    %62 = vector.shape_cast %61 : vector<1x16x16x4xbf16> to vector<16x16x4xbf16>
    %63 = vector.shape_cast %62 : vector<16x16x4xbf16> to vector<256x4xbf16>
    %64 = tpu.concatenate %39, %42, %45, %48, %51, %54, %57, %60, %63 in 1 : vector<256x4xbf16>, vector<256x4xbf16>, vector<256x4xbf16>, vector<256x4xbf16>, vector<256x4xbf16>, vector<256x4xbf16>, vector<256x4xbf16>, vector<256x4xbf16>, vector<256x4xbf16> -> vector<256x36xbf16>
    %c0_79 = arith.constant 0 : index
    %c0_80 = arith.constant 0 : index
    %65 = vector.load %arg2[%c0_79, %c0_80] : memref<36x8xbf16, #tpu.memory_space<vmem>>, vector<36x8xbf16>
    %cst_81 = arith.constant dense<0.000000e+00> : vector<256x8xf32>
    %66 = tpu.matmul %64, %65, %cst_81 {dimension_numbers = #tpu.dot_dimension_numbers<[1], [0], [0], [1], [0, 0, 1, 1], [], []>} : vector<256x36xbf16>, vector<36x8xbf16>, vector<256x8xf32> -> vector<256x8xf32>
    %c0_82 = arith.constant 0 : index
    %c0_83 = arith.constant 0 : index
    %67 = vector.load %arg4[%c0_82, %c0_83] : memref<1x8xf32, #tpu.memory_space<vmem>>, vector<1x8xf32>
    %68 = vector.broadcast %67 : vector<1x8xf32> to vector<256x8xf32>
    %69 = arith.addf %66, %68 : vector<256x8xf32>
    %cst_84 = arith.constant 0.000000e+00 : f32
    %70 = vector.broadcast %cst_84 : f32 to vector<256x8xf32>
    %71 = arith.maximumf %69, %70 : vector<256x8xf32>
    %72 = vector.shape_cast %71 : vector<256x8xf32> to vector<16x16x8xf32>
    %73 = arith.truncf %72 : vector<16x16x8xf32> to vector<16x16x8xbf16>
    %c0_85 = arith.constant 0 : index
    %c1_86 = arith.constant 1 : index
    %c1_87 = arith.constant 1 : index
    %c0_88 = arith.constant 0 : index
    %74 = vector.load %arg8[%c0_85, %c1_86, %c1_87, %c0_88] : memref<1x18x18x8xbf16, #tpu.memory_space<vmem>>, vector<1x16x16x8xbf16>
    %75 = vector.shape_cast %74 : vector<1x16x16x8xbf16> to vector<16x16x8xbf16>
    %76 = vector.shape_cast %73 : vector<16x16x8xbf16> to vector<1x16x16x8xbf16>
    tpu.vector_store %arg8[%c0_85, %c1_86, %c1_87, %c0_88], %76 {strides = array<i32>} : memref<1x18x18x8xbf16, #tpu.memory_space<vmem>>, vector<1x16x16x8xbf16>,
    %c0_89 = arith.constant 0 : index
    %c0_90 = arith.constant 0 : index
    %c0_91 = arith.constant 0 : index
    %c0_92 = arith.constant 0 : index
    %77 = vector.load %arg8[%c0_89, %c0_90, %c0_91, %c0_92] : memref<1x18x18x8xbf16, #tpu.memory_space<vmem>>, vector<1x16x16x8xbf16>
    %78 = vector.shape_cast %77 : vector<1x16x16x8xbf16> to vector<16x16x8xbf16>
    %79 = vector.shape_cast %78 : vector<16x16x8xbf16> to vector<256x8xbf16>
    %c0_93 = arith.constant 0 : index
    %c0_94 = arith.constant 0 : index
    %c1_95 = arith.constant 1 : index
    %c0_96 = arith.constant 0 : index
    %80 = vector.load %arg8[%c0_93, %c0_94, %c1_95, %c0_96] : memref<1x18x18x8xbf16, #tpu.memory_space<vmem>>, vector<1x16x16x8xbf16>
    %81 = vector.shape_cast %80 : vector<1x16x16x8xbf16> to vector<16x16x8xbf16>
    %82 = vector.shape_cast %81 : vector<16x16x8xbf16> to vector<256x8xbf16>
    %c0_97 = arith.constant 0 : index
    %c0_98 = arith.constant 0 : index
    %c2_99 = arith.constant 2 : index
    %c0_100 = arith.constant 0 : index
    %83 = vector.load %arg8[%c0_97, %c0_98, %c2_99, %c0_100] : memref<1x18x18x8xbf16, #tpu.memory_space<vmem>>, vector<1x16x16x8xbf16>
    %84 = vector.shape_cast %83 : vector<1x16x16x8xbf16> to vector<16x16x8xbf16>
    %85 = vector.shape_cast %84 : vector<16x16x8xbf16> to vector<256x8xbf16>
    %c0_101 = arith.constant 0 : index
    %c1_102 = arith.constant 1 : index
    %c0_103 = arith.constant 0 : index
    %c0_104 = arith.constant 0 : index
    %86 = vector.load %arg8[%c0_101, %c1_102, %c0_103, %c0_104] : memref<1x18x18x8xbf16, #tpu.memory_space<vmem>>, vector<1x16x16x8xbf16>
    %87 = vector.shape_cast %86 : vector<1x16x16x8xbf16> to vector<16x16x8xbf16>
    %88 = vector.shape_cast %87 : vector<16x16x8xbf16> to vector<256x8xbf16>
    %c0_105 = arith.constant 0 : index
    %c1_106 = arith.constant 1 : index
    %c1_107 = arith.constant 1 : index
    %c0_108 = arith.constant 0 : index
    %89 = vector.load %arg8[%c0_105, %c1_106, %c1_107, %c0_108] : memref<1x18x18x8xbf16, #tpu.memory_space<vmem>>, vector<1x16x16x8xbf16>
    %90 = vector.shape_cast %89 : vector<1x16x16x8xbf16> to vector<16x16x8xbf16>
    %91 = vector.shape_cast %90 : vector<16x16x8xbf16> to vector<256x8xbf16>
    %c0_109 = arith.constant 0 : index
    %c1_110 = arith.constant 1 : index
    %c2_111 = arith.constant 2 : index
    %c0_112 = arith.constant 0 : index
    %92 = vector.load %arg8[%c0_109, %c1_110, %c2_111, %c0_112] : memref<1x18x18x8xbf16, #tpu.memory_space<vmem>>, vector<1x16x16x8xbf16>
    %93 = vector.shape_cast %92 : vector<1x16x16x8xbf16> to vector<16x16x8xbf16>
    %94 = vector.shape_cast %93 : vector<16x16x8xbf16> to vector<256x8xbf16>
    %c0_113 = arith.constant 0 : index
    %c2_114 = arith.constant 2 : index
    %c0_115 = arith.constant 0 : index
    %c0_116 = arith.constant 0 : index
    %95 = vector.load %arg8[%c0_113, %c2_114, %c0_115, %c0_116] : memref<1x18x18x8xbf16, #tpu.memory_space<vmem>>, vector<1x16x16x8xbf16>
    %96 = vector.shape_cast %95 : vector<1x16x16x8xbf16> to vector<16x16x8xbf16>
    %97 = vector.shape_cast %96 : vector<16x16x8xbf16> to vector<256x8xbf16>
    %c0_117 = arith.constant 0 : index
    %c2_118 = arith.constant 2 : index
    %c1_119 = arith.constant 1 : index
    %c0_120 = arith.constant 0 : index
    %98 = vector.load %arg8[%c0_117, %c2_118, %c1_119, %c0_120] : memref<1x18x18x8xbf16, #tpu.memory_space<vmem>>, vector<1x16x16x8xbf16>
    %99 = vector.shape_cast %98 : vector<1x16x16x8xbf16> to vector<16x16x8xbf16>
    %100 = vector.shape_cast %99 : vector<16x16x8xbf16> to vector<256x8xbf16>
    %c0_121 = arith.constant 0 : index
    %c2_122 = arith.constant 2 : index
    %c2_123 = arith.constant 2 : index
    %c0_124 = arith.constant 0 : index
    %101 = vector.load %arg8[%c0_121, %c2_122, %c2_123, %c0_124] : memref<1x18x18x8xbf16, #tpu.memory_space<vmem>>, vector<1x16x16x8xbf16>
    %102 = vector.shape_cast %101 : vector<1x16x16x8xbf16> to vector<16x16x8xbf16>
    %103 = vector.shape_cast %102 : vector<16x16x8xbf16> to vector<256x8xbf16>
    %104 = tpu.concatenate %79, %82, %85, %88, %91, %94, %97, %100, %103 in 1 : vector<256x8xbf16>, vector<256x8xbf16>, vector<256x8xbf16>, vector<256x8xbf16>, vector<256x8xbf16>, vector<256x8xbf16>, vector<256x8xbf16>, vector<256x8xbf16>, vector<256x8xbf16> -> vector<256x72xbf16>
    %c0_125 = arith.constant 0 : index
    %c0_126 = arith.constant 0 : index
    %105 = vector.load %arg3[%c0_125, %c0_126] : memref<72x8xbf16, #tpu.memory_space<vmem>>, vector<72x8xbf16>
    %cst_127 = arith.constant dense<0.000000e+00> : vector<256x8xf32>
    %106 = tpu.matmul %104, %105, %cst_127 {dimension_numbers = #tpu.dot_dimension_numbers<[1], [0], [0], [1], [0, 0, 1, 1], [], []>} : vector<256x72xbf16>, vector<72x8xbf16>, vector<256x8xf32> -> vector<256x8xf32>
    %c0_128 = arith.constant 0 : index
    %c0_129 = arith.constant 0 : index
    %107 = vector.load %arg5[%c0_128, %c0_129] : memref<1x8xf32, #tpu.memory_space<vmem>>, vector<1x8xf32>
    %108 = vector.broadcast %107 : vector<1x8xf32> to vector<256x8xf32>
    %109 = arith.addf %106, %108 : vector<256x8xf32>
    %110 = tpu.transpose %109, [1, 0] : vector<256x8xf32> -> vector<8x256xf32>
    %c0_130 = arith.constant 0 : index
    %c0_131 = arith.constant 0 : index
    %c0_132 = arith.constant 0 : index
    %111 = vector.load %arg6[%c0_130, %c0_131, %c0_132] : memref<1x8x256xf32, #tpu.memory_space<vmem>>, vector<1x8x256xf32>
    %112 = vector.shape_cast %111 : vector<1x8x256xf32> to vector<8x256xf32>
    %113 = vector.shape_cast %110 : vector<8x256xf32> to vector<1x8x256xf32>
    tpu.vector_store %arg6[%c0_130, %c0_131, %c0_132], %113 {strides = array<i32>} : memref<1x8x256xf32, #tpu.memory_space<vmem>>, vector<1x8x256xf32>,
    return
  }
  func.func @transform_0(%arg0: i32) -> (i32, i32, i32, i32) {
    %c0_i32 = arith.constant 0 : i32
    %c0_i32_0 = arith.constant 0 : i32
    %c0_i32_1 = arith.constant 0 : i32
    %c0_i32_2 = arith.constant 0 : i32
    return %arg0, %c0_i32, %c0_i32_0, %c0_i32_1 : i32, i32, i32, i32
  }
  func.func @transform_1(%arg0: i32) -> (i32, i32) {
    %c0_i32 = arith.constant 0 : i32
    %c0_i32_0 = arith.constant 0 : i32
    %c0_i32_1 = arith.constant 0 : i32
    return %c0_i32, %c0_i32_0 : i32, i32
  }
  func.func @transform_2(%arg0: i32) -> (i32, i32) {
    %c0_i32 = arith.constant 0 : i32
    %c0_i32_0 = arith.constant 0 : i32
    %c0_i32_1 = arith.constant 0 : i32
    return %c0_i32, %c0_i32_0 : i32, i32
  }
  func.func @transform_3(%arg0: i32) -> (i32, i32) {
    %c0_i32 = arith.constant 0 : i32
    %c0_i32_0 = arith.constant 0 : i32
    %c0_i32_1 = arith.constant 0 : i32
    return %c0_i32, %c0_i32_0 : i32, i32
  }
  func.func @transform_4(%arg0: i32) -> (i32, i32) {
    %c0_i32 = arith.constant 0 : i32
    %c0_i32_0 = arith.constant 0 : i32
    %c0_i32_1 = arith.constant 0 : i32
    return %c0_i32, %c0_i32_0 : i32, i32
  }
  func.func @transform_5(%arg0: i32) -> (i32, i32, i32) {
    %c0_i32 = arith.constant 0 : i32
    %c0_i32_0 = arith.constant 0 : i32
    %c0_i32_1 = arith.constant 0 : i32
    return %arg0, %c0_i32, %c0_i32_0 : i32, i32, i32
  }
}

</mosaic_0001>

<bundles_post_ra>
// kernel: tpu_custom_call.1
= control target key start
LH: loop header
LB: loop body
LE: loop exit
PB: predicated region body
PF: predicated region fallthrough
CT: control target
= control target key end

     0   :  { %10 = vsyncpa [#allocation5], 0  ;;  %s12657_s0 = inlined_call_operand.vmem [shape: bf16[2,16,16,4], index: 0, kind: input, shape index: {}]   ;;  %s12658_s1 = inlined_call_operand.vmem [shape: bf16[36,8], index: 1, kind: input, shape index: {}]   ;;  %s12659_s2 = inlined_call_operand.vmem [shape: bf16[72,8], index: 2, kind: input, shape index: {}]   ;;  %s12660_s3 = inlined_call_operand.vmem [shape: f32[1,8], index: 3, kind: input, shape index: {}]   ;;  %s12661_s4 = inlined_call_operand.vmem [shape: f32[1,8], index: 4, kind: input, shape index: {}]   ;;  %s12662_s5 = inlined_call_operand.hbm [shape: f32[2,8,256], index: 5, kind: output, shape index: {}]  }
   0x1   :  { %12 = vsyncpa [#allocation5 + $0x1], 0  ;;  %s8694_s18 = smov 0   ;;  %s8696_s19 = smov 0  }
   0x2   :  { %s8698_s20 = smov 0   ;;  %s8700_s21 = smov 0  }
   0x3 LB: > { %s8715_s22 = sadd.s32 4294967295, %s8648_s21   ;;  %s7788_s23 = sadd.s32 4294967294, %s8648_s21   ;;  %s8648_s21 = sphi %s8700_s21, %s12787_s21   ;;  %s8644_s20 = sphi %s8698_s20, %s12786_s20   ;;  %s8640_s19 = sphi %s8696_s19, %s12785_s19   ;;  %s8636_s18 = sphi %s8694_s18, %s12784_s18  }
   0x4   : > { %s8719_s24 = sadd.s32 1, %s8648_s21   ;;  %s135_s25 = sadd.s32 1, %s8644_s20 }
   0x5   : > { %s132_s26 = ssub.s32 %s8648_s21, %s8719_s24  ;;  %p145_p0 = scmp.ne.s32.totalorder %s8644_s20, %s8640_s19 }
   0x6   : > { %p133_p1 = scmp.eq.s32.totalorder %s132_s26, 0  ;;  %p146_p2 = scmp.eq.s32.totalorder %s8715_s22, 1 }
   0x7   : > { %p151_p3 = scmp.ne.s32.totalorder %s8640_s19, %s8636_s18  ;;  %p152_p4 = scmp.eq.s32.totalorder %s7788_s23, 1 }
   0x8   : > { %s8730_s27 = scalar_select %p133_p1, %s8644_s20, %s135_s25  }
   0x9   : > { %p8732_p5 = por %p146_p2, %p145_p0  ;;  %p8736_p6 = por %p152_p4, %p151_p3 }
   0xa   : > { %p7791_p7 = scmp.ge.s32.totalorder %s8648_s21, 1  ;;  %p190_p8 = scmp.lt.s32.totalorder %s8648_s21, 3 }
   0xc   : > { %p191_p9 = pnand %p7791_p7, %p190_p8 }
   0xe   : > { %194 = sbr.rel (%p191_p9) target bundleno = 1325 (0x52d), region = 40 }
  0x15   : > { %vm224_vm0 = vcmask 27648   ;;  %vm227_vm1 = vcmask 24576   ;;  %vm12669_vm2 = vsmask.f32 256  ;;  %v12663_v0 = vmov 0   ;;  %p218_p10 = scmp.lt.s32.totalorder %s8715_s22, 1 }
  0x16   : > { %225 = vst.msk [vmem:[#allocation2] sm:$0xf] %vm224_vm0, %v12663_v0  ;;  %226 = vst.msk [vmem:[#allocation2 + $0x4] sm:$0xf] %vm224_vm0, %v12663_v0  ;;  %vm12667_vm4 = vcmask 60416   ;;  %vm1434_vm7 = vcmask 1042432  }
  0x17   : > { %228 = vst.msk [vmem:[#allocation2 + $0x8] sm:$0x1] %vm227_vm1, %v12663_v0  ;;  %vm8750_vm3 = vmand %vm227_vm1, %vm12669_vm2  ;;  %vm12668_vm5 = vsmask.f32 7938  ;;  %v239_v2 = vld [vmem:[#allocation2 + $0xc] sm:$0x1] }
  0x18   : > { %230 = vst.msk [vmem:[#allocation2 + $0xcc] sm:$0xf] %vm224_vm0, %v12663_v0  ;;  %231 = vst.msk [vmem:[#allocation2 + $0xd0] sm:$0xf] %vm224_vm0, %v12663_v0  ;;  %s219_s30 = scalar_select %p218_p10, %s8715_s22, 1  ;;  %v240_v3 = vsel %vm8750_vm3, 0, %v239_v2 }
  0x19   : > { %232 = vst.msk [vmem:[#allocation2 + $0xd4] sm:$0x1] %vm227_vm1, %v12663_v0  ;;  %v242_v4 = vld [vmem:[#allocation2 + $0x18] sm:$0x1]  ;;  %v245_v5 = vld [vmem:[#allocation2 + $0x24] sm:$0x1]  ;;  %vm8778_vm6 = vmand %vm227_vm1, %vm12668_vm5 }
  0x1a   : > { %347 = vst.msk [vmem:[#allocation3] sm:$0xf] %vm12667_vm4, %v12663_v0  ;;  %348 = vst.msk [vmem:[#allocation3 + $0x4] sm:$0xf] %vm12667_vm4, %v12663_v0  ;;  %v243_v6 = vsel %vm8750_vm3, 0, %v242_v4  ;;  %v246_v7 = vsel %vm8750_vm3, 0, %v245_v5 }
  0x1b   : > { %352 = vst.msk [vmem:[#allocation3 + $0xcc] sm:$0xf] %vm12667_vm4, %v12663_v0  ;;  %353 = vst.msk [vmem:[#allocation3 + $0xd0] sm:$0xf] %vm12667_vm4, %v12663_v0  ;;  %s8258_s6 = sshll.u32 %s219_s30, 7  ;;  %vm1435_vm8 = vcmask 1046532  }
  0x1c   : > { %241 = vst [vmem:[#allocation2 + $0xc] sm:$0x1] %v240_v3  ;;  %244 = vst [vmem:[#allocation2 + $0x18] sm:$0x1] %v243_v6  ;;  %v295_v9 = vld [vmem:[#allocation2 + $0x14] sm:$0x1]  ;;  %s8785_s9 = scalar_lea.vmem %s12657_s0, %s8258_s6 }
  0x1d   : > { %247 = vst [vmem:[#allocation2 + $0x24] sm:$0x1] %v246_v7  ;;  %v298_v10 = vld [vmem:[#allocation2 + $0x20] sm:$0x1]  ;;  %vm498_vm9 = vsmask.f32 4368  ;;  %vm8804_vm10 = vmor %vm1434_vm7, %vm1435_vm8 }
  0x1e   : > { %v296_v11 = vsel %vm8778_vm6, 0, %v295_v9  ;;  %v299_v12 = vsel %vm8778_vm6, 0, %v298_v10  ;;  %v466_v13 = vld [vmem:[%s8785_s9] sm:$0xf]  ;;  %v467_v14 = vld [vmem:[%s8785_s9 + $0x4] sm:$0xf]  ;;  %vm8810_vm11 = vmand %vm224_vm0, %vm12668_vm5 }
  0x1f   : > { %v468_v15 = vld [vmem:[%s8785_s9 + $0x8] sm:$0xf]  ;;  %297 = vst [vmem:[#allocation2 + $0x14] sm:$0x1] %v296_v11  ;;  %300 = vst [vmem:[#allocation2 + $0x20] sm:$0x1] %v299_v12 }
  0x20   : > { %v292_v16 = vld [vmem:[#allocation2 + $0x8] sm:$0x1]  ;;  %v8794_v17 = vld [vmem:[#allocation2 + $0x4] sm:$0xf]  ;;  %v1370_v18 = vld [vmem:[#allocation2] sm:$0xe] }
  0x21   : > { %v293_v19 = vsel %vm8778_vm6, 0, %v292_v16  ;;  %v7795_v20 = vrot.slane %v1370_v18, 9  ;;  %v1439_v21 = vrot.slane %v8794_v17, 5  ;;  %v236_v22 = vld [vmem:[#allocation2] sm:$0x1]  ;;  %v501_v23 = vshrl.u32 %v466_v13, 16  ;;  %vm8816_vm12 = vmor %vm12669_vm2, %vm498_vm9 }
  0x22   : > { %294 = vst [vmem:[#allocation2 + $0x8] sm:$0x1] %v293_v19  ;;  %v237_v24 = vsel %vm8750_vm3, 0, %v236_v22  ;;  %v504_v25 = vshll.u32 %v466_v13, 16  ;;  %v509_v26 = vshrl.u32 %v467_v14, 16  ;;  %v512_v27 = vshll.u32 %v467_v14, 16 }
  0x23   : > { %v469_v28 = vld [vmem:[%s8785_s9 + $0xc] sm:$0xf]  ;;  %238 = vst [vmem:[#allocation2] sm:$0x1] %v237_v24  ;;  %v503_v30 = vrot.slane %v501_v23, 7  ;;  %v518_v31 = vshrl.u32 %v468_v15, 16  ;;  %v1440_v44 = vsel %vm8804_vm10, %v7795_v20, %v1439_v21 }
  0x24   : > { %v511_v33 = vrot.slane %v509_v26, 7  ;;  %v823_v34 = vld [vmem:[#allocation2 + $0xc] sm:$0xf]  ;;  %v521_v35 = vshll.u32 %v468_v15, 16  ;;  %v526_v36 = vshrl.u32 %v469_v28, 16  ;;  %v529_v37 = vshll.u32 %v469_v28, 16 }
  0x25   : > { %v1441_v38 = vrot.slane %v1439_v21, 4  ;;  %v506_v40 = vor.u32 %v504_v25, %v503_v30  ;;  %v507_v41 = vrot.slane %v503_v30, 4  ;;  %v520_v42 = vrot.slane %v518_v31, 7  ;;  %v470_v43 = vld [vmem:[%s8785_s9 + $0x10] sm:$0xf]  ;;  %s8651_s10 = smov 8  }
  0x26   : > { %v514_v45 = vor.u32 %v512_v27, %v511_v33  ;;  %v528_v46 = vrot.slane %v526_v36, 7  ;;  %v830_v47 = vld [vmem:[#allocation2 + $0x18] sm:$0xf]  ;;  %v471_v48 = vld [vmem:[%s8785_s9 + $0x14] sm:$0xf]  ;;  %v535_v49 = vshrl.u32 %v470_v43, 16 }
  0x27   : > { %v824_v50 = vsel %vm8810_vm11, %v506_v40, %v823_v34  ;;  %v523_v51 = vor.u32 %v521_v35, %v520_v42  ;;  %v524_v52 = vrot.slane %v520_v42, 4  ;;  %v538_v53 = vshll.u32 %v470_v43, 16  ;;  %v837_v58 = vld [vmem:[#allocation2 + $0x24] sm:$0xf]  ;;  %v827_v12 = vld [vmem:[#allocation2 + $0x14] sm:$0x1] }
  0x28   : > { %v515_v54 = vsel %vm8816_vm12, %v507_v41, %v514_v45  ;;  %v516_v55 = vrot.slane %v511_v33, 4  ;;  %825 = vst [vmem:[#allocation2 + $0xc] sm:$0xf] %v824_v50  ;;  %v531_v56 = vor.u32 %v529_v37, %v528_v46  ;;  %v537_v57 = vrot.slane %v535_v49, 7  ;;  %v834_v18 = vld [vmem:[#allocation2 + $0x20] sm:$0x1] }
  0x29   : > { %v967_v59 = vld [vmem:[#allocation2 + $0x8] sm:$0x1]  ;;  %826 = vst.msk [vmem:[#allocation2 + $0x10] sm:$0xf] %vm224_vm0, %v515_v54  ;;  %v831_v60 = vsel %vm8810_vm11, %v523_v51, %v830_v47  ;;  %v543_v61 = vshrl.u32 %v471_v48, 16  ;;  %v546_v62 = vshll.u32 %v471_v48, 16 }
  0x2a   : > { %v996_v63 = vshll.u32 %v8794_v17, 16  ;;  %v1442_v2 = vrot.slane %v967_v59, 5  ;;  %v532_v3 = vsel %vm8816_vm12, %v524_v52, %v531_v56  ;;  %v533_v4 = vrot.slane %v528_v46, 4  ;;  %832 = vst [vmem:[#allocation2 + $0x18] sm:$0xf] %v831_v60  ;;  %s8652_s11 = smov 12  }
  0x2b   : > { %v540_v5 = vor.u32 %v538_v53, %v537_v57  ;;  %v935_v6 = vld [vmem:[#allocation2] sm:$0xf]  ;;  %833 = vst.msk [vmem:[#allocation2 + $0x1c] sm:$0xf] %vm224_vm0, %v532_v3  ;;  %v541_v7 = vrot.slane %v537_v57, 4  ;;  %v8835_v9 = vrot.slane %v543_v61, 7  ;;  %v828_v25 = vsel %vm8750_vm3, %v516_v55, %v827_v12 }
  0x2c   : > { %v987_v10 = vshrl.u32 %v935_v6, 16  ;;  %v990_v11 = vshll.u32 %v935_v6, 16  ;;  %v1006_v13 = vshll.u32 %v967_v59, 16  ;;  %v1443_v14 = vsel %vm8804_vm10, %v1441_v38, %v1442_v2  ;;  %829 = vst [vmem:[#allocation2 + $0x14] sm:$0x1] %v828_v25  ;;  %s8653_s12 = smov 24  }
  0x2d   : > { %v838_v15 = vsel %vm8810_vm11, %v540_v5, %v837_v58  ;;  %v1000_v16 = vshrl.u32 %v8794_v17, 16  ;;  %v7875_v19 = vcombine.low %v1440_v44, %v1443_v14  ;;  %v548_v20 = vor.u32 %v546_v62, %v8835_v9  ;;  %s8654_s13 = smov 4   ;;  %s8655_s14 = smov 20  }
  0x2e   : > { %839 = vst [vmem:[#allocation2 + $0x24] sm:$0xf] %v838_v15  ;;  %v989_v21 = vrot.slane %v987_v10, 4  ;;  %v8843_v22 = vrot.slane %v996_v63, 5  ;;  %v992_v23 = vrot.slane %v990_v11, 5  ;;  %v835_v27 = vsel %vm8750_vm3, %v533_v4, %v834_v18  ;;  %s8656_s15 = smov 32  }
  0x2f   : > { %v1002_v24 = vrot.slane %v1000_v16, 4  ;;  %2958 = vrot.lane.b32.xlu1 %v7875_v19, %s8651_s10  ;;  %v1549_v26 = vld [vmem:[#allocation2 + $0xc] sm:$0xf]  ;;  %v549_v17 = vsel %vm8816_vm12, %v541_v7, %v548_v20  ;;  %vm983_vm13 = vsmask.f32 3328  ;;  %v550_v33 = vrot.slane %v8835_v9, 4 }
  0x30   : > { %vm984_vm14 = vsmask.f32 7440  ;;  %v8852_v28 = vld [vmem:[#allocation2 + $0x10] sm:$0xf]  ;;  %v1598_v30 = vshrl.u32 %v1549_v26, 16  ;;  %v1601_v31 = vshll.u32 %v1549_v26, 16  ;;  %v993_v40 = vor.u32 %v992_v23, %v989_v21 }
  0x31   : > { %840 = vst.msk [vmem:[#allocation2 + $0x28] sm:$0xf] %vm224_vm0, %v549_v17  ;;  %v1008_v34 = vrot.slane %v1006_v13, 5  ;;  %836 = vst [vmem:[#allocation2 + $0x20] sm:$0x1] %v835_v27  ;;  %v1611_v35 = vshrl.u32 %v8852_v28, 16  ;;  %v7891_v36 = vcombine.low %v1549_v26, %v8852_v28  ;;  %v1003_v41 = vor.u32 %v1002_v24, %v8843_v22 }
  0x32   : > { %v1551_v37 = vld [vmem:[#allocation2 + $0x18] sm:$0xf]  ;;  %v8861_v42 = vrot.slane %v1598_v30, 4  ;;  %v8863_v43 = vrot.slane %v1601_v31, 5  ;;  %v8865_v44 = vld [vmem:[#allocation2 + $0x1c] sm:$0xf]  ;;  %vm8891_vm15 = vmor %vm983_vm13, %vm984_vm14 }
  0x33   : > { %v8858_v38 = vld [vmem:[#allocation2 + $0x18] sm:$0xf]  ;;  %v1622_v45 = vshrl.u32 %v1551_v37, 16  ;;  %v1625_v46 = vshll.u32 %v1551_v37, 16  ;;  %v8867_v47 = vld [vmem:[#allocation2 + $0x10] sm:$0xf]  ;;  %3054 = vrot.lane.b32.xlu0 %v7891_v36, %s8652_s11  ;;  %v7892_v51 = vcombine.low %v1551_v37, %v8865_v44 }
  0x34   : > { %v1371_v48 = vld [vmem:[#allocation2 + $0xc] sm:$0xe]  ;;  %v1607_v49 = vshll.u32 %v8852_v28, 16  ;;  %v8870_v50 = vrot.slane %v1611_v35, 4  ;;  %v8874_v52 = vld [vmem:[#allocation2 + $0x1c] sm:$0xf]  ;;  %v1604_v3 = vor.u32 %v8863_v43, %v8861_v42 }
  0x35   : > { %v2207_v53 = vshrl.u32 %v8858_v38, 16  ;;  %v1635_v54 = vshrl.u32 %v8865_v44, 16  ;;  %v8878_v55 = vrot.slane %v1622_v45, 4  ;;  %v8880_v56 = vrot.slane %v1625_v46, 5  ;;  %v2160_v58 = vld [vmem:[#allocation2 + $0x24] sm:$0xf]  ;;  %3056 = vrot.lane.b32.xlu1 %v7892_v51, %s8652_s11 }
  0x36   : > { %v2210_v57 = vshll.u32 %v8858_v38, 16  ;;  %v2220_v60 = vshrl.u32 %v8874_v52, 16  ;;  %v7939_v61 = vcombine.low %v8858_v38, %v8874_v52  ;;  %v2231_v62 = vshrl.u32 %v2160_v58, 16  ;;  %v1981_v2 = vld [vmem:[#allocation2 + $0xc] sm:$0xe]  ;;  %s8657_s16 = smov 16  }
  0x37   : > { %v8884_v59 = vrot.slane %v2207_v53, 4  ;;  %v2234_v4 = vshll.u32 %v2160_v58, 16  ;;  %v994_v5 = vrot.slane %v993_v40, 4  ;;  %v8897_v6 = vld [vmem:[#allocation2 + $0x14] sm:$0x1]  ;;  %v1004_v12 = vrot.slane %v1003_v41, 4 }
  0x38   : > { %v1982_v7 = vld [vmem:[#allocation2 + $0x18] sm:$0xe]  ;;  %3310 = vrot.lane.b32.xlu0 %v7939_v61, %s8653_s12  ;;  %v8900_v10 = vld [vmem:[#allocation2 + $0x28] sm:$0xf]  ;;  %v8902_v11 = vrot.slane %v2231_v62, 4  ;;  %v7796_v13 = vrot.slane %v1371_v48, 9  ;;  %v1628_v61 = vor.u32 %v8880_v56, %v8878_v55 }
  0x39   : > { %v1446_v14 = vrot.slane %v8867_v47, 5  ;;  %v8905_v15 = vrot.slane %v2234_v4, 5  ;;  %v2244_v16 = vshrl.u32 %v8900_v10, 16  ;;  %v7940_v18 = vcombine.low %v2160_v58, %v8900_v10  ;;  %v8912_v20 = vld [vmem:[#allocation2 + $0x14] sm:$0x1]  ;;  %s8658_s17 = smov 28  }
  0x3a   : > { %v999_v19 = vsel %vm8891_vm15, %v994_v5, %v8843_v22  ;;  %v1582_v21 = vld [vmem:[#allocation2 + $0x20] sm:$0x1]  ;;  %v1009_v23 = vsel %vm8891_vm15, %v1004_v12, %v1008_v34  ;;  %v1449_v26 = vrot.slane %v8897_v6, 5  ;;  %v2590_v17 = vld [vmem:[#allocation2 + $0x18] sm:$0xe]  ;;  %v7811_v30 = vrot.slane %v1981_v2, 9 }
  0x3b   : > { %v1447_v24 = vsel %vm8804_vm10, %v7796_v13, %v1446_v14  ;;  %v1448_v25 = vrot.slane %v1446_v14, 4  ;;  %3312 = vrot.lane.b32.xlu1 %v7940_v18, %s8653_s12  ;;  %v7859_v27 = vcombine.low %v999_v19, %v1009_v23  ;;  %v2047_v31 = vrot.slane %v8852_v28, 5  ;;  %v8922_v35 = vld [vmem:[#allocation2 + $0x20] sm:$0x1]  ;;  %v301_v4 = vld [vmem:[#allocation2 + $0x2c] sm:$0x1] }
  0x3c   : > { %v2050_v22 = vrot.slane %v8912_v20, 5  ;;  %v7812_v36 = vrot.slane %v1982_v7, 9  ;;  %v2054_v37 = vrot.slane %v8865_v44, 5  ;;  %v2057_v40 = vrot.slane %v1582_v21, 5  ;;  %v2591_v5 = vld [vmem:[#allocation2 + $0x24] sm:$0xe] }
  0x3d   : > { %v1450_v34 = vsel %vm8804_vm10, %v1448_v25, %v1449_v26  ;;  %2878 = vrot.lane.b32.xlu0 %v7859_v27, %s8654_s13  ;;  %v2048_v42 = vsel %vm8804_vm10, %v7811_v30, %v2047_v31  ;;  %v2049_v43 = vrot.slane %v2047_v31, 4  ;;  %v7827_v45 = vrot.slane %v2590_v17, 9  ;;  %v8951_v56 = vld [vmem:[#allocation2 + $0xc] sm:$0xf] }
  0x3e   : > { %v7876_v41 = vcombine.low %v1447_v24, %v1450_v34  ;;  %v2055_v46 = vsel %vm8804_vm10, %v7812_v36, %v2054_v37  ;;  %v2056_v48 = vrot.slane %v2054_v37, 4  ;;  %v2656_v51 = vrot.slane %v8874_v52, 5 }
  0x3f   : > { %v2659_v53 = vrot.slane %v8922_v35, 5  ;;  %v2051_v58 = vsel %vm8804_vm10, %v2049_v43, %v2050_v22  ;;  %v1631_v62 = vshll.u32 %v8865_v44, 16  ;;  %v1637_v2 = vrot.slane %v1635_v54, 4 }
  0x40   : > { %2960 = vrot.lane.b32.xlu1 %v7876_v41, %s8651_s10  ;;  %v7923_v7 = vcombine.low %v2048_v42, %v2051_v58  ;;  %v2058_v12 = vsel %vm8804_vm10, %v2056_v48, %v2057_v40  ;;  %v2657_v13 = vsel %vm8804_vm10, %v7827_v45, %v2656_v51  ;;  %v2658_v14 = vrot.slane %v2656_v51, 4  ;;  %v8980_v45 = vld [vmem:[#allocation2 + $0x1c] sm:$0xf] }
  0x41   : > { %v7924_v18 = vcombine.low %v2055_v46, %v2058_v12  ;;  %v1629_v19 = vrot.slane %v1628_v61, 4  ;;  %v1633_v23 = vrot.slane %v1631_v62, 5  ;;  %v1641_v24 = vshll.u32 %v1582_v21, 16  ;;  %v8987_v62 = vld [vmem:[#allocation2 + $0x20] sm:$0x1] }
  0x42   : > { %v8944_v25 = vrot.slane %v1604_v3, 4  ;;  %3214 = vrot.lane.b32.xlu0 %v7923_v7, %s8655_s14  ;;  %v2660_v44 = vsel %vm8804_vm10, %v2658_v14, %v2659_v53  ;;  %v302_v54 = vsel %vm8778_vm6, 0, %v301_v4  ;;  %v7828_v55 = vrot.slane %v2591_v5, 9 }
  0x43   : > { %v8955_v26 = vrot.slane %v2210_v57, 5  ;;  %v7971_v3 = vcombine.low %v2657_v13, %v2660_v44  ;;  %v1638_v21 = vor.u32 %v1637_v2, %v1633_v23  ;;  %v1643_v17 = vrot.slane %v1641_v24, 5  ;;  %303 = vst [vmem:[#allocation2 + $0x2c] sm:$0x1] %v302_v54 }
  0x44   : > { %3216 = vrot.lane.b32.xlu1 %v7924_v18, %s8655_s14  ;;  %v1634_v27 = vsel %vm8891_vm15, %v1629_v19, %v1633_v23  ;;  %v2663_v30 = vrot.slane %v8900_v10, 5  ;;  %v2237_v31 = vor.u32 %v8905_v15, %v8902_v11  ;;  %v2240_v22 = vshll.u32 %v8900_v10, 16  ;;  %v8975_v10 = vld [vmem:[#allocation2 + $0x18] sm:$0xf]  ;;  %v8998_v23 = vld [vmem:[#allocation2 + $0x24] sm:$0xf] }
  0x45   : > { %v1639_v34 = vrot.slane %v1638_v21, 4  ;;  %v2246_v38 = vrot.slane %v2244_v16, 4  ;;  %v1011_v57 = vshrl.u32 %v8951_v56, 16  ;;  %v1014_v36 = vshll.u32 %v8951_v56, 16 }
  0x46   : > { %3470 = vrot.lane.b32.xlu0 %v7971_v3, %s8656_s15  ;;  %v8969_v37 = vsel %vm8804_vm10, %v7828_v55, %v2663_v30  ;;  %v8971_v40 = vrot.slane %v2240_v22, 5  ;;  %v1020_v41 = vshll.u32 %v8867_v47, 16  ;;  %v1024_v11 = vshrl.u32 %v8867_v47, 16 }
  0x47   : > { %v1644_v15 = vsel %vm8891_vm15, %v1639_v34, %v1643_v17  ;;  %v1013_v16 = vrot.slane %v1011_v57, 4  ;;  %v1016_v42 = vrot.slane %v1014_v36, 5  ;;  %v1030_v43 = vshll.u32 %v8897_v6, 16 }
  0x48   : > { %v7908_v46 = vcombine.low %v1634_v27, %v1644_v15  ;;  %v8982_v48 = vrot.slane %v2663_v30, 4  ;;  %v8984_v51 = vrot.slane %v2237_v31, 4  ;;  %v1022_v53 = vrot.slane %v1020_v41, 5  ;;  %v9010_v31 = vld [vmem:[#allocation2 + $0x28] sm:$0xf] }
  0x49   : > { %v2247_v58 = vor.u32 %v2246_v38, %v8971_v40  ;;  %v1017_v47 = vor.u32 %v1016_v42, %v1013_v16  ;;  %v1026_v61 = vrot.slane %v1024_v11, 4  ;;  %v1035_v2 = vshrl.u32 %v8975_v10, 16 }
  0x4a   : > { %3136 = vrot.lane.b32.xlu1 %v7908_v46, %s8657_s16  ;;  %v841_v6 = vld [vmem:[#allocation2 + $0x2c] sm:$0x1]  ;;  %v1032_v4 = vrot.slane %v1030_v43, 5  ;;  %v1038_v5 = vshll.u32 %v8975_v10, 16  ;;  %v1044_v7 = vshll.u32 %v8980_v45, 16  ;;  %v1048_v12 = vshrl.u32 %v8980_v45, 16 }
  0x4b   : > { %v842_v13 = vsel %vm8750_vm3, %v550_v33, %v841_v6  ;;  %v1018_v14 = vrot.slane %v1017_v47, 4  ;;  %v1027_v18 = vor.u32 %v1026_v61, %v1022_v53  ;;  %v1037_v19 = vrot.slane %v1035_v2, 4 }
  0x4c   : > { %843 = vst [vmem:[#allocation2 + $0x2c] sm:$0x1] %v842_v13  ;;  %v1040_v24 = vrot.slane %v1038_v5, 5  ;;  %v1046_v44 = vrot.slane %v1044_v7, 5  ;;  %v1050_v54 = vrot.slane %v1048_v12, 4  ;;  %v1054_v55 = vshll.u32 %v8987_v62, 16 }
  0x4d   : > { %v2243_v3 = vsel %vm8891_vm15, %v8984_v51, %v8971_v40  ;;  %v1028_v9 = vrot.slane %v1027_v18, 4  ;;  %v9007_v33 = vrot.slane %v1607_v49, 5  ;;  %v1617_v21 = vshll.u32 %v8912_v20, 16  ;;  %v1373_v12 = vld [vmem:[#allocation2 + $0x24] sm:$0xe] }
  0x4e   : > { %v1041_v17 = vor.u32 %v1040_v24, %v1037_v19  ;;  %v1051_v27 = vor.u32 %v1050_v54, %v1046_v44  ;;  %v1056_v30 = vrot.slane %v1054_v55, 5  ;;  %v1059_v22 = vshrl.u32 %v8998_v23, 16 }
  0x4f   : > { %v2248_v34 = vrot.slane %v2247_v58, 4  ;;  %v1023_v38 = vsel %vm8891_vm15, %v1018_v14, %v1022_v53  ;;  %v1033_v57 = vsel %vm8891_vm15, %v1028_v9, %v1032_v4  ;;  %v1614_v28 = vor.u32 %v8870_v50, %v9007_v33 }
  0x50   : > { %v1042_v49 = vrot.slane %v1041_v17, 4  ;;  %v1052_v36 = vrot.slane %v1051_v27, 4  ;;  %v1619_v20 = vrot.slane %v1617_v21, 5  ;;  %v1061_v40 = vrot.slane %v1059_v22, 4  ;;  %v248_v21 = vld [vmem:[#allocation2 + $0x30] sm:$0x1] }
  0x51   : > { %v1615_v41 = vrot.slane %v1614_v28, 4  ;;  %v1062_v11 = vshll.u32 %v8998_v23, 16  ;;  %v1068_v15 = vshll.u32 %v9010_v31, 16  ;;  %v1072_v16 = vshrl.u32 %v9010_v31, 16 }
  0x52   : > { %v1047_v42 = vsel %vm8891_vm15, %v1042_v49, %v1046_v44  ;;  %v1057_v43 = vsel %vm8891_vm15, %v1052_v36, %v1056_v30  ;;  %v2213_v50 = vor.u32 %v8955_v26, %v8884_v59  ;;  %v2216_v46 = vshll.u32 %v8874_v52, 16  ;;  %v1372_v44 = vld [vmem:[#allocation2 + $0x18] sm:$0xe] }
  0x53   : > { %v2191_v51 = vld [vmem:[#allocation2 + $0x2c] sm:$0x1]  ;;  %v7860_v53 = vcombine.low %v1023_v38, %v1033_v57  ;;  %v1610_v58 = vsel %vm8891_vm15, %v8944_v25, %v9007_v33  ;;  %v1064_v61 = vrot.slane %v1062_v11, 5  ;;  %v1070_v2 = vrot.slane %v1068_v15, 5  ;;  %v472_v38 = vld [vmem:[%s8785_s9 + $0x18] sm:$0xf] }
  0x54   : > { %v970_v47 = vld [vmem:[#allocation2 + $0x2c] sm:$0x1]  ;;  %v2666_v6 = vrot.slane %v2191_v51, 5  ;;  %v2250_v4 = vshll.u32 %v2191_v51, 16  ;;  %v7861_v5 = vcombine.low %v1047_v42, %v1057_v43  ;;  %v1074_v7 = vrot.slane %v1072_v16, 4 }
  0x55   : > { %v1065_v13 = vor.u32 %v1064_v61, %v1061_v40  ;;  %v1078_v14 = vshll.u32 %v970_v47, 16  ;;  %v2214_v59 = vrot.slane %v2213_v50, 4  ;;  %v2218_v26 = vrot.slane %v2216_v46, 5  ;;  %v473_v40 = vld [vmem:[%s8785_s9 + $0x1c] sm:$0xf] }
  0x56   : > { %v2667_v18 = vsel %vm8804_vm10, %v8982_v48, %v2666_v6  ;;  %v2252_v19 = vrot.slane %v2250_v4, 5  ;;  %v1075_v24 = vor.u32 %v1074_v7, %v1070_v2  ;;  %v2222_v25 = vrot.slane %v2220_v60, 4  ;;  %v9059_v42 = vld [vmem:[#allocation2 + $0x24] sm:$0xf] }
  0x57   : > { %v7972_v54 = vcombine.low %v8969_v37, %v2667_v18  ;;  %v1620_v55 = vsel %vm8891_vm15, %v1615_v41, %v1619_v20  ;;  %v1066_v9 = vrot.slane %v1065_v13, 4  ;;  %v1080_v33 = vrot.slane %v1078_v14, 5  ;;  %v1583_v18 = vld [vmem:[#allocation2 + $0x2c] sm:$0x1] }
  0x58   : > { %v2253_v17 = vsel %vm8891_vm15, %v2248_v34, %v2252_v19  ;;  %v1076_v27 = vrot.slane %v1075_v24, 4  ;;  %v2223_v48 = vor.u32 %v2222_v25, %v2218_v26  ;;  %v2226_v30 = vshll.u32 %v8922_v35, 16 }
  0x59   : > { %3472 = vrot.lane.b32.xlu0 %v7972_v54, %s8656_s15  ;;  %v7956_v52 = vcombine.low %v2243_v3, %v2253_v17  ;;  %v1071_v60 = vsel %vm8891_vm15, %v1066_v9, %v1070_v2  ;;  %v7798_v37 = vrot.slane %v1373_v12, 9  ;;  %v1460_v22 = vrot.slane %v9010_v31, 5  ;;  %v304_v12 = vld [vmem:[#allocation2 + $0x38] sm:$0x1] }
  0x5a   : > { %v1081_v57 = vsel %vm8891_vm15, %v1076_v27, %v1080_v33  ;;  %v2224_v28 = vrot.slane %v2223_v48, 4  ;;  %v2228_v34 = vrot.slane %v2226_v30, 5  ;;  %v1463_v49 = vrot.slane %v970_v47, 5 }
  0x5b   : > { %3392 = vrot.lane.b32.xlu1 %v7956_v52, %s8658_s17  ;;  %v7907_v35 = vcombine.low %v1610_v58, %v1620_v55  ;;  %v2219_v3 = vsel %vm8891_vm15, %v2214_v59, %v2218_v26  ;;  %v1462_v36 = vrot.slane %v1460_v22, 4  ;;  %v7797_v20 = vrot.slane %v1372_v44, 9  ;;  %v9066_v58 = vld [vmem:[#allocation2 + $0x28] sm:$0xf]  ;;  %v1983_v44 = vld [vmem:[#allocation2 + $0x24] sm:$0xe] }
  0x5c   : > { %v7862_v41 = vcombine.low %v1071_v60, %v1081_v57  ;;  %v1453_v11 = vrot.slane %v8980_v45, 5  ;;  %v1456_v15 = vrot.slane %v8987_v62, 5  ;;  %v249_v16 = vsel %vm8750_vm3, 0, %v248_v21  ;;  %v251_v21 = vld [vmem:[#allocation2 + $0x3c] sm:$0x1] }
  0x5d   : > { %2880 = vrot.lane.b32.xlu0 %v7860_v53, %s8654_s13  ;;  %v2229_v43 = vsel %vm8891_vm15, %v2224_v28, %v2228_v34  ;;  %v1461_v50 = vsel %vm8804_vm10, %v7798_v37, %v1460_v22  ;;  %250 = vst [vmem:[#allocation2 + $0x30] sm:$0x1] %v249_v16  ;;  %v552_v46 = vshrl.u32 %v472_v38, 16  ;;  %v555_v51 = vshll.u32 %v472_v38, 16  ;;  %v474_v52 = vld [vmem:[%s8785_s9 + $0x20] sm:$0xf] }
  0x5e   : > { %v1464_v62 = vsel %vm8804_vm10, %v1462_v36, %v1463_v49  ;;  %v1454_v47 = vsel %vm8804_vm10, %v7797_v20, %v1453_v11  ;;  %v1455_v61 = vrot.slane %v1453_v11, 4  ;;  %v560_v2 = vshrl.u32 %v473_v40, 16  ;;  %v475_v28 = vld [vmem:[%s8785_s9 + $0x24] sm:$0xf] }
  0x5f   : > { %2882 = vrot.lane.b32.xlu1 %v7861_v5, %s8654_s13  ;;  %v554_v53 = vrot.slane %v552_v46, 7  ;;  %v563_v6 = vshll.u32 %v473_v40, 16  ;;  %v1646_v4 = vshrl.u32 %v9059_v42, 16  ;;  %v1649_v7 = vshll.u32 %v9059_v42, 16  ;;  %v307_v36 = vld [vmem:[#allocation2 + $0x44] sm:$0x1] }
  0x60   : > { %v7955_v13 = vcombine.low %v2219_v3, %v2229_v43  ;;  %v1457_v14 = vsel %vm8804_vm10, %v1455_v61, %v1456_v15  ;;  %v9077_v59 = vrot.slane %v560_v2, 7  ;;  %v1659_v26 = vshrl.u32 %v9066_v58, 16  ;;  %v254_v15 = vld [vmem:[#allocation2 + $0x48] sm:$0x1] }
  0x61   : > { %3134 = vrot.lane.b32.xlu0 %v7907_v35, %s8657_s16  ;;  %v7878_v19 = vcombine.low %v1461_v50, %v1464_v62  ;;  %v557_v5 = vor.u32 %v555_v51, %v554_v53  ;;  %v558_v24 = vrot.slane %v554_v53, 4  ;;  %v1648_v25 = vrot.slane %v1646_v4, 4 }
  0x62   : > { %v7877_v54 = vcombine.low %v1454_v47, %v1457_v14  ;;  %v565_v55 = vor.u32 %v563_v6, %v9077_v59  ;;  %v1651_v9 = vrot.slane %v1649_v7, 5  ;;  %v305_v33 = vsel %vm8778_vm6, 0, %v304_v12 }
  0x63   : > { %2884 = vrot.lane.b32.xlu1 %v7862_v41, %s8654_s13  ;;  %v567_v17 = vrot.slane %v9077_v59, 4  ;;  %306 = vst [vmem:[#allocation2 + $0x38] sm:$0x1] %v305_v33  ;;  %v1655_v27 = vshll.u32 %v9066_v58, 16  ;;  %v1661_v48 = vrot.slane %v1659_v26, 4  ;;  %v1665_v30 = vshll.u32 %v1583_v18, 16 }
  0x64   : > { %v566_v60 = vsel %vm8816_vm12, %v558_v24, %v565_v55  ;;  %v844_v37 = vld [vmem:[#allocation2 + $0x30] sm:$0xf]  ;;  %v1652_v22 = vor.u32 %v1651_v9, %v1648_v25  ;;  %v7813_v38 = vrot.slane %v1983_v44, 9  ;;  %v2061_v57 = vrot.slane %v9066_v58, 5 }
  0x65   : > { %3390 = vrot.lane.b32.xlu0 %v7955_v13, %s8658_s17  ;;  %v845_v34 = vsel %vm8810_vm11, %v557_v5, %v844_v37  ;;  %847 = vst.msk [vmem:[#allocation2 + $0x34] sm:$0xf] %vm224_vm0, %v566_v60  ;;  %v1657_v49 = vrot.slane %v1655_v27, 5  ;;  %v2064_v35 = vrot.slane %v1583_v18, 5  ;;  %v252_v3 = vsel %vm8750_vm3, 0, %v251_v21 }
  0x66   : > { %846 = vst [vmem:[#allocation2 + $0x30] sm:$0xf] %v845_v34  ;;  %v1653_v20 = vrot.slane %v1652_v22, 4  ;;  %v1667_v40 = vrot.slane %v1665_v30, 5  ;;  %v2063_v41 = vrot.slane %v2061_v57, 4  ;;  %v569_v11 = vshrl.u32 %v474_v52, 16 }
  0x67   : > { %253 = vst [vmem:[#allocation2 + $0x3c] sm:$0x1] %v252_v3  ;;  %2964 = vrot.lane.b32.xlu1 %v7878_v19, %s8651_s10  ;;  %v1662_v16 = vor.u32 %v1661_v48, %v1657_v49  ;;  %v572_v43 = vshll.u32 %v474_v52, 16  ;;  %v577_v50 = vshrl.u32 %v475_v28, 16  ;;  %v580_v46 = vshll.u32 %v475_v28, 16 }
  0x68   : > { %v7893_v51 = vcombine.low %v9059_v42, %v9066_v58  ;;  %v9103_v62 = vsel %vm8804_vm10, %v7813_v38, %v2061_v57  ;;  %v571_v47 = vrot.slane %v569_v11, 7  ;;  %v308_v61 = vsel %vm8778_vm6, 0, %v307_v36  ;;  %v9115_v58 = vld [vmem:[%s8785_s9 + $0x28] sm:$0xf] }
  0x69   : > { %2962 = vrot.lane.b32.xlu0 %v7877_v54, %s8651_s10  ;;  %v1663_v2 = vrot.slane %v1662_v16, 4  ;;  %v9110_v53 = vsel %vm8804_vm10, %v2063_v41, %v2064_v35  ;;  %v579_v6 = vrot.slane %v577_v50, 7  ;;  %309 = vst [vmem:[#allocation2 + $0x44] sm:$0x1] %v308_v61  ;;  %v255_v42 = vsel %vm8750_vm3, 0, %v254_v15 }
  0x6a   : > { %v848_v4 = vld [vmem:[#allocation2 + $0x38] sm:$0x1]  ;;  %v1658_v7 = vsel %vm8891_vm15, %v1653_v20, %v1657_v49  ;;  %v575_v12 = vrot.slane %v571_v47, 4  ;;  %256 = vst [vmem:[#allocation2 + $0x48] sm:$0x1] %v255_v42  ;;  %v574_v59 = vor.u32 %v572_v43, %v571_v47  ;;  %v7925_v19 = vcombine.low %v9103_v62, %v9110_v53 }
  0x6b   : > { %v849_v13 = vsel %vm8750_vm3, %v567_v17, %v848_v4  ;;  %v1668_v14 = vsel %vm8891_vm15, %v1663_v2, %v1667_v40  ;;  %v582_v26 = vor.u32 %v580_v46, %v579_v6  ;;  %v584_v5 = vrot.slane %v579_v6, 4 }
  0x6c   : > { %v1556_v18 = vld [vmem:[#allocation2 + $0x34] sm:$0xf]  ;;  %850 = vst [vmem:[#allocation2 + $0x38] sm:$0x1] %v849_v13  ;;  %v586_v25 = vshrl.u32 %v9115_v58, 16  ;;  %v7909_v9 = vcombine.low %v1658_v7, %v1668_v14  ;;  %v589_v41 = vshll.u32 %v9115_v58, 16 }
  0x6d   : > { %v9125_v24 = vld [vmem:[#allocation2 + $0x34] sm:$0xf]  ;;  %v1555_v44 = vld [vmem:[#allocation2 + $0x30] sm:$0xf]  ;;  %v1683_v54 = vshrl.u32 %v1556_v18, 16  ;;  %3058 = vrot.lane.b32.xlu0 %v7893_v51, %s8652_s11  ;;  %v1679_v55 = vshll.u32 %v1556_v18, 16  ;;  %v583_v21 = vsel %vm8816_vm12, %v575_v12, %v582_v26 }
  0x6e   : > { %v1984_v33 = vld [vmem:[#allocation2 + $0x30] sm:$0xe]  ;;  %v1670_v17 = vshrl.u32 %v1555_v44, 16  ;;  %v1673_v27 = vshll.u32 %v1555_v44, 16  ;;  %v7894_v48 = vcombine.low %v1555_v44, %v1556_v18  ;;  %v851_v52 = vld [vmem:[#allocation2 + $0x3c] sm:$0xf] }
  0x6f   : > { %v7814_v30 = vrot.slane %v1984_v33, 9  ;;  %854 = vst.msk [vmem:[#allocation2 + $0x40] sm:$0xf] %vm224_vm0, %v583_v21  ;;  %v1681_v60 = vrot.slane %v1679_v55, 5  ;;  %v1685_v37 = vrot.slane %v1683_v54, 4  ;;  %v2068_v22 = vrot.slane %v1556_v18, 5 }
  0x70   : > { %v852_v38 = vsel %vm8810_vm11, %v574_v59, %v851_v52  ;;  %v2162_v57 = vld [vmem:[#allocation2 + $0x30] sm:$0xf]  ;;  %v1672_v28 = vrot.slane %v1670_v17, 4  ;;  %v1675_v34 = vrot.slane %v1673_v27, 5  ;;  %3060 = vrot.lane.b32.xlu1 %v7894_v48, %s8652_s11  ;;  %v855_v3 = vld [vmem:[#allocation2 + $0x44] sm:$0x1] }
  0x71   : > { %853 = vst [vmem:[#allocation2 + $0x3c] sm:$0xf] %v852_v38  ;;  %v2255_v49 = vshrl.u32 %v2162_v57, 16  ;;  %v2258_v35 = vshll.u32 %v2162_v57, 16  ;;  %v1686_v36 = vor.u32 %v1685_v37, %v1681_v60  ;;  %3138 = vrot.lane.b32.xlu0 %v7909_v9, %s8657_s16  ;;  %v9138_v20 = vsel %vm8804_vm10, %v7814_v30, %v2068_v22  ;;  %v943_v50 = vld [vmem:[#allocation2 + $0x30] sm:$0xf] }
  0x72   : > { %v2268_v40 = vshrl.u32 %v9125_v24, 16  ;;  %v1676_v11 = vor.u32 %v1675_v34, %v1672_v28  ;;  %v2070_v15 = vrot.slane %v2068_v22, 4  ;;  %v7941_v62 = vcombine.low %v2162_v57, %v9125_v24  ;;  %v9162_v30 = vld [vmem:[#allocation2 + $0x34] sm:$0xf] }
  0x73   : > { %v2257_v16 = vrot.slane %v2255_v49, 4  ;;  %v2260_v43 = vrot.slane %v2258_v35, 5  ;;  %v1584_v46 = vld [vmem:[#allocation2 + $0x38] sm:$0x1]  ;;  %v1687_v51 = vrot.slane %v1686_v36, 4  ;;  %v856_v47 = vsel %vm8750_vm3, %v584_v5, %v855_v3  ;;  %12688 = vst [vmem:[#allocation7_spill] sm:$0xff] %v9162_v30 }
  0x74   : > { %v9145_v61 = vld [vmem:[#allocation2 + $0x38] sm:$0x1]  ;;  %v2264_v2 = vshll.u32 %v9125_v24, 16  ;;  %v1677_v53 = vrot.slane %v1676_v11, 4  ;;  %v1689_v6 = vshll.u32 %v1584_v46, 16  ;;  %v2071_v42 = vrot.slane %v1584_v46, 5 }
  0x75   : > { %857 = vst [vmem:[#allocation2 + $0x44] sm:$0x1] %v856_v47  ;;  %v2261_v4 = vor.u32 %v2260_v43, %v2257_v16  ;;  %3218 = vrot.lane.b32.xlu0 %v7925_v19, %s8655_s14  ;;  %v2270_v13 = vrot.slane %v2268_v40, 4  ;;  %v2274_v14 = vshll.u32 %v9145_v61, 16  ;;  %v1083_v59 = vshrl.u32 %v943_v50, 16  ;;  %v8484_v35 = vld [vmem:[%s12658_s1] sm:$0xff]  }
  0x76   : > { %v9149_v7 = vld [vmem:[#allocation2 + $0x40] sm:$0xf]  ;;  %v2266_v12 = vrot.slane %v2264_v2, 5  ;;  %v1682_v26 = vsel %vm8891_vm15, %v1677_v53, %v1681_v60  ;;  %v1691_v18 = vrot.slane %v1689_v6, 5  ;;  %v2072_v5 = vsel %vm8804_vm10, %v2070_v15, %v2071_v42  ;;  %v9167_v38 = vld [vmem:[#allocation2 + $0x38] sm:$0x1]  ;;  %8332 = vmatprep.subr.bf16.mxu0 %v8484_v35 }
  0x77   : > { %v2292_v44 = vshrl.u32 %v9149_v7, 16  ;;  %v7926_v54 = vcombine.low %v9138_v20, %v2072_v5  ;;  %v2288_v19 = vshll.u32 %v9149_v7, 16  ;;  %v2262_v9 = vrot.slane %v2261_v4, 4  ;;  %8333 = vmatpush3.bf16.msra.mxu0 %v8484_v35  ;;  %v257_v58 = vld [vmem:[#allocation2 + $0x54] sm:$0x1] }
  0x78   : > { %v2164_v55 = vld [vmem:[#allocation2 + $0x3c] sm:$0xf]  ;;  %v2271_v33 = vor.u32 %v2270_v13, %v2266_v12  ;;  %v1692_v21 = vsel %vm8891_vm15, %v1687_v51, %v1691_v18  ;;  %v2276_v49 = vrot.slane %v2274_v14, 5  ;;  %v1085_v20 = vrot.slane %v1083_v59, 4  ;;  %v2592_v51 = vld [vmem:[#allocation2 + $0x30] sm:$0xe] }
  0x79   : > { %v2279_v17 = vshrl.u32 %v2164_v55, 16  ;;  %v2282_v27 = vshll.u32 %v2164_v55, 16  ;;  %v7942_v48 = vcombine.low %v2164_v55, %v9149_v7  ;;  %v7910_v52 = vcombine.low %v1682_v26, %v1692_v21  ;;  %3314 = vrot.lane.b32.xlu0 %v7941_v62, %s8653_s12  ;;  %v945_v18 = vld [vmem:[#allocation2 + $0x3c] sm:$0xf] }
  0x7a   : > { %v2290_v60 = vrot.slane %v2288_v19, 5  ;;  %v2294_v37 = vrot.slane %v2292_v44, 4  ;;  %v2267_v22 = vsel %vm8891_vm15, %v2262_v9, %v2266_v12  ;;  %v2272_v34 = vrot.slane %v2271_v33, 4  ;;  %v946_v12 = vld [vmem:[#allocation2 + $0x40] sm:$0xf] }
  0x7b   : > { %v2281_v57 = vrot.slane %v2279_v17, 4  ;;  %v2284_v28 = vrot.slane %v2282_v27, 5  ;;  %3140 = vrot.lane.b32.xlu1 %v7910_v52, %s8657_s16  ;;  %v1086_v40 = vshll.u32 %v943_v50, 16  ;;  %v1092_v11 = vshll.u32 %v9162_v30, 16 }
  0x7c   : > { %v9173_v3 = vld [vmem:[#allocation2 + $0x44] sm:$0x1]  ;;  %v2295_v36 = vor.u32 %v2294_v37, %v2290_v60  ;;  %v2277_v43 = vsel %vm8891_vm15, %v2272_v34, %v2276_v49  ;;  %v1096_v46 = vshrl.u32 %v9162_v30, 16  ;;  %v1102_v4 = vshll.u32 %v9167_v38, 16 }
  0x7d   : > { %v2285_v15 = vor.u32 %v2284_v28, %v2281_v57  ;;  %v2298_v16 = vshll.u32 %v9173_v3, 16  ;;  %v7957_v47 = vcombine.low %v2267_v22, %v2277_v43  ;;  %v1088_v2 = vrot.slane %v1086_v40, 5  ;;  %v972_v9 = vld [vmem:[#allocation2 + $0x44] sm:$0x1]  ;;  %v2593_v28 = vld [vmem:[#allocation2 + $0x3c] sm:$0xe] }
  0x7e   : > { %v2296_v62 = vrot.slane %v2295_v36, 4  ;;  %v1094_v53 = vrot.slane %v1092_v11, 5  ;;  %v1098_v50 = vrot.slane %v1096_v46, 4  ;;  %v7829_v14 = vrot.slane %v2592_v51, 9  ;;  %v8485_v43 = vld [vmem:[%s12658_s1 + $0x8] sm:$0xff]  }
  0x7f   : > { %v2286_v6 = vrot.slane %v2285_v15, 4  ;;  %v2300_v42 = vrot.slane %v2298_v16, 5  ;;  %3220 = vrot.lane.b32.xlu1 %v7926_v54, %s8655_s14  ;;  %3394 = vrot.lane.b32.xlu0 %v7957_v47, %s8658_s17  ;;  %v1089_v13 = vor.u32 %v1088_v2, %v1085_v20  ;;  %v2670_v59 = vrot.slane %v9125_v24, 5  ;;  %v1375_v20 = vld [vmem:[#allocation2 + $0x3c] sm:$0xe] }
  0x80   : > { %v2673_v26 = vrot.slane %v9145_v61, 5  ;;  %v1099_v55 = vor.u32 %v1098_v50, %v1094_v53  ;;  %v1104_v19 = vrot.slane %v1102_v4, 5  ;;  %v1107_v24 = vshrl.u32 %v945_v18, 16  ;;  %v1374_v16 = vld [vmem:[#allocation2 + $0x30] sm:$0xe]  ;;  %8334 = vmatprep.subr.bf16.mxu0 %v8485_v43 }
  0x81   : > { %v2291_v5 = vsel %vm8891_vm15, %v2286_v6, %v2290_v60  ;;  %v2301_v44 = vsel %vm8891_vm15, %v2296_v62, %v2300_v42  ;;  %v1090_v54 = vrot.slane %v1089_v13, 4  ;;  %v2671_v21 = vsel %vm8804_vm10, %v7829_v14, %v2670_v59  ;;  %8335 = vmatpush3.bf16.msra.mxu0 %v8485_v43 }
  0x82   : > { %v7958_v33 = vcombine.low %v2291_v5, %v2301_v44  ;;  %v2672_v17 = vrot.slane %v2670_v59, 4  ;;  %v1100_v27 = vrot.slane %v1099_v55, 4  ;;  %v1110_v52 = vshll.u32 %v945_v18, 16  ;;  %v477_v44 = vld [vmem:[%s8785_s9 + $0x2c] sm:$0xf] }
  0x83   : > { %v1116_v61 = vshll.u32 %v946_v12, 16  ;;  %3316 = vrot.lane.b32.xlu1 %v7942_v48, %s8653_s12  ;;  %v1095_v60 = vsel %vm8891_vm15, %v1090_v54, %v1094_v53  ;;  %v1120_v22 = vshrl.u32 %v946_v12, 16  ;;  %v1126_v57 = vshll.u32 %v972_v9, 16 }
  0x84   : > { %v2674_v37 = vsel %vm8804_vm10, %v2672_v17, %v2673_v26  ;;  %v1105_v34 = vsel %vm8891_vm15, %v1100_v27, %v1104_v19  ;;  %v1109_v35 = vrot.slane %v1107_v24, 4  ;;  %v1112_v36 = vrot.slane %v1110_v52, 5  ;;  %v1557_v19 = vld [vmem:[#allocation2 + $0x3c] sm:$0xf]  ;;  %v9223_v17 = vld [vmem:[#allocation2 + $0x40] sm:$0xf] }
  0x85   : > { %v7973_v49 = vcombine.low %v2671_v21, %v2674_v37  ;;  %v7863_v40 = vcombine.low %v1095_v60, %v1105_v34  ;;  %v1118_v11 = vrot.slane %v1116_v61, 5  ;;  %v1122_v15 = vrot.slane %v1120_v22, 4  ;;  %v858_v21 = vld [vmem:[#allocation2 + $0x48] sm:$0xf]  ;;  %v9225_v27 = vld [vmem:[#allocation2 + $0x4] sm:$0xf] }
  0x86   : > { %v1128_v48 = vrot.slane %v1126_v57, 5  ;;  %v1113_v46 = vor.u32 %v1112_v36, %v1109_v35  ;;  %v7830_v51 = vrot.slane %v2593_v28, 9  ;;  %v2677_v62 = vrot.slane %v9149_v7, 5  ;;  %v310_v34 = vld [vmem:[#allocation2 + $0x50] sm:$0x1] }
  0x87   : > { %3474 = vrot.lane.b32.xlu0 %v7973_v49, %s8656_s15  ;;  %v2680_v47 = vrot.slane %v9173_v3, 5  ;;  %3396 = vrot.lane.b32.xlu1 %v7958_v33, %s8658_s17  ;;  %v1123_v2 = vor.u32 %v1122_v15, %v1118_v11  ;;  %v7800_v53 = vrot.slane %v1375_v20, 9  ;;  %v1474_v6 = vrot.slane %v946_v12, 5 }
  0x88   : > { %v1477_v42 = vrot.slane %v972_v9, 5  ;;  %v1114_v50 = vrot.slane %v1113_v46, 4  ;;  %v2678_v4 = vsel %vm8804_vm10, %v7830_v51, %v2677_v62  ;;  %v2679_v13 = vrot.slane %v2677_v62, 4 }
  0x89   : > { %v7799_v14 = vrot.slane %v1374_v16, 9  ;;  %v1124_v59 = vrot.slane %v1123_v2, 4  ;;  %v1475_v7 = vsel %vm8804_vm10, %v7800_v53, %v1474_v6  ;;  %v1476_v3 = vrot.slane %v1474_v6, 4  ;;  %v1985_v16 = vld [vmem:[#allocation2 + $0x3c] sm:$0xe] }
  0x8a   : > { %v1467_v26 = vrot.slane %v9162_v30, 5  ;;  %v1119_v18 = vsel %vm8891_vm15, %v1114_v50, %v1118_v11  ;;  %v2681_v12 = vsel %vm8804_vm10, %v2679_v13, %v2680_v47  ;;  %v1470_v5 = vrot.slane %v9167_v38, 5  ;;  %v9227_v38 = vld [vmem:[#allocation2] sm:$0xf]  ;;  %v478_v47 = vld [vmem:[%s8785_s9 + $0x30] sm:$0xf] }
  0x8b   : > { %v588_v55 = vrot.slane %v586_v25, 7  ;;  %2886 = vrot.lane.b32.xlu1 %v7863_v40, %s8654_s13  ;;  %v1129_v9 = vsel %vm8891_vm15, %v1124_v59, %v1128_v48  ;;  %v7974_v33 = vcombine.low %v2678_v4, %v2681_v12  ;;  %v1478_v54 = vsel %vm8804_vm10, %v1476_v3, %v1477_v42  ;;  %v1585_v40 = vld [vmem:[#allocation2 + $0x44] sm:$0x1]  ;;  %v479_v59 = vld [vmem:[%s8785_s9 + $0x34] sm:$0xf] }
  0x8c   : > { %v7843_v25 = vcombine.low %v9227_v38, %v9225_v27  ;;  %v7864_v24 = vcombine.low %v1119_v18, %v1129_v9  ;;  %v1468_v52 = vsel %vm8804_vm10, %v7799_v14, %v1467_v26  ;;  %v1469_v61 = vrot.slane %v1467_v26, 4  ;;  %v313_v12 = vld [vmem:[#allocation2 + $0x5c] sm:$0x1] }
  0x8d   : > { %v591_v60 = vor.u32 %v589_v41, %v588_v55  ;;  %3476 = vrot.lane.b32.xlu0 %v7974_v33, %s8656_s15  ;;  %v7880_v37 = vcombine.low %v1475_v7, %v1478_v54  ;;  %v594_v22 = vshrl.u32 %v477_v44, 16  ;;  %v597_v57 = vshll.u32 %v477_v44, 16 }
  0x8e   : > { %v1694_v28 = vshrl.u32 %v1557_v19, 16  ;;  %v1471_v49 = vsel %vm8804_vm10, %v1469_v61, %v1470_v5  ;;  %v1697_v36 = vshll.u32 %v1557_v19, 16  ;;  %v1707_v20 = vshrl.u32 %v9223_v17, 16 }
  0x8f   : > { %v859_v35 = vsel %vm8810_vm11, %v591_v60, %v858_v21  ;;  %2888 = vrot.lane.b32.xlu1 %v7864_v24, %s8654_s13  ;;  %v7879_v41 = vcombine.low %v1468_v52, %v1471_v49  ;;  %v592_v11 = vrot.slane %v588_v55, 4  ;;  %v596_v15 = vrot.slane %v594_v22, 7 }
  0x90   : > { %860 = vst [vmem:[#allocation2 + $0x48] sm:$0xf] %v859_v35  ;;  %v1696_v48 = vrot.slane %v1694_v28, 4  ;;  %v1699_v43 = vrot.slane %v1697_v36, 5  ;;  %v311_v46 = vsel %vm8778_vm6, 0, %v310_v34  ;;  %v1703_v51 = vshll.u32 %v9223_v17, 16 }
  0x91   : > { %v1709_v62 = vrot.slane %v1707_v20, 4  ;;  %2966 = vrot.lane.b32.xlu0 %v7879_v41, %s8651_s10  ;;  %v599_v2 = vor.u32 %v597_v57, %v596_v15  ;;  %v601_v53 = vrot.slane %v596_v15, 4  ;;  %v7895_v6 = vcombine.low %v1557_v19, %v9223_v17  ;;  %312 = vst [vmem:[#allocation2 + $0x50] sm:$0x1] %v311_v46 }
  0x92   : > { %v1713_v42 = vshll.u32 %v1585_v40, 16  ;;  %v1700_v50 = vor.u32 %v1699_v43, %v1696_v48  ;;  %v1705_v4 = vrot.slane %v1703_v51, 5  ;;  %v7815_v13 = vrot.slane %v1985_v16, 9 }
  0x93   : > { %v2075_v14 = vrot.slane %v9223_v17, 5  ;;  %2968 = vrot.lane.b32.xlu1 %v7880_v37, %s8651_s10  ;;  %v600_v7 = vsel %vm8816_vm12, %v592_v11, %v599_v2  ;;  %v2078_v3 = vrot.slane %v1585_v40, 5  ;;  %v258_v26 = vsel %vm8750_vm3, 0, %v257_v58 }
  0x94   : > { %v603_v18 = vshrl.u32 %v478_v47, 16  ;;  %861 = vst.msk [vmem:[#allocation2 + $0x4c] sm:$0xf] %vm224_vm0, %v600_v7  ;;  %v1701_v5 = vrot.slane %v1700_v50, 4  ;;  %v1710_v44 = vor.u32 %v1709_v62, %v1705_v4  ;;  %v1715_v55 = vrot.slane %v1713_v42, 5 }
  0x95   : > { %v2077_v19 = vrot.slane %v2075_v14, 4  ;;  %259 = vst [vmem:[#allocation2 + $0x54] sm:$0x1] %v258_v26  ;;  %3062 = vrot.lane.b32.xlu0 %v7895_v6, %s8652_s11  ;;  %v606_v33 = vshll.u32 %v478_v47, 16  ;;  %v611_v54 = vshrl.u32 %v479_v59, 16  ;;  %v614_v21 = vshll.u32 %v479_v59, 16 }
  0x96   : > { %v605_v9 = vrot.slane %v603_v18, 7  ;;  %v1706_v24 = vsel %vm8891_vm15, %v1701_v5, %v1705_v4  ;;  %v1711_v52 = vrot.slane %v1710_v44, 4  ;;  %v2076_v60 = vsel %vm8804_vm10, %v7815_v13, %v2075_v14  ;;  %v9274_v42 = vld [vmem:[#allocation2 + $0x10] sm:$0xf] }
  0x97   : > { %v1559_v17 = vld [vmem:[#allocation2 + $0x48] sm:$0xf]  ;;  %v314_v37 = vsel %vm8778_vm6, 0, %v313_v12  ;;  %v2079_v34 = vsel %vm8804_vm10, %v2077_v19, %v2078_v3  ;;  %v613_v58 = vrot.slane %v611_v54, 7  ;;  %vm3502_vm1 = vcmask 31744  }
  0x98   : > { %v1986_v61 = vld [vmem:[#allocation2 + $0x48] sm:$0xe]  ;;  %v1718_v22 = vshrl.u32 %v1559_v17, 16  ;;  %v1721_v57 = vshll.u32 %v1559_v17, 16  ;;  %315 = vst [vmem:[#allocation2 + $0x5c] sm:$0x1] %v314_v37  ;;  %v1716_v36 = vsel %vm8891_vm15, %v1711_v52, %v1715_v55  ;;  %v608_v20 = vor.u32 %v606_v33, %v605_v9 }
  0x99   : > { %v7816_v28 = vrot.slane %v1986_v61, 9  ;;  %v9265_v49 = vld [vmem:[#allocation2 + $0x48] sm:$0xf]  ;;  %v862_v35 = vld [vmem:[#allocation2 + $0x50] sm:$0x1]  ;;  %v609_v40 = vrot.slane %v605_v9, 4  ;;  %v7911_v48 = vcombine.low %v1706_v24, %v1716_v36  ;;  %v7927_v16 = vcombine.low %v2076_v60, %v2079_v34 }
  0x9a   : > { %v1720_v41 = vrot.slane %v1718_v22, 4  ;;  %v1723_v11 = vrot.slane %v1721_v57, 5  ;;  %v863_v15 = vsel %vm8750_vm3, %v601_v53, %v862_v35  ;;  %v616_v43 = vor.u32 %v614_v21, %v613_v58  ;;  %v947_v5 = vld [vmem:[#allocation2 + $0x48] sm:$0xf] }
  0x9b   : > { %864 = vst [vmem:[#allocation2 + $0x50] sm:$0x1] %v863_v15  ;;  %v618_v46 = vrot.slane %v613_v58, 4  ;;  %v2303_v51 = vshrl.u32 %v9265_v49, 16  ;;  %v1560_v62 = vld [vmem:[#allocation2 + $0x4c] sm:$0xf]  ;;  %3142 = vrot.lane.b32.xlu0 %v7911_v48, %s8657_s16 }
  0x9c   : > { %v1724_v47 = vor.u32 %v1723_v11, %v1720_v41  ;;  %v865_v2 = vld [vmem:[#allocation2 + $0x54] sm:$0xf]  ;;  %v2306_v6 = vshll.u32 %v9265_v49, 16  ;;  %v1731_v4 = vshrl.u32 %v1560_v62, 16  ;;  %v7896_v13 = vcombine.low %v1559_v17, %v1560_v62  ;;  %v9280_v7 = vld [vmem:[#allocation2 + $0x4c] sm:$0xf] }
  0x9d   : > { %v1727_v14 = vshll.u32 %v1560_v62, 16  ;;  %v2082_v59 = vrot.slane %v1560_v62, 5  ;;  %v617_v26 = vsel %vm8816_vm12, %v609_v40, %v616_v43  ;;  %v866_v18 = vsel %vm8810_vm11, %v608_v20, %v865_v2  ;;  %v9301_v37 = vld [vmem:[#allocation2 + $0x4c] sm:$0xf] }
  0x9e   : > { %v1725_v3 = vrot.slane %v1724_v47, 4  ;;  %v2305_v12 = vrot.slane %v2303_v51, 4  ;;  %3064 = vrot.lane.b32.xlu1 %v7896_v13, %s8652_s11  ;;  %v1733_v55 = vrot.slane %v1731_v4, 4  ;;  %867 = vst [vmem:[#allocation2 + $0x54] sm:$0xf] %v866_v18  ;;  %v2308_v54 = vrot.slane %v2306_v6, 5 }
  0x9f   : > { %v1729_v44 = vrot.slane %v1727_v14, 5  ;;  %v9289_v19 = vsel %vm8804_vm10, %v7816_v28, %v2082_v59  ;;  %868 = vst.msk [vmem:[#allocation2 + $0x58] sm:$0xf] %vm224_vm0, %v617_v26  ;;  %v869_v9 = vld [vmem:[#allocation2 + $0x5c] sm:$0x1]  ;;  %3222 = vrot.lane.b32.xlu0 %v7927_v16, %s8655_s14  ;;  %v2316_v21 = vshrl.u32 %v9280_v7, 16  ;;  %v7943_v17 = vcombine.low %v9265_v49, %v9280_v7 }
  0xa0   : > { %v870_v24 = vsel %vm8750_vm3, %v618_v46, %v869_v9  ;;  %v2084_v61 = vrot.slane %v2082_v59, 4  ;;  %v2312_v60 = vshll.u32 %v9280_v7, 16  ;;  %v1131_v22 = vshrl.u32 %v947_v5, 16  ;;  %v2594_v9 = vld [vmem:[#allocation2 + $0x48] sm:$0xe] }
  0xa1   : > { %v1734_v52 = vor.u32 %v1733_v55, %v1729_v44  ;;  %871 = vst [vmem:[#allocation2 + $0x5c] sm:$0x1] %v870_v24  ;;  %v1730_v28 = vsel %vm8891_vm15, %v1725_v3, %v1729_v44  ;;  %v2309_v35 = vor.u32 %v2308_v54, %v2305_v12  ;;  %v2318_v36 = vrot.slane %v2316_v21, 4 }
  0xa2   : > { %v1586_v57 = vld [vmem:[#allocation2 + $0x50] sm:$0x1]  ;;  %v1134_v49 = vshll.u32 %v947_v5, 16  ;;  %v2314_v41 = vrot.slane %v2312_v60, 5  ;;  %v1133_v48 = vrot.slane %v1131_v22, 4  ;;  %v1140_v62 = vshll.u32 %v9301_v37, 16 }
  0xa3   : > { %v9305_v34 = vld [vmem:[#allocation2 + $0x50] sm:$0x1]  ;;  %v1735_v20 = vrot.slane %v1734_v52, 4  ;;  %v1737_v40 = vshll.u32 %v1586_v57, 16  ;;  %v2085_v58 = vrot.slane %v1586_v57, 5  ;;  %3318 = vrot.lane.b32.xlu0 %v7943_v17, %s8653_s12  ;;  %v2310_v11 = vrot.slane %v2309_v35, 4 }
  0xa4   : > { %v2322_v15 = vshll.u32 %v9305_v34, 16  ;;  %v1136_v16 = vrot.slane %v1134_v49, 5  ;;  %v2319_v51 = vor.u32 %v2318_v36, %v2314_v41  ;;  %v9325_v52 = vld [vmem:[#allocation2 + $0x50] sm:$0x1]  ;;  %v1142_v57 = vrot.slane %v1140_v62, 5 }
  0xa5   : > { %v1739_v43 = vrot.slane %v1737_v40, 5  ;;  %v2086_v46 = vsel %vm8804_vm10, %v2084_v61, %v2085_v58  ;;  %v2168_v2 = vld [vmem:[#allocation2 + $0x54] sm:$0xf]  ;;  %v2315_v4 = vsel %vm8891_vm15, %v2310_v11, %v2314_v41  ;;  %v1144_v49 = vshrl.u32 %v9301_v37, 16 }
  0xa6   : > { %v7928_v47 = vcombine.low %v9289_v19, %v2086_v46  ;;  %v9313_v6 = vld [vmem:[#allocation2 + $0x58] sm:$0xf]  ;;  %v2324_v13 = vrot.slane %v2322_v15, 5  ;;  %v1137_v14 = vor.u32 %v1136_v16, %v1133_v48  ;;  %v2327_v3 = vshrl.u32 %v2168_v2, 16  ;;  %v9334_v15 = vpop.permute.xlu1 %2958 }
  0xa7   : > { %v1740_v59 = vsel %vm8891_vm15, %v1735_v20, %v1739_v43  ;;  %v2330_v26 = vshll.u32 %v2168_v2, 16  ;;  %v2340_v18 = vshrl.u32 %v9313_v6, 16  ;;  %v7944_v5 = vcombine.low %v2168_v2, %v9313_v6  ;;  %v949_v20 = vld [vmem:[#allocation2 + $0x54] sm:$0xf] }
  0xa8   : > { %v7912_v12 = vcombine.low %v1730_v28, %v1740_v59  ;;  %v9321_v44 = vld [vmem:[#allocation2 + $0x5c] sm:$0x1]  ;;  %v2336_v55 = vshll.u32 %v9313_v6, 16  ;;  %v2320_v19 = vrot.slane %v2319_v51, 4  ;;  %v2329_v54 = vrot.slane %v2327_v3, 4 }
  0xa9   : > { %v2332_v21 = vrot.slane %v2330_v26, 5  ;;  %v2342_v17 = vrot.slane %v2340_v18, 4  ;;  %v2346_v24 = vshll.u32 %v9321_v44, 16  ;;  %v1138_v22 = vrot.slane %v1137_v14, 4  ;;  %v950_v51 = vld [vmem:[#allocation2 + $0x58] sm:$0xf]  ;;  %v9340_v14 = vpop.permute.xlu0 %3054 }
  0xaa   : > { %3144 = vrot.lane.b32.xlu1 %v7912_v12, %s8657_s16  ;;  %v2338_v61 = vrot.slane %v2336_v55, 5  ;;  %v2325_v60 = vsel %vm8891_vm15, %v2320_v19, %v2324_v13  ;;  %v1150_v41 = vshll.u32 %v9325_v52, 16  ;;  %v7831_v11 = vrot.slane %v2594_v9, 9  ;;  %v2595_v19 = vld [vmem:[#allocation2 + $0x54] sm:$0xe] }
  0xab   : > { %v2333_v28 = vor.u32 %v2332_v21, %v2329_v54  ;;  %v2348_v35 = vrot.slane %v2346_v24, 5  ;;  %v7959_v36 = vcombine.low %v2315_v4, %v2325_v60  ;;  %v1143_v58 = vsel %vm8891_vm15, %v1138_v22, %v1142_v57 }
  0xac   : > { %v2343_v40 = vor.u32 %v2342_v17, %v2338_v61  ;;  %v1146_v16 = vrot.slane %v1144_v49, 4  ;;  %v2684_v43 = vrot.slane %v9280_v7, 5  ;;  %v2687_v46 = vrot.slane %v9305_v34, 5  ;;  %v974_v7 = vld [vmem:[#allocation2 + $0x5c] sm:$0x1] }
  0xad   : > { %v2334_v48 = vrot.slane %v2333_v28, 4  ;;  %3398 = vrot.lane.b32.xlu0 %v7959_v36, %s8658_s17  ;;  %v1152_v2 = vrot.slane %v1150_v41, 5  ;;  %v1155_v4 = vshrl.u32 %v949_v20, 16  ;;  %v1158_v13 = vshll.u32 %v949_v20, 16  ;;  %v9351_v28 = vpop.permute.xlu1 %3056 }
  0xae   : > { %3224 = vrot.lane.b32.xlu1 %v7928_v47, %s8655_s14  ;;  %v2344_v62 = vrot.slane %v2343_v40, 4  ;;  %v1147_v3 = vor.u32 %v1146_v16, %v1142_v57  ;;  %v2685_v26 = vsel %vm8804_vm10, %v7831_v11, %v2684_v43  ;;  %v2686_v18 = vrot.slane %v2684_v43, 4  ;;  %v1377_v57 = vld [vmem:[#allocation2 + $0x54] sm:$0xe]  ;;  %v1376_v40 = vld [vmem:[#allocation2 + $0x48] sm:$0xe]  ;;  %v9358_v16 = vpop.permute.xlu0 %3310 }
  0xaf   : > { %v2339_v59 = vsel %vm8891_vm15, %v2334_v48, %v2338_v61  ;;  %v1157_v12 = vrot.slane %v1155_v4, 4  ;;  %v1160_v47 = vrot.slane %v1158_v13, 5  ;;  %v1164_v55 = vshll.u32 %v950_v51, 16  ;;  %v260_v4 = vld [vmem:[#allocation2 + $0x60] sm:$0x1] }
  0xb0   : > { %v2349_v34 = vsel %vm8891_vm15, %v2344_v62, %v2348_v35  ;;  %v1148_v54 = vrot.slane %v1147_v3, 4  ;;  %v2688_v21 = vsel %vm8804_vm10, %v2686_v18, %v2687_v46  ;;  %v1168_v17 = vshrl.u32 %v950_v51, 16  ;;  %v480_v3 = vld [vmem:[%s8785_s9 + $0x38] sm:$0xf] }
  0xb1   : > { %v7960_v9 = vcombine.low %v2339_v59, %v2349_v34  ;;  %v7975_v24 = vcombine.low %v2685_v26, %v2688_v21  ;;  %v1161_v61 = vor.u32 %v1160_v47, %v1157_v12  ;;  %v1166_v60 = vrot.slane %v1164_v55, 5  ;;  %v481_v12 = vld [vmem:[%s8785_s9 + $0x3c] sm:$0xf]  ;;  %v1561_v21 = vld [vmem:[#allocation2 + $0x54] sm:$0xf] }
  0xb2   : > { %3320 = vrot.lane.b32.xlu1 %v7944_v5, %s8653_s12  ;;  %v1174_v22 = vshll.u32 %v974_v7, 16  ;;  %v1153_v35 = vsel %vm8891_vm15, %v1148_v54, %v1152_v2  ;;  %v1170_v36 = vrot.slane %v1168_v17, 4  ;;  %v7832_v49 = vrot.slane %v2595_v19, 9 }
  0xb3   : > { %v2691_v20 = vrot.slane %v9313_v6, 5  ;;  %v7865_v41 = vcombine.low %v1143_v58, %v1153_v35  ;;  %3478 = vrot.lane.b32.xlu0 %v7975_v24, %s8656_s15  ;;  %v1162_v5 = vrot.slane %v1161_v61, 4  ;;  %v2694_v48 = vrot.slane %v9321_v44, 5 }
  0xb4   : > { %v1176_v11 = vrot.slane %v1174_v22, 5  ;;  %v1171_v43 = vor.u32 %v1170_v36, %v1166_v60  ;;  %v7802_v2 = vrot.slane %v1377_v57, 9  ;;  %v1488_v58 = vrot.slane %v950_v51, 5  ;;  %v1562_v22 = vld [vmem:[#allocation2 + $0x58] sm:$0xf]  ;;  %v9385_v57 = vpop.permute.xlu0 %2878 }
  0xb5   : > { %v2692_v46 = vsel %vm8804_vm10, %v7832_v49, %v2691_v20  ;;  %v2693_v62 = vrot.slane %v2691_v20, 4  ;;  %v1167_v6 = vsel %vm8891_vm15, %v1162_v5, %v1166_v60  ;;  %v1491_v13 = vrot.slane %v974_v7, 5  ;;  %v9375_v7 = vpop.permute.xlu1 %3312 }
  0xb6   : > { %3400 = vrot.lane.b32.xlu1 %v7960_v9, %s8658_s17  ;;  %v7801_v59 = vrot.slane %v1376_v40, 9  ;;  %v1172_v44 = vrot.slane %v1171_v43, 4  ;;  %v1481_v18 = vrot.slane %v9301_v37, 5  ;;  %v1484_v34 = vrot.slane %v9325_v52, 5  ;;  %v316_v40 = vld [vmem:[#allocation2 + $0x68] sm:$0x1] }
  0xb7   : > { %v2695_v26 = vsel %vm8804_vm10, %v2693_v62, %v2694_v48  ;;  %v1489_v55 = vsel %vm8804_vm10, %v7802_v2, %v1488_v58  ;;  %v1490_v19 = vrot.slane %v1488_v58, 4  ;;  %v261_v51 = vsel %vm8750_vm3, 0, %v260_v4  ;;  %v1587_v43 = vld [vmem:[#allocation2 + $0x5c] sm:$0x1] }
  0xb8   : > { %v7976_v47 = vcombine.low %v2692_v46, %v2695_v26  ;;  %v1177_v9 = vsel %vm8891_vm15, %v1172_v44, %v1176_v11  ;;  %v1482_v54 = vsel %vm8804_vm10, %v7801_v59, %v1481_v18  ;;  %v1483_v37 = vrot.slane %v1481_v18, 4  ;;  %262 = vst [vmem:[#allocation2 + $0x60] sm:$0x1] %v261_v51  ;;  %v263_v44 = vld [vmem:[#allocation2 + $0x6c] sm:$0x1] }
  0xb9   : > { %v620_v52 = vshrl.u32 %v480_v3, 16  ;;  %v7866_v17 = vcombine.low %v1167_v6, %v1177_v9  ;;  %v1492_v24 = vsel %vm8804_vm10, %v1490_v19, %v1491_v13  ;;  %v623_v61 = vshll.u32 %v480_v3, 16  ;;  %v1987_v6 = vld [vmem:[#allocation2 + $0x54] sm:$0xe]  ;;  %v9395_v26 = vpop.permute.xlu1 %2960 }
  0xba   : > { %2890 = vrot.lane.b32.xlu1 %v7865_v41, %s8654_s13  ;;  %3480 = vrot.lane.b32.xlu0 %v7976_v47, %s8656_s15  ;;  %v628_v60 = vshrl.u32 %v481_v12, 16  ;;  %v7882_v35 = vcombine.low %v1489_v55, %v1492_v24  ;;  %v1485_v36 = vsel %vm8804_vm10, %v1483_v37, %v1484_v34  ;;  %v631_v20 = vshll.u32 %v481_v12, 16  ;;  %v482_v55 = vld [vmem:[%s8785_s9 + $0x40] sm:$0xf] }
  0xbb   : > { %v622_v49 = vrot.slane %v620_v52, 7  ;;  %v7881_v5 = vcombine.low %v1482_v54, %v1485_v36  ;;  %v1742_v11 = vshrl.u32 %v1561_v21, 16  ;;  %v1745_v48 = vshll.u32 %v1561_v21, 16  ;;  %v483_v52 = vld [vmem:[%s8785_s9 + $0x44] sm:$0xf] }
  0xbc   : > { %v9389_v41 = vrot.slane %v628_v60, 7  ;;  %v1755_v2 = vshrl.u32 %v1562_v22, 16  ;;  %v7897_v4 = vcombine.low %v1561_v21, %v1562_v22  ;;  %v317_v18 = vsel %vm8778_vm6, 0, %v316_v40  ;;  %v9403_v21 = vpop.permute.xlu0 %3214  ;;  %v319_v36 = vld [vmem:[#allocation2 + $0x74] sm:$0x1] }
  0xbd   : > { %v625_v46 = vor.u32 %v623_v61, %v622_v49  ;;  %v626_v62 = vrot.slane %v622_v49, 4  ;;  %v1744_v59 = vrot.slane %v1742_v11, 4  ;;  %v1747_v3 = vrot.slane %v1745_v48, 5  ;;  %318 = vst [vmem:[#allocation2 + $0x68] sm:$0x1] %v317_v18 }
  0xbe   : > { %2892 = vrot.lane.b32.xlu1 %v7866_v17, %s8654_s13  ;;  %2970 = vrot.lane.b32.xlu0 %v7881_v5, %s8651_s10  ;;  %v633_v58 = vor.u32 %v631_v20, %v9389_v41  ;;  %v635_v13 = vrot.slane %v9389_v41, 4  ;;  %v1751_v34 = vshll.u32 %v1562_v22, 16  ;;  %v1757_v12 = vrot.slane %v1755_v2, 4  ;;  %v266_v5 = vld [vmem:[#allocation2 + $0x78] sm:$0x1] }
  0xbf   : > { %v1761_v47 = vshll.u32 %v1587_v43, 16  ;;  %v872_v51 = vld [vmem:[#allocation2 + $0x60] sm:$0xf]  ;;  %v1748_v9 = vor.u32 %v1747_v3, %v1744_v59  ;;  %v7817_v54 = vrot.slane %v1987_v6, 9  ;;  %v2089_v37 = vrot.slane %v1562_v22, 5  ;;  %v9425_v6 = vpop.permute.xlu1 %3216 }
  0xc0   : > { %v634_v19 = vsel %vm8816_vm12, %v626_v62, %v633_v58  ;;  %v873_v17 = vsel %vm8810_vm11, %v625_v46, %v872_v51  ;;  %v1753_v24 = vrot.slane %v1751_v34, 5  ;;  %v2092_v60 = vrot.slane %v1587_v43, 5  ;;  %v9417_v46 = vld [vmem:[%s8785_s9 + $0x48] sm:$0xf]  ;;  %v9428_v18 = vpop.permute.xlu0 %3470 }
  0xc1   : > { %875 = vst.msk [vmem:[#allocation2 + $0x64] sm:$0xf] %vm224_vm0, %v634_v19  ;;  %v1763_v61 = vrot.slane %v1761_v47, 5  ;;  %874 = vst [vmem:[#allocation2 + $0x60] sm:$0xf] %v873_v17  ;;  %v1749_v49 = vrot.slane %v1748_v9, 4  ;;  %v9412_v22 = vsel %vm8804_vm10, %v7817_v54, %v2089_v37 }
  0xc2   : > { %2972 = vrot.lane.b32.xlu1 %v7882_v35, %s8651_s10  ;;  %3066 = vrot.lane.b32.xlu0 %v7897_v4, %s8652_s11  ;;  %v2091_v20 = vrot.slane %v2089_v37, 4  ;;  %v264_v40 = vsel %vm8750_vm3, 0, %v263_v44  ;;  %v1758_v41 = vor.u32 %v1757_v12, %v1753_v24  ;;  %v637_v11 = vshrl.u32 %v482_v55, 16 }
  0xc3   : > { %265 = vst [vmem:[#allocation2 + $0x6c] sm:$0x1] %v264_v40  ;;  %v640_v48 = vshll.u32 %v482_v55, 16  ;;  %v645_v43 = vshrl.u32 %v483_v52, 16  ;;  %v1754_v35 = vsel %vm8891_vm15, %v1749_v49, %v1753_v24  ;;  %v648_v2 = vshll.u32 %v483_v52, 16 }
  0xc4   : > { %v2093_v62 = vsel %vm8804_vm10, %v2091_v20, %v2092_v60  ;;  %v320_v4 = vsel %vm8778_vm6, 0, %v319_v36  ;;  %v1759_v58 = vrot.slane %v1758_v41, 4  ;;  %v639_v3 = vrot.slane %v637_v11, 7  ;;  %v876_v47 = vld [vmem:[#allocation2 + $0x68] sm:$0x1] }
  0xc5   : > { %v7929_v59 = vcombine.low %v9412_v22, %v2093_v62  ;;  %v647_v44 = vrot.slane %v645_v43, 7  ;;  %321 = vst [vmem:[#allocation2 + $0x74] sm:$0x1] %v320_v4  ;;  %vm3551_vm7 = vcmask 64512   ;;  %v267_v34 = vsel %vm8750_vm3, 0, %v266_v5 }
  0xc6   : > { %v1764_v55 = vsel %vm8891_vm15, %v1759_v58, %v1763_v61  ;;  %v642_v19 = vor.u32 %v640_v48, %v639_v3  ;;  %v643_v51 = vrot.slane %v639_v3, 4  ;;  %268 = vst [vmem:[#allocation2 + $0x78] sm:$0x1] %v267_v34  ;;  %v877_v37 = vsel %vm8750_vm3, %v635_v13, %v876_v47 }
  0xc7   : > { %v650_v9 = vor.u32 %v648_v2, %v647_v44  ;;  %v7913_v52 = vcombine.low %v1754_v35, %v1764_v55  ;;  %v652_v17 = vrot.slane %v647_v44, 4  ;;  %v3505_v60 = vsel %vm3502_vm1, %v7843_v25, %v9385_v57  ;;  %878 = vst [vmem:[#allocation2 + $0x68] sm:$0x1] %v877_v37  ;;  %v9452_v25 = vpop.permute.xlu1 %3136 }
  0xc8   : > { %v1564_v54 = vld [vmem:[#allocation2 + $0x64] sm:$0xf]  ;;  %v1563_v36 = vld [vmem:[#allocation2 + $0x60] sm:$0xf]  ;;  %v9448_v13 = vsel %vm3551_vm7, %v3505_v60, %v9334_v15  ;;  %vm12671_vm8 = vcmask 97280   ;;  %vm3617_vm9 = vcmask 130048  }
  0xc9   : > { %v9437_v24 = vld [vmem:[#allocation2 + $0x64] sm:$0xf]  ;;  %v1779_v61 = vshrl.u32 %v1564_v54, 16  ;;  %v1775_v49 = vshll.u32 %v1564_v54, 16  ;;  %v1988_v22 = vld [vmem:[#allocation2 + $0x60] sm:$0xe]  ;;  %v651_v20 = vsel %vm8816_vm12, %v643_v51, %v650_v9  ;;  %v7898_v41 = vcombine.low %v1563_v36, %v1564_v54  ;;  %3146 = vrot.lane.b32.xlu0 %v7913_v52, %s8657_s16 }
  0xca   : > { %v1766_v40 = vshrl.u32 %v1563_v36, 16  ;;  %v1769_v5 = vshll.u32 %v1563_v36, 16  ;;  %v7818_v27 = vrot.slane %v1988_v22, 9  ;;  %v879_v38 = vld [vmem:[#allocation2 + $0x6c] sm:$0xf]  ;;  %v2096_v48 = vrot.slane %v1564_v54, 5 }
  0xcb   : > { %882 = vst.msk [vmem:[#allocation2 + $0x70] sm:$0xf] %vm224_vm0, %v651_v20  ;;  %v9454_v57 = vrot.slane %v1775_v49, 5  ;;  %v1781_v11 = vrot.slane %v1779_v61, 4  ;;  %v880_v43 = vsel %vm8810_vm11, %v642_v19, %v879_v38  ;;  %v2170_v15 = vld [vmem:[#allocation2 + $0x60] sm:$0xf]  ;;  %3068 = vrot.lane.b32.xlu1 %v7898_v41, %s8652_s11  ;;  %v9459_v3 = vpop.permute.xlu0 %3472 }
  0xcc   : > { %v1768_v35 = vrot.slane %v1766_v40, 4  ;;  %v1771_v62 = vrot.slane %v1769_v5, 5  ;;  %881 = vst [vmem:[#allocation2 + $0x6c] sm:$0xf] %v880_v43  ;;  %v2351_v2 = vshrl.u32 %v2170_v15, 16  ;;  %v2354_v4 = vshll.u32 %v2170_v15, 16 }
  0xcd   : > { %v883_v58 = vld [vmem:[#allocation2 + $0x74] sm:$0x1]  ;;  %v1782_v44 = vor.u32 %v1781_v11, %v9454_v57  ;;  %v9464_v34 = vsel %vm8804_vm10, %v7818_v27, %v2096_v48  ;;  %v2098_v47 = vrot.slane %v2096_v48, 4  ;;  %v2364_v55 = vshrl.u32 %v9437_v24, 16  ;;  %v9467_v19 = vld [vmem:[#allocation2 + $0x60] sm:$0xf]  ;;  %3226 = vrot.lane.b32.xlu0 %v7929_v59, %s8655_s14  ;;  %v9477_v59 = vpop.permute.xlu1 %3392 }
  0xce   : > { %v1772_v51 = vor.u32 %v1771_v62, %v1768_v35  ;;  %v2353_v9 = vrot.slane %v2351_v2, 4  ;;  %v2356_v54 = vrot.slane %v2354_v4, 5  ;;  %v7945_v37 = vcombine.low %v2170_v15, %v9437_v24  ;;  %v1588_v49 = vld [vmem:[#allocation2 + $0x68] sm:$0x1]  ;;  %v9481_v27 = vld [vmem:[#allocation2 + $0x30] sm:$0xf] }
  0xcf   : > { %v1783_v52 = vrot.slane %v1782_v44, 4  ;;  %v884_v60 = vsel %vm8750_vm3, %v652_v17, %v883_v58  ;;  %v2360_v36 = vshll.u32 %v9437_v24, 16  ;;  %v2366_v61 = vrot.slane %v2364_v55, 4  ;;  %v9474_v20 = vld [vmem:[#allocation2 + $0x68] sm:$0x1]  ;;  %v9479_v41 = vpop.permute.xlu0 %2880  ;;  %12689 = vst [vmem:[#allocation8_spill] sm:$0xff] %v9481_v27 }
  0xd0   : > { %v1773_v22 = vrot.slane %v1772_v51, 4  ;;  %885 = vst [vmem:[#allocation2 + $0x74] sm:$0x1] %v884_v60  ;;  %v2357_v40 = vor.u32 %v2356_v54, %v2353_v9  ;;  %v1179_v5 = vshrl.u32 %v9467_v19, 16  ;;  %v1785_v38 = vshll.u32 %v1588_v49, 16 }
  0xd1   : > { %v2099_v11 = vrot.slane %v1588_v49, 5  ;;  %v2362_v43 = vrot.slane %v2360_v36, 5  ;;  %v2370_v15 = vshll.u32 %v9474_v20, 16  ;;  %3322 = vrot.lane.b32.xlu0 %v7945_v37, %s8653_s12  ;;  %v9503_v36 = vld [vmem:[#allocation2 + $0x64] sm:$0xf]  ;;  %v9513_v0 = vpop.permute.xlu1 %2882  ;;  %v1182_v53 = vshll.u32 %v9467_v19, 16 }
  0xd2   : > { %v9485_v48 = vld [vmem:[#allocation2 + $0x70] sm:$0xf]  ;;  %v1778_v35 = vsel %vm8891_vm15, %v1773_v22, %v9454_v57  ;;  %v2358_v4 = vrot.slane %v2357_v40, 4  ;;  %v1787_v58 = vrot.slane %v1785_v38, 5  ;;  %v1181_v33 = vrot.slane %v1179_v5, 4 }
  0xd3   : > { %v2388_v62 = vshrl.u32 %v9485_v48, 16  ;;  %v2384_v2 = vshll.u32 %v9485_v48, 16  ;;  %v2100_v44 = vsel %vm8804_vm10, %v2098_v47, %v2099_v11  ;;  %v9496_v55 = vld [vmem:[#allocation2 + $0x6c] sm:$0xf]  ;;  %v2367_v51 = vor.u32 %v2366_v61, %v2362_v43  ;;  %v9505_v49 = vpop.permute.xlu0 %3134  ;;  %v954_v12 = vld [vmem:[#allocation2 + $0x70] sm:$0xf] }
  0xd4   : > { %v2372_v9 = vrot.slane %v2370_v15, 5  ;;  %v7930_v54 = vcombine.low %v9464_v34, %v2100_v44  ;;  %v2375_v60 = vshrl.u32 %v9496_v55, 16  ;;  %v2378_v57 = vshll.u32 %v9496_v55, 16  ;;  %v9511_v44 = vld [vmem:[#allocation2 + $0x68] sm:$0x1] }
  0xd5   : > { %v7946_v37 = vcombine.low %v9496_v55, %v9485_v48  ;;  %v1788_v47 = vsel %vm8891_vm15, %v1783_v52, %v1787_v58  ;;  %v2386_v22 = vrot.slane %v2384_v2, 5  ;;  %v2390_v40 = vrot.slane %v2388_v62, 4  ;;  %v1378_v30 = vld [vmem:[#allocation2 + $0x60] sm:$0xe]  ;;  %v8555_v32 = vld [vmem:[#allocation2 + $0x70] sm:$0xf] }
  0xd6   : > { %v2363_v61 = vsel %vm8891_vm15, %v2358_v4, %v2362_v43  ;;  %v7914_v34 = vcombine.low %v1778_v35, %v1788_v47  ;;  %v2377_v38 = vrot.slane %v2375_v60, 4  ;;  %v2380_v11 = vrot.slane %v2378_v57, 5  ;;  %v2596_v4 = vld [vmem:[#allocation2 + $0x60] sm:$0xe] }
  0xd7   : > { %v2368_v15 = vrot.slane %v2367_v51, 4  ;;  %v9515_v55 = vld [vmem:[#allocation2 + $0x74] sm:$0x1]  ;;  %v2391_v17 = vor.u32 %v2390_v40, %v2386_v22  ;;  %v1188_v52 = vshll.u32 %v9503_v36, 16  ;;  %v1192_v2 = vshrl.u32 %v9503_v36, 16  ;;  %v9524_v58 = vpop.permute.xlu0 %3390 }
  0xd8   : > { %3148 = vrot.lane.b32.xlu1 %v7914_v34, %s8657_s16  ;;  %v2381_v62 = vor.u32 %v2380_v11, %v2377_v38  ;;  %v2394_v43 = vshll.u32 %v9515_v55, 16  ;;  %v1184_v5 = vrot.slane %v1182_v53, 5  ;;  %v1198_v34 = vshll.u32 %v9511_v44, 16  ;;  %v953_v38 = vld [vmem:[#allocation2 + $0x6c] sm:$0xf] }
  0xd9   : > { %v2373_v35 = vsel %vm8891_vm15, %v2368_v15, %v2372_v9  ;;  %v2392_v51 = vrot.slane %v2391_v17, 4  ;;  %v1190_v57 = vrot.slane %v1188_v52, 5  ;;  %v1194_v40 = vrot.slane %v1192_v2, 4 }
  0xda   : > { %v7961_v60 = vcombine.low %v2363_v61, %v2373_v35  ;;  %v2382_v19 = vrot.slane %v2381_v62, 4  ;;  %v2396_v47 = vrot.slane %v2394_v43, 5  ;;  %v1185_v11 = vor.u32 %v1184_v5, %v1181_v33  ;;  %v976_v62 = vld [vmem:[#allocation2 + $0x74] sm:$0x1]  ;;  %v9535_v43 = vpop.permute.xlu1 %2884 }
  0xdb   : > { %v7833_v50 = vrot.slane %v2596_v4, 9  ;;  %v2698_v9 = vrot.slane %v9437_v24, 5  ;;  %v2701_v15 = vrot.slane %v9474_v20, 5  ;;  %v1195_v61 = vor.u32 %v1194_v40, %v1190_v57  ;;  %v9537_v33 = vpop.permute.xlu0 %2962  ;;  %v2597_v40 = vld [vmem:[#allocation2 + $0x6c] sm:$0xe] }
  0xdc   : > { %3402 = vrot.lane.b32.xlu0 %v7961_v60, %s8658_s17  ;;  %3228 = vrot.lane.b32.xlu1 %v7930_v54, %s8655_s14  ;;  %v2387_v53 = vsel %vm8891_vm15, %v2382_v19, %v2386_v22  ;;  %v2397_v17 = vsel %vm8891_vm15, %v2392_v51, %v2396_v47  ;;  %v1200_v52 = vrot.slane %v1198_v34, 5  ;;  %v1186_v24 = vrot.slane %v1185_v11, 4 }
  0xdd   : > { %v7962_v35 = vcombine.low %v2387_v53, %v2397_v17  ;;  %v2699_v20 = vsel %vm8804_vm10, %v7833_v50, %v2698_v9  ;;  %v2700_v2 = vrot.slane %v2698_v9, 4  ;;  %v1196_v54 = vrot.slane %v1195_v61, 4  ;;  %v1379_v53 = vld [vmem:[#allocation2 + $0x6c] sm:$0xe] }
  0xde   : > { %v1203_v4 = vshrl.u32 %v953_v38, 16  ;;  %v1206_v60 = vshll.u32 %v953_v38, 16  ;;  %v1212_v22 = vshll.u32 %v954_v12, 16  ;;  %v1191_v51 = vsel %vm8891_vm15, %v1186_v24, %v1190_v57 }
  0xdf   : > { %v2702_v5 = vsel %vm8804_vm10, %v2700_v2, %v2701_v15  ;;  %v1216_v19 = vshrl.u32 %v954_v12, 16  ;;  %v1222_v47 = vshll.u32 %v976_v62, 16  ;;  %v1201_v34 = vsel %vm8891_vm15, %v1196_v54, %v1200_v52  ;;  %v9548_v38 = vpop.permute.xlu0 %3058  ;;  %v9553_v52 = vpop.permute.xlu1 %2964 }
  0xe0   : > { %3324 = vrot.lane.b32.xlu1 %v7946_v37, %s8653_s12  ;;  %v7977_v50 = vcombine.low %v2699_v20, %v2702_v5  ;;  %v1205_v11 = vrot.slane %v1203_v4, 4  ;;  %v1208_v9 = vrot.slane %v1206_v60, 5  ;;  %v7867_v17 = vcombine.low %v1191_v51, %v1201_v34 }
  0xe1   : > { %v1214_v61 = vrot.slane %v1212_v22, 5  ;;  %v1218_v57 = vrot.slane %v1216_v19, 4  ;;  %v1224_v24 = vrot.slane %v1222_v47, 5  ;;  %v7834_v2 = vrot.slane %v2597_v40, 9 }
  0xe2   : > { %3482 = vrot.lane.b32.xlu0 %v7977_v50, %s8656_s15  ;;  %v1209_v15 = vor.u32 %v1208_v9, %v1205_v11  ;;  %v2705_v37 = vrot.slane %v9485_v48, 5  ;;  %v2708_v27 = vrot.slane %v9515_v55, 5  ;;  %v7804_v54 = vrot.slane %v1379_v53, 9  ;;  %v485_v50 = vld [vmem:[%s8785_s9 + $0x4c] sm:$0xf] }
  0xe3   : > { %v1219_v20 = vor.u32 %v1218_v57, %v1214_v61  ;;  %v1502_v4 = vrot.slane %v954_v12, 5  ;;  %v1505_v60 = vrot.slane %v976_v62, 5  ;;  %v7803_v19 = vrot.slane %v1378_v30, 9  ;;  %v9558_v47 = vpop.permute.xlu0 %3138  ;;  %v1565_v9 = vld [vmem:[#allocation2 + $0x6c] sm:$0xf] }
  0xe4   : > { %3404 = vrot.lane.b32.xlu1 %v7962_v35, %s8658_s17  ;;  %v1210_v22 = vrot.slane %v1209_v15, 4  ;;  %v2706_v51 = vsel %vm8804_vm10, %v7834_v2, %v2705_v37  ;;  %v2707_v5 = vrot.slane %v2705_v37, 4  ;;  %v1495_v34 = vrot.slane %v9503_v36, 5  ;;  %v9577_v15 = vld [vmem:[#allocation2 + $0x70] sm:$0xf] }
  0xe5   : > { %v1220_v48 = vrot.slane %v1219_v20, 4  ;;  %v1503_v55 = vsel %vm8804_vm10, %v7804_v54, %v1502_v4  ;;  %v1504_v40 = vrot.slane %v1502_v4, 4  ;;  %v1498_v35 = vrot.slane %v9511_v44, 5  ;;  %v9581_v20 = vpop.permute.xlu1 %3060 }
  0xe6   : > { %v1215_v12 = vsel %vm8891_vm15, %v1210_v22, %v1214_v61  ;;  %v2709_v62 = vsel %vm8804_vm10, %v2707_v5, %v2708_v27  ;;  %v12690_v30 = vshrl.u32 %v9417_v46, 16  ;;  %v1496_v61 = vsel %vm8804_vm10, %v7803_v19, %v1495_v34  ;;  %v886_v22 = vld [vmem:[#allocation2 + $0x78] sm:$0xf] }
  0xe7   : > { %v1225_v53 = vsel %vm8891_vm15, %v1220_v48, %v1224_v24  ;;  %v7978_v57 = vcombine.low %v2706_v51, %v2709_v62  ;;  %v1506_v36 = vsel %vm8804_vm10, %v1504_v40, %v1505_v60  ;;  %v1497_v2 = vrot.slane %v1495_v34, 4  ;;  %v9583_v54 = vpop.permute.xlu0 %3218 }
  0xe8   : > { %v656_v11 = vrot.slane %v12690_v30, 7  ;;  %2894 = vrot.lane.b32.xlu1 %v7867_v17, %s8654_s13  ;;  %v7868_v27 = vcombine.low %v1215_v12, %v1225_v53  ;;  %v7884_v44 = vcombine.low %v1503_v55, %v1506_v36  ;;  %v657_v37 = vshll.u32 %v9417_v46, 16  ;;  %v322_v55 = vld [vmem:[#allocation2 + $0x80] sm:$0x1] }
  0xe9   : > { %3484 = vrot.lane.b32.xlu0 %v7978_v57, %s8656_s15  ;;  %v662_v4 = vshrl.u32 %v485_v50, 16  ;;  %v665_v60 = vshll.u32 %v485_v50, 16  ;;  %v1790_v51 = vshrl.u32 %v1565_v9, 16  ;;  %v1499_v5 = vsel %vm8804_vm10, %v1497_v2, %v1498_v35  ;;  %v1589_v35 = vld [vmem:[#allocation2 + $0x74] sm:$0x1] }
  0xea   : > { %v660_v24 = vrot.slane %v656_v11, 4  ;;  %v659_v17 = vor.u32 %v657_v37, %v656_v11  ;;  %v1793_v19 = vshll.u32 %v1565_v9, 16  ;;  %v1803_v48 = vshrl.u32 %v9577_v15, 16  ;;  %v1989_v37 = vld [vmem:[#allocation2 + $0x6c] sm:$0xe] }
  0xeb   : > { %v7883_v46 = vcombine.low %v1496_v61, %v1499_v5  ;;  %v9589_v40 = vrot.slane %v662_v4, 7  ;;  %v1792_v34 = vrot.slane %v1790_v51, 4  ;;  %v7899_v12 = vcombine.low %v1565_v9, %v9577_v15 }
  0xec   : > { %2896 = vrot.lane.b32.xlu1 %v7868_v27, %s8654_s13  ;;  %v887_v62 = vsel %vm8810_vm11, %v659_v17, %v886_v22  ;;  %v1795_v50 = vrot.slane %v1793_v19, 5  ;;  %v12691_v9 = vcombine.low %v8951_v56, %v9274_v42  ;;  %v323_v57 = vsel %vm8778_vm6, 0, %v322_v55 }
  0xed   : > { %2974 = vrot.lane.b32.xlu0 %v7883_v46, %s8651_s10  ;;  %v667_v30 = vor.u32 %v665_v60, %v9589_v40  ;;  %v669_v11 = vrot.slane %v9589_v40, 4  ;;  %888 = vst [vmem:[#allocation2 + $0x78] sm:$0xf] %v887_v62  ;;  %324 = vst [vmem:[#allocation2 + $0x80] sm:$0x1] %v323_v57  ;;  %v1799_v27 = vshll.u32 %v9577_v15, 16  ;;  %v9608_v4 = vpop.permute.xlu1 %3140  ;;  %v9610_v60 = vpop.permute.xlu0 %3314 }
  0xee   : > { %v3508_v53 = vsel %vm3502_vm1, %v12691_v9, %v9479_v41  ;;  %v1796_v61 = vor.u32 %v1795_v50, %v1792_v34  ;;  %v1805_v2 = vrot.slane %v1803_v48, 4  ;;  %v1809_v41 = vshll.u32 %v1589_v35, 16  ;;  %v486_v57 = vld [vmem:[%s8785_s9 + $0x50] sm:$0xf] }
  0xef   : > { %v3555_v36 = vsel %vm3551_vm7, %v3508_v53, %v9395_v26  ;;  %v668_v56 = vsel %vm8816_vm12, %v660_v24, %v667_v30  ;;  %v12692_v26 = vcombine.low %v8975_v10, %v8980_v45  ;;  %v1801_v5 = vrot.slane %v1799_v27, 5  ;;  %v8486_v10 = vld [vmem:[%s12658_s1 + $0x10] ss:$0 sps:$4 sm:$0x33]   ;;  %v269_v53 = vld [vmem:[#allocation2 + $0x84] sm:$0x1] }
  0xf0   : > { %v3588_v42 = vsel %vm12671_vm8, %v3555_v36, %v9351_v28  ;;  %2976 = vrot.lane.b32.xlu1 %v7884_v44, %s8651_s10  ;;  %889 = vst.msk [vmem:[#allocation2 + $0x7c] sm:$0xf] %vm224_vm0, %v668_v56  ;;  %v1797_v24 = vrot.slane %v1796_v61, 4  ;;  %v3586_v28 = vsel %vm12671_vm8, %v9448_v13, %v9340_v14  ;;  %vm3650_vm13 = vcmask 162816  }
  0xf1   : > { %v9621_v22 = vsel %vm3502_vm1, %v12692_v26, %v9513_v0  ;;  %v9627_v51 = vsel %vm3617_vm9, %v3588_v42, %v9452_v25  ;;  %3070 = vrot.lane.b32.xlu0 %v7899_v12, %s8652_s11  ;;  %v1811_v0 = vrot.slane %v1809_v41, 5  ;;  %v3619_v45 = vsel %vm3617_vm9, %v3586_v28, %v9505_v49  ;;  %v9650_v49 = vpop.permute.xlu1 %3220  ;;  %v487_v26 = vld [vmem:[%s8785_s9 + $0x54] sm:$0xf] }
  0xf2   : > { %v7819_v44 = vrot.slane %v1989_v37, 9  ;;  %v1802_v25 = vsel %vm8891_vm15, %v1797_v24, %v1801_v5  ;;  %v1806_v17 = vor.u32 %v1805_v2, %v1801_v5  ;;  %v3652_v19 = vsel %vm3650_vm13, %v3619_v45, %v9403_v21 }
  0xf3   : > { %v2103_v14 = vrot.slane %v9577_v15, 5  ;;  %v2106_v13 = vrot.slane %v1589_v35, 5  ;;  %v12693_v48 = vcombine.low %v8998_v23, %v9010_v31  ;;  %vm3842_vm14 = vcmask 1041408   ;;  %v9657_v31 = vpop.permute.xlu0 %3394 }
  0xf4   : > { %vm3683_vm4 = vcmask 195584   ;;  %v1567_v46 = vld [vmem:[#allocation2 + $0x78] sm:$0xf]  ;;  %v1807_v40 = vrot.slane %v1806_v17, 4  ;;  %8412 = vmatprep.subr.msk.bf16.mxu0 %vm3842_vm14, %v8486_v10  ;;  %v890_v62 = vld [vmem:[#allocation2 + $0x80] sm:$0x1] }
  0xf5   : > { %v9648_v55 = vsel %vm3502_vm1, %v12693_v48, %v9535_v43  ;;  %v1990_v34 = vld [vmem:[#allocation2 + $0x78] sm:$0xe]  ;;  %v2104_v21 = vsel %vm8804_vm10, %v7819_v44, %v2103_v14  ;;  %v2105_v15 = vrot.slane %v2103_v14, 4  ;;  %v3685_v23 = vsel %vm3683_vm4, %v3652_v19, %v9358_v16  ;;  %v9675_v45 = vpop.permute.xlu1 %3316 }
  0xf6   : > { %v1814_v43 = vshrl.u32 %v1567_v46, 16  ;;  %v1817_v12 = vshll.u32 %v1567_v46, 16  ;;  %v7820_v50 = vrot.slane %v1990_v34, 9  ;;  %vm3716_vm5 = vcmask 228352  }
  0xf7   : > { %v891_v35 = vsel %vm8750_vm3, %v669_v11, %v890_v62  ;;  %v1812_v30 = vsel %vm8891_vm15, %v1807_v40, %v1811_v0  ;;  %v2107_v9 = vsel %vm8804_vm10, %v2105_v15, %v2106_v13  ;;  %v9667_v16 = vsel %vm3716_vm5, %v3685_v23, %v9524_v58  ;;  %v1568_v36 = vld [vmem:[#allocation2 + $0x7c] sm:$0xf]  ;;  %v2174_v0 = vld [vmem:[#allocation2 + $0x78] sm:$0xf] }
  0xf8   : > { %v1816_v61 = vrot.slane %v1814_v43, 4  ;;  %v1819_v27 = vrot.slane %v1817_v12, 5  ;;  %892 = vst [vmem:[#allocation2 + $0x80] sm:$0x1] %v891_v35  ;;  %v7915_v2 = vcombine.low %v1802_v25, %v1812_v30  ;;  %v7931_v37 = vcombine.low %v2104_v21, %v2107_v9  ;;  %v9684_v40 = vld [vmem:[#allocation2 + $0x7c] sm:$0xf] }
  0xf9   : > { %v1827_v11 = vshrl.u32 %v1568_v36, 16  ;;  %v7900_v56 = vcombine.low %v1567_v46, %v1568_v36  ;;  %v1823_v42 = vshll.u32 %v1568_v36, 16  ;;  %v2110_v41 = vrot.slane %v1568_v36, 5  ;;  %v9682_v14 = vpop.permute.xlu0 %3474 }
  0xfa   : > { %v1820_v24 = vor.u32 %v1819_v27, %v1816_v61  ;;  %3150 = vrot.lane.b32.xlu0 %v7915_v2, %s8657_s16  ;;  %v3844_v5 = vsel %vm3842_vm14, %v8486_v10, 0  ;;  %v270_v58 = vsel %vm8750_vm3, 0, %v269_v53  ;;  %v671_v28 = vshrl.u32 %v486_v57, 16 }
  0xfb   : > { %3072 = vrot.lane.b32.xlu1 %v7900_v56, %s8652_s11  ;;  %v1825_v44 = vrot.slane %v1823_v42, 5  ;;  %v1829_v25 = vrot.slane %v1827_v11, 4  ;;  %v9680_v17 = vsel %vm8804_vm10, %v7820_v50, %v2110_v41  ;;  %v2112_v19 = vrot.slane %v2110_v41, 4  ;;  %8337 = vmatpush3.bf16.msra.mxu0 %v3844_v5  ;;  %271 = vst [vmem:[#allocation2 + $0x84] sm:$0x1] %v270_v58  ;;  %v9694_v56 = vpop.permute.xlu1 %3396 }
  0xfc   : > { %v1821_v10 = vrot.slane %v1820_v24, 4  ;;  %v673_v13 = vrot.slane %v671_v28, 7  ;;  %v674_v48 = vshll.u32 %v486_v57, 16  ;;  %v679_v46 = vshrl.u32 %v487_v26, 16  ;;  %v325_v11 = vld [vmem:[#allocation2 + $0x8c] sm:$0x1] }
  0xfd   : > { %v1830_v34 = vor.u32 %v1829_v25, %v1825_v44  ;;  %v682_v21 = vshll.u32 %v487_v26, 16  ;;  %v2399_v15 = vshrl.u32 %v2174_v0, 16  ;;  %v2402_v23 = vshll.u32 %v2174_v0, 16 }
  0xfe   : > { %v1826_v43 = vsel %vm8891_vm15, %v1821_v10, %v1825_v44  ;;  %3230 = vrot.lane.b32.xlu0 %v7931_v37, %s8655_s14  ;;  %v676_v12 = vor.u32 %v674_v48, %v673_v13  ;;  %v677_v62 = vrot.slane %v673_v13, 4  ;;  %v9689_v50 = vrot.slane %v679_v46, 7  ;;  %v955_v10 = vld [vmem:[#allocation2 + $0x78] sm:$0xf]  ;;  %v9732_v46 = vld [vmem:[#allocation2 + $0x7c] sm:$0xf] }
  0xff   : > { %v1590_v35 = vld [vmem:[#allocation2 + $0x80] sm:$0x1]  ;;  %v1831_v30 = vrot.slane %v1830_v34, 4  ;;  %v2401_v9 = vrot.slane %v2399_v15, 4  ;;  %v2404_v53 = vrot.slane %v2402_v23, 5  ;;  %v2412_v57 = vshrl.u32 %v9684_v40, 16  ;;  %v9700_v41 = vpop.permute.xlu0 %3476  ;;  %v9741_v15 = vpop.permute.xlu1 %2886 }
 0x100   : > { %v1833_v36 = vshll.u32 %v1590_v35, 16  ;;  %v2113_v61 = vrot.slane %v1590_v35, 5  ;;  %v684_v27 = vor.u32 %v682_v21, %v9689_v50  ;;  %v686_v2 = vrot.slane %v9689_v50, 4  ;;  %v9720_v25 = vld [vmem:[#allocation2 + $0x80] sm:$0x1] }
 0x101   : > { %v7947_v37 = vcombine.low %v2174_v0, %v9684_v40  ;;  %v3559_v42 = vsel %vm3551_vm7, %v9648_v55, %v9553_v52  ;;  %vm3749_vm14 = vcmask 261120   ;;  %vm12670_vm2 = vcmask 293888   ;;  %v9734_v34 = vld [vmem:[#allocation2 + $0x80] sm:$0x1] }
 0x102   : > { %v1835_v26 = vrot.slane %v1833_v36, 5  ;;  %v2114_v24 = vsel %vm8804_vm10, %v2112_v19, %v2113_v61  ;;  %v685_v5 = vsel %vm8816_vm12, %v677_v62, %v684_v27  ;;  %v893_v58 = vld [vmem:[#allocation2 + $0x84] sm:$0xf]  ;;  %v3751_v28 = vsel %vm3749_vm14, %v9667_v16, %v9428_v18  ;;  %v2598_v62 = vld [vmem:[#allocation2 + $0x78] sm:$0xe] }
 0x103   : > { %v7932_v0 = vcombine.low %v9680_v17, %v2114_v24  ;;  %v894_v52 = vsel %vm8810_vm11, %v676_v12, %v893_v58  ;;  %896 = vst.msk [vmem:[#allocation2 + $0x88] sm:$0xf] %vm224_vm0, %v685_v5  ;;  %3326 = vrot.lane.b32.xlu0 %v7947_v37, %s8653_s12  ;;  %8338 = vmatprep.mubr.msk.bf16.mxu0 %vm12670_vm2, %v3751_v28  ;;  %v326_v44 = vsel %vm8778_vm6, 0, %v325_v11  ;;  %v2408_v13 = vshll.u32 %v9684_v40, 16  ;;  %v9743_v23 = vpop.permute.xlu0 %2966 }
 0x104   : > { %v3654_v55 = vsel %vm3650_vm13, %v9627_v51, %v9425_v6  ;;  %v1836_v18 = vsel %vm8891_vm15, %v1831_v30, %v1835_v26  ;;  %895 = vst [vmem:[#allocation2 + $0x84] sm:$0xf] %v894_v52  ;;  %v3557_v17 = vsel %vm3551_vm7, %v9621_v22, %v9537_v33  ;;  %327 = vst [vmem:[#allocation2 + $0x8c] sm:$0x1] %v326_v44  ;;  %v2414_v48 = vrot.slane %v2412_v57, 4 }
 0x105   : > { %v3687_v16 = vsel %vm3683_vm4, %v3654_v55, %v9375_v7  ;;  %v2405_v19 = vor.u32 %v2404_v53, %v2401_v9  ;;  %v7916_v6 = vcombine.low %v1826_v43, %v1836_v18  ;;  %v2418_v33 = vshll.u32 %v9720_v25, 16 }
 0x106   : > { %v3720_v51 = vsel %vm3716_vm5, %v3687_v16, %v9477_v59  ;;  %v3592_v22 = vsel %vm12671_vm8, %v3559_v42, %v9581_v20  ;;  %v2410_v59 = vrot.slane %v2408_v13, 5  ;;  %v3590_v43 = vsel %vm12671_vm8, %v3557_v17, %v9548_v38 }
 0x107   : > { %v3753_v7 = vsel %vm3749_vm14, %v3720_v51, %v9459_v3  ;;  %v2406_v21 = vrot.slane %v2405_v19, 4  ;;  %3152 = vrot.lane.b32.xlu1 %v7916_v6, %s8657_s16  ;;  %v1227_v12 = vshrl.u32 %v955_v10, 16  ;;  %v1230_v3 = vshll.u32 %v955_v10, 16  ;;  %v9768_v17 = vpop.permute.xlu0 %3062 }
 0x108   : > { %8339 = vmatmul.mubr.msk.bf16.vlgmr.msra.gmra.mrb[0].mxu0 %vm12670_vm2, %v3753_v7  ;;  %v2420_v35 = vrot.slane %v2418_v33, 5  ;;  %v1236_v30 = vshll.u32 %v9732_v46, 16  ;;  %v1240_v20 = vshrl.u32 %v9732_v46, 16  ;;  %v1246_v9 = vshll.u32 %v9734_v34, 16 }
 0x109   : > { %v2411_v53 = vsel %vm8891_vm15, %v2406_v21, %v2410_v59  ;;  %v2415_v57 = vor.u32 %v2414_v48, %v2410_v59  ;;  %v1229_v36 = vrot.slane %v1227_v12, 4  ;;  %v1232_v61 = vrot.slane %v1230_v3, 5 }
 0x10a   : > { %v9754_v27 = vld [vmem:[#allocation2 + $0x88] sm:$0xf]  ;;  %v1238_v11 = vrot.slane %v1236_v30, 5  ;;  %v1242_v38 = vrot.slane %v1240_v20, 4  ;;  %v1248_v37 = vrot.slane %v1246_v9, 5  ;;  %v7835_v42 = vrot.slane %v2598_v62, 9 }
 0x10b   : > { %3232 = vrot.lane.b32.xlu1 %v7932_v0, %s8655_s14  ;;  %v2176_v26 = vld [vmem:[#allocation2 + $0x84] sm:$0xf]  ;;  %v2436_v24 = vshrl.u32 %v9754_v27, 16  ;;  %v897_v5 = vld [vmem:[#allocation2 + $0x8c] sm:$0x1]  ;;  %v2432_v58 = vshll.u32 %v9754_v27, 16  ;;  %v1233_v28 = vor.u32 %v1232_v61, %v1229_v36  ;;  %v3625_v52 = vsel %vm3617_vm9, %v3592_v22, %v9608_v4  ;;  %v9766_v0 = vpop.permute.xlu1 %2888 }
 0x10c   : > { %v2423_v55 = vshrl.u32 %v2176_v26, 16  ;;  %v2426_v44 = vshll.u32 %v2176_v26, 16  ;;  %v7948_v18 = vcombine.low %v2176_v26, %v9754_v27  ;;  %v898_v16 = vsel %vm8750_vm3, %v686_v2, %v897_v5  ;;  %v957_v21 = vld [vmem:[#allocation2 + $0x84] sm:$0xf]  ;;  %v958_v59 = vld [vmem:[#allocation2 + $0x88] sm:$0xf] }
 0x10d   : > { %899 = vst [vmem:[#allocation2 + $0x8c] sm:$0x1] %v898_v16  ;;  %v9770_v19 = vrot.slane %v2432_v58, 5  ;;  %v2438_v10 = vrot.slane %v2436_v24, 4  ;;  %v2416_v6 = vrot.slane %v2415_v57, 4  ;;  %v1234_v51 = vrot.slane %v1233_v28, 4 }
 0x10e   : > { %v2425_v4 = vrot.slane %v2423_v55, 4  ;;  %v2428_v13 = vrot.slane %v2426_v44, 5  ;;  %v1243_v48 = vor.u32 %v1242_v38, %v1238_v11  ;;  %v2712_v7 = vrot.slane %v9684_v40, 5  ;;  %v9789_v38 = vpop.permute.xlu0 %3142 }
 0x10f   : > { %3328 = vrot.lane.b32.xlu1 %v7948_v18, %s8653_s12  ;;  %v2439_v50 = vor.u32 %v2438_v10, %v9770_v19  ;;  %v2421_v2 = vsel %vm8891_vm15, %v2416_v6, %v2420_v35  ;;  %v1239_v33 = vsel %vm8891_vm15, %v1234_v51, %v1238_v11  ;;  %v2715_v22 = vrot.slane %v9720_v25, 5  ;;  %v2599_v11 = vld [vmem:[#allocation2 + $0x84] sm:$0xe] }
 0x110   : > { %v2429_v12 = vor.u32 %v2428_v13, %v2425_v4  ;;  %v7963_v3 = vcombine.low %v2411_v53, %v2421_v2  ;;  %v1244_v62 = vrot.slane %v1243_v48, 4  ;;  %v2713_v40 = vsel %vm8804_vm10, %v7835_v42, %v2712_v7  ;;  %v9787_v53 = vpop.permute.xlu1 %2968  ;;  %v1381_v6 = vld [vmem:[#allocation2 + $0x84] sm:$0xe]  ;;  %v1380_v2 = vld [vmem:[#allocation2 + $0x78] sm:$0xe] }
 0x111   : > { %v2440_v30 = vrot.slane %v2439_v50, 4  ;;  %v2714_v20 = vrot.slane %v2712_v7, 4  ;;  %v3623_v9 = vsel %vm3617_vm9, %v3590_v43, %v9558_v47  ;;  %v1251_v57 = vshrl.u32 %v957_v21, 16 }
 0x112   : > { %v2430_v36 = vrot.slane %v2429_v12, 4  ;;  %3406 = vrot.lane.b32.xlu0 %v7963_v3, %s8658_s17  ;;  %v1249_v35 = vsel %vm8891_vm15, %v1244_v62, %v1248_v37  ;;  %v1254_v25 = vshll.u32 %v957_v21, 16  ;;  %v1260_v61 = vshll.u32 %v958_v59, 16 }
 0x113   : > { %v9791_v42 = vcombine.low %v1239_v33, %v1249_v35  ;;  %v2716_v26 = vsel %vm8804_vm10, %v2714_v20, %v2715_v22  ;;  %v1253_v47 = vrot.slane %v1251_v57, 4  ;;  %v1264_v43 = vshrl.u32 %v958_v59, 16  ;;  %v272_v35 = vld [vmem:[#allocation2 + $0x90] sm:$0x1] }
 0x114   : > { %v2199_v24 = vld [vmem:[#allocation2 + $0x8c] sm:$0x1]  ;;  %v2435_v5 = vsel %vm8891_vm15, %v2430_v36, %v9770_v19  ;;  %v7979_v37 = vcombine.low %v2713_v40, %v2716_v26  ;;  %v1256_v28 = vrot.slane %v1254_v25, 5  ;;  %v1262_v55 = vrot.slane %v1260_v61, 5  ;;  %v9806_v62 = vpop.permute.xlu1 %3064  ;;  %v488_v25 = vld [vmem:[%s8785_s9 + $0x58] sm:$0xf] }
 0x115   : > { %v978_v58 = vld [vmem:[#allocation2 + $0x8c] sm:$0x1]  ;;  %v2442_v44 = vshll.u32 %v2199_v24, 16  ;;  %v1266_v18 = vrot.slane %v1264_v43, 4  ;;  %v7836_v10 = vrot.slane %v2599_v11, 9  ;;  %v2719_v4 = vrot.slane %v9754_v27, 5  ;;  %v9808_v27 = vpop.permute.xlu0 %3222 }
 0x116   : > { %v1270_v16 = vshll.u32 %v978_v58, 16  ;;  %3486 = vrot.lane.b32.xlu0 %v7979_v37, %s8656_s15  ;;  %v1257_v51 = vor.u32 %v1256_v28, %v1253_v47  ;;  %v2722_v13 = vrot.slane %v2199_v24, 5  ;;  %v3658_v48 = vsel %vm3650_vm13, %v3625_v52, %v9650_v49  ;;  %v1569_v37 = vld [vmem:[#allocation2 + $0x84] sm:$0xf] }
 0x117   : > { %v2444_v7 = vrot.slane %v2442_v44, 5  ;;  %v1267_v19 = vor.u32 %v1266_v18, %v1262_v55  ;;  %v3656_v50 = vsel %vm3650_vm13, %v3623_v9, %v9583_v54  ;;  %v2720_v22 = vsel %vm8804_vm10, %v7836_v10, %v2719_v4  ;;  %v9838_v44 = vld [vmem:[#allocation2 + $0x88] sm:$0xf] }
 0x118   : > { %v1272_v21 = vrot.slane %v1270_v16, 5  ;;  %v1258_v33 = vrot.slane %v1257_v51, 4  ;;  %v2721_v12 = vrot.slane %v2719_v4, 4  ;;  %v7806_v3 = vrot.slane %v1381_v6, 9 }
 0x119   : > { %v2445_v49 = vsel %vm8891_vm15, %v2440_v30, %v2444_v7  ;;  %v1268_v52 = vrot.slane %v1267_v19, 4  ;;  %v1516_v40 = vrot.slane %v958_v59, 5  ;;  %v1519_v20 = vrot.slane %v978_v58, 5  ;;  %v9846_v6 = vpop.permute.xlu0 %3318 }
 0x11a   : > { %v7964_v54 = vcombine.low %v2435_v5, %v2445_v49  ;;  %v1263_v9 = vsel %vm8891_vm15, %v1258_v33, %v1262_v55  ;;  %v2723_v57 = vsel %vm8804_vm10, %v2721_v12, %v2722_v13  ;;  %v7805_v36 = vrot.slane %v1380_v2, 9  ;;  %v489_v5 = vld [vmem:[%s8785_s9 + $0x5c] sm:$0xf] }
 0x11b   : > { %v1273_v61 = vsel %vm8891_vm15, %v1268_v52, %v1272_v21  ;;  %v7980_v11 = vcombine.low %v2720_v22, %v2723_v57  ;;  %v9821_v30 = vsel %vm8804_vm10, %v7806_v3, %v1516_v40  ;;  %v1518_v59 = vrot.slane %v1516_v40, 4  ;;  %v1591_v3 = vld [vmem:[#allocation2 + $0x8c] sm:$0x1] }
 0x11c   : > { %3408 = vrot.lane.b32.xlu1 %v7964_v54, %s8658_s17  ;;  %v7870_v26 = vcombine.low %v1263_v9, %v1273_v61  ;;  %v1509_v47 = vrot.slane %v9732_v46, 5  ;;  %v1512_v43 = vrot.slane %v9734_v34, 5  ;;  %v3691_v24 = vsel %vm3683_vm4, %v3658_v48, %v9675_v45  ;;  %v9844_v10 = vpop.permute.xlu1 %3144  ;;  %v12695_v61 = vld [vmem:[#allocation7_spill] sm:$0xff] }
 0x11d   : > { %3488 = vrot.lane.b32.xlu0 %v7980_v11, %s8656_s15  ;;  %v9832_v58 = vsel %vm8804_vm10, %v1518_v59, %v1519_v20  ;;  %v3689_v28 = vsel %vm3683_vm4, %v3656_v50, %v9610_v60  ;;  %v273_v55 = vsel %vm8750_vm3, 0, %v272_v35  ;;  %v688_v46 = vshrl.u32 %v488_v25, 16  ;;  %v328_v50 = vld [vmem:[#allocation2 + $0x98] sm:$0x1]  ;;  %v1991_v20 = vld [vmem:[#allocation2 + $0x84] sm:$0xe] }
 0x11e   : > { %v7886_v45 = vcombine.low %v9821_v30, %v9832_v58  ;;  %v1510_v34 = vsel %vm8804_vm10, %v7805_v36, %v1509_v47  ;;  %v1511_v18 = vrot.slane %v1509_v47, 4  ;;  %274 = vst [vmem:[#allocation2 + $0x90] sm:$0x1] %v273_v55  ;;  %v691_v16 = vshll.u32 %v488_v25, 16  ;;  %v275_v58 = vld [vmem:[#allocation2 + $0x9c] sm:$0x1] }
 0x11f   : > { %v690_v60 = vrot.slane %v688_v46, 7  ;;  %v696_v51 = vshrl.u32 %v489_v5, 16  ;;  %v699_v4 = vshll.u32 %v489_v5, 16  ;;  %v1838_v13 = vshrl.u32 %v1569_v37, 16  ;;  %v9874_v47 = vpop.permute.xlu0 %3398 }
 0x120   : > { %2898 = vrot.lane.b32.xlu1 %v9791_v42, %s8654_s13  ;;  %v1513_v48 = vsel %vm8804_vm10, %v1511_v18, %v1512_v43  ;;  %v1841_v7 = vshll.u32 %v1569_v37, 16  ;;  %v1851_v19 = vshrl.u32 %v9838_v44, 16  ;;  %v7901_v21 = vcombine.low %v1569_v37, %v9838_v44  ;;  %v9872_v59 = vpop.permute.xlu1 %3224 }
 0x121   : > { %v7885_v2 = vcombine.low %v1510_v34, %v1513_v48  ;;  %v693_v33 = vor.u32 %v691_v16, %v690_v60  ;;  %v694_v22 = vrot.slane %v690_v60, 4  ;;  %v9854_v12 = vrot.slane %v696_v51, 7  ;;  %v490_v34 = vld [vmem:[%s8785_s9 + $0x60] sm:$0xf]  ;;  %v8547_v60 = vld [vmem:[#allocation2 + $0x3c] sm:$0xf] }
 0x122   : > { %v1840_v49 = vrot.slane %v1838_v13, 4  ;;  %v1843_v52 = vrot.slane %v1841_v7, 5  ;;  %v3724_v42 = vsel %vm3716_vm5, %v3691_v24, %v9694_v56  ;;  %v3722_v40 = vsel %vm3716_vm5, %v3689_v28, %v9657_v31  ;;  %v12694_v31 = vld [vmem:[#allocation8_spill] sm:$0xff]  ;;  %v8546_v16 = vld [vmem:[#allocation2 + $0x40] sm:$0xf] }
 0x123   : > { %2978 = vrot.lane.b32.xlu0 %v7885_v2, %s8651_s10  ;;  %v701_v54 = vor.u32 %v699_v4, %v9854_v12  ;;  %v703_v9 = vrot.slane %v9854_v12, 4  ;;  %v329_v57 = vsel %vm8778_vm6, 0, %v328_v50  ;;  %v1847_v36 = vshll.u32 %v9838_v44, 16  ;;  %v491_v13 = vld [vmem:[%s8785_s9 + $0x64] sm:$0xf] }
 0x124   : > { %2900 = vrot.lane.b32.xlu1 %v7870_v26, %s8654_s13  ;;  %330 = vst [vmem:[#allocation2 + $0x98] sm:$0x1] %v329_v57  ;;  %v1844_v35 = vor.u32 %v1843_v52, %v1840_v49  ;;  %v1853_v56 = vrot.slane %v1851_v19, 4  ;;  %v1857_v25 = vshll.u32 %v1591_v3, 16  ;;  %v12696_v11 = vcombine.low %v12694_v31, %v12695_v61  ;;  %v9904_v49 = vpop.permute.xlu1 %3320 }
 0x125   : > { %v702_v43 = vsel %vm8816_vm12, %v694_v22, %v701_v54  ;;  %v900_v24 = vld [vmem:[#allocation2 + $0x90] sm:$0xf]  ;;  %v1849_v26 = vrot.slane %v1847_v36, 5  ;;  %v3755_v5 = vsel %vm3749_vm14, %v3722_v40, %v9682_v14  ;;  %v7821_v37 = vrot.slane %v1991_v20, 9  ;;  %v9906_v52 = vpop.permute.xlu0 %3478 }
 0x126   : > { %v3517_v30 = vsel %vm3502_vm1, %v12696_v11, %v9741_v15  ;;  %v901_v28 = vsel %vm8810_vm11, %v693_v33, %v900_v24  ;;  %903 = vst.msk [vmem:[#allocation2 + $0x94] sm:$0xf] %vm224_vm0, %v702_v43  ;;  %v1845_v15 = vrot.slane %v1844_v35, 4  ;;  %v1859_v55 = vrot.slane %v1857_v25, 5  ;;  %8342 = vmatprep.mubr.msk.bf16.mxu0 %vm12670_vm2, %v3755_v5 }
 0x127   : > { %v2117_v46 = vrot.slane %v9838_v44, 5  ;;  %902 = vst [vmem:[#allocation2 + $0x90] sm:$0xf] %v901_v28  ;;  %3074 = vrot.lane.b32.xlu0 %v7901_v21, %s8652_s11  ;;  %v1854_v18 = vor.u32 %v1853_v56, %v1849_v26  ;;  %v2120_v14 = vrot.slane %v1591_v3, 5  ;;  %v7848_v51 = vcombine.low %v8547_v60, %v8546_v16 }
 0x128   : > { %v3757_v4 = vsel %vm3749_vm14, %v3724_v42, %v9700_v41  ;;  %2980 = vrot.lane.b32.xlu1 %v7886_v45, %s8651_s10  ;;  %v1850_v44 = vsel %vm8891_vm15, %v1845_v15, %v1849_v26  ;;  %v276_v19 = vsel %vm8750_vm3, 0, %v275_v58  ;;  %v705_v41 = vshrl.u32 %v490_v34, 16  ;;  %v331_v45 = vld [vmem:[#allocation2 + $0xa4] sm:$0x1] }
 0x129   : > { %v2118_v48 = vsel %vm8804_vm10, %v7821_v37, %v2117_v46  ;;  %v2119_v7 = vrot.slane %v2117_v46, 4  ;;  %8343 = vmatmul.mubr.msk.bf16.gmra.mrb[4].mxu0 %vm12670_vm2, %v3757_v4  ;;  %v1855_v21 = vrot.slane %v1854_v18, 4  ;;  %v3520_v50 = vsel %vm3502_vm1, %v7848_v51, %v9766_v0  ;;  %277 = vst [vmem:[#allocation2 + $0x9c] sm:$0x1] %v276_v19 }
 0x12a   : > { %v708_v2 = vshll.u32 %v490_v34, 16  ;;  %v713_v22 = vshrl.u32 %v491_v13, 16  ;;  %v716_v12 = vshll.u32 %v491_v13, 16  ;;  %v3563_v3 = vsel %vm3551_vm7, %v3520_v50, %v9787_v53 }
 0x12b   : > { %v2121_v33 = vsel %vm8804_vm10, %v2119_v7, %v2120_v14  ;;  %v904_v42 = vld [vmem:[#allocation2 + $0x98] sm:$0x1]  ;;  %v1860_v0 = vsel %vm8891_vm15, %v1855_v21, %v1859_v55  ;;  %v707_v20 = vrot.slane %v705_v41, 7  ;;  %v332_v35 = vsel %vm8778_vm6, 0, %v331_v45  ;;  %v9925_v14 = vpop.permute.xlu1 %3400 }
 0x12c   : > { %v7933_v40 = vcombine.low %v2118_v48, %v2121_v33  ;;  %v905_v54 = vsel %vm8750_vm3, %v703_v9, %v904_v42  ;;  %v7917_v57 = vcombine.low %v1850_v44, %v1860_v0  ;;  %v715_v36 = vrot.slane %v713_v22, 7  ;;  %333 = vst [vmem:[#allocation2 + $0xa4] sm:$0x1] %v332_v35  ;;  %v9927_v16 = vpop.permute.xlu0 %3480 }
 0x12d   : > { %v1572_v56 = vld [vmem:[#allocation2 + $0x94] sm:$0xf]  ;;  %906 = vst [vmem:[#allocation2 + $0x98] sm:$0x1] %v905_v54  ;;  %v710_v53 = vor.u32 %v708_v2, %v707_v20  ;;  %v711_v25 = vrot.slane %v707_v20, 4  ;;  %v3561_v31 = vsel %vm3551_vm7, %v3517_v30, %v9743_v23  ;;  %v3596_v61 = vsel %vm12671_vm8, %v3563_v3, %v9806_v62 }
 0x12e   : > { %v1571_v11 = vld [vmem:[#allocation2 + $0x90] sm:$0xf]  ;;  %v1875_v43 = vshrl.u32 %v1572_v56, 16  ;;  %v1871_v24 = vshll.u32 %v1572_v56, 16  ;;  %3154 = vrot.lane.b32.xlu0 %v7917_v57, %s8657_s16  ;;  %v718_v26 = vor.u32 %v716_v12, %v715_v36  ;;  %v9919_v5 = vld [vmem:[#allocation2 + $0x94] sm:$0xf]  ;;  %v3594_v37 = vsel %vm12671_vm8, %v3561_v31, %v9768_v17 }
 0x12f   : > { %v1992_v9 = vld [vmem:[#allocation2 + $0x90] sm:$0xe]  ;;  %v1862_v58 = vshrl.u32 %v1571_v11, 16  ;;  %v1865_v28 = vshll.u32 %v1571_v11, 16  ;;  %v7902_v15 = vcombine.low %v1571_v11, %v1572_v56  ;;  %v2124_v62 = vrot.slane %v1572_v56, 5 }
 0x130   : > { %v7822_v23 = vrot.slane %v1992_v9, 9  ;;  %v2178_v30 = vld [vmem:[#allocation2 + $0x90] sm:$0xf]  ;;  %v1873_v55 = vrot.slane %v1871_v24, 5  ;;  %v1877_v46 = vrot.slane %v1875_v43, 4  ;;  %v719_v34 = vsel %vm8816_vm12, %v711_v25, %v718_v26 }
 0x131   : > { %v907_v18 = vld [vmem:[#allocation2 + $0x9c] sm:$0xf]  ;;  %v1864_v60 = vrot.slane %v1862_v58, 4  ;;  %v1867_v51 = vrot.slane %v1865_v28, 5  ;;  %3076 = vrot.lane.b32.xlu1 %v7902_v15, %s8652_s11  ;;  %910 = vst.msk [vmem:[#allocation2 + $0xa0] sm:$0xf] %vm224_vm0, %v719_v34  ;;  %v3629_v4 = vsel %vm3617_vm9, %v3596_v61, %v9844_v10  ;;  %v7949_v41 = vcombine.low %v2178_v30, %v9919_v5 }
 0x132   : > { %v908_v17 = vsel %vm8810_vm11, %v710_v53, %v907_v18  ;;  %v1878_v13 = vor.u32 %v1877_v46, %v1873_v55  ;;  %v2126_v44 = vrot.slane %v2124_v62, 4  ;;  %3234 = vrot.lane.b32.xlu0 %v7933_v40, %s8655_s14  ;;  %v720_v48 = vrot.slane %v715_v36, 4  ;;  %v959_v2 = vld [vmem:[#allocation2 + $0x90] sm:$0xf]  ;;  %v9951_v53 = vpop.permute.xlu1 %2890  ;;  %v9969_v18 = vld [vmem:[#allocation2 + $0x94] sm:$0xf] }
 0x133   : > { %909 = vst [vmem:[#allocation2 + $0x9c] sm:$0xf] %v908_v17  ;;  %v2447_v7 = vshrl.u32 %v2178_v30, 16  ;;  %v1868_v19 = vor.u32 %v1867_v51, %v1864_v60  ;;  %v2450_v21 = vshll.u32 %v2178_v30, 16  ;;  %v2460_v50 = vshrl.u32 %v9919_v5, 16 }
 0x134   : > { %v1592_v45 = vld [vmem:[#allocation2 + $0x98] sm:$0x1]  ;;  %v1879_v33 = vrot.slane %v1878_v13, 4  ;;  %v2125_v22 = vsel %vm8804_vm10, %v7822_v23, %v2124_v62  ;;  %v911_v12 = vld [vmem:[#allocation2 + $0xa4] sm:$0x1]  ;;  %v9942_v3 = vsel %vm3617_vm9, %v3594_v37, %v9789_v38  ;;  %v2456_v36 = vshll.u32 %v9919_v5, 16  ;;  %v9953_v38 = vpop.permute.xlu0 %2970 }
 0x135   : > { %v2449_v10 = vrot.slane %v2447_v7, 4  ;;  %v1869_v42 = vrot.slane %v1868_v19, 4  ;;  %v1881_v0 = vshll.u32 %v1592_v45, 16  ;;  %v2127_v40 = vrot.slane %v1592_v45, 5  ;;  %v9944_v54 = vld [vmem:[#allocation2 + $0x98] sm:$0x1] }
 0x136   : > { %v2452_v20 = vrot.slane %v2450_v21, 5  ;;  %3330 = vrot.lane.b32.xlu0 %v7949_v41, %s8653_s12  ;;  %v912_v57 = vsel %vm8750_vm3, %v720_v48, %v911_v12  ;;  %v2462_v35 = vrot.slane %v2460_v50, 4  ;;  %v2466_v56 = vshll.u32 %v9944_v54, 16  ;;  %v9976_v19 = vpop.permute.xlu1 %2892 }
 0x137   : > { %v1874_v25 = vsel %vm8891_vm15, %v1869_v42, %v1873_v55  ;;  %v1883_v31 = vrot.slane %v1881_v0, 5  ;;  %v2128_v61 = vsel %vm8804_vm10, %v2126_v44, %v2127_v40  ;;  %913 = vst [vmem:[#allocation2 + $0xa4] sm:$0x1] %v912_v57  ;;  %v2458_v9 = vrot.slane %v2456_v36, 5  ;;  %v2600_v40 = vld [vmem:[#allocation2 + $0x90] sm:$0xe] }
 0x138   : > { %v2453_v11 = vor.u32 %v2452_v20, %v2449_v10  ;;  %v7934_v43 = vcombine.low %v2125_v22, %v2128_v61  ;;  %v9959_v24 = vld [vmem:[#allocation2 + $0xa0] sm:$0xf]  ;;  %v1275_v26 = vshrl.u32 %v959_v2, 16  ;;  %v9963_v37 = vsel %vm3650_vm13, %v3629_v4, %v9872_v59  ;;  %v9973_v4 = vld [vmem:[#allocation2 + $0x98] sm:$0x1]  ;;  %v9978_v21 = vpop.permute.xlu0 %3066 }
 0x139   : > { %v1884_v58 = vsel %vm8891_vm15, %v1879_v33, %v1883_v31  ;;  %v2484_v15 = vshrl.u32 %v9959_v24, 16  ;;  %v2480_v23 = vshll.u32 %v9959_v24, 16  ;;  %v2468_v34 = vrot.slane %v2466_v56, 5 }
 0x13a   : > { %v2180_v28 = vld [vmem:[#allocation2 + $0x9c] sm:$0xf]  ;;  %v2454_v30 = vrot.slane %v2453_v11, 4  ;;  %v7918_v55 = vcombine.low %v1874_v25, %v1884_v58  ;;  %v2463_v17 = vor.u32 %v2462_v35, %v2458_v9  ;;  %v1277_v48 = vrot.slane %v1275_v26, 4 }
 0x13b   : > { %v2471_v46 = vshrl.u32 %v2180_v28, 16  ;;  %v2474_v62 = vshll.u32 %v2180_v28, 16  ;;  %v2482_v60 = vrot.slane %v2480_v23, 5  ;;  %v2486_v51 = vrot.slane %v2484_v15, 4  ;;  %v961_v61 = vld [vmem:[#allocation2 + $0x9c] sm:$0xf] }
 0x13c   : > { %v2459_v59 = vsel %vm8891_vm15, %v2454_v30, %v2458_v9  ;;  %3156 = vrot.lane.b32.xlu1 %v7918_v55, %s8657_s16  ;;  %v1278_v7 = vshll.u32 %v959_v2, 16  ;;  %v2464_v41 = vrot.slane %v2463_v17, 4  ;;  %v1284_v45 = vshll.u32 %v9969_v18, 16  ;;  %v9995_v55 = vpop.permute.xlu1 %2972 }
 0x13d   : > { %v2473_v13 = vrot.slane %v2471_v46, 4  ;;  %v2476_v44 = vrot.slane %v2474_v62, 5  ;;  %v2487_v50 = vor.u32 %v2486_v51, %v2482_v60  ;;  %v1288_v33 = vshrl.u32 %v9969_v18, 16  ;;  %v9997_v46 = vpop.permute.xlu0 %3146 }
 0x13e   : > { %v7950_v22 = vcombine.low %v2180_v28, %v9959_v24  ;;  %v9983_v10 = vld [vmem:[#allocation2 + $0xa4] sm:$0x1]  ;;  %v1280_v42 = vrot.slane %v1278_v7, 5  ;;  %v1294_v0 = vshll.u32 %v9973_v4, 16  ;;  %v2469_v57 = vsel %vm8891_vm15, %v2464_v41, %v2468_v34  ;;  %v2601_v41 = vld [vmem:[#allocation2 + $0x9c] sm:$0xe] }
 0x13f   : > { %v2477_v12 = vor.u32 %v2476_v44, %v2473_v13  ;;  %v2488_v2 = vrot.slane %v2487_v50, 4  ;;  %v2490_v20 = vshll.u32 %v9983_v10, 16  ;;  %v1286_v36 = vrot.slane %v1284_v45, 5  ;;  %v980_v51 = vld [vmem:[#allocation2 + $0xa4] sm:$0x1] }
 0x140   : > { %3236 = vrot.lane.b32.xlu1 %v7934_v43, %s8655_s14  ;;  %v7965_v56 = vcombine.low %v2459_v59, %v2469_v57  ;;  %v1281_v25 = vor.u32 %v1280_v42, %v1277_v48  ;;  %v1290_v31 = vrot.slane %v1288_v33, 4  ;;  %v1296_v9 = vrot.slane %v1294_v0, 5  ;;  %v962_v43 = vld [vmem:[#allocation2 + $0xa0] sm:$0xf] }
 0x141   : > { %v2478_v35 = vrot.slane %v2477_v12, 4  ;;  %v2492_v11 = vrot.slane %v2490_v20, 5  ;;  %v7837_v26 = vrot.slane %v2600_v40, 9  ;;  %v2726_v58 = vrot.slane %v9919_v5, 5 }
 0x142   : > { %3410 = vrot.lane.b32.xlu0 %v7965_v56, %s8658_s17  ;;  %v1282_v15 = vrot.slane %v1281_v25, 4  ;;  %v1291_v23 = vor.u32 %v1290_v31, %v1286_v36  ;;  %v2729_v30 = vrot.slane %v9944_v54, 5  ;;  %v1302_v13 = vshll.u32 %v961_v61, 16  ;;  %v1382_v25 = vld [vmem:[#allocation2 + $0x90] sm:$0xe]  ;;  %v10014_v31 = vpop.permute.xlu1 %3068 }
 0x143   : > { %v2483_v28 = vsel %vm8891_vm15, %v2478_v35, %v2482_v60  ;;  %v2493_v62 = vsel %vm8891_vm15, %v2488_v2, %v2492_v11  ;;  %v2727_v5 = vsel %vm8804_vm10, %v7837_v26, %v2726_v58  ;;  %v2728_v34 = vrot.slane %v2726_v58, 4 }
 0x144   : > { %v1299_v60 = vshrl.u32 %v961_v61, 16  ;;  %3332 = vrot.lane.b32.xlu1 %v7950_v22, %s8653_s12  ;;  %v7966_v59 = vcombine.low %v2483_v28, %v2493_v62  ;;  %v1287_v54 = vsel %vm8891_vm15, %v1282_v15, %v1286_v36  ;;  %v1292_v17 = vrot.slane %v1291_v23, 4  ;;  %v1383_v22 = vld [vmem:[#allocation2 + $0x9c] sm:$0xe]  ;;  %v10016_v61 = vpop.permute.xlu0 %3226 }
 0x145   : > { %v2730_v44 = vsel %vm8804_vm10, %v2728_v34, %v2729_v30  ;;  %v1308_v7 = vshll.u32 %v962_v43, 16  ;;  %v1312_v50 = vshrl.u32 %v962_v43, 16  ;;  %v1304_v12 = vrot.slane %v1302_v13, 5  ;;  %v278_v34 = vld [vmem:[#allocation2 + $0xa8] sm:$0x1] }
 0x146   : > { %v1301_v48 = vrot.slane %v1299_v60, 4  ;;  %v1297_v45 = vsel %vm8891_vm15, %v1292_v17, %v1296_v9  ;;  %v7981_v33 = vcombine.low %v2727_v5, %v2730_v44  ;;  %v1318_v42 = vshll.u32 %v980_v51, 16  ;;  %v493_v17 = vld [vmem:[%s8785_s9 + $0x6c] sm:$0xf]  ;;  %v1573_v13 = vld [vmem:[#allocation2 + $0x9c] sm:$0xf] }
 0x147   : > { %v1526_v0 = vrot.slane %v9973_v4, 5  ;;  %v7871_v40 = vcombine.low %v1287_v54, %v1297_v45  ;;  %v1310_v2 = vrot.slane %v1308_v7, 5  ;;  %v1314_v20 = vrot.slane %v1312_v50, 4 }
 0x148   : > { %3412 = vrot.lane.b32.xlu1 %v7966_v59, %s8658_s17  ;;  %3490 = vrot.lane.b32.xlu0 %v7981_v33, %s8656_s15  ;;  %v1305_v57 = vor.u32 %v1304_v12, %v1301_v48  ;;  %v1533_v36 = vrot.slane %v980_v51, 5  ;;  %v7838_v35 = vrot.slane %v2601_v41, 9  ;;  %v2733_v56 = vrot.slane %v9959_v24, 5  ;;  %v492_v59 = vld [vmem:[%s8785_s9 + $0x68] sm:$0xf]  ;;  %v10049_v33 = vpop.permute.xlu0 %3322 }
 0x149   : > { %v1315_v11 = vor.u32 %v1314_v20, %v1310_v2  ;;  %v1320_v9 = vrot.slane %v1318_v42, 5  ;;  %v2736_v4 = vrot.slane %v9983_v10, 5  ;;  %v7808_v26 = vrot.slane %v1383_v22, 9  ;;  %v10045_v41 = vld [vmem:[#allocation2 + $0xa0] sm:$0xf] }
 0x14a   : > { %v1306_v58 = vrot.slane %v1305_v57, 4  ;;  %v2734_v28 = vsel %vm8804_vm10, %v7838_v35, %v2733_v56  ;;  %v2735_v15 = vrot.slane %v2733_v56, 4  ;;  %v1530_v23 = vrot.slane %v962_v43, 5  ;;  %v10047_v45 = vpop.permute.xlu1 %3148  ;;  %v334_v57 = vld [vmem:[#allocation2 + $0xb0] sm:$0x1] }
 0x14b   : > { %v1316_v30 = vrot.slane %v1315_v11, 4  ;;  %v3660_v24 = vsel %vm3650_vm13, %v9942_v3, %v9808_v27  ;;  %v7807_v62 = vrot.slane %v1382_v25, 9  ;;  %v1523_v5 = vrot.slane %v9969_v18, 5 }
 0x14c   : > { %2902 = vrot.lane.b32.xlu1 %v7871_v40, %s8654_s13  ;;  %v1311_v10 = vsel %vm8891_vm15, %v1306_v58, %v1310_v2  ;;  %v2737_v51 = vsel %vm8804_vm10, %v2735_v15, %v2736_v4  ;;  %v1531_v43 = vsel %vm8804_vm10, %v7808_v26, %v1530_v23  ;;  %v1532_v60 = vrot.slane %v1530_v23, 4  ;;  %v1593_v26 = vld [vmem:[#allocation2 + $0xa4] sm:$0x1]  ;;  %v1993_v23 = vld [vmem:[#allocation2 + $0x9c] sm:$0xe] }
 0x14d   : > { %v1321_v27 = vsel %vm8891_vm15, %v1316_v30, %v1320_v9  ;;  %v7982_v3 = vcombine.low %v2734_v28, %v2737_v51  ;;  %v1524_v18 = vsel %vm8804_vm10, %v7807_v62, %v1523_v5  ;;  %v1525_v54 = vrot.slane %v1523_v5, 4 }
 0x14e   : > { %v7872_v44 = vcombine.low %v1311_v10, %v1321_v27  ;;  %v1534_v48 = vsel %vm8804_vm10, %v1532_v60, %v1533_v36  ;;  %v3695_v7 = vsel %vm3683_vm4, %v9963_v37, %v9904_v49  ;;  %v279_v50 = vsel %vm8750_vm3, 0, %v278_v34  ;;  %v10071_v5 = vpop.permute.xlu1 %3228  ;;  %v10073_v34 = vpop.permute.xlu0 %3402  ;;  %v8549_v60 = vld [vmem:[#allocation2 + $0x4c] sm:$0xf] }
 0x14f   : > { %3492 = vrot.lane.b32.xlu0 %v7982_v3, %s8656_s15  ;;  %v7888_v12 = vcombine.low %v1531_v43, %v1534_v48  ;;  %v1527_v42 = vsel %vm8804_vm10, %v1525_v54, %v1526_v0  ;;  %280 = vst [vmem:[#allocation2 + $0xa8] sm:$0x1] %v279_v50  ;;  %v722_v22 = vshrl.u32 %v492_v59, 16  ;;  %v725_v40 = vshll.u32 %v492_v59, 16  ;;  %v8548_v43 = vld [vmem:[#allocation2 + $0x48] sm:$0xf] }
 0x150   : > { %2904 = vrot.lane.b32.xlu1 %v7872_v44, %s8654_s13  ;;  %v7887_v49 = vcombine.low %v1524_v18, %v1527_v42  ;;  %v730_v37 = vshrl.u32 %v493_v17, 16  ;;  %v733_v2 = vshll.u32 %v493_v17, 16  ;;  %v1886_v20 = vshrl.u32 %v1573_v13, 16  ;;  %v281_v3 = vld [vmem:[#allocation2 + $0xb4] sm:$0x1] }
 0x151   : > { %v3693_v36 = vsel %vm3683_vm4, %v3660_v24, %v9846_v6  ;;  %v724_v35 = vrot.slane %v722_v22, 7  ;;  %v1889_v56 = vshll.u32 %v1573_v13, 16  ;;  %v1899_v25 = vshrl.u32 %v10045_v41, 16  ;;  %v494_v50 = vld [vmem:[%s8785_s9 + $0x70] sm:$0xf] }
 0x152   : > { %v10058_v11 = vrot.slane %v730_v37, 7  ;;  %v1888_v0 = vrot.slane %v1886_v20, 4  ;;  %v7903_v9 = vcombine.low %v1573_v13, %v10045_v41  ;;  %v3728_v4 = vsel %vm3716_vm5, %v3695_v7, %v9925_v14  ;;  %v8550_v37 = vld [vmem:[#allocation2 + $0x54] sm:$0xf] }
 0x153   : > { %2982 = vrot.lane.b32.xlu0 %v7887_v49, %s8651_s10  ;;  %v727_v58 = vor.u32 %v725_v40, %v724_v35  ;;  %v728_v28 = vrot.slane %v724_v35, 4  ;;  %v1891_v15 = vrot.slane %v1889_v56, 5  ;;  %v335_v6 = vsel %vm8778_vm6, 0, %v334_v57  ;;  %v495_v40 = vld [vmem:[%s8785_s9 + $0x74] sm:$0xf] }
 0x154   : > { %2984 = vrot.lane.b32.xlu1 %v7888_v12, %s8651_s10  ;;  %v735_v30 = vor.u32 %v733_v2, %v10058_v11  ;;  %v3726_v24 = vsel %vm3716_vm5, %v3693_v36, %v9874_v47  ;;  %336 = vst [vmem:[#allocation2 + $0xb0] sm:$0x1] %v335_v6  ;;  %v1895_v14 = vshll.u32 %v10045_v41, 16  ;;  %v1901_v62 = vrot.slane %v1899_v25, 4  ;;  %v8551_v2 = vld [vmem:[#allocation2 + $0x58] sm:$0xf] }
 0x155   : > { %v1892_v10 = vor.u32 %v1891_v15, %v1888_v0  ;;  %v1905_v51 = vshll.u32 %v1593_v26, 16  ;;  %v7849_v59 = vcombine.low %v8548_v43, %v8549_v60  ;;  %v3759_v27 = vsel %vm3749_vm14, %v3726_v24, %v9906_v52  ;;  %v10101_v0 = vpop.permute.xlu1 %3324 }
 0x156   : > { %v736_v47 = vsel %vm8816_vm12, %v728_v28, %v735_v30  ;;  %v914_v18 = vld [vmem:[#allocation2 + $0xa8] sm:$0xf]  ;;  %v1897_v54 = vrot.slane %v1895_v14, 5  ;;  %v7823_v17 = vrot.slane %v1993_v23, 9  ;;  %v2131_v13 = vrot.slane %v10045_v41, 5  ;;  %8346 = vmatprep.mubr.msk.bf16.mxu0 %vm12670_vm2, %v3759_v27 }
 0x157   : > { %v737_v44 = vrot.slane %v10058_v11, 4  ;;  %v915_v48 = vsel %vm8810_vm11, %v727_v58, %v914_v18  ;;  %917 = vst.msk [vmem:[#allocation2 + $0xac] sm:$0xf] %vm224_vm0, %v736_v47  ;;  %3078 = vrot.lane.b32.xlu0 %v7903_v9, %s8652_s11  ;;  %v1893_v52 = vrot.slane %v1892_v10, 4  ;;  %v1907_v7 = vrot.slane %v1905_v51, 5  ;;  %v10103_v9 = vpop.permute.xlu0 %3482 }
 0x158   : > { %916 = vst [vmem:[#allocation2 + $0xa8] sm:$0xf] %v915_v48  ;;  %v1902_v12 = vor.u32 %v1901_v62, %v1897_v54  ;;  %v3523_v42 = vsel %vm3502_vm1, %v7849_v59, %v9951_v53  ;;  %v2133_v41 = vrot.slane %v2131_v13, 4  ;;  %v2134_v22 = vrot.slane %v1593_v26, 5  ;;  %v337_v11 = vld [vmem:[#allocation2 + $0xbc] sm:$0x1] }
 0x159   : > { %v10092_v49 = vsel %vm8804_vm10, %v7823_v17, %v2131_v13  ;;  %v7850_v20 = vcombine.low %v8550_v37, %v8551_v2  ;;  %v3761_v57 = vsel %vm3749_vm14, %v3728_v4, %v9927_v16  ;;  %v282_v36 = vsel %vm8750_vm3, 0, %v281_v3 }
 0x15a   : > { %v1898_v35 = vsel %vm8891_vm15, %v1893_v52, %v1897_v54  ;;  %v1903_v53 = vrot.slane %v1902_v12, 4  ;;  %283 = vst [vmem:[#allocation2 + $0xb4] sm:$0x1] %v282_v36  ;;  %v739_v56 = vshrl.u32 %v494_v50, 16  ;;  %v742_v25 = vshll.u32 %v494_v50, 16  ;;  %8347 = vmatmul.mubr.msk.bf16.gmra.mrb[8].mxu0 %vm12670_vm2, %v3761_v57  ;;  %v10129_v52 = vpop.permute.xlu1 %3404 }
 0x15b   : > { %v918_v26 = vld [vmem:[#allocation2 + $0xb0] sm:$0x1]  ;;  %v2135_v16 = vsel %vm8804_vm10, %v2133_v41, %v2134_v22  ;;  %v3526_v4 = vsel %vm3502_vm1, %v7850_v20, %v9976_v19  ;;  %v747_v58 = vshrl.u32 %v495_v40, 16  ;;  %v750_v28 = vshll.u32 %v495_v40, 16 }
 0x15c   : > { %v919_v15 = vsel %vm8750_vm3, %v737_v44, %v918_v26  ;;  %v1908_v6 = vsel %vm8891_vm15, %v1903_v53, %v1907_v7  ;;  %v741_v23 = vrot.slane %v739_v56, 7  ;;  %v3567_v30 = vsel %vm3551_vm7, %v3526_v4, %v9995_v55  ;;  %v10131_v7 = vpop.permute.xlu0 %3484 }
 0x15d   : > { %920 = vst [vmem:[#allocation2 + $0xb0] sm:$0x1] %v919_v15  ;;  %v7919_v24 = vcombine.low %v1898_v35, %v1908_v6  ;;  %v749_v14 = vrot.slane %v747_v58, 7  ;;  %v338_v62 = vsel %vm8778_vm6, 0, %v337_v11  ;;  %v7935_v19 = vcombine.low %v10092_v49, %v2135_v16 }
 0x15e   : > { %v1576_v10 = vld [vmem:[#allocation2 + $0xac] sm:$0xf]  ;;  %v744_v51 = vor.u32 %v742_v25, %v741_v23  ;;  %v745_v43 = vrot.slane %v741_v23, 4  ;;  %v10120_v60 = vsel %vm3551_vm7, %v3523_v42, %v9953_v38  ;;  %339 = vst [vmem:[#allocation2 + $0xbc] sm:$0x1] %v338_v62  ;;  %v10127_v54 = vsel %vm12671_vm8, %v3567_v30, %v10014_v31  ;;  %v10153_v62 = vpop.permute.xlu1 %2894 }
 0x15f   : > { %v1575_v59 = vld [vmem:[#allocation2 + $0xa8] sm:$0xf]  ;;  %v1923_v27 = vshrl.u32 %v1576_v10, 16  ;;  %v1919_v3 = vshll.u32 %v1576_v10, 16  ;;  %3158 = vrot.lane.b32.xlu0 %v7919_v24, %s8657_s16  ;;  %v752_v47 = vor.u32 %v750_v28, %v749_v14  ;;  %v10123_v18 = vld [vmem:[#allocation2 + $0xac] sm:$0xf] }
 0x160   : > { %v1994_v55 = vld [vmem:[#allocation2 + $0xa8] sm:$0xe]  ;;  %v1910_v17 = vshrl.u32 %v1575_v59, 16  ;;  %v1913_v13 = vshll.u32 %v1575_v59, 16  ;;  %v7904_v44 = vcombine.low %v1575_v59, %v1576_v10  ;;  %v2138_v42 = vrot.slane %v1576_v10, 5  ;;  %v10155_v10 = vpop.permute.xlu0 %2974 }
 0x161   : > { %v7824_v48 = vrot.slane %v1994_v55, 9  ;;  %v2182_v38 = vld [vmem:[#allocation2 + $0xa8] sm:$0xf]  ;;  %v1921_v50 = vrot.slane %v1919_v3, 5  ;;  %v1925_v12 = vrot.slane %v1923_v27, 4  ;;  %v753_v41 = vsel %vm8816_vm12, %v745_v43, %v752_v47 }
 0x162   : > { %v921_v22 = vld [vmem:[#allocation2 + $0xb4] sm:$0xf]  ;;  %v1912_v40 = vrot.slane %v1910_v17, 4  ;;  %v1915_v49 = vrot.slane %v1913_v13, 5  ;;  %3080 = vrot.lane.b32.xlu1 %v7904_v44, %s8652_s11  ;;  %v754_v31 = vrot.slane %v749_v14, 4  ;;  %v2140_v57 = vrot.slane %v2138_v42, 4 }
 0x163   : > { %v922_v37 = vsel %vm8810_vm11, %v744_v51, %v921_v22  ;;  %924 = vst.msk [vmem:[#allocation2 + $0xb8] sm:$0xf] %vm224_vm0, %v753_v41  ;;  %v1926_v2 = vor.u32 %v1925_v12, %v1921_v50  ;;  %v10141_v20 = vsel %vm8804_vm10, %v7824_v48, %v2138_v42  ;;  %3238 = vrot.lane.b32.xlu0 %v7935_v19, %s8655_s14  ;;  %v2495_v36 = vshrl.u32 %v2182_v38, 16  ;;  %v10151_v14 = vld [vmem:[#allocation2 + $0xa8] sm:$0xf] }
 0x164   : > { %923 = vst [vmem:[#allocation2 + $0xb4] sm:$0xf] %v922_v37  ;;  %v1594_v35 = vld [vmem:[#allocation2 + $0xb0] sm:$0x1]  ;;  %v1916_v53 = vor.u32 %v1915_v49, %v1912_v40  ;;  %v2498_v56 = vshll.u32 %v2182_v38, 16  ;;  %v2508_v25 = vshrl.u32 %v10123_v18, 16  ;;  %v7951_v11 = vcombine.low %v2182_v38, %v10123_v18 }
 0x165   : > { %v10146_v26 = vld [vmem:[#allocation2 + $0xb0] sm:$0x1]  ;;  %v1927_v16 = vrot.slane %v1926_v2, 4  ;;  %v1929_v4 = vshll.u32 %v1594_v35, 16  ;;  %v2141_v58 = vrot.slane %v1594_v35, 5  ;;  %v2497_v28 = vrot.slane %v2495_v36, 4 }
 0x166   : > { %v925_v15 = vld [vmem:[#allocation2 + $0xbc] sm:$0x1]  ;;  %v1917_v6 = vrot.slane %v1916_v53, 4  ;;  %v2500_v23 = vrot.slane %v2498_v56, 5  ;;  %v2504_v24 = vshll.u32 %v10123_v18, 16  ;;  %v2510_v43 = vrot.slane %v2508_v25, 4  ;;  %v10180_v56 = vpop.permute.xlu1 %2896  ;;  %v10182_v25 = vpop.permute.xlu0 %3070 }
 0x167   : > { %v926_v30 = vsel %vm8750_vm3, %v754_v31, %v925_v15  ;;  %v1931_v19 = vrot.slane %v1929_v4, 5  ;;  %v2142_v51 = vsel %vm8804_vm10, %v2140_v57, %v2141_v58  ;;  %3334 = vrot.lane.b32.xlu0 %v7951_v11, %s8653_s12  ;;  %v2514_v59 = vshll.u32 %v10146_v26, 16  ;;  %v10173_v2 = vld [vmem:[#allocation2 + $0xac] sm:$0xf] }
 0x168   : > { %927 = vst [vmem:[#allocation2 + $0xbc] sm:$0x1] %v926_v30  ;;  %v1922_v27 = vsel %vm8891_vm15, %v1917_v6, %v1921_v50  ;;  %v7936_v3 = vcombine.low %v10141_v20, %v2142_v51  ;;  %v2501_v55 = vor.u32 %v2500_v23, %v2497_v28  ;;  %v2506_v47 = vrot.slane %v2504_v24, 5  ;;  %v10175_v20 = vld [vmem:[#allocation2 + $0xb0] sm:$0x1] }
 0x169   : > { %v1932_v17 = vsel %vm8891_vm15, %v1927_v16, %v1931_v19  ;;  %v2516_v44 = vrot.slane %v2514_v59, 5  ;;  %v1323_v48 = vshrl.u32 %v10151_v14, 16  ;;  %v1326_v38 = vshll.u32 %v10151_v14, 16  ;;  %v2602_v59 = vld [vmem:[#allocation2 + $0xa8] sm:$0xe] }
 0x16a   : > { %v10166_v13 = vld [vmem:[#allocation2 + $0xb8] sm:$0xf]  ;;  %v7920_v12 = vcombine.low %v1922_v27, %v1932_v17  ;;  %v2502_v22 = vrot.slane %v2501_v55, 4  ;;  %v2511_v37 = vor.u32 %v2510_v43, %v2506_v47  ;;  %v1332_v6 = vshll.u32 %v10173_v2, 16 }
 0x16b   : > { %v2184_v42 = vld [vmem:[#allocation2 + $0xb4] sm:$0xf]  ;;  %v2532_v41 = vshrl.u32 %v10166_v13, 16  ;;  %v2528_v50 = vshll.u32 %v10166_v13, 16  ;;  %v1325_v53 = vrot.slane %v1323_v48, 4  ;;  %v1328_v58 = vrot.slane %v1326_v38, 5 }
 0x16c   : > { %v2519_v40 = vshrl.u32 %v2184_v42, 16  ;;  %v2522_v49 = vshll.u32 %v2184_v42, 16  ;;  %v7952_v31 = vcombine.low %v2184_v42, %v10166_v13  ;;  %3160 = vrot.lane.b32.xlu1 %v7920_v12, %s8657_s16  ;;  %v2507_v35 = vsel %vm8891_vm15, %v2502_v22, %v2506_v47 }
 0x16d   : > { %v2530_v57 = vrot.slane %v2528_v50, 5  ;;  %v2534_v36 = vrot.slane %v2532_v41, 4  ;;  %v2512_v4 = vrot.slane %v2511_v37, 4  ;;  %v1336_v23 = vshrl.u32 %v10173_v2, 16  ;;  %v10193_v41 = vld [vmem:[#allocation2 + $0xb4] sm:$0xf]  ;;  %v10202_v37 = vpop.permute.xlu0 %3150 }
 0x16e   : > { %v2521_v11 = vrot.slane %v2519_v40, 4  ;;  %v2524_v16 = vrot.slane %v2522_v49, 5  ;;  %v1342_v30 = vshll.u32 %v10175_v20, 16  ;;  %v1329_v43 = vor.u32 %v1328_v58, %v1325_v53  ;;  %v10198_v49 = vld [vmem:[#allocation2 + $0xb8] sm:$0xf] }
 0x16f   : > { %v10184_v28 = vld [vmem:[#allocation2 + $0xbc] sm:$0x1]  ;;  %v2535_v15 = vor.u32 %v2534_v36, %v2530_v57  ;;  %v2517_v51 = vsel %vm8891_vm15, %v2512_v4, %v2516_v44  ;;  %v1334_v47 = vrot.slane %v1332_v6, 5  ;;  %v1338_v17 = vrot.slane %v1336_v23, 4 }
 0x170   : > { %v2525_v24 = vor.u32 %v2524_v16, %v2521_v11  ;;  %v2538_v19 = vshll.u32 %v10184_v28, 16  ;;  %3240 = vrot.lane.b32.xlu1 %v7936_v3, %s8655_s14  ;;  %v7967_v55 = vcombine.low %v2507_v35, %v2517_v51  ;;  %v1330_v12 = vrot.slane %v1329_v43, 4  ;;  %v10200_v3 = vpop.permute.xlu1 %2976  ;;  %v2603_v11 = vld [vmem:[#allocation2 + $0xb4] sm:$0xe] }
 0x171   : > { %v2536_v27 = vrot.slane %v2535_v15, 4  ;;  %v1344_v42 = vrot.slane %v1342_v30, 5  ;;  %v1339_v50 = vor.u32 %v1338_v17, %v1334_v47  ;;  %v7839_v22 = vrot.slane %v2602_v59, 9 }
 0x172   : > { %v2526_v48 = vrot.slane %v2525_v24, 4  ;;  %v2540_v38 = vrot.slane %v2538_v19, 5  ;;  %3414 = vrot.lane.b32.xlu0 %v7967_v55, %s8658_s17  ;;  %v2740_v44 = vrot.slane %v10123_v18, 5  ;;  %v2743_v40 = vrot.slane %v10146_v26, 5  ;;  %v10213_v26 = vld [vmem:[#allocation2 + $0xbc] sm:$0x1] }
 0x173   : > { %v3598_v53 = vsel %vm12671_vm8, %v10120_v60, %v9978_v21  ;;  %v1335_v18 = vsel %vm8891_vm15, %v1330_v12, %v1334_v47  ;;  %v1340_v4 = vrot.slane %v1339_v50, 4  ;;  %v1347_v15 = vshrl.u32 %v10193_v41, 16 }
 0x174   : > { %v2531_v36 = vsel %vm8891_vm15, %v2526_v48, %v2530_v57  ;;  %v2541_v35 = vsel %vm8891_vm15, %v2536_v27, %v2540_v38  ;;  %3336 = vrot.lane.b32.xlu1 %v7952_v31, %s8653_s12  ;;  %v2741_v57 = vsel %vm8804_vm10, %v7839_v22, %v2740_v44  ;;  %v2742_v58 = vrot.slane %v2740_v44, 4  ;;  %v1385_v27 = vld [vmem:[#allocation2 + $0xb4] sm:$0xe]  ;;  %v1384_v38 = vld [vmem:[#allocation2 + $0xa8] sm:$0xe]  ;;  %v10232_v12 = vpop.permute.xlu1 %3072 }
 0x175   : > { %v7968_v16 = vcombine.low %v2531_v36, %v2541_v35  ;;  %v1350_v6 = vshll.u32 %v10193_v41, 16  ;;  %v1356_v21 = vshll.u32 %v10198_v49, 16  ;;  %v1360_v60 = vshrl.u32 %v10198_v49, 16 }
 0x176   : > { %v1345_v23 = vsel %vm8891_vm15, %v1340_v4, %v1344_v42  ;;  %v2744_v31 = vsel %vm8804_vm10, %v2742_v58, %v2743_v40  ;;  %v1366_v30 = vshll.u32 %v10213_v26, 16  ;;  %v7840_v24 = vrot.slane %v2603_v11, 9  ;;  %v10234_v42 = vpop.permute.xlu0 %3230 }
 0x177   : > { %v7983_v19 = vcombine.low %v2741_v57, %v2744_v31  ;;  %v3633_v51 = vsel %vm3617_vm9, %v10127_v54, %v10047_v45  ;;  %v1349_v43 = vrot.slane %v1347_v15, 4  ;;  %v1352_v59 = vrot.slane %v1350_v6, 5  ;;  %v284_v57 = vld [vmem:[#allocation2 + $0xc0] sm:$0x1] }
 0x178   : > { %3416 = vrot.lane.b32.xlu1 %v7968_v16, %s8658_s17  ;;  %v7873_v55 = vcombine.low %v1335_v18, %v1345_v23  ;;  %v1358_v47 = vrot.slane %v1356_v21, 5  ;;  %v1362_v17 = vrot.slane %v1360_v60, 4  ;;  %v2747_v48 = vrot.slane %v10166_v13, 5  ;;  %v496_v21 = vld [vmem:[%s8785_s9 + $0x78] sm:$0xf] }
 0x179   : > { %3494 = vrot.lane.b32.xlu0 %v7983_v19, %s8656_s15  ;;  %v3631_v45 = vsel %vm3617_vm9, %v3598_v53, %v9997_v46  ;;  %v1353_v54 = vor.u32 %v1352_v59, %v1349_v43  ;;  %v1368_v50 = vrot.slane %v1366_v30, 5  ;;  %v2750_v22 = vrot.slane %v10184_v28, 5  ;;  %v497_v30 = vld [vmem:[%s8785_s9 + $0x7c] sm:$0xf]  ;;  %v10261_v19 = vpop.permute.xlu1 %3152 }
 0x17a   : > { %v1363_v44 = vor.u32 %v1362_v17, %v1358_v47  ;;  %v2748_v40 = vsel %vm8804_vm10, %v7840_v24, %v2747_v48  ;;  %v2749_v36 = vrot.slane %v2747_v48, 4  ;;  %v7810_v13 = vrot.slane %v1385_v27, 9  ;;  %v1577_v24 = vld [vmem:[#allocation2 + $0xb4] sm:$0xf]  ;;  %v10263_v43 = vpop.permute.xlu0 %3326 }
 0x17b   : > { %v1354_v35 = vrot.slane %v1353_v54, 4  ;;  %v1544_v18 = vrot.slane %v10198_v49, 5  ;;  %v1547_v11 = vrot.slane %v10213_v26, 5  ;;  %v7809_v16 = vrot.slane %v1384_v38, 9 }
 0x17c   : > { %2906 = vrot.lane.b32.xlu1 %v7873_v55, %s8654_s13  ;;  %v1364_v46 = vrot.slane %v1363_v44, 4  ;;  %v2751_v28 = vsel %vm8804_vm10, %v2749_v36, %v2750_v22  ;;  %v1537_v53 = vrot.slane %v10173_v2, 5  ;;  %v1540_v4 = vrot.slane %v10175_v20, 5  ;;  %v340_v22 = vld [vmem:[#allocation2 + $0xc8] sm:$0x1] }
 0x17d   : > { %v1359_v58 = vsel %vm8891_vm15, %v1354_v35, %v1358_v47  ;;  %v7984_v15 = vcombine.low %v2748_v40, %v2751_v28  ;;  %v1545_v26 = vsel %vm8804_vm10, %v7810_v13, %v1544_v18  ;;  %v1546_v6 = vrot.slane %v1544_v18, 4 }
 0x17e   : > { %v1369_v60 = vsel %vm8891_vm15, %v1364_v46, %v1368_v50  ;;  %v3666_v23 = vsel %vm3650_vm13, %v3633_v51, %v10071_v5  ;;  %v1538_v31 = vsel %vm8804_vm10, %v7809_v16, %v1537_v53  ;;  %v1539_v20 = vrot.slane %v1537_v53, 4  ;;  %v10272_v51 = vld [vmem:[#allocation2 + $0xb8] sm:$0xf]  ;;  %v1595_v46 = vld [vmem:[#allocation2 + $0xbc] sm:$0x1] }
 0x17f   : > { %v7874_v59 = vcombine.low %v1359_v58, %v1369_v60  ;;  %3496 = vrot.lane.b32.xlu0 %v7984_v15, %s8656_s15  ;;  %v3664_v27 = vsel %vm3650_vm13, %v3631_v45, %v10016_v61  ;;  %v1548_v55 = vsel %vm8804_vm10, %v1546_v6, %v1547_v11  ;;  %v285_v5 = vsel %vm8750_vm3, 0, %v284_v57  ;;  %v1995_v57 = vld [vmem:[#allocation2 + $0xb4] sm:$0xe]  ;;  %v10288_v58 = vpop.permute.xlu1 %3232 }
 0x180   : > { %v7890_v47 = vcombine.low %v1545_v26, %v1548_v55  ;;  %v1541_v17 = vsel %vm8804_vm10, %v1539_v20, %v1540_v4  ;;  %286 = vst [vmem:[#allocation2 + $0xc0] sm:$0x1] %v285_v5  ;;  %v756_v48 = vshrl.u32 %v496_v21, 16  ;;  %v759_v38 = vshll.u32 %v496_v21, 16  ;;  %v8553_v20 = vld [vmem:[#allocation2 + $0x64] sm:$0xf] }
 0x181   : > { %2908 = vrot.lane.b32.xlu1 %v7874_v59, %s8654_s13  ;;  %v7889_v54 = vcombine.low %v1538_v31, %v1541_v17  ;;  %v764_v50 = vshrl.u32 %v497_v30, 16  ;;  %v767_v61 = vshll.u32 %v497_v30, 16  ;;  %v1934_v45 = vshrl.u32 %v1577_v24, 16  ;;  %v8552_v31 = vld [vmem:[#allocation2 + $0x60] sm:$0xf]  ;;  %s8660_s13 = smov 40  }
 0x182   : > { %v3699_v44 = vsel %vm3683_vm4, %v3666_v23, %v10101_v0  ;;  %v758_v40 = vrot.slane %v756_v48, 7  ;;  %v1937_v36 = vshll.u32 %v1577_v24, 16  ;;  %v1947_v13 = vshrl.u32 %v10272_v51, 16  ;;  %v287_v59 = vld [vmem:[#allocation2 + $0xcc] sm:$0x1] }
 0x183   : > { %2986 = vrot.lane.b32.xlu0 %v7889_v54, %s8651_s10  ;;  %v3697_v35 = vsel %vm3683_vm4, %v3664_v27, %v10049_v33  ;;  %v10283_v18 = vrot.slane %v764_v50, 7  ;;  %v1936_v11 = vrot.slane %v1934_v45, 4  ;;  %v7905_v16 = vcombine.low %v1577_v24, %v10272_v51  ;;  %v10310_v54 = vld [vmem:[#allocation2 + $0xd0] sm:$0xf] }
 0x184   : > { %v761_v28 = vor.u32 %v759_v38, %v758_v40  ;;  %v762_v53 = vrot.slane %v758_v40, 4  ;;  %v1939_v4 = vrot.slane %v1937_v36, 5  ;;  %v341_v0 = vsel %vm8778_vm6, 0, %v340_v22  ;;  %v10290_v15 = vpop.permute.xlu0 %3406  ;;  %v343_v22 = vld [vmem:[#allocation2 + $0xd4] sm:$0x1] }
 0x185   : > { %2988 = vrot.lane.b32.xlu1 %v7890_v47, %s8651_s10  ;;  %v769_v33 = vor.u32 %v767_v61, %v10283_v18  ;;  %v3730_v26 = vsel %vm3716_vm5, %v3697_v35, %v10073_v34  ;;  %342 = vst [vmem:[#allocation2 + $0xc8] sm:$0x1] %v341_v0  ;;  %v1943_v6 = vshll.u32 %v10272_v51, 16  ;;  %v1949_v21 = vrot.slane %v1947_v13, 4  ;;  %v8554_v36 = vld [vmem:[#allocation2 + $0x6c] sm:$0xf] }
 0x186   : > { %v1940_v60 = vor.u32 %v1939_v4, %v1936_v11  ;;  %v1953_v23 = vshll.u32 %v1595_v46, 16  ;;  %v7851_v30 = vcombine.low %v8552_v31, %v8553_v20  ;;  %v3763_v24 = vsel %vm3749_vm14, %v3730_v26, %v10103_v9 }
 0x187   : > { %v770_v27 = vsel %vm8816_vm12, %v762_v53, %v769_v33  ;;  %v928_v55 = vld [vmem:[#allocation2 + $0xc0] sm:$0xf]  ;;  %3082 = vrot.lane.b32.xlu0 %v7905_v16, %s8652_s11  ;;  %v1945_v34 = vrot.slane %v1943_v6, 5  ;;  %v7825_v5 = vrot.slane %v1995_v57, 9  ;;  %v2145_v47 = vrot.slane %v10272_v51, 5  ;;  %8350 = vmatprep.mubr.msk.bf16.mxu0 %vm12670_vm2, %v3763_v24 }
 0x188   : > { %v771_v17 = vrot.slane %v10283_v18, 4  ;;  %v929_v48 = vsel %vm8810_vm11, %v761_v28, %v928_v55  ;;  %931 = vst.msk [vmem:[#allocation2 + $0xc4] sm:$0xf] %vm224_vm0, %v770_v27  ;;  %v3732_v9 = vsel %vm3716_vm5, %v3699_v44, %v10129_v52  ;;  %v1941_v38 = vrot.slane %v1940_v60, 4  ;;  %v10318_v44 = vpop.permute.xlu1 %3328  ;;  %v10320_v18 = vpop.permute.xlu0 %3486 }
 0x189   : > { %930 = vst [vmem:[#allocation2 + $0xc0] sm:$0xf] %v929_v48  ;;  %v1950_v50 = vor.u32 %v1949_v21, %v1945_v34  ;;  %v1955_v61 = vrot.slane %v1953_v23, 5  ;;  %v2147_v45 = vrot.slane %v2145_v47, 4  ;;  %v2148_v51 = vrot.slane %v1595_v46, 5 }
 0x18a   : > { %v3529_v40 = vsel %vm3502_vm1, %v7851_v30, %v10153_v62  ;;  %v7852_v13 = vcombine.low %v8554_v36, %v8555_v32  ;;  %v3765_v35 = vsel %vm3749_vm14, %v3732_v9, %v10131_v7  ;;  %v288_v52 = vsel %vm8750_vm3, 0, %v287_v59 }
 0x18b   : > { %v1946_v11 = vsel %vm8891_vm15, %v1941_v38, %v1945_v34  ;;  %v1951_v16 = vrot.slane %v1950_v50, 4  ;;  %v2146_v62 = vsel %vm8804_vm10, %v7825_v5, %v2145_v47  ;;  %289 = vst [vmem:[#allocation2 + $0xcc] sm:$0x1] %v288_v52  ;;  %v2580_v46 = vshrl.u32 %v10310_v54, 16  ;;  %8351 = vmatmul.mubr.msk.bf16.gmra.mrb[12].mxu0 %vm12670_vm2, %v3765_v35 }
 0x18c   : > { %v932_v7 = vld [vmem:[#allocation2 + $0xc8] sm:$0x1]  ;;  %v2149_v28 = vsel %vm8804_vm10, %v2147_v45, %v2148_v51  ;;  %v3532_v53 = vsel %vm3502_vm1, %v7852_v13, %v10180_v56  ;;  %v344_v4 = vsel %vm8778_vm6, 0, %v343_v22  ;;  %v2576_v0 = vshll.u32 %v10310_v54, 16 }
 0x18d   : > { %v933_v57 = vsel %vm8750_vm3, %v771_v17, %v932_v7  ;;  %v1956_v33 = vsel %vm8891_vm15, %v1951_v16, %v1955_v61  ;;  %v3571_v26 = vsel %vm3551_vm7, %v3532_v53, %v10200_v3  ;;  %345 = vst [vmem:[#allocation2 + $0xd4] sm:$0x1] %v344_v4  ;;  %v7937_v60 = vcombine.low %v2146_v62, %v2149_v28 }
 0x18e   : > { %934 = vst [vmem:[#allocation2 + $0xc8] sm:$0x1] %v933_v57  ;;  %v7921_v6 = vcombine.low %v1946_v11, %v1956_v33  ;;  %v3569_v8 = vsel %vm3551_vm7, %v3529_v40, %v10155_v10  ;;  %v2582_v56 = vrot.slane %v2580_v46, 4  ;;  %v10344_v1 = vrot.slane %v2576_v0, 5  ;;  %v10350_v3 = vpop.permute.xlu1 %3408 }
 0x18f   : > { %v1580_v21 = vld [vmem:[#allocation2 + $0xc4] sm:$0xf]  ;;  %v10348_v30 = vsel %vm12671_vm8, %v3571_v26, %v10232_v12  ;;  %v10352_v24 = vpop.permute.xlu0 %3488  ;;  %v10356_v5 = vsel %vm12671_vm8, %v3569_v8, %v10182_v25  ;;  %vm349_vm0 = vcmask 57344   ;;  %vm12697_vm3 = vsmask.f32 256 }
 0x190   : > { %v1579_v23 = vld [vmem:[#allocation2 + $0xc0] sm:$0xf]  ;;  %v1971_v31 = vshrl.u32 %v1580_v21, 16  ;;  %v1967_v20 = vshll.u32 %v1580_v21, 16  ;;  %3162 = vrot.lane.b32.xlu0 %v7921_v6, %s8657_s16  ;;  %v2152_v48 = vrot.slane %v1580_v21, 5  ;;  %v2583_v36 = vor.u32 %v2582_v56, %v10344_v1  ;;  %vm10453_vm6 = vmand %vm349_vm0, %vm12697_vm3 }
 0x191   : > { %v1958_v59 = vshrl.u32 %v1579_v23, 16  ;;  %v1961_v27 = vshll.u32 %v1579_v23, 16  ;;  %v7906_v55 = vcombine.low %v1579_v23, %v1580_v21  ;;  %v1996_v10 = vld [vmem:[#allocation2 + $0xc0] sm:$0xe]  ;;  %v10364_v25 = vld [vmem:[#allocation2 + $0xc4] sm:$0xf] }
 0x192   : > { %v2186_v34 = vld [vmem:[#allocation2 + $0xc0] sm:$0xf]  ;;  %v1969_v47 = vrot.slane %v1967_v20, 5  ;;  %v1973_v17 = vrot.slane %v1971_v31, 4  ;;  %v10358_v9 = vld [vmem:[#allocation2 + $0xcc] sm:$0xf]  ;;  %v10369_v53 = vpop.permute.xlu1 %2898 }
 0x193   : > { %v2543_v12 = vshrl.u32 %v2186_v34, 16  ;;  %v1960_v38 = vrot.slane %v1958_v59, 4  ;;  %v1963_v50 = vrot.slane %v1961_v27, 5  ;;  %3084 = vrot.lane.b32.xlu1 %v7906_v55, %s8652_s11  ;;  %v2567_v61 = vshrl.u32 %v10358_v9, 16  ;;  %v2605_v27 = vld [vmem:[#allocation2 + $0xcc] sm:$0xe] }
 0x194   : > { %v2570_v45 = vshll.u32 %v10358_v9, 16  ;;  %v1974_v51 = vor.u32 %v1973_v17, %v1969_v47  ;;  %v7826_v22 = vrot.slane %v1996_v10, 9  ;;  %v2154_v40 = vrot.slane %v2152_v48, 4  ;;  %3242 = vrot.lane.b32.xlu0 %v7937_v60, %s8655_s14  ;;  %v10367_v28 = vld [vmem:[#allocation2 + $0xd4] sm:$0x1]  ;;  %s8659_s11 = smov 48  }
 0x195   : > { %v1596_v32 = vld [vmem:[#allocation2 + $0xc8] sm:$0x1]  ;;  %v1964_v13 = vor.u32 %v1963_v50, %v1960_v38  ;;  %v2569_v35 = vrot.slane %v2567_v61, 4  ;;  %v2545_v11 = vrot.slane %v2543_v12, 4  ;;  %v2546_v7 = vshll.u32 %v2186_v34, 16  ;;  %v10371_v4 = vpop.permute.xlu0 %2978 }
 0x196   : > { %v2572_v52 = vrot.slane %v2570_v45, 5  ;;  %v1975_v16 = vrot.slane %v1974_v51, 4  ;;  %v1977_v62 = vshll.u32 %v1596_v32, 16  ;;  %v2155_v46 = vrot.slane %v1596_v32, 5  ;;  %v2204_v8 = vld [vmem:[#allocation2 + $0xc8] sm:$0x1] }
 0x197   : > { %v1965_v0 = vrot.slane %v1964_v13, 4  ;;  %v2556_v57 = vshrl.u32 %v10364_v25, 16  ;;  %v7953_v33 = vcombine.low %v2186_v34, %v10364_v25  ;;  %v2153_v21 = vsel %vm8804_vm10, %v7826_v22, %v2152_v48  ;;  %v2604_v48 = vld [vmem:[#allocation2 + $0xc0] sm:$0xe] }
 0x198   : > { %v2573_v26 = vor.u32 %v2572_v52, %v2569_v35  ;;  %v1979_v6 = vrot.slane %v1977_v62, 5  ;;  %v2548_v60 = vrot.slane %v2546_v7, 5  ;;  %v2761_v56 = vrot.slane %v10310_v54, 5 }
 0x199   : > { %v1970_v23 = vsel %vm8891_vm15, %v1965_v0, %v1969_v47  ;;  %v2156_v31 = vsel %vm8804_vm10, %v2154_v40, %v2155_v46  ;;  %3338 = vrot.lane.b32.xlu0 %v7953_v33, %s8653_s12  ;;  %v2584_v20 = vrot.slane %v2583_v36, 4  ;;  %v2586_v59 = vshll.u32 %v10367_v28, 16  ;;  %v10390_v40 = vpop.permute.xlu1 %2900  ;;  %v10392_v36 = vpop.permute.xlu0 %3074 }
 0x19a   : > { %v1980_v55 = vsel %vm8891_vm15, %v1975_v16, %v1979_v6  ;;  %v2549_v10 = vor.u32 %v2548_v60, %v2545_v11  ;;  %v2552_v34 = vshll.u32 %v10364_v25, 16  ;;  %v2558_v17 = vrot.slane %v2556_v57, 4 }
 0x19b   : > { %v7922_v12 = vcombine.low %v1970_v23, %v1980_v55  ;;  %v2574_v38 = vrot.slane %v2573_v26, 4  ;;  %v2588_v47 = vrot.slane %v2586_v59, 5  ;;  %v2562_v50 = vshll.u32 %v2204_v8, 16  ;;  %v357_v23 = vld [vmem:[#allocation3] sm:$0x1] }
 0x19c   : > { %v2550_v61 = vrot.slane %v2549_v10, 4  ;;  %v2554_v45 = vrot.slane %v2552_v34, 5  ;;  %v7842_v51 = vrot.slane %v2605_v27, 9  ;;  %v3637_v22 = vsel %vm3617_vm9, %v10348_v30, %v10261_v19  ;;  %v369_v55 = vld [vmem:[#allocation3 + $0x30] sm:$0x1] }
 0x19d   : > { %3164 = vrot.lane.b32.xlu1 %v7922_v12, %s8657_s16  ;;  %v7938_v32 = vcombine.low %v2153_v21, %v2156_v31  ;;  %v7841_v13 = vrot.slane %v2604_v48, 9  ;;  %v3635_v35 = vsel %vm3617_vm9, %v10356_v5, %v10202_v37  ;;  %v3670_v52 = vsel %vm3650_vm13, %v3637_v22, %v10288_v58  ;;  %v10430_v21 = vpop.permute.xlu1 %2980  ;;  %v363_v31 = vld [vmem:[#allocation3 + $0x18] sm:$0x1] }
 0x19e   : > { %v7954_v11 = vcombine.low %v10358_v9, %v10310_v54  ;;  %v2559_v16 = vor.u32 %v2558_v17, %v2554_v45  ;;  %v2564_v19 = vrot.slane %v2562_v50, 5  ;;  %v2754_v30 = vrot.slane %v10364_v25, 5  ;;  %v366_v54 = vld [vmem:[#allocation3 + $0x24] sm:$0x1]  ;;  %v424_v12 = vld [vmem:[#allocation3 + $0x38] sm:$0x1] }
 0x19f   : > { %v2579_v62 = vsel %vm8891_vm15, %v2574_v38, %v10344_v1  ;;  %v2589_v46 = vsel %vm8891_vm15, %v2584_v20, %v2588_v47  ;;  %v2763_v37 = vrot.slane %v2761_v56, 4  ;;  %v2757_v5 = vrot.slane %v2204_v8, 5  ;;  %v360_v20 = vld [vmem:[#allocation3 + $0xc] sm:$0x1] }
 0x1a0   : > { %v2555_v58 = vsel %vm8891_vm15, %v2550_v61, %v2554_v45  ;;  %v2560_v7 = vrot.slane %v2559_v16, 4  ;;  %v2756_v9 = vrot.slane %v2754_v30, 4  ;;  %v3668_v0 = vsel %vm3650_vm13, %v3635_v35, %v10234_v42  ;;  %v10432_v60 = vpop.permute.xlu0 %3154  ;;  %v421_v61 = vld [vmem:[#allocation3 + $0x2c] sm:$0x1]  ;;  %v375_v35 = vld [vmem:[#allocation3 + $0x48] sm:$0x1] }
 0x1a1   : > { %3244 = vrot.lane.b32.xlu1 %v7938_v32, %s8655_s14  ;;  %v2764_v25 = vrot.slane %v10367_v28, 5  ;;  %v2755_v1 = vsel %vm8804_vm10, %v7841_v13, %v2754_v30  ;;  %v3703_v57 = vsel %vm3683_vm4, %v3670_v52, %v10318_v44  ;;  %v3701_v33 = vsel %vm3683_vm4, %v3668_v0, %v10263_v43  ;;  %v10478_v13 = vld [vmem:[#allocation3 + $0x4] sm:$0xf]  ;;  %s8661_s14 = smov 64  }
 0x1a2   : > { %v2565_v26 = vsel %vm8891_vm15, %v2560_v7, %v2564_v19  ;;  %v2758_v6 = vsel %vm8804_vm10, %v2756_v9, %v2757_v5  ;;  %v3736_v42 = vsel %vm3716_vm5, %v3703_v57, %v10350_v3  ;;  %v3734_v28 = vsel %vm3716_vm5, %v3701_v33, %v10290_v15  ;;  %v418_v3 = vld [vmem:[#allocation3 + $0x20] sm:$0x1]  ;;  %v8558_v57 = vld [vmem:[#allocation2 + $0x84] sm:$0xf]  ;;  %v8559_v33 = vld [vmem:[#allocation2 + $0x88] sm:$0xf] }
 0x1a3   : > { %v7969_v44 = vcombine.low %v2555_v58, %v2565_v26  ;;  %v3767_v43 = vsel %vm3749_vm14, %v3734_v28, %v10320_v18  ;;  %v3769_v8 = vsel %vm3749_vm14, %v3736_v42, %v10352_v24  ;;  %v7970_v15 = vcombine.low %v2579_v62, %v2589_v46  ;;  %v415_v18 = vld [vmem:[#allocation3 + $0x14] sm:$0x1]  ;;  %v10470_v45 = vpop.permute.xlu1 %3076  ;;  %v8556_v5 = vld [vmem:[#allocation2 + $0x78] sm:$0xf]  ;;  %v8557_v58 = vld [vmem:[#allocation2 + $0x7c] sm:$0xf] }
 0x1a4   : > { %8354 = vmatprep.mubr.msk.bf16.mxu0 %vm12670_vm2, %v3767_v43  ;;  %v7985_v59 = vcombine.low %v2755_v1, %v2758_v6  ;;  %v7857_v27 = vcombine.low %v10151_v14, %v10173_v2  ;;  %v2762_v24 = vsel %vm8804_vm10, %v7842_v51, %v2761_v56  ;;  %v2765_v10 = vsel %vm8804_vm10, %v2763_v37, %v2764_v25  ;;  %v10472_v51 = vpop.permute.xlu0 %3234 }
 0x1a5   : > { %3340 = vrot.lane.b32.xlu1 %v7954_v11, %s8653_s12  ;;  %3418 = vrot.lane.b32.xlu0 %v7969_v44, %s8658_s17  ;;  %v7858_v34 = vcombine.low %v10193_v41, %v10198_v49  ;;  %v12700_v48 = vmov 0   ;;  %v364_v56 = vsel %vm10453_vm6, 0, %v363_v31  ;;  %v361_v38 = vsel %vm10453_vm6, 0, %v360_v20 }
 0x1a6   : > { %8355 = vmatmul.mubr.msk.bf16.gmra.mrb[16].mxu0 %vm12670_vm2, %v3769_v8  ;;  %350 = vst.msk [vmem:[#allocation3 + $0x8] sm:$0x1] %vm349_vm0, %v12700_v48  ;;  %354 = vst.msk [vmem:[#allocation3 + $0xd4] sm:$0x1] %vm349_vm0, %v12700_v48  ;;  %vm12701_vm11 = vsmask.f32 7938  ;;  %v7986_v52 = vcombine.low %v2762_v24, %v2765_v10  ;;  %v7853_v7 = vcombine.low %v8556_v5, %v8557_v58  ;;  %v7854_v26 = vcombine.low %v8558_v57, %v8559_v33 }
 0x1a7   : > { %vm10464_vm2 = vmand %vm349_vm0, %vm12701_vm11  ;;  %v358_v50 = vsel %vm10453_vm6, 0, %v357_v23  ;;  %365 = vst [vmem:[#allocation3 + $0x18] sm:$0x1] %v364_v56  ;;  %v370_v11 = vsel %vm10453_vm6, 0, %v369_v55  ;;  %v367_v16 = vsel %vm10453_vm6, 0, %v366_v54  ;;  %v4628_v62 = vshll.u32 %v10478_v13, 16 }
 0x1a8   : > { %362 = vst [vmem:[#allocation3 + $0xc] sm:$0x1] %v361_v38  ;;  %v419_v22 = vsel %vm10464_vm2, 0, %v418_v3  ;;  %v416_v32 = vsel %vm10464_vm2, 0, %v415_v18  ;;  %359 = vst [vmem:[#allocation3] sm:$0x1] %v358_v50  ;;  %v3331_v25 = vpop.permute.xlu0 %3330  ;;  %v3535_v8 = vsel %vm3502_vm1, %v7853_v7, %v10369_v53  ;;  %v3538_v3 = vsel %vm3502_vm1, %v7854_v26, %v10390_v40 }
 0x1a9   : > { %3420 = vrot.lane.b32.xlu1 %v7970_v15, %s8658_s17  ;;  %3498 = vrot.lane.b32.xlu0 %v7985_v59, %s8656_s15  ;;  %420 = vst [vmem:[#allocation3 + $0x20] sm:$0x1] %v419_v22  ;;  %417 = vst [vmem:[#allocation3 + $0x14] sm:$0x1] %v416_v32  ;;  %v425_v19 = vsel %vm10464_vm2, 0, %v424_v12  ;;  %v422_v30 = vsel %vm10464_vm2, 0, %v421_v61  ;;  %v3573_v55 = vsel %vm3551_vm7, %v3535_v8, %v10371_v4 }
 0x1aa   : > { %371 = vst [vmem:[#allocation3 + $0x30] sm:$0x1] %v370_v11  ;;  %v4632_v46 = vshrl.u32 %v10478_v13, 16  ;;  %368 = vst [vmem:[#allocation3 + $0x24] sm:$0x1] %v367_v16  ;;  %v376_v37 = vsel %vm10453_vm6, 0, %v375_v35  ;;  %v3606_v48 = vsel %vm12671_vm8, %v3573_v55, %v10392_v36  ;;  %v3575_v53 = vsel %vm3551_vm7, %v3538_v3, %v10430_v21 }
 0x1ab   : > { %426 = vst [vmem:[#allocation3 + $0x38] sm:$0x1] %v425_v19  ;;  %423 = vst [vmem:[#allocation3 + $0x2c] sm:$0x1] %v422_v30  ;;  %v4630_v42 = vrot.slane %v4628_v62, 5  ;;  %v5068_v18 = vrot.slane %v10478_v13, 5  ;;  %v3639_v54 = vsel %vm3617_vm9, %v3606_v48, %v10432_v60  ;;  %v3608_v60 = vsel %vm12671_vm8, %v3575_v53, %v10470_v45 }
 0x1ac   : > { %377 = vst [vmem:[#allocation3 + $0x48] sm:$0x1] %v376_v37  ;;  %v4634_v28 = vrot.slane %v4632_v46, 4  ;;  %v5002_v59 = vld [vmem:[#allocation3] sm:$0xe]  ;;  %v3672_v4 = vsel %vm3650_vm13, %v3639_v54, %v10472_v51  ;;  %vm12704_vm0 = vcmask 293888  }
 0x1ad   : > { %3500 = vrot.lane.b32.xlu1 %v7986_v52, %s8656_s15  ;;  %v412_v9 = vld [vmem:[#allocation3 + $0x8] sm:$0x1]  ;;  %v8039_v56 = vrot.slane %v5002_v59, 9  ;;  %v5070_v61 = vrot.slane %v5068_v18, 4  ;;  %v3705_v35 = vsel %vm3683_vm4, %v3672_v4, %v3331_v25  ;;  %v372_v62 = vld [vmem:[#allocation3 + $0x3c] sm:$0x1]  ;;  %vm12705_vm3 = vmmov %vm12704_vm0 }
 0x1ae   : > { %v3157_v0 = vpop.permute.xlu1 %3156  ;;  %v413_v1 = vsel %vm10464_vm2, 0, %v412_v9  ;;  %v4635_v15 = vor.u32 %v4634_v28, %v4630_v42  ;;  %v373_v45 = vsel %vm10453_vm6, 0, %v372_v62  ;;  %v430_v37 = vld [vmem:[#allocation3 + $0x50] sm:$0x1]  ;;  %v427_v58 = vld [vmem:[#allocation3 + $0x44] sm:$0x1] }
 0x1af   : > { %414 = vst [vmem:[#allocation3 + $0x8] sm:$0x1] %v413_v1  ;;  %v10497_v6 = vld [vmem:[#allocation3] sm:$0xf]  ;;  %v5069_v51 = vsel %vm8804_vm10, %v8039_v56, %v5068_v18  ;;  %374 = vst [vmem:[#allocation3 + $0x3c] sm:$0x1] %v373_v45  ;;  %v3641_v7 = vsel %vm3617_vm9, %v3608_v60, %v3157_v0 }
 0x1b0   : > { %v4619_v44 = vshrl.u32 %v10497_v6, 16  ;;  %v4622_v43 = vshll.u32 %v10497_v6, 16  ;;  %v4636_v38 = vrot.slane %v4635_v15, 4  ;;  %v431_v5 = vsel %vm10464_vm2, 0, %v430_v37  ;;  %v381_v8 = vld [vmem:[#allocation3 + $0x60] sm:$0x1] }
 0x1b1   : > { %432 = vst [vmem:[#allocation3 + $0x50] sm:$0x1] %v431_v5  ;;  %v428_v1 = vsel %vm10464_vm2, 0, %v427_v58  ;;  %v10549_v59 = vld [vmem:[%s12660_s3] ss:$0 sm:$0xff]  ;;  %s8662_s17 = smov 56  }
 0x1b2   : > { %v3237_v23 = vpop.permute.xlu1 %3236  ;;  %v4621_v31 = vrot.slane %v4619_v44, 4  ;;  %v4624_v20 = vrot.slane %v4622_v43, 5  ;;  %429 = vst [vmem:[#allocation3 + $0x44] sm:$0x1] %v428_v1  ;;  %v8560_v55 = vld [vmem:[#allocation2 + $0x90] sm:$0xf] }
 0x1b3   : > { %v3674_v57 = vsel %vm3650_vm13, %v3641_v7, %v3237_v23  ;;  %v382_v23 = vsel %vm10453_vm6, 0, %v381_v8  ;;  %v4458_v8 = vld [vmem:[#allocation3 + $0xc] sm:$0xf] }
 0x1b4   : > { %v3411_v24 = vpop.permute.xlu0 %3410  ;;  %v4625_v10 = vor.u32 %v4624_v20, %v4621_v31  ;;  %383 = vst [vmem:[#allocation3 + $0x60] sm:$0x1] %v382_v23 }
 0x1b5   : > { %v3738_v52 = vsel %vm3716_vm5, %v3705_v35, %v3411_v24  ;;  %v8561_v24 = vld [vmem:[#allocation2 + $0x94] sm:$0xf] }
 0x1b6   : > { %v4602_v12 = vld [vmem:[#allocation3 + $0x8] sm:$0x1]  ;;  %v4626_v40 = vrot.slane %v4625_v10, 4  ;;  %v3333_v32 = vpop.permute.xlu1 %3332  ;;  %v7855_v10 = vcombine.low %v8560_v55, %v8561_v24 }
 0x1b7   : > { %v4638_v50 = vshll.u32 %v4602_v12, 16  ;;  %v5071_v22 = vrot.slane %v4602_v12, 5  ;;  %v3707_v33 = vsel %vm3683_vm4, %v3674_v57, %v3333_v32  ;;  %v8562_v12 = vld [vmem:[#allocation2 + $0x9c] sm:$0xf] }
 0x1b8   : > { %v4631_v36 = vsel %vm8891_vm15, %v4626_v40, %v4630_v42  ;;  %v8563_v40 = vld [vmem:[#allocation2 + $0xa0] sm:$0xf] }
 0x1b9   : > { %v4640_v21 = vrot.slane %v4638_v50, 5  ;;  %v5072_v30 = vsel %vm8804_vm10, %v5070_v61, %v5071_v22  ;;  %v7856_v56 = vcombine.low %v8562_v12, %v8563_v40 }
 0x1ba   : > { %v3491_v11 = vpop.permute.xlu0 %3490  ;;  %v3413_v9 = vpop.permute.xlu1 %3412  ;;  %v8119_v25 = vcombine.low %v5069_v51, %v5072_v30 }
 0x1bb   : > { %v3771_v16 = vsel %vm3749_vm14, %v3738_v52, %v3491_v11  ;;  %v4641_v19 = vsel %vm8891_vm15, %v4636_v38, %v4640_v21  ;;  %v3740_v26 = vsel %vm3716_vm5, %v3707_v33, %v3413_v9  ;;  %v4465_v33 = vld [vmem:[#allocation3 + $0x18] sm:$0xf] }
 0x1bc   : > { %8358 = vmatprep.mubr.msk.bf16.mxu0 %vm12704_vm0, %v3771_v16  ;;  %v8103_v46 = vcombine.low %v4631_v36, %v4641_v19  ;;  %vm12706_vm0 = vcmask 60416  }
 0x1be   : > { %6507 = vrot.lane.b32.xlu0 %v8103_v46, %s8651_s10  ;;  %v2903_v0 = vpop.permute.xlu1 %2902 }
 0x1bf   : > { %v3541_v32 = vsel %vm3502_vm1, %v7855_v10, %v2903_v0 }
 0x1c1   : > { %v3493_v42 = vpop.permute.xlu0 %3492 }
 0x1c2   : > { %v3773_v28 = vsel %vm3749_vm14, %v3740_v26, %v3493_v42  ;;  %6587 = vrot.lane.b32.xlu0 %v8119_v25, %s8657_s16  ;;  %v2905_v43 = vpop.permute.xlu1 %2904 }
 0x1c3   : > { %8359 = vmatmul.mubr.msk.bf16.gmra.mrb[20].mxu0 %vm12705_vm3, %v3773_v28  ;;  %v3544_v16 = vsel %vm3502_vm1, %v7856_v56, %v2905_v43  ;;  %vm10563_vm3 = vmand %vm12706_vm0, %vm12701_vm11 }
 0x1c4   : > { %vm12709_vm11 = vmmov %vm12706_vm0 }
 0x1c5   : > { %v2983_v44 = vpop.permute.xlu0 %2982 }
 0x1c6   : > { %v2985_v20 = vpop.permute.xlu1 %2984  ;;  %v3577_v30 = vsel %vm3551_vm7, %v3541_v32, %v2983_v44 }
 0x1c7   : > { %v3579_v58 = vsel %vm3551_vm7, %v3544_v16, %v2985_v20 }
 0x1c9   : > { %v3079_v31 = vpop.permute.xlu0 %3078 }
 0x1ca   : > { %v3610_v57 = vsel %vm12671_vm8, %v3577_v30, %v3079_v31 }
 0x1d1   : > { %v3159_v3 = vpop.permute.xlu0 %3158 }
 0x1d2   : > { %v3643_v0 = vsel %vm3617_vm9, %v3610_v57, %v3159_v3 }
 0x1d4   : > { %v3081_v15 = vpop.permute.xlu1 %3080 }
 0x1d5   : > { %v10551_v18 = vpop.permute.xlu0 %3238  ;;  %v3612_v55 = vsel %vm12671_vm8, %v3579_v58, %v3081_v15  ;;  %vm12710_vm8 = vcmask 293888  }
 0x1d6   : > { %v3676_v15 = vsel %vm3650_vm13, %v3643_v0, %v10551_v18 }
 0x1d9   : > { %v3335_v60 = vpop.permute.xlu0 %3334 }
 0x1db   : > { %v8340_v48 = vpop.f32.mrb[0].mxu0 }
 0x1dc   : > { %v3889_v53 = vadd.f32 %v8340_v48, %v10549_v59  ;;  %v3880_v54 = vpop.f32.mrb[1].mxu0  ;;  %v4469_v48 = vld [vmem:[#allocation3 + $0x20] sm:$0x1] }
 0x1dd   : > { %v3881_v38 = vadd.f32 %v10549_v59, %v3880_v54  ;;  %v8341_v50 = vpop.f32.mrb[2].mxu0 }
 0x1de   : > { %v4009_v61 = vmax.f32 %v3889_v53, 0.0  ;;  %v3892_v22 = vadd.f32 %v8341_v50, %v10549_v59  ;;  %v3883_v4 = vpop.f32.mrb[3].mxu0  ;;  %v3161_v35 = vpop.permute.xlu1 %3160 }
 0x1df   : > { %v4007_v36 = vmax.f32 %v3881_v38, 0.0  ;;  %v3884_v21 = vadd.f32 %v10549_v59, %v3883_v4  ;;  %v4462_v38 = vld [vmem:[#allocation3 + $0x14] sm:$0x1]  ;;  %v3645_v18 = vsel %vm3617_vm9, %v3612_v55, %v3161_v35 }
 0x1e0   : > { %v8261_v52 = vpack.c.bf16 %v4009_v61, %v4009_v61  ;;  %v4010_v11 = vmax.f32 %v3892_v22, 0.0 }
 0x1e1   : > { %v8259_v19 = vpack.c.bf16 %v4007_v36, %v4007_v36  ;;  %v4008_v51 = vmax.f32 %v3884_v21, 0.0  ;;  %v3709_v36 = vsel %vm3683_vm4, %v3676_v15, %v3335_v60 }
 0x1e2   : > { %v4153_v62 = vshrl.u32 %v8261_v52, 16  ;;  %v8262_v46 = vpack.c.bf16 %v4010_v11, %v4010_v11  ;;  %v3241_v45 = vpop.permute.xlu1 %3240  ;;  %v4156_v9 = vshll.u32 %v8261_v52, 16 }
 0x1e3   : > { %v4136_v37 = vshrl.u32 %v8259_v19, 16  ;;  %v8260_v5 = vpack.c.bf16 %v4008_v51, %v4008_v51  ;;  %v4139_v42 = vshll.u32 %v8259_v19, 16  ;;  %v378_v51 = vld [vmem:[#allocation3 + $0x54] sm:$0x1] }
 0x1e4   : > { %v4155_v7 = vrot.slane %v4153_v62, 7  ;;  %v4161_v25 = vshrl.u32 %v8262_v46, 16  ;;  %v3415_v44 = vpop.permute.xlu0 %3414  ;;  %v4164_v20 = vshll.u32 %v8262_v46, 16  ;;  %v379_v30 = vsel %vm10453_vm6, 0, %v378_v51  ;;  %v436_v62 = vld [vmem:[#allocation3 + $0x68] sm:$0x1] }
 0x1e5   : > { %v4138_v26 = vrot.slane %v4136_v37, 7  ;;  %v4144_v28 = vshrl.u32 %v8260_v5, 16  ;;  %v4147_v54 = vshll.u32 %v8260_v5, 16  ;;  %v3742_v16 = vsel %vm3716_vm5, %v3709_v36, %v3415_v44  ;;  %380 = vst [vmem:[#allocation3 + $0x54] sm:$0x1] %v379_v30 }
 0x1e6   : > { %v4158_v43 = vor.u32 %v4156_v9, %v4155_v7  ;;  %v4163_v23 = vrot.slane %v4161_v25, 7  ;;  %v3337_v24 = vpop.permute.xlu1 %3336  ;;  %v4159_v12 = vrot.slane %v4155_v7, 4  ;;  %v3678_v46 = vsel %vm3650_vm13, %v3645_v18, %v3241_v45 }
 0x1e7   : > { %v4141_v10 = vor.u32 %v4139_v42, %v4138_v26  ;;  %v4146_v53 = vrot.slane %v4144_v28, 7  ;;  %v4142_v3 = vrot.slane %v4138_v26, 4  ;;  %v437_v35 = vsel %vm10464_vm2, 0, %v436_v62 }
 0x1e8   : > { %v4466_v31 = vsel %vm10563_vm3, %v4158_v43, %v4465_v33  ;;  %v4166_v40 = vor.u32 %v4164_v20, %v4163_v23  ;;  %v4168_v56 = vrot.slane %v4163_v23, 4  ;;  %v3711_v5 = vsel %vm3683_vm4, %v3678_v46, %v3337_v24  ;;  %438 = vst [vmem:[#allocation3 + $0x68] sm:$0x1] %v437_v35 }
 0x1e9   : > { %4467 = vst [vmem:[#allocation3 + $0x18] sm:$0xf] %v4466_v31  ;;  %v4459_v50 = vsel %vm10563_vm3, %v4141_v10, %v4458_v8  ;;  %v4149_v61 = vor.u32 %v4147_v54, %v4146_v53  ;;  %v4151_v22 = vrot.slane %v4146_v53, 4 }
 0x1ea   : > { %4460 = vst [vmem:[#allocation3 + $0xc] sm:$0xf] %v4459_v50  ;;  %v4167_v4 = vsel %vm8816_vm12, %v4159_v12, %v4166_v40  ;;  %v4470_v32 = vsel %vm10453_vm6, %v4168_v56, %v4469_v48  ;;  %v3417_v21 = vpop.permute.xlu1 %3416 }
 0x1eb   : > { %4468 = vst.msk [vmem:[#allocation3 + $0x1c] sm:$0xf] %vm12709_vm11, %v4167_v4  ;;  %4471 = vst [vmem:[#allocation3 + $0x20] sm:$0x1] %v4470_v32  ;;  %v4150_v52 = vsel %vm8816_vm12, %v4142_v3, %v4149_v61  ;;  %v4463_v11 = vsel %vm10453_vm6, %v4151_v22, %v4462_v38  ;;  %v3495_v19 = vpop.permute.xlu0 %3494  ;;  %v3744_v42 = vsel %vm3716_vm5, %v3711_v5, %v3417_v21 }
 0x1ec   : > { %4461 = vst.msk [vmem:[#allocation3 + $0x10] sm:$0xf] %vm12706_vm0, %v4150_v52  ;;  %4464 = vst [vmem:[#allocation3 + $0x14] sm:$0x1] %v4463_v11  ;;  %v3775_v60 = vsel %vm3749_vm14, %v3742_v16, %v3495_v19 }
 0x1ed   : > { %8362 = vmatprep.mubr.msk.bf16.mxu0 %vm12710_vm8, %v3775_v60 }
 0x1ee   : > { %v2907_v37 = vpop.permute.xlu1 %2906 }
 0x1ef   : > { %v3547_v10 = vsel %vm3502_vm1, %v7857_v27, %v2907_v37 }
 0x1f0   : > { %v5180_v58 = vld [vmem:[#allocation3 + $0x18] sm:$0xf] }
 0x1f1   : > { %v5787_v7 = vld [vmem:[#allocation3 + $0x18] sm:$0xf]  ;;  %v5251_v9 = vshrl.u32 %v5180_v58, 16  ;;  %v5254_v25 = vshll.u32 %v5180_v58, 16  ;;  %v5178_v26 = vld [vmem:[#allocation3 + $0xc] sm:$0xf]  ;;  %v3497_v28 = vpop.permute.xlu0 %3496 }
 0x1f2   : > { %v5836_v57 = vshrl.u32 %v5787_v7, 16  ;;  %v5839_v33 = vshll.u32 %v5787_v7, 16  ;;  %v10598_v0 = vld [vmem:[#allocation3 + $0x1c] sm:$0xf]  ;;  %v5227_v44 = vshrl.u32 %v5178_v26, 16  ;;  %v5230_v43 = vshll.u32 %v5178_v26, 16 }
 0x1f3   : > { %v10600_v45 = vld [vmem:[#allocation3 + $0x1c] sm:$0xf]  ;;  %v3777_v8 = vsel %vm3749_vm14, %v3744_v42, %v3497_v28  ;;  %v10603_v23 = vrot.slane %v5251_v9, 4  ;;  %v10605_v20 = vrot.slane %v5254_v25, 5  ;;  %v8136_v55 = vcombine.low %v5180_v58, %v10598_v0  ;;  %v5611_v24 = vld [vmem:[#allocation3 + $0x18] sm:$0xe]  ;;  %v2909_v48 = vpop.permute.xlu1 %2908 }
 0x1f4   : > { %8363 = vmatmul.mubr.msk.bf16.gmra.mrb[24].mxu0 %vm12710_vm8, %v3777_v8  ;;  %v5264_v53 = vshrl.u32 %v10598_v0, 16  ;;  %v10614_v54 = vrot.slane %v5836_v57, 4  ;;  %v10616_v12 = vld [vmem:[#allocation3 + $0x10] sm:$0xf]  ;;  %v10618_v31 = vld [vmem:[#allocation3 + $0x20] sm:$0x1]  ;;  %v3550_v40 = vsel %vm3502_vm1, %v7858_v34, %v2909_v48  ;;  %v8183_v27 = vcombine.low %v5787_v7, %v10600_v45  ;;  %vm12713_vm8 = vmmov %vm12706_vm0 }
 0x1f5   : > { %6685 = vrot.lane.b32.xlu1 %v8136_v55, %s8653_s12  ;;  %v10625_v14 = vrot.slane %v5839_v33, 5  ;;  %v5849_v2 = vshrl.u32 %v10600_v45, 16  ;;  %v10629_v56 = vld [vmem:[#allocation3 + $0x20] sm:$0x1]  ;;  %v6219_v38 = vld [vmem:[#allocation3 + $0x18] sm:$0xe]  ;;  %v2987_v3 = vpop.permute.xlu0 %2986  ;;  %v8135_v4 = vcombine.low %v5178_v26, %v10616_v12 }
 0x1f6   : > { %v10631_v50 = vrot.slane %v5227_v44, 4  ;;  %v10633_v61 = vrot.slane %v5230_v43, 5  ;;  %v8056_v22 = vrot.slane %v5611_v24, 9  ;;  %v5683_v41 = vrot.slane %v10598_v0, 5  ;;  %v10636_v49 = vld [vmem:[#allocation3 + $0x10] sm:$0xf]  ;;  %6939 = vrot.lane.b32.xlu0 %v8183_v27, %s8659_s11 }
 0x1f7   : > { %v3581_v34 = vsel %vm3551_vm7, %v3547_v10, %v2987_v3  ;;  %v5240_v15 = vshrl.u32 %v10616_v12, 16  ;;  %v6285_v32 = vrot.slane %v10600_v45, 5  ;;  %v10643_v36 = vld [vmem:[#allocation3 + $0x14] sm:$0x1]  ;;  %v5003_v21 = vld [vmem:[#allocation3 + $0xc] sm:$0xe]  ;;  %v2989_v60 = vpop.permute.xlu1 %2988 }
 0x1f8   : > { %v5684_v52 = vsel %vm8804_vm10, %v8056_v22, %v5683_v41  ;;  %v5685_v11 = vrot.slane %v5683_v41, 4  ;;  %v5686_v18 = vrot.slane %v10618_v31, 5  ;;  %v8071_v16 = vrot.slane %v6219_v38, 9  ;;  %v10648_v19 = vld [vmem:[#allocation3 + $0x1c] sm:$0xf] }
 0x1f9   : > { %v6287_v51 = vrot.slane %v6285_v32, 4  ;;  %v6288_v30 = vrot.slane %v10629_v56, 5  ;;  %v8040_v62 = vrot.slane %v5003_v21, 9  ;;  %v5075_v46 = vrot.slane %v10636_v49, 5  ;;  %v5004_v37 = vld [vmem:[#allocation3 + $0x18] sm:$0xe]  ;;  %v3083_v5 = vpop.permute.xlu0 %3082 }
 0x1fa   : > { %v10653_v35 = vsel %vm3551_vm7, %v3550_v40, %v2989_v60  ;;  %v5687_v58 = vsel %vm8804_vm10, %v5685_v11, %v5686_v18  ;;  %v6286_v7 = vsel %vm8804_vm10, %v8071_v16, %v6285_v32  ;;  %v10659_v9 = vld [vmem:[#allocation3 + $0x20] sm:$0x1]  ;;  %v5082_v25 = vrot.slane %v10648_v19, 5  ;;  %6683 = vrot.lane.b32.xlu0 %v8135_v4, %s8653_s12  ;;  %v10669_v24 = vld [vmem:[#allocation3 + $0x14] sm:$0x1] }
 0x1fb   : > { %v8168_v57 = vcombine.low %v5684_v52, %v5687_v58  ;;  %v6289_v33 = vsel %vm8804_vm10, %v6287_v51, %v6288_v30  ;;  %v5078_v26 = vrot.slane %v10643_v36, 5  ;;  %v8041_v42 = vrot.slane %v5004_v37, 9  ;;  %v5610_v38 = vld [vmem:[#allocation3 + $0xc] sm:$0xe] }
 0x1fc   : > { %vm12711_vm1 = vcmask 97280   ;;  %v8344_v44 = vpop.f32.mrb[4].mxu0  ;;  %v5076_v43 = vsel %vm8804_vm10, %v8040_v62, %v5075_v46  ;;  %v5077_v8 = vrot.slane %v5075_v46, 4  ;;  %v5084_v55 = vrot.slane %v5082_v25, 4 }
 0x1fd   : > { %v3614_v28 = vsel %vm12711_vm1, %v3581_v34, %v3083_v5  ;;  %v3905_v10 = vadd.f32 %v8344_v44, %v10549_v59  ;;  %6845 = vrot.lane.b32.xlu1 %v8168_v57, %s8660_s13  ;;  %v3896_v48 = vpop.f32.mrb[5].mxu0  ;;  %v8215_v40 = vcombine.low %v6286_v7, %v6289_v33  ;;  %v5085_v27 = vrot.slane %v10659_v9, 5  ;;  %vm12712_vm11 = vmmov %vm12711_vm1 }
 0x1fe   : > { %v5676_v3 = vrot.slane %v10616_v12, 5  ;;  %v3897_v22 = vadd.f32 %v10549_v59, %v3896_v48  ;;  %v8345_v41 = vpop.f32.mrb[6].mxu0  ;;  %v5079_v34 = vsel %vm8804_vm10, %v5077_v8, %v5078_v26  ;;  %v5083_v4 = vsel %vm8804_vm10, %v8041_v42, %v5082_v25  ;;  %vm12716_vm1 = vmmov %vm12706_vm0 }
 0x1ff   : > { %v5257_v32 = vor.u32 %v10605_v20, %v10603_v23  ;;  %v4013_v21 = vmax.f32 %v3905_v10, 0.0  ;;  %v3908_v52 = vadd.f32 %v8345_v41, %v10549_v59  ;;  %v3899_v11 = vpop.f32.mrb[7].mxu0  ;;  %7099 = vrot.lane.b32.xlu0 %v8215_v40, %s8661_s14  ;;  %v8120_v18 = vcombine.low %v5076_v43, %v5079_v34 }
 0x200   : > { %v5086_v16 = vsel %vm8804_vm10, %v5084_v55, %v5085_v27  ;;  %v4011_v60 = vmax.f32 %v3897_v22, 0.0  ;;  %v3900_v51 = vadd.f32 %v10549_v59, %v3899_v11  ;;  %v8055_v30 = vrot.slane %v5610_v38, 9  ;;  %v4472_v11 = vld [vmem:[#allocation3 + $0x24] sm:$0xf] }
 0x201   : > { %v5679_v62 = vrot.slane %v10669_v24, 5  ;;  %v8265_v46 = vpack.c.bf16 %v4013_v21, %v4013_v21  ;;  %v4014_v37 = vmax.f32 %v3908_v52, 0.0  ;;  %6589 = vrot.lane.b32.xlu1 %v8120_v18, %s8657_s16  ;;  %v8121_v23 = vcombine.low %v5083_v4, %v5086_v16 }
 0x202   : > { %v5678_v20 = vrot.slane %v5676_v3, 4  ;;  %v8263_v5 = vpack.c.bf16 %v4011_v60, %v4011_v60  ;;  %v4012_v58 = vmax.f32 %v3900_v51, 0.0  ;;  %v5677_v7 = vsel %vm8804_vm10, %v8055_v30, %v5676_v3  ;;  %v3163_v57 = vpop.permute.xlu0 %3162  ;;  %v4479_v3 = vld [vmem:[#allocation3 + $0x30] sm:$0xf]  ;;  %v4483_v51 = vld [vmem:[#allocation3 + $0x38] sm:$0x1] }
 0x203   : > { %v5260_v25 = vshll.u32 %v10598_v0, 16  ;;  %v4187_v33 = vshrl.u32 %v8265_v46, 16  ;;  %v8266_v26 = vpack.c.bf16 %v4014_v37, %v4014_v37  ;;  %6591 = vrot.lane.b32.xlu0 %v8121_v23, %s8657_s16  ;;  %v10695_v44 = vrot.slane %v5257_v32, 4 }
 0x204   : > { %v5680_v42 = vsel %vm8804_vm10, %v5678_v20, %v5679_v62  ;;  %v4190_v43 = vshll.u32 %v8265_v46, 16  ;;  %v4170_v8 = vshrl.u32 %v8263_v5, 16  ;;  %v8264_v55 = vpack.c.bf16 %v4012_v58, %v4012_v58  ;;  %v4476_v20 = vld [vmem:[#allocation3 + $0x2c] sm:$0x1] }
 0x205   : > { %v5266_v10 = vrot.slane %v5264_v53, 4  ;;  %v3647_v48 = vsel %vm3617_vm9, %v3614_v28, %v3163_v57  ;;  %v4189_v40 = vrot.slane %v4187_v33, 7  ;;  %v4195_v27 = vshrl.u32 %v8266_v26, 16  ;;  %v3085_v21 = vpop.permute.xlu1 %3084 }
 0x206   : > { %v8167_v38 = vcombine.low %v5677_v7, %v5680_v42  ;;  %v4172_v22 = vrot.slane %v4170_v8, 7  ;;  %v4173_v41 = vshll.u32 %v8263_v5, 16  ;;  %v4178_v34 = vshrl.u32 %v8264_v55, 16  ;;  %v3243_v52 = vpop.permute.xlu0 %3242  ;;  %v10714_v42 = vld [vmem:[#allocation3 + $0x18] sm:$0xf] }
 0x207   : > { %v5262_v4 = vrot.slane %v5260_v25, 5  ;;  %v4192_v32 = vor.u32 %v4190_v43, %v4189_v40  ;;  %v4197_v18 = vrot.slane %v4195_v27, 7  ;;  %v4198_v16 = vshll.u32 %v8266_v26, 16 }
 0x208   : > { %v4181_v60 = vshll.u32 %v8264_v55, 16  ;;  %6843 = vrot.lane.b32.xlu0 %v8167_v38, %s8660_s13  ;;  %v3616_v0 = vsel %vm12712_vm11, %v10653_v35, %v3085_v21  ;;  %v4193_v53 = vrot.slane %v4189_v40, 4  ;;  %v4175_v28 = vor.u32 %v4173_v41, %v4172_v22  ;;  %vm12717_vm11 = vmmov %vm12706_vm0 }
 0x209   : > { %v4180_v30 = vrot.slane %v4178_v34, 7  ;;  %v4480_v62 = vsel %vm10563_vm3, %v4192_v32, %v4479_v3  ;;  %v4176_v46 = vrot.slane %v4172_v22, 4  ;;  %v4200_v37 = vor.u32 %v4198_v16, %v4197_v18 }
 0x20a   : > { %v4202_v23 = vrot.slane %v4197_v18, 4  ;;  %4481 = vst [vmem:[#allocation3 + $0x30] sm:$0xf] %v4480_v62  ;;  %v4473_v5 = vsel %vm10563_vm3, %v4175_v28, %v4472_v11  ;;  %v5267_v25 = vor.u32 %v5266_v10, %v5262_v4  ;;  %v5270_v33 = vshll.u32 %v10618_v31, 16 }
 0x20b   : > { %v4183_v58 = vor.u32 %v4181_v60, %v4180_v30  ;;  %v4185_v7 = vrot.slane %v4180_v30, 4  ;;  %4474 = vst [vmem:[#allocation3 + $0x24] sm:$0xf] %v4473_v5  ;;  %v4201_v35 = vsel %vm8816_vm12, %v4193_v53, %v4200_v37  ;;  %v5842_v26 = vor.u32 %v10625_v14, %v10614_v54  ;;  %v3339_v43 = vpop.permute.xlu0 %3338 }
 0x20c   : > { %v4484_v57 = vsel %vm10453_vm6, %v4202_v23, %v4483_v51  ;;  %4482 = vst.msk [vmem:[#allocation3 + $0x34] sm:$0xf] %vm12706_vm0, %v4201_v35  ;;  %v5268_v10 = vrot.slane %v5267_v25, 4  ;;  %v5845_v40 = vshll.u32 %v10600_v45, 16  ;;  %v3680_v31 = vsel %vm3650_vm13, %v3647_v48, %v3243_v52 }
 0x20d   : > { %4485 = vst [vmem:[#allocation3 + $0x38] sm:$0x1] %v4484_v57  ;;  %v4184_v8 = vsel %vm8816_vm12, %v4176_v46, %v4183_v58  ;;  %v4477_v55 = vsel %vm10453_vm6, %v4185_v7, %v4476_v20  ;;  %v5263_v54 = vsel %vm8891_vm15, %v10695_v44, %v5262_v4  ;;  %v5272_v14 = vrot.slane %v5270_v33, 5 }
 0x20e   : > { %4475 = vst.msk [vmem:[#allocation3 + $0x28] sm:$0xf] %vm12713_vm8, %v4184_v8  ;;  %4478 = vst [vmem:[#allocation3 + $0x2c] sm:$0x1] %v4477_v55  ;;  %v5851_v27 = vrot.slane %v5849_v2, 4  ;;  %v5847_v38 = vrot.slane %v5845_v40, 5  ;;  %v3713_v48 = vsel %vm3683_vm4, %v3680_v31, %v3339_v43  ;;  %v8087_v33 = vcombine.low %v10497_v6, %v10478_v13 }
 0x20f   : > { %v5855_v3 = vshll.u32 %v10629_v56, 16  ;;  %v4667_v22 = vshrl.u32 %v10714_v42, 16  ;;  %v4670_v41 = vshll.u32 %v10714_v42, 16  ;;  %v5273_v34 = vsel %vm8891_vm15, %v5268_v10, %v5272_v14  ;;  %v3165_v44 = vpop.permute.xlu1 %3164  ;;  %vm12718_vm8 = vmmov %vm12706_vm0 }
 0x210   : > { %v5843_v21 = vrot.slane %v5842_v26, 4  ;;  %v4676_v52 = vshll.u32 %v10648_v19, 16  ;;  %v5852_v4 = vor.u32 %v5851_v27, %v5847_v38  ;;  %v4680_v45 = vshrl.u32 %v10648_v19, 16 }
 0x211   : > { %v5857_v32 = vrot.slane %v5855_v3, 5  ;;  %v4686_v2 = vshll.u32 %v10659_v9, 16  ;;  %v3649_v56 = vsel %vm3617_vm9, %v3616_v0, %v3165_v44  ;;  %v5184_v11 = vld [vmem:[#allocation3 + $0x30] sm:$0xf]  ;;  %v8152_v16 = vcombine.low %v5263_v54, %v5273_v34 }
 0x212   : > { %v5791_v18 = vld [vmem:[#allocation3 + $0x30] sm:$0xf]  ;;  %v4669_v60 = vrot.slane %v4667_v22, 4  ;;  %v4672_v53 = vrot.slane %v4670_v41, 5  ;;  %v5299_v28 = vshrl.u32 %v5184_v11, 16  ;;  %v5302_v51 = vshll.u32 %v5184_v11, 16 }
 0x213   : > { %v5884_v30 = vshrl.u32 %v5791_v18, 16  ;;  %v5887_v62 = vshll.u32 %v5791_v18, 16  ;;  %v5789_v46 = vld [vmem:[#allocation3 + $0x24] sm:$0xf]  ;;  %v10739_v37 = vld [vmem:[#allocation3 + $0x34] sm:$0xf]  ;;  %v5848_v20 = vsel %vm8891_vm15, %v5843_v21, %v5847_v38  ;;  %v5233_v0 = vor.u32 %v10633_v61, %v10631_v50  ;;  %v3245_v58 = vpop.permute.xlu1 %3244 }
 0x214   : > { %v10741_v23 = vld [vmem:[#allocation3 + $0x34] sm:$0xf]  ;;  %v5853_v9 = vrot.slane %v5852_v4, 4  ;;  %v5860_v5 = vshrl.u32 %v5789_v46, 16  ;;  %v10747_v7 = vrot.slane %v5299_v28, 4  ;;  %v8138_v25 = vcombine.low %v5184_v11, %v10739_v37 }
 0x215   : > { %v10750_v35 = vld [vmem:[#allocation3 + $0x28] sm:$0xf]  ;;  %v4673_v57 = vor.u32 %v4672_v53, %v4669_v60  ;;  %v3682_v26 = vsel %vm3650_vm13, %v3649_v56, %v3245_v58  ;;  %v10755_v43 = vrot.slane %v5302_v51, 5  ;;  %v5312_v8 = vshrl.u32 %v10739_v37, 16  ;;  %v5182_v50 = vld [vmem:[#allocation3 + $0x24] sm:$0xf] }
 0x216   : > { %v10758_v55 = vrot.slane %v5884_v30, 4  ;;  %6689 = vrot.lane.b32.xlu1 %v8138_v25, %s8653_s12  ;;  %v10761_v61 = vrot.slane %v5887_v62, 5  ;;  %v5897_v10 = vshrl.u32 %v10741_v23, 16  ;;  %v8185_v40 = vcombine.low %v5791_v18, %v10741_v23  ;;  %v10767_v54 = vld [vmem:[#allocation3 + $0x28] sm:$0xf] }
 0x217   : > { %v5858_v31 = vsel %vm8891_vm15, %v5853_v9, %v5857_v32  ;;  %v5873_v14 = vshrl.u32 %v10750_v35, 16  ;;  %v8184_v27 = vcombine.low %v5789_v46, %v10750_v35  ;;  %v5863_v38 = vshll.u32 %v5789_v46, 16  ;;  %v3341_v22 = vpop.permute.xlu1 %3340  ;;  %v3419_v41 = vpop.permute.xlu0 %3418  ;;  %v10778_v60 = vld [vmem:[#allocation3 + $0xc] sm:$0xf] }
 0x218   : > { %v5275_v3 = vshrl.u32 %v5182_v50, 16  ;;  %6943 = vrot.lane.b32.xlu0 %v8185_v40, %s8659_s11  ;;  %v8199_v34 = vcombine.low %v5848_v20, %v5858_v31  ;;  %v10772_v21 = vrot.slane %v5860_v5, 4  ;;  %v5278_v44 = vshll.u32 %v5182_v50, 16 }
 0x219   : > { %v5288_v4 = vshrl.u32 %v10767_v54, 16  ;;  %v3715_v32 = vsel %vm3683_vm4, %v3682_v26, %v3341_v22  ;;  %v3746_v56 = vsel %vm3716_vm5, %v3713_v48, %v3419_v41  ;;  %v8137_v11 = vcombine.low %v5182_v50, %v10767_v54  ;;  %v6221_v22 = vld [vmem:[#allocation3 + $0x30] sm:$0xe] }
 0x21a   : > { %v4674_v18 = vrot.slane %v4673_v57, 4  ;;  %6765 = vrot.lane.b32.xlu1 %v8152_v16, %s8656_s15  ;;  %v10781_v53 = vrot.slane %v5863_v38, 5  ;;  %v10783_v28 = vrot.slane %v5275_v3, 4  ;;  %v4678_v51 = vrot.slane %v4676_v52, 5 }
 0x21b   : > { %v4682_v30 = vrot.slane %v4680_v45, 4  ;;  %v10785_v62 = vrot.slane %v5278_v44, 5  ;;  %v4688_v46 = vrot.slane %v4686_v2, 5  ;;  %v5236_v20 = vshll.u32 %v10616_v12, 16  ;;  %v3421_v9 = vpop.permute.xlu1 %3420  ;;  %v3499_v5 = vpop.permute.xlu0 %3498 }
 0x21c   : > { %v5242_v48 = vrot.slane %v5240_v15, 4  ;;  %7019 = vrot.lane.b32.xlu0 %v8199_v34, %s8662_s17  ;;  %v5246_v58 = vshll.u32 %v10669_v24, 16  ;;  %v4643_v25 = vshrl.u32 %v10778_v60, 16  ;;  %v4646_v52 = vshll.u32 %v10778_v60, 16 }
 0x21d   : > { %v4683_v16 = vor.u32 %v4682_v30, %v4678_v51  ;;  %v3779_v45 = vsel %vm3749_vm14, %v3746_v56, %v3499_v5  ;;  %v4679_v2 = vsel %vm8891_vm15, %v4674_v18, %v4678_v51  ;;  %v5234_v57 = vrot.slane %v5233_v0, 4  ;;  %v10807_v30 = vld [vmem:[#allocation3 + $0x38] sm:$0x1] }
 0x21e   : > { %v5238_v12 = vrot.slane %v5236_v20, 5  ;;  %vm12714_vm13 = vcmask 293888   ;;  %6941 = vrot.lane.b32.xlu1 %v8184_v27, %s8659_s11  ;;  %v4645_v26 = vrot.slane %v4643_v25, 4  ;;  %v4648_v50 = vrot.slane %v4646_v52, 5  ;;  %v5613_v20 = vld [vmem:[#allocation3 + $0x30] sm:$0xe] }
 0x21f   : > { %8366 = vmatprep.mubr.msk.bf16.mxu0 %vm12714_vm13, %v3779_v45  ;;  %v4684_v15 = vrot.slane %v4683_v16, 4  ;;  %v4652_v24 = vshll.u32 %v10636_v49, 16  ;;  %v3748_v40 = vsel %vm3716_vm5, %v3715_v32, %v3421_v9  ;;  %v4656_v38 = vshrl.u32 %v10636_v49, 16  ;;  %v3501_v41 = vpop.permute.xlu1 %3500  ;;  %vm12715_vm5 = vmmov %vm12714_vm13  ;;  %v10813_v9 = vld [vmem:[#allocation3 + $0x38] sm:$0x1] }
 0x220   : > { %v5243_v31 = vor.u32 %v5242_v48, %v5238_v12  ;;  %v4662_v3 = vshll.u32 %v10643_v36, 16  ;;  %6687 = vrot.lane.b32.xlu0 %v8137_v11, %s8653_s12  ;;  %v5248_v27 = vrot.slane %v5246_v58, 5  ;;  %v4649_v34 = vor.u32 %v4648_v50, %v4645_v26  ;;  %v10819_v52 = vld [vmem:[#allocation3 + $0x34] sm:$0xf]  ;;  %v10821_v45 = vld [vmem:[#allocation3 + $0x38] sm:$0x1]  ;;  %vm12719_vm13 = vmmov %vm12706_vm0 }
 0x221   : > { %v4689_v0 = vsel %vm8891_vm15, %v4684_v15, %v4688_v46  ;;  %v4654_v44 = vrot.slane %v4652_v24, 5  ;;  %v3781_v56 = vsel %vm3749_vm14, %v3748_v40, %v3501_v41  ;;  %v4658_v32 = vrot.slane %v4656_v38, 4  ;;  %v5006_v26 = vld [vmem:[#allocation3 + $0x30] sm:$0xe]  ;;  %v5005_v38 = vld [vmem:[#allocation3 + $0x24] sm:$0xe] }
 0x222   : > { %v8105_v18 = vcombine.low %v4679_v2, %v4689_v0  ;;  %v5244_v51 = vrot.slane %v5243_v31, 4  ;;  %8367 = vmatmul.mubr.msk.bf16.gmra.mrb[28].mxu0 %vm12715_vm5, %v3781_v56  ;;  %v5239_v36 = vsel %vm8891_vm15, %v5234_v57, %v5238_v12  ;;  %v4650_v11 = vrot.slane %v4649_v34, 4  ;;  %vm12720_vm5 = vmmov %vm12706_vm0 }
 0x223   : > { %v8073_v48 = vrot.slane %v6221_v22, 9  ;;  %v6299_v46 = vrot.slane %v10741_v23, 5  ;;  %v4659_v16 = vor.u32 %v4658_v32, %v4654_v44  ;;  %v4664_v58 = vrot.slane %v4662_v3, 5  ;;  %v6220_v32 = vld [vmem:[#allocation3 + $0x24] sm:$0xe] }
 0x224   : > { %6511 = vrot.lane.b32.xlu1 %v8105_v18, %s8651_s10  ;;  %v5249_v5 = vsel %vm8891_vm15, %v5244_v51, %v5248_v27  ;;  %v5697_v25 = vrot.slane %v10739_v37, 5  ;;  %v6302_v12 = vrot.slane %v10807_v30, 5  ;;  %v8058_v15 = vrot.slane %v5613_v20, 9  ;;  %v10835_v27 = vld [vmem:[#allocation3 + $0x28] sm:$0xf] }
 0x225   : > { %v8151_v2 = vcombine.low %v5239_v36, %v5249_v5  ;;  %v6301_v57 = vrot.slane %v6299_v46, 4  ;;  %v4655_v50 = vsel %vm8891_vm15, %v4650_v11, %v4654_v44  ;;  %v4660_v24 = vrot.slane %v4659_v16, 4  ;;  %v10842_v51 = vld [vmem:[#allocation3 + $0x2c] sm:$0x1]  ;;  %v5612_v5 = vld [vmem:[#allocation3 + $0x24] sm:$0xe] }
 0x226   : > { %v5699_v40 = vrot.slane %v5697_v25, 4  ;;  %v5700_v31 = vrot.slane %v10813_v9, 5  ;;  %v6300_v3 = vsel %vm8804_vm10, %v8073_v48, %v6299_v46  ;;  %v5698_v41 = vsel %vm8804_vm10, %v8058_v15, %v5697_v25  ;;  %v10844_v46 = vld [vmem:[#allocation3 + $0x2c] sm:$0x1] }
 0x227   : > { %6763 = vrot.lane.b32.xlu0 %v8151_v2, %s8656_s15  ;;  %v6303_v22 = vsel %vm8804_vm10, %v6301_v57, %v6302_v12  ;;  %v5096_v0 = vrot.slane %v10819_v52, 5  ;;  %v4665_v34 = vsel %vm8891_vm15, %v4660_v24, %v4664_v58  ;;  %v8043_v56 = vrot.slane %v5006_v26, 9  ;;  %v10850_v57 = vld [vmem:[#allocation3 + $0x2c] sm:$0x1] }
 0x228   : > { %v5701_v44 = vsel %vm8804_vm10, %v5699_v40, %v5700_v31  ;;  %v5099_v18 = vrot.slane %v10821_v45, 5  ;;  %v8104_v20 = vcombine.low %v4655_v50, %v4665_v34  ;;  %v8217_v36 = vcombine.low %v6300_v3, %v6303_v22 }
 0x229   : > { %v5098_v11 = vrot.slane %v5096_v0, 4  ;;  %v8042_v48 = vrot.slane %v5005_v38, 9  ;;  %v8170_v16 = vcombine.low %v5698_v41, %v5701_v44  ;;  %v5097_v58 = vsel %vm8804_vm10, %v8043_v56, %v5096_v0 }
 0x22a   : > { %v5089_v25 = vrot.slane %v10835_v27, 5  ;;  %v6292_v2 = vrot.slane %v10750_v35, 5  ;;  %6509 = vrot.lane.b32.xlu1 %v8104_v20, %s8651_s10  ;;  %v5092_v15 = vrot.slane %v10842_v51, 5  ;;  %v8072_v26 = vrot.slane %v6220_v32, 9 }
 0x22b   : > { %7103 = vrot.lane.b32.xlu0 %v8217_v36, %s8661_s14  ;;  %v5100_v12 = vsel %vm8804_vm10, %v5098_v11, %v5099_v18  ;;  %v5690_v50 = vrot.slane %v10767_v54, 5  ;;  %v6295_v31 = vrot.slane %v10844_v46, 5  ;;  %v8057_v38 = vrot.slane %v5612_v5, 9 }
 0x22c   : > { %v8123_v24 = vcombine.low %v5097_v58, %v5100_v12  ;;  %v5091_v40 = vrot.slane %v5089_v25, 4  ;;  %v5090_v3 = vsel %vm8804_vm10, %v8042_v48, %v5089_v25  ;;  %v6294_v22 = vrot.slane %v6292_v2, 4 }
 0x22d   : > { %v5692_v41 = vrot.slane %v5690_v50, 4  ;;  %v5693_v0 = vrot.slane %v10850_v57, 5  ;;  %v6293_v44 = vsel %vm8804_vm10, %v8072_v26, %v6292_v2  ;;  %v5305_v56 = vor.u32 %v10755_v43, %v10747_v7  ;;  %v8348_v32 = vpop.f32.mrb[8].mxu0 }
 0x22e   : > { %v5093_v34 = vsel %vm8804_vm10, %v5091_v40, %v5092_v15  ;;  %v5308_v18 = vshll.u32 %v10739_v37, 16  ;;  %6849 = vrot.lane.b32.xlu1 %v8170_v16, %s8660_s13  ;;  %v6296_v20 = vsel %vm8804_vm10, %v6294_v22, %v6295_v31  ;;  %v5314_v11 = vrot.slane %v5312_v8, 4  ;;  %v3912_v43 = vpop.f32.mrb[9].mxu0 }
 0x22f   : > { %6595 = vrot.lane.b32.xlu0 %v8123_v24, %s8657_s16  ;;  %v5694_v36 = vsel %vm8804_vm10, %v5692_v41, %v5693_v0  ;;  %v5318_v48 = vshll.u32 %v10813_v9, 16  ;;  %v3921_v7 = vadd.f32 %v8348_v32, %v10549_v59  ;;  %v8122_v5 = vcombine.low %v5090_v3, %v5093_v34  ;;  %v8349_v2 = vpop.f32.mrb[10].mxu0 }
 0x230   : > { %v8216_v58 = vcombine.low %v6293_v44, %v6296_v20  ;;  %v5691_v16 = vsel %vm8804_vm10, %v8057_v38, %v5690_v50  ;;  %v3913_v25 = vadd.f32 %v10549_v59, %v3912_v43  ;;  %v10882_v15 = vrot.slane %v5308_v18, 5  ;;  %v3915_v26 = vpop.f32.mrb[11].mxu0 }
 0x231   : > { %v8169_v12 = vcombine.low %v5691_v16, %v5694_v36  ;;  %v5890_v37 = vor.u32 %v10761_v61, %v10758_v55  ;;  %v4017_v8 = vmax.f32 %v3921_v7, 0.0  ;;  %v3924_v9 = vadd.f32 %v8349_v2, %v10549_v59 }
 0x232   : > { %v10887_v24 = vrot.slane %v5305_v56, 4  ;;  %v5893_v40 = vshll.u32 %v10741_v23, 16  ;;  %v4015_v31 = vmax.f32 %v3913_v25, 0.0  ;;  %v3916_v50 = vadd.f32 %v10549_v59, %v3915_v26  ;;  %6593 = vrot.lane.b32.xlu1 %v8122_v5, %s8657_s16  ;;  %v4486_v5 = vld [vmem:[#allocation3 + $0x3c] sm:$0xf] }
 0x233   : > { %7101 = vrot.lane.b32.xlu0 %v8216_v58, %s8661_s14  ;;  %v5315_v38 = vor.u32 %v5314_v11, %v10882_v15  ;;  %v10894_v3 = vrot.slane %v5318_v48, 5  ;;  %v8269_v55 = vpack.c.bf16 %v4017_v8, %v4017_v8  ;;  %v4018_v61 = vmax.f32 %v3924_v9, 0.0  ;;  %v4493_v11 = vld [vmem:[#allocation3 + $0x48] sm:$0xf]  ;;  %v4497_v26 = vld [vmem:[#allocation3 + $0x50] sm:$0x1] }
 0x234   : > { %v10896_v22 = vrot.slane %v5890_v37, 4  ;;  %v5899_v41 = vrot.slane %v5897_v10, 4  ;;  %v8267_v0 = vpack.c.bf16 %v4015_v31, %v4015_v31  ;;  %v4016_v34 = vmax.f32 %v3916_v50, 0.0  ;;  %v433_v37 = vld [vmem:[#allocation3 + $0x5c] sm:$0x1] }
 0x235   : > { %v5316_v44 = vrot.slane %v5315_v38, 4  ;;  %v10900_v56 = vrot.slane %v5893_v40, 5  ;;  %v4221_v59 = vshrl.u32 %v8269_v55, 16  ;;  %v8270_v18 = vpack.c.bf16 %v4018_v61, %v4018_v61 }
 0x236   : > { %v5311_v32 = vsel %vm8891_vm15, %v10887_v24, %v10882_v15  ;;  %v5903_v20 = vshll.u32 %v10807_v30, 16  ;;  %v4224_v36 = vshll.u32 %v8269_v55, 16  ;;  %v4204_v48 = vshrl.u32 %v8267_v0, 16  ;;  %v4578_v55 = vld [vmem:[#allocation3 + $0x30] sm:$0xf] }
 0x237   : > { %v8268_v7 = vpack.c.bf16 %v4016_v34, %v4016_v34  ;;  %6847 = vrot.lane.b32.xlu0 %v8169_v12, %s8660_s13  ;;  %v5896_v23 = vsel %vm8891_vm15, %v10896_v22, %v10900_v56  ;;  %v4223_v10 = vrot.slane %v4221_v59, 7  ;;  %v4207_v43 = vshll.u32 %v8267_v0, 16  ;;  %v4490_v0 = vld [vmem:[#allocation3 + $0x44] sm:$0x1] }
 0x238   : > { %v4229_v58 = vshrl.u32 %v8270_v18, 16  ;;  %v5321_v16 = vsel %vm8891_vm15, %v5316_v44, %v10894_v3  ;;  %v4206_v30 = vrot.slane %v4204_v48, 7  ;;  %v4232_v25 = vshll.u32 %v8270_v18, 16 }
 0x239   : > { %v4212_v2 = vshrl.u32 %v8268_v7, 16  ;;  %v5900_v15 = vor.u32 %v5899_v41, %v10900_v56  ;;  %v4226_v12 = vor.u32 %v4224_v36, %v4223_v10  ;;  %v4227_v8 = vrot.slane %v4223_v10, 4 }
 0x23a   : > { %v4231_v9 = vrot.slane %v4229_v58, 7  ;;  %v4215_v24 = vshll.u32 %v8268_v7, 16  ;;  %v4209_v40 = vor.u32 %v4207_v43, %v4206_v30  ;;  %v5905_v38 = vrot.slane %v5903_v20, 5 }
 0x23b   : > { %v4214_v31 = vrot.slane %v4212_v2, 7  ;;  %v5901_v50 = vrot.slane %v5900_v15, 4  ;;  %v4494_v61 = vsel %vm10563_vm3, %v4226_v12, %v4493_v11  ;;  %v434_v41 = vsel %vm10464_vm2, 0, %v433_v37 }
 0x23c   : > { %v4234_v3 = vor.u32 %v4232_v25, %v4231_v9  ;;  %v4236_v22 = vrot.slane %v4231_v9, 4  ;;  %4495 = vst [vmem:[#allocation3 + $0x48] sm:$0xf] %v4494_v61  ;;  %v4210_v34 = vrot.slane %v4206_v30, 4  ;;  %v4487_v44 = vsel %vm10563_vm3, %v4209_v40, %v4486_v5  ;;  %435 = vst [vmem:[#allocation3 + $0x5c] sm:$0x1] %v434_v41 }
 0x23d   : > { %v4217_v56 = vor.u32 %v4215_v24, %v4214_v31  ;;  %v4219_v59 = vrot.slane %v4214_v31, 4  ;;  %4488 = vst [vmem:[#allocation3 + $0x3c] sm:$0xf] %v4487_v44  ;;  %v5906_v36 = vsel %vm8891_vm15, %v5901_v50, %v5905_v38  ;;  %v4715_v11 = vshrl.u32 %v4578_v55, 16 }
 0x23e   : > { %v4235_v18 = vsel %vm8816_vm12, %v4227_v8, %v4234_v3  ;;  %v4498_v20 = vsel %vm10453_vm6, %v4236_v22, %v4497_v26  ;;  %v4718_v10 = vshll.u32 %v4578_v55, 16  ;;  %v4724_v43 = vshll.u32 %v10819_v52, 16 }
 0x23f   : > { %4496 = vst.msk [vmem:[#allocation3 + $0x4c] sm:$0xf] %vm12716_vm1, %v4235_v18  ;;  %4499 = vst [vmem:[#allocation3 + $0x50] sm:$0x1] %v4498_v20  ;;  %v4218_v48 = vsel %vm8816_vm12, %v4210_v34, %v4217_v56  ;;  %v4491_v7 = vsel %vm10453_vm6, %v4219_v59, %v4490_v0  ;;  %v4717_v5 = vrot.slane %v4715_v11, 4  ;;  %v4728_v58 = vshrl.u32 %v10819_v52, 16 }
 0x240   : > { %4489 = vst.msk [vmem:[#allocation3 + $0x40] sm:$0xf] %vm12717_vm11, %v4218_v48  ;;  %4492 = vst [vmem:[#allocation3 + $0x44] sm:$0x1] %v4491_v7  ;;  %v4734_v30 = vshll.u32 %v10821_v45, 16  ;;  %v5281_v25 = vor.u32 %v10785_v62, %v10783_v28  ;;  %v8154_v2 = vcombine.low %v5311_v32, %v5321_v16  ;;  %v4720_v15 = vrot.slane %v4718_v10, 5  ;;  %v6508_v62 = vpop.permute.xlu0 %6507 }
 0x241   : > { %v10939_v37 = vrot.slane %v4724_v43, 5  ;;  %v5284_v12 = vshll.u32 %v10767_v54, 16  ;;  %v8201_v8 = vcombine.low %v5896_v23, %v5906_v36  ;;  %v4730_v9 = vrot.slane %v4728_v58, 4  ;;  %vm12730_vm1 = vmmov %vm12706_vm0 }
 0x242   : > { %v10942_v26 = vrot.slane %v4734_v30, 5  ;;  %v5290_v24 = vrot.slane %v5288_v4, 4  ;;  %v4721_v40 = vor.u32 %v4720_v15, %v4717_v5  ;;  %v10946_v52 = vrot.slane %v5281_v25, 4  ;;  %vm12732_vm11 = vmmov %vm12706_vm0 }
 0x243   : > { %v10948_v45 = vrot.slane %v5284_v12, 5  ;;  %v5294_v28 = vshll.u32 %v10850_v57, 16  ;;  %v5188_v32 = vld [vmem:[#allocation3 + $0x48] sm:$0xf]  ;;  %v4731_v31 = vor.u32 %v4730_v9, %v10939_v37  ;;  %v5866_v23 = vor.u32 %v10781_v53, %v10772_v21 }
 0x244   : > { %v5795_v16 = vld [vmem:[#allocation3 + $0x48] sm:$0xf]  ;;  %v5869_v50 = vshll.u32 %v10750_v35, 16  ;;  %v10959_v54 = vsel %vm3551_vm7, %v8087_v33, %v6508_v62  ;;  %v5347_v4 = vshrl.u32 %v5188_v32, 16  ;;  %v5350_v38 = vshll.u32 %v5188_v32, 16 }
 0x245   : > { %v5932_v55 = vshrl.u32 %v5795_v16, 16  ;;  %v5935_v57 = vshll.u32 %v5795_v16, 16  ;;  %v5793_v61 = vld [vmem:[#allocation3 + $0x3c] sm:$0xf]  ;;  %v5287_v34 = vsel %vm8891_vm15, %v10946_v52, %v10948_v45  ;;  %v5291_v44 = vor.u32 %v5290_v24, %v10948_v45 }
 0x246   : > { %v10961_v3 = vld [vmem:[#allocation3 + $0x4c] sm:$0xf]  ;;  %v5908_v0 = vshrl.u32 %v5793_v61, 16  ;;  %v5911_v41 = vshll.u32 %v5793_v61, 16  ;;  %v10969_v6 = vrot.slane %v5347_v4, 4  ;;  %v10979_v56 = vrot.slane %v5350_v38, 5 }
 0x247   : > { %v10963_v22 = vld [vmem:[#allocation3 + $0x4c] sm:$0xf]  ;;  %v8140_v33 = vcombine.low %v5188_v32, %v10961_v3  ;;  %v10972_v53 = vld [vmem:[#allocation3 + $0x40] sm:$0xf]  ;;  %v5360_v59 = vshrl.u32 %v10961_v3, 16  ;;  %v10982_v18 = vrot.slane %v5932_v55, 4 }
 0x248   : > { %v8187_v20 = vcombine.low %v5795_v16, %v10963_v22  ;;  %v5186_v36 = vld [vmem:[#allocation3 + $0x3c] sm:$0xf]  ;;  %v10986_v11 = vrot.slane %v5935_v57, 5  ;;  %v5945_v48 = vshrl.u32 %v10963_v22, 16  ;;  %v5921_v7 = vshrl.u32 %v10972_v53, 16 }
 0x249   : > { %6693 = vrot.lane.b32.xlu1 %v8140_v33, %s8653_s12  ;;  %v8186_v10 = vcombine.low %v5793_v61, %v10972_v53  ;;  %v10991_v43 = vld [vmem:[#allocation3 + $0x40] sm:$0xf]  ;;  %v10994_v5 = vrot.slane %v5908_v0, 4  ;;  %v10996_v58 = vrot.slane %v5911_v41, 5  ;;  %v5323_v30 = vshrl.u32 %v5186_v36, 16 }
 0x24a   : > { %6947 = vrot.lane.b32.xlu0 %v8187_v20, %s8659_s11  ;;  %v5326_v25 = vshll.u32 %v5186_v36, 16  ;;  %v4722_v15 = vrot.slane %v4721_v40, 4  ;;  %v4732_v12 = vrot.slane %v4731_v31, 4  ;;  %v5292_v9 = vrot.slane %v5291_v44, 4  ;;  %v6223_v16 = vld [vmem:[#allocation3 + $0x48] sm:$0xe] }
 0x24b   : > { %v5296_v24 = vrot.slane %v5294_v28, 5  ;;  %v10998_v52 = vrot.slane %v5323_v30, 4  ;;  %v5336_v45 = vshrl.u32 %v10991_v43, 16  ;;  %v8139_v62 = vcombine.low %v5186_v36, %v10991_v43  ;;  %v11013_v38 = vld [vmem:[#allocation3 + $0x50] sm:$0x1] }
 0x24c   : > { %v5871_v32 = vrot.slane %v5869_v50, 5  ;;  %v4727_v4 = vsel %vm8891_vm15, %v4722_v15, %v10939_v37  ;;  %v4737_v40 = vsel %vm8891_vm15, %v4732_v12, %v10942_v26  ;;  %v5875_v31 = vrot.slane %v5873_v14, 4  ;;  %v4576_v50 = vld [vmem:[#allocation3 + $0x24] sm:$0xf]  ;;  %v5008_v30 = vld [vmem:[#allocation3 + $0x48] sm:$0xe] }
 0x24d   : > { %6769 = vrot.lane.b32.xlu1 %v8154_v2, %s8656_s15  ;;  %v5297_v28 = vsel %vm8891_vm15, %v5292_v9, %v5296_v24  ;;  %v11016_v2 = vrot.slane %v5326_v25, 5  ;;  %v8107_v55 = vcombine.low %v4727_v4, %v4737_v40  ;;  %v5867_v57 = vrot.slane %v5866_v23, 4  ;;  %v11026_v12 = vld [vmem:[#allocation3 + $0x4c] sm:$0xf] }
 0x24e   : > { %7023 = vrot.lane.b32.xlu0 %v8201_v8, %s8662_s17  ;;  %v5879_v37 = vshll.u32 %v10844_v46, 16  ;;  %v8153_v61 = vcombine.low %v5287_v34, %v5297_v28  ;;  %v5876_v0 = vor.u32 %v5875_v31, %v5871_v32  ;;  %v8075_v26 = vrot.slane %v6223_v16, 9  ;;  %v11034_v16 = vld [vmem:[#allocation3 + $0x50] sm:$0x1] }
 0x24f   : > { %v6313_v41 = vrot.slane %v10963_v22, 5  ;;  %v6316_v33 = vrot.slane %v11013_v38, 5  ;;  %v4691_v35 = vshrl.u32 %v4576_v50, 16  ;;  %v4694_v14 = vshll.u32 %v4576_v50, 16  ;;  %v11038_v31 = vld [vmem:[#allocation3 + $0x50] sm:$0x1] }
 0x250   : > { %v4700_v44 = vshll.u32 %v10835_v27, 16  ;;  %v5877_v8 = vrot.slane %v5876_v0, 4  ;;  %v5881_v20 = vrot.slane %v5879_v37, 5  ;;  %v4704_v23 = vshrl.u32 %v10835_v27, 16  ;;  %v6222_v0 = vld [vmem:[#allocation3 + $0x3c] sm:$0xe] }
 0x251   : > { %6945 = vrot.lane.b32.xlu1 %v8186_v10, %s8659_s11  ;;  %v6315_v36 = vrot.slane %v6313_v41, 4  ;;  %v4693_v46 = vrot.slane %v4691_v35, 4  ;;  %v4696_v34 = vrot.slane %v4694_v14, 5  ;;  %v4710_v15 = vshll.u32 %v10842_v51, 16 }
 0x252   : > { %6691 = vrot.lane.b32.xlu0 %v8139_v62, %s8653_s12  ;;  %v4702_v25 = vrot.slane %v4700_v44, 5  ;;  %v5872_v9 = vsel %vm8891_vm15, %v5867_v57, %v5871_v32  ;;  %v5882_v10 = vsel %vm8891_vm15, %v5877_v8, %v5881_v20  ;;  %v4706_v27 = vrot.slane %v4704_v23, 4  ;;  %v5615_v62 = vld [vmem:[#allocation3 + $0x48] sm:$0xe] }
 0x253   : > { %v6317_v24 = vsel %vm8804_vm10, %v6315_v36, %v6316_v33  ;;  %v8200_v4 = vcombine.low %v5872_v9, %v5882_v10  ;;  %v6314_v40 = vsel %vm8804_vm10, %v8075_v26, %v6313_v41  ;;  %v4697_v51 = vor.u32 %v4696_v34, %v4693_v46  ;;  %v11045_v41 = vld [vmem:[#allocation3 + $0x44] sm:$0x1]  ;;  %v11053_v46 = vld [vmem:[#allocation3 + $0x40] sm:$0xf]  ;;  %v5007_v34 = vld [vmem:[#allocation3 + $0x3c] sm:$0xe] }
 0x254   : > { %v8045_v28 = vrot.slane %v5008_v30, 9  ;;  %v8219_v32 = vcombine.low %v6314_v40, %v6317_v24  ;;  %v4707_v50 = vor.u32 %v4706_v27, %v4702_v25  ;;  %v4712_v57 = vrot.slane %v4710_v15, 5 }
 0x255   : > { %6515 = vrot.lane.b32.xlu1 %v8107_v55, %s8651_s10  ;;  %v5110_v37 = vrot.slane %v11026_v12, 5  ;;  %v4698_v33 = vrot.slane %v4697_v51, 4  ;;  %v5113_v35 = vrot.slane %v11034_v16, 5  ;;  %v8060_v14 = vrot.slane %v5615_v62, 9  ;;  %v5614_v51 = vld [vmem:[#allocation3 + $0x3c] sm:$0xe] }
 0x256   : > { %6767 = vrot.lane.b32.xlu0 %v8153_v61, %s8656_s15  ;;  %v5711_v26 = vrot.slane %v10961_v3, 5  ;;  %v4708_v44 = vrot.slane %v4707_v50, 4  ;;  %v5714_v55 = vrot.slane %v11038_v31, 5  ;;  %v6306_v20 = vrot.slane %v10972_v53, 5 }
 0x257   : > { %v5112_v8 = vrot.slane %v5110_v37, 4  ;;  %v4703_v36 = vsel %vm8891_vm15, %v4698_v33, %v4702_v25  ;;  %v5111_v61 = vsel %vm8804_vm10, %v8045_v28, %v5110_v37  ;;  %v8074_v30 = vrot.slane %v6222_v0, 9  ;;  %v11061_v25 = vld [vmem:[#allocation3 + $0x44] sm:$0x1] }
 0x258   : > { %v5713_v23 = vrot.slane %v5711_v26, 4  ;;  %v4713_v15 = vsel %vm8891_vm15, %v4708_v44, %v4712_v57  ;;  %v6308_v10 = vrot.slane %v6306_v20, 4  ;;  %v6309_v24 = vrot.slane %v11045_v41, 5  ;;  %v11073_v0 = vld [vmem:[#allocation3 + $0x44] sm:$0x1] }
 0x259   : > { %7021 = vrot.lane.b32.xlu1 %v8200_v4, %s8662_s17  ;;  %v5114_v9 = vsel %vm8804_vm10, %v5112_v8, %v5113_v35  ;;  %v8106_v27 = vcombine.low %v4703_v36, %v4713_v15  ;;  %v5712_v62 = vsel %vm8804_vm10, %v8060_v14, %v5711_v26  ;;  %v6307_v40 = vsel %vm8804_vm10, %v8074_v30, %v6306_v20 }
 0x25a   : > { %7107 = vrot.lane.b32.xlu0 %v8219_v32, %s8661_s14  ;;  %v5715_v4 = vsel %vm8804_vm10, %v5713_v23, %v5714_v55  ;;  %v8125_v28 = vcombine.low %v5111_v61, %v5114_v9  ;;  %v6310_v50 = vsel %vm8804_vm10, %v6308_v10, %v6309_v24  ;;  %v8044_v57 = vrot.slane %v5007_v34, 9 }
 0x25b   : > { %v5103_v37 = vrot.slane %v11053_v46, 5  ;;  %v8172_v32 = vcombine.low %v5712_v62, %v5715_v4  ;;  %v8218_v33 = vcombine.low %v6307_v40, %v6310_v50  ;;  %v5106_v35 = vrot.slane %v11061_v25, 5 }
 0x25c   : > { %v5704_v14 = vrot.slane %v10991_v43, 5  ;;  %v8059_v44 = vrot.slane %v5614_v51, 9  ;;  %v5353_v8 = vor.u32 %v10979_v56, %v10969_v6  ;;  %v5356_v55 = vshll.u32 %v10961_v3, 16 }
 0x25d   : > { %6513 = vrot.lane.b32.xlu1 %v8106_v27, %s8651_s10  ;;  %v5105_v26 = vrot.slane %v5103_v37, 4  ;;  %v5707_v36 = vrot.slane %v11073_v0, 5  ;;  %v5362_v61 = vrot.slane %v5360_v59, 4  ;;  %v5366_v23 = vshll.u32 %v11038_v31, 16  ;;  %v11098_v59 = vld [vmem:[%s12660_s3] ss:$0 sm:$0xff] }
 0x25e   : > { %6599 = vrot.lane.b32.xlu0 %v8125_v28, %s8657_s16  ;;  %v5706_v20 = vrot.slane %v5704_v14, 4  ;;  %v5104_v30 = vsel %vm8804_vm10, %v8044_v57, %v5103_v37  ;;  %v5358_v15 = vrot.slane %v5356_v55, 5  ;;  %v5938_v6 = vor.u32 %v10986_v11, %v10982_v18  ;;  %v8352_v56 = vpop.f32.mrb[12].mxu0  ;;  %v387_v55 = vld [vmem:[#allocation3 + $0x78] sm:$0x1] }
 0x25f   : > { %v5107_v34 = vsel %vm8804_vm10, %v5105_v26, %v5106_v35  ;;  %v5705_v10 = vsel %vm8804_vm10, %v8059_v44, %v5704_v14  ;;  %v5354_v24 = vrot.slane %v5353_v8, 4  ;;  %v5941_v3 = vshll.u32 %v10963_v22, 16  ;;  %v3928_v27 = vpop.f32.mrb[13].mxu0 }
 0x260   : > { %v8124_v9 = vcombine.low %v5104_v30, %v5107_v34  ;;  %v3937_v31 = vadd.f32 %v11098_v59, %v8352_v56  ;;  %v5708_v18 = vsel %vm8804_vm10, %v5706_v20, %v5707_v36  ;;  %v5363_v11 = vor.u32 %v5362_v61, %v5358_v15  ;;  %v8353_v40 = vpop.f32.mrb[14].mxu0 }
 0x261   : > { %6853 = vrot.lane.b32.xlu1 %v8172_v32, %s8660_s13  ;;  %v5368_v62 = vrot.slane %v5366_v23, 5  ;;  %v3929_v4 = vadd.f32 %v11098_v59, %v3928_v27  ;;  %v11106_v51 = vrot.slane %v5938_v6, 4  ;;  %v11108_v28 = vrot.slane %v5941_v3, 5  ;;  %v3931_v32 = vpop.f32.mrb[15].mxu0 }
 0x262   : > { %7105 = vrot.lane.b32.xlu0 %v8218_v33, %s8661_s14  ;;  %v5947_v50 = vrot.slane %v5945_v48, 4  ;;  %v4021_v57 = vmax.f32 %v3937_v31, 0.0  ;;  %v3940_v37 = vadd.f32 %v11098_v59, %v8353_v40  ;;  %v5364_v35 = vrot.slane %v5363_v11, 4 }
 0x263   : > { %v5951_v14 = vshll.u32 %v11013_v38, 16  ;;  %v4019_v26 = vmax.f32 %v3929_v4, 0.0  ;;  %v3932_v44 = vadd.f32 %v11098_v59, %v3931_v32  ;;  %v8171_v8 = vcombine.low %v5705_v10, %v5708_v18  ;;  %v442_v18 = vld [vmem:[#allocation3 + $0x80] sm:$0x1] }
 0x264   : > { %v5948_v33 = vor.u32 %v5947_v50, %v11108_v28  ;;  %v8273_v20 = vpack.c.bf16 %v4021_v57, %v4021_v57  ;;  %v4022_v36 = vmax.f32 %v3940_v37, 0.0  ;;  %v5359_v22 = vsel %vm8891_vm15, %v5354_v24, %v5358_v15  ;;  %v4507_v24 = vld [vmem:[#allocation3 + $0x60] sm:$0xf]  ;;  %v439_v50 = vld [vmem:[#allocation3 + $0x74] sm:$0x1] }
 0x265   : > { %6597 = vrot.lane.b32.xlu1 %v8124_v9, %s8657_s16  ;;  %v5369_v48 = vsel %vm8891_vm15, %v5364_v35, %v5368_v62  ;;  %v8271_v61 = vpack.c.bf16 %v4019_v26, %v4019_v26  ;;  %v4020_v23 = vmax.f32 %v3932_v44, 0.0  ;;  %v5944_v38 = vsel %vm8891_vm15, %v11106_v51, %v11108_v28  ;;  %v384_v9 = vld [vmem:[#allocation3 + $0x6c] sm:$0x1] }
 0x266   : > { %6851 = vrot.lane.b32.xlu0 %v8171_v8, %s8660_s13  ;;  %v11126_v30 = vrot.slane %v5951_v14, 5  ;;  %v4255_v34 = vshrl.u32 %v8273_v20, 16  ;;  %v8274_v6 = vpack.c.bf16 %v4022_v36, %v4022_v36  ;;  %v11128_v56 = vcombine.low %v5359_v22, %v5369_v48  ;;  %v4582_v14 = vld [vmem:[#allocation3 + $0x48] sm:$0xf]  ;;  %v4500_v8 = vld [vmem:[#allocation3 + $0x54] sm:$0xf] }
 0x267   : > { %v388_v15 = vsel %vm10453_vm6, 0, %v387_v55  ;;  %v4258_v10 = vshll.u32 %v8273_v20, 16  ;;  %v4238_v3 = vshrl.u32 %v8271_v61, 16  ;;  %v8272_v31 = vpack.c.bf16 %v4020_v23, %v4020_v23  ;;  %v4511_v22 = vld [vmem:[#allocation3 + $0x68] sm:$0x1] }
 0x268   : > { %v11132_v27 = vrot.slane %v5948_v33, 4  ;;  %389 = vst [vmem:[#allocation3 + $0x78] sm:$0x1] %v388_v15  ;;  %v4257_v11 = vrot.slane %v4255_v34, 7  ;;  %v4241_v62 = vshll.u32 %v8271_v61, 16  ;;  %v4263_v4 = vshrl.u32 %v8274_v6, 16 }
 0x269   : > { %v4266_v40 = vshll.u32 %v8274_v6, 16  ;;  %v4240_v57 = vrot.slane %v4238_v3, 7  ;;  %v4246_v37 = vshrl.u32 %v8272_v31, 16  ;;  %v4249_v32 = vshll.u32 %v8272_v31, 16  ;;  %v4504_v15 = vld [vmem:[#allocation3 + $0x5c] sm:$0x1] }
 0x26a   : > { %v385_v35 = vsel %vm10453_vm6, 0, %v384_v9  ;;  %v4260_v26 = vor.u32 %v4258_v10, %v4257_v11  ;;  %v4261_v44 = vrot.slane %v4257_v11, 4  ;;  %v4265_v55 = vrot.slane %v4263_v4, 7 }
 0x26b   : > { %386 = vst [vmem:[#allocation3 + $0x6c] sm:$0x1] %v385_v35  ;;  %v443_v33 = vsel %vm10464_vm2, 0, %v442_v18  ;;  %v4243_v20 = vor.u32 %v4241_v62, %v4240_v57  ;;  %v4244_v36 = vrot.slane %v4240_v57, 4  ;;  %v4248_v48 = vrot.slane %v4246_v37, 7 }
 0x26c   : > { %444 = vst [vmem:[#allocation3 + $0x80] sm:$0x1] %v443_v33  ;;  %v440_v61 = vsel %vm10464_vm2, 0, %v439_v50  ;;  %v4508_v23 = vsel %vm10563_vm3, %v4260_v26, %v4507_v24  ;;  %v4268_v34 = vor.u32 %v4266_v40, %v4265_v55  ;;  %v4270_v6 = vrot.slane %v4265_v55, 4 }
 0x26d   : > { %441 = vst [vmem:[#allocation3 + $0x74] sm:$0x1] %v440_v61  ;;  %v4763_v9 = vshrl.u32 %v4582_v14, 16  ;;  %4509 = vst [vmem:[#allocation3 + $0x60] sm:$0xf] %v4508_v23  ;;  %v4501_v10 = vsel %vm10563_vm3, %v4243_v20, %v4500_v8  ;;  %v4251_v3 = vor.u32 %v4249_v32, %v4248_v48  ;;  %v4253_v31 = vrot.slane %v4248_v48, 4 }
 0x26e   : > { %v4766_v18 = vshll.u32 %v4582_v14, 16  ;;  %4502 = vst [vmem:[#allocation3 + $0x54] sm:$0xf] %v4501_v10  ;;  %v4269_v11 = vsel %vm8816_vm12, %v4261_v44, %v4268_v34  ;;  %v4512_v62 = vsel %vm10453_vm6, %v4270_v6, %v4511_v22  ;;  %v4772_v4 = vshll.u32 %v11026_v12, 16 }
 0x26f   : > { %v4765_v24 = vrot.slane %v4763_v9, 4  ;;  %4510 = vst.msk [vmem:[#allocation3 + $0x64] sm:$0xf] %vm12706_vm0, %v4269_v11  ;;  %4513 = vst [vmem:[#allocation3 + $0x68] sm:$0x1] %v4512_v62  ;;  %v4252_v40 = vsel %vm8816_vm12, %v4244_v36, %v4251_v3  ;;  %v4505_v50 = vsel %vm10453_vm6, %v4253_v31, %v4504_v15  ;;  %v4776_v37 = vshrl.u32 %v11026_v12, 16 }
 0x270   : > { %v4768_v57 = vrot.slane %v4766_v18, 5  ;;  %4503 = vst.msk [vmem:[#allocation3 + $0x58] sm:$0xf] %vm12718_vm8, %v4252_v40  ;;  %4506 = vst [vmem:[#allocation3 + $0x5c] sm:$0x1] %v4505_v50  ;;  %v11156_v32 = vrot.slane %v4772_v4, 5  ;;  %v5329_v14 = vor.u32 %v11016_v2, %v10998_v52  ;;  %v5954_v44 = vsel %vm8891_vm15, %v11132_v27, %v11126_v30 }
 0x271   : > { %v4782_v35 = vshll.u32 %v11034_v16, 16  ;;  %v5332_v26 = vshll.u32 %v10991_v43, 16  ;;  %v4778_v55 = vrot.slane %v4776_v37, 4  ;;  %v5342_v12 = vshll.u32 %v11073_v0, 16  ;;  %v8524_v0 = vld [vmem:[%s12659_s2] sm:$0xff]   ;;  %v8525_v37 = vld [vmem:[%s12659_s2 + $0x8] sm:$0xff]  }
 0x272   : > { %v4769_v8 = vor.u32 %v4768_v57, %v4765_v24  ;;  %v11167_v33 = vrot.slane %v5329_v14, 4  ;;  %v5338_v16 = vrot.slane %v5336_v45, 4  ;;  %v5914_v52 = vor.u32 %v10996_v58, %v10994_v5  ;;  %8370 = vmatprep.subr.bf16.mxu1 %v8524_v0 }
 0x273   : > { %v11169_v20 = vrot.slane %v5332_v26, 5  ;;  %v11177_v36 = vrot.slane %v4782_v35, 5  ;;  %v11179_v22 = vrot.slane %v5342_v12, 5  ;;  %v5917_v30 = vshll.u32 %v10972_v53, 16  ;;  %8371 = vmatpush3.bf16.msra.mxu1 %v8524_v0 }
 0x274   : > { %v11175_v2 = vrot.slane %v4769_v8, 4  ;;  %v5192_v27 = vld [vmem:[#allocation3 + $0x60] sm:$0xf]  ;;  %v8203_v43 = vcombine.low %v5944_v38, %v5954_v44  ;;  %v4779_v5 = vor.u32 %v4778_v55, %v11156_v32  ;;  %v11191_v58 = vrot.slane %v5914_v52, 4  ;;  %v6588_v38 = vpop.permute.xlu0 %6587  ;;  %8372 = vmatprep.subr.bf16.mxu1 %v8525_v37 }
 0x275   : > { %v5799_v48 = vld [vmem:[#allocation3 + $0x60] sm:$0xf]  ;;  %v11195_v45 = vrot.slane %v5921_v7, 4  ;;  %v5395_v61 = vshrl.u32 %v5192_v27, 16  ;;  %v5398_v23 = vshll.u32 %v5192_v27, 16  ;;  %v5335_v53 = vsel %vm8891_vm15, %v11167_v33, %v11169_v20 }
 0x276   : > { %v5980_v34 = vshrl.u32 %v5799_v48, 16  ;;  %v5983_v6 = vshll.u32 %v5799_v48, 16  ;;  %v11197_v15 = vld [vmem:[#allocation3 + $0x54] sm:$0xf]  ;;  %v11199_v9 = vld [vmem:[#allocation3 + $0x64] sm:$0xf]  ;;  %v5339_v7 = vor.u32 %v5338_v16, %v11169_v20  ;;  %v4775_v11 = vsel %vm8891_vm15, %v11175_v2, %v11156_v32 }
 0x277   : > { %v11201_v10 = vld [vmem:[#allocation3 + $0x64] sm:$0xf]  ;;  %v5956_v51 = vshrl.u32 %v11197_v15, 16  ;;  %v5959_v28 = vshll.u32 %v11197_v15, 16  ;;  %v11210_v3 = vrot.slane %v5395_v61, 4  ;;  %v8142_v31 = vcombine.low %v5192_v27, %v11199_v9  ;;  %8373 = vmatpush3.bf16.msra.mxu1 %v8525_v37 }
 0x278   : > { %v11213_v18 = vld [vmem:[#allocation3 + $0x58] sm:$0xf]  ;;  %v11221_v62 = vsel %vm3617_vm9, %v10959_v54, %v6588_v38  ;;  %v11223_v24 = vrot.slane %v5398_v23, 5  ;;  %v5408_v4 = vshrl.u32 %v11199_v9, 16  ;;  %v11226_v40 = vrot.slane %v5980_v34, 4 }
 0x279   : > { %v8189_v50 = vcombine.low %v5799_v48, %v11201_v10  ;;  %v11229_v57 = vld [vmem:[#allocation3 + $0x54] sm:$0xf]  ;;  %6697 = vrot.lane.b32.xlu1 %v8142_v31, %s8653_s12  ;;  %v11235_v32 = vrot.slane %v5983_v6, 5  ;;  %v5993_v54 = vshrl.u32 %v11201_v10, 16  ;;  %v8188_v14 = vcombine.low %v11197_v15, %v11213_v18  ;;  %v11241_v26 = vld [vmem:[#allocation3 + $0x58] sm:$0xf] }
 0x27a   : > { %v8356_v44 = vpop.f32.mrb[16].mxu0  ;;  %v11244_v8 = vrot.slane %v5956_v51, 4  ;;  %v11246_v55 = vrot.slane %v5959_v28, 5  ;;  %v5371_v12 = vshrl.u32 %v11229_v57, 16  ;;  %v5374_v33 = vshll.u32 %v11229_v57, 16 }
 0x27b   : > { %6951 = vrot.lane.b32.xlu0 %v8189_v50, %s8659_s11  ;;  %v3953_v20 = vadd.f32 %v11098_v59, %v8356_v44  ;;  %v3944_v16 = vpop.f32.mrb[17].mxu0  ;;  %v4780_v52 = vrot.slane %v4779_v5, 4  ;;  %v5340_v2 = vrot.slane %v5339_v7, 4  ;;  %v5919_v0 = vrot.slane %v5917_v30, 5  ;;  %v6225_v28 = vld [vmem:[#allocation3 + $0x60] sm:$0xe]  ;;  %v11265_v7 = vpop.permute.xlu0 %6939 }
 0x27c   : > { %v3945_v27 = vadd.f32 %v11098_v59, %v3944_v16  ;;  %v8357_v48 = vpop.f32.mrb[18].mxu0  ;;  %v8141_v23 = vcombine.low %v11229_v57, %v11241_v26  ;;  %v5927_v34 = vshll.u32 %v11045_v41, 16  ;;  %v8526_v50 = vld [vmem:[%s12659_s2 + $0x10] sm:$0xff]   ;;  %v5989_v61 = vshll.u32 %v11201_v10, 16 }
 0x27d   : > { %6773 = vrot.lane.b32.xlu1 %v11128_v56, %s8656_s15  ;;  %v4025_v6 = vmax.f32 %v3953_v20, 0.0  ;;  %v3956_v15 = vadd.f32 %v11098_v59, %v8357_v48  ;;  %v3947_v5 = vpop.f32.mrb[19].mxu0  ;;  %v4785_v30 = vsel %vm8891_vm15, %v4780_v52, %v11177_v36  ;;  %v5345_v51 = vsel %vm8891_vm15, %v5340_v2, %v11179_v22  ;;  %8374 = vmatprep.subr.bf16.mxu1 %v8526_v50 }
 0x27e   : > { %v4023_v41 = vmax.f32 %v3945_v27, 0.0  ;;  %v3948_v56 = vadd.f32 %v11098_v59, %v3947_v5  ;;  %v8109_v38 = vcombine.low %v4775_v11, %v4785_v30  ;;  %v8155_v31 = vcombine.low %v5335_v53, %v5345_v51  ;;  %8375 = vmatpush3.bf16.msra.mxu1 %v8526_v50  ;;  %v11286_v50 = vld [vmem:[#allocation3 + $0x68] sm:$0x1] }
 0x27f   : > { %7027 = vrot.lane.b32.xlu0 %v8203_v43, %s8662_s17  ;;  %v8277_v37 = vpack.c.bf16 %v4025_v6, %v4025_v6  ;;  %v4026_v36 = vmax.f32 %v3956_v15, 0.0  ;;  %v5920_v22 = vsel %vm8891_vm15, %v11191_v58, %v5919_v0  ;;  %v5924_v44 = vor.u32 %v11195_v45, %v5919_v0  ;;  %v4521_v0 = vld [vmem:[#allocation3 + $0x78] sm:$0xf]  ;;  %v11281_v51 = vpop.permute.xlu0 %6683 }
 0x280   : > { %v8275_v20 = vpack.c.bf16 %v4023_v41, %v4023_v41  ;;  %v4024_v16 = vmax.f32 %v3948_v56, 0.0  ;;  %v5929_v43 = vrot.slane %v5927_v34, 5  ;;  %v8077_v52 = vrot.slane %v6225_v28, 9 }
 0x281   : > { %v4289_v2 = vshrl.u32 %v8277_v37, 16  ;;  %v4292_v11 = vshll.u32 %v8277_v37, 16  ;;  %6949 = vrot.lane.b32.xlu1 %v8188_v14, %s8659_s11  ;;  %v8278_v53 = vpack.c.bf16 %v4026_v36, %v4026_v36  ;;  %v5925_v27 = vrot.slane %v5924_v44, 4  ;;  %v8527_v14 = vld [vmem:[%s12659_s2 + $0x18] sm:$0xff]   ;;  %v4514_v44 = vld [vmem:[#allocation3 + $0x6c] sm:$0xf] }
 0x282   : > { %v4272_v48 = vshrl.u32 %v8275_v20, 16  ;;  %v4275_v6 = vshll.u32 %v8275_v20, 16  ;;  %v8276_v15 = vpack.c.bf16 %v4024_v16, %v4024_v16  ;;  %v6327_v58 = vrot.slane %v11201_v10, 5  ;;  %8376 = vmatprep.subr.bf16.mxu1 %v8527_v14 }
 0x283   : > { %6695 = vrot.lane.b32.xlu0 %v8141_v23, %s8653_s12  ;;  %v4291_v45 = vrot.slane %v4289_v2, 7  ;;  %v4297_v5 = vshrl.u32 %v8278_v53, 16  ;;  %v4300_v34 = vshll.u32 %v8278_v53, 16  ;;  %v5930_v30 = vsel %vm8891_vm15, %v5925_v27, %v5929_v43  ;;  %v4580_v43 = vld [vmem:[#allocation3 + $0x3c] sm:$0xf]  ;;  %8377 = vmatpush3.bf16.msra.mxu1 %v8527_v14 }
 0x284   : > { %v4274_v28 = vrot.slane %v4272_v48, 7  ;;  %v4280_v41 = vshrl.u32 %v8276_v15, 16  ;;  %v4283_v56 = vshll.u32 %v8276_v15, 16  ;;  %v8202_v23 = vcombine.low %v5920_v22, %v5930_v30  ;;  %v4525_v27 = vld [vmem:[#allocation3 + $0x80] sm:$0x1] }
 0x285   : > { %v4294_v37 = vor.u32 %v4292_v11, %v4291_v45  ;;  %v4295_v36 = vrot.slane %v4291_v45, 4  ;;  %v4299_v20 = vrot.slane %v4297_v5, 7  ;;  %6519 = vrot.lane.b32.xlu1 %v8109_v38, %s8651_s10  ;;  %v6328_v16 = vsel %vm8804_vm10, %v8077_v52, %v6327_v58  ;;  %v4518_v5 = vld [vmem:[#allocation3 + $0x74] sm:$0x1]  ;;  %v11304_v14 = vld [vmem:[#allocation3 + $0x64] sm:$0xf] }
 0x286   : > { %v4277_v2 = vor.u32 %v4275_v6, %v4274_v28  ;;  %v4278_v53 = vrot.slane %v4274_v28, 4  ;;  %v4282_v48 = vrot.slane %v4280_v41, 7  ;;  %v6329_v22 = vrot.slane %v6327_v58, 4  ;;  %v5010_v41 = vld [vmem:[#allocation3 + $0x60] sm:$0xe] }
 0x287   : > { %6771 = vrot.lane.b32.xlu0 %v8155_v31, %s8656_s15  ;;  %v4522_v11 = vsel %vm10563_vm3, %v4294_v37, %v4521_v0  ;;  %v4302_v15 = vor.u32 %v4300_v34, %v4299_v20  ;;  %v4304_v45 = vrot.slane %v4299_v20, 4  ;;  %v6330_v38 = vrot.slane %v11286_v50, 5  ;;  %v11306_v37 = vpop.permute.xlu0 %7099  ;;  %v11313_v20 = vld [vmem:[#allocation3 + $0x68] sm:$0x1] }
 0x288   : > { %4523 = vst [vmem:[#allocation3 + $0x78] sm:$0xf] %v4522_v11  ;;  %v4515_v52 = vsel %vm10563_vm3, %v4277_v2, %v4514_v44  ;;  %v4285_v6 = vor.u32 %v4283_v56, %v4282_v48  ;;  %v4287_v30 = vrot.slane %v4282_v48, 4  ;;  %v4739_v28 = vshrl.u32 %v4580_v43, 16  ;;  %v11328_v11 = vpop.permute.xlu1 %6685 }
 0x289   : > { %4516 = vst [vmem:[#allocation3 + $0x6c] sm:$0xf] %v4515_v52  ;;  %v4303_v31 = vsel %vm8816_vm12, %v4295_v36, %v4302_v15  ;;  %v4526_v58 = vsel %vm10453_vm6, %v4304_v45, %v4525_v27  ;;  %7025 = vrot.lane.b32.xlu1 %v8202_v23, %s8662_s17  ;;  %v6331_v0 = vsel %vm8804_vm10, %v6329_v22, %v6330_v38  ;;  %v4742_v34 = vshll.u32 %v4580_v43, 16  ;;  %v5617_v22 = vld [vmem:[#allocation3 + $0x60] sm:$0xe] }
 0x28a   : > { %4524 = vst.msk [vmem:[#allocation3 + $0x7c] sm:$0xf] %vm12719_vm13, %v4303_v31  ;;  %4527 = vst [vmem:[#allocation3 + $0x80] sm:$0x1] %v4526_v58  ;;  %v4286_v56 = vsel %vm8816_vm12, %v4278_v53, %v4285_v6  ;;  %v4519_v36 = vsel %vm10453_vm6, %v4287_v30, %v4518_v5  ;;  %v8221_v44 = vcombine.low %v6328_v16, %v6331_v0  ;;  %v4741_v23 = vrot.slane %v4739_v28, 4 }
 0x28b   : > { %4517 = vst.msk [vmem:[#allocation3 + $0x70] sm:$0xf] %vm12720_vm5, %v4286_v56  ;;  %4520 = vst [vmem:[#allocation3 + $0x74] sm:$0x1] %v4519_v36  ;;  %v4744_v43 = vrot.slane %v4742_v34, 5  ;;  %v4748_v2 = vshll.u32 %v11053_v46, 16  ;;  %v11342_v56 = vpop.permute.xlu0 %6591 }
 0x28c   : > { %v4752_v27 = vshrl.u32 %v11053_v46, 16  ;;  %v4758_v48 = vshll.u32 %v11061_v25, 16  ;;  %v11321_v53 = vrot.slane %v5371_v12, 4  ;;  %v11325_v16 = vrot.slane %v5374_v33, 5  ;;  %7111 = vrot.lane.b32.xlu0 %v8221_v44, %s8661_s14  ;;  %12721 = vst [vmem:[#allocation8_spill] sm:$0xff] %v11328_v11 }
 0x28d   : > { %v8047_v15 = vrot.slane %v5010_v41, 9  ;;  %v5124_v45 = vrot.slane %v11304_v14, 5  ;;  %v11331_v5 = vld [vmem:[#allocation3 + $0x68] sm:$0x1]  ;;  %v4745_v46 = vor.u32 %v4744_v43, %v4741_v23  ;;  %v4750_v25 = vrot.slane %v4748_v2, 5 }
 0x28e   : > { %v4754_v38 = vrot.slane %v4752_v27, 4  ;;  %v5127_v52 = vrot.slane %v11313_v20, 5  ;;  %v6224_v12 = vld [vmem:[#allocation3 + $0x54] sm:$0xe]  ;;  %v4760_v6 = vrot.slane %v4758_v48, 5  ;;  %v8062_v57 = vrot.slane %v5617_v22, 9 }
 0x28f   : > { %v5126_v30 = vrot.slane %v5124_v45, 4  ;;  %v5725_v33 = vrot.slane %v11199_v9, 5  ;;  %v11335_v28 = vld [vmem:[#allocation3 + $0x5c] sm:$0x1]  ;;  %v4746_v31 = vrot.slane %v4745_v46, 4  ;;  %v5125_v0 = vsel %vm8804_vm10, %v8047_v15, %v5124_v45  ;;  %v11379_v13 = vpop.permute.xlu0 %6843 }
 0x290   : > { %v4755_v58 = vor.u32 %v4754_v38, %v4750_v25  ;;  %v6320_v34 = vrot.slane %v11213_v18, 5  ;;  %v11340_v41 = vld [vmem:[#allocation3 + $0x58] sm:$0xf]  ;;  %v5728_v23 = vrot.slane %v11331_v5, 5  ;;  %v8076_v43 = vrot.slane %v6224_v12, 9 }
 0x291   : > { %v5128_v36 = vsel %vm8804_vm10, %v5126_v30, %v5127_v52  ;;  %v5727_v44 = vrot.slane %v5725_v33, 4  ;;  %v5009_v2 = vld [vmem:[#allocation3 + $0x54] sm:$0xe]  ;;  %v5726_v22 = vsel %vm8804_vm10, %v8062_v57, %v5725_v33  ;;  %v6323_v15 = vrot.slane %v11335_v28, 5  ;;  %v11356_v30 = vpop.permute.xlu1 %6845  ;;  %v11358_v12 = vld [vmem:[#allocation3 + $0x5c] sm:$0x1] }
 0x292   : > { %v4756_v27 = vrot.slane %v4755_v58, 4  ;;  %v8127_v48 = vcombine.low %v5125_v0, %v5128_v36  ;;  %v4751_v45 = vsel %vm8891_vm15, %v4746_v31, %v4750_v25  ;;  %v6321_v38 = vsel %vm8804_vm10, %v8076_v43, %v6320_v34  ;;  %12722 = vst [vmem:[#allocation7_spill] sm:$0xff] %v11356_v30  ;;  %v5616_v58 = vld [vmem:[#allocation3 + $0x54] sm:$0xe]  ;;  %v11369_v0 = vld [vmem:[#allocation3 + $0x5c] sm:$0x1] }
 0x293   : > { %v5729_v46 = vsel %vm8804_vm10, %v5727_v44, %v5728_v23  ;;  %v6322_v52 = vrot.slane %v6320_v34, 4  ;;  %v11366_v25 = vsel %vm3683_vm4, %v11221_v62, %v11281_v51  ;;  %v8046_v33 = vrot.slane %v5009_v2, 9  ;;  %v11371_v34 = vld [vmem:[#allocation3 + $0x78] sm:$0xf]  ;;  %v11377_v2 = vld [vmem:[#allocation3 + $0x7c] sm:$0xf] }
 0x294   : > { %v4761_v57 = vsel %vm8891_vm15, %v4756_v27, %v4760_v6  ;;  %6603 = vrot.lane.b32.xlu0 %v8127_v48, %s8657_s16  ;;  %v5117_v31 = vrot.slane %v11340_v41, 5  ;;  %v8174_v44 = vcombine.low %v5726_v22, %v5729_v46  ;;  %v5718_v6 = vrot.slane %v11241_v26, 5  ;;  %v5803_v43 = vld [vmem:[#allocation3 + $0x78] sm:$0xf]  ;;  %v390_v30 = vld [vmem:[#allocation3 + $0x84] sm:$0x1] }
 0x295   : > { %v8108_v36 = vcombine.low %v4751_v45, %v4761_v57  ;;  %v6324_v23 = vsel %vm8804_vm10, %v6322_v52, %v6323_v15  ;;  %v5120_v62 = vrot.slane %v11358_v12, 5  ;;  %v8061_v51 = vrot.slane %v5616_v58, 9  ;;  %v11394_v35 = vpop.permute.xlu1 %6589 }
 0x296   : > { %v8220_v27 = vcombine.low %v6321_v38, %v6324_v23  ;;  %v5119_v48 = vrot.slane %v5117_v31, 4  ;;  %v5720_v21 = vrot.slane %v5718_v6, 4  ;;  %v5721_v22 = vrot.slane %v11369_v0, 5  ;;  %v8360_v57 = vpop.f32.mrb[20].mxu0 }
 0x297   : > { %6517 = vrot.lane.b32.xlu1 %v8108_v36, %s8651_s10  ;;  %v5443_v45 = vshrl.u32 %v11371_v34, 16  ;;  %v5446_v15 = vshll.u32 %v11371_v34, 16  ;;  %v5118_v46 = vsel %vm8804_vm10, %v8046_v33, %v5117_v31  ;;  %v5719_v52 = vsel %vm8804_vm10, %v8061_v51, %v5718_v6  ;;  %v11399_v33 = vld [vmem:[#allocation3 + $0x7c] sm:$0xf]  ;;  %v3960_v31 = vpop.f32.mrb[21].mxu0 }
 0x298   : > { %7109 = vrot.lane.b32.xlu0 %v8220_v27, %s8661_s14  ;;  %v5121_v38 = vsel %vm8804_vm10, %v5119_v48, %v5120_v62  ;;  %v6028_v58 = vshrl.u32 %v5803_v43, 16  ;;  %v5722_v23 = vsel %vm8804_vm10, %v5720_v21, %v5721_v22  ;;  %v8144_v27 = vcombine.low %v11371_v34, %v11377_v2 }
 0x299   : > { %v8126_v36 = vcombine.low %v5118_v46, %v5121_v38  ;;  %v8173_v48 = vcombine.low %v5719_v52, %v5722_v23  ;;  %v11401_v62 = vrot.slane %v5443_v45, 4  ;;  %v11403_v6 = vrot.slane %v5446_v15, 5  ;;  %v8361_v46 = vpop.f32.mrb[22].mxu0  ;;  %v11407_v38 = vpop.permute.xlu0 %6943  ;;  %v393_v45 = vld [vmem:[#allocation3 + $0x90] sm:$0x1] }
 0x29a   : > { %v11405_v51 = vrot.slane %v6028_v58, 4  ;;  %12723 = vst [vmem:[#allocation9_spill] sm:$0xff] %v11407_v38  ;;  %v6031_v21 = vshll.u32 %v5803_v43, 16  ;;  %v5401_v34 = vor.u32 %v11223_v24, %v11210_v3  ;;  %v5404_v22 = vshll.u32 %v11199_v9, 16  ;;  %v11415_v23 = vpop.f32.mrb[23].mxu0  ;;  %v11426_v38 = vpop.permute.xlu1 %6689 }
 0x29b   : > { %6857 = vrot.lane.b32.xlu1 %v8174_v44, %s8660_s13  ;;  %v5410_v52 = vrot.slane %v5408_v4, 4  ;;  %v8191_v15 = vcombine.low %v5803_v43, %v11399_v33  ;;  %v5414_v58 = vshll.u32 %v11331_v5, 16  ;;  %v5986_v44 = vor.u32 %v11235_v32, %v11226_v40  ;;  %12724 = vst [vmem:[#allocation10_spill] sm:$0xff] %v11426_v38 }
 0x29c   : > { %6855 = vrot.lane.b32.xlu0 %v8173_v48, %s8660_s13  ;;  %v5402_v3 = vrot.slane %v5401_v34, 4  ;;  %v5406_v24 = vrot.slane %v5404_v22, 5  ;;  %v5995_v9 = vrot.slane %v5993_v54, 4  ;;  %v5999_v4 = vshll.u32 %v11286_v50, 16  ;;  %v11435_v54 = vld [vmem:[#allocation3 + $0x6c] sm:$0xf] }
 0x29d   : > { %v5987_v43 = vrot.slane %v5986_v44, 4  ;;  %v5991_v11 = vrot.slane %v5989_v61, 5  ;;  %v394_v5 = vsel %vm10453_vm6, 0, %v393_v45  ;;  %v11432_v40 = vrot.slane %v6031_v21, 5  ;;  %v448_v21 = vld [vmem:[#allocation3 + $0x98] sm:$0x1]  ;;  %v11443_v45 = vpop.permute.xlu0 %7019 }
 0x29e   : > { %v5411_v32 = vor.u32 %v5410_v52, %v5406_v24  ;;  %v5416_v34 = vrot.slane %v5414_v58, 5  ;;  %395 = vst [vmem:[#allocation3 + $0x90] sm:$0x1] %v394_v5  ;;  %v3969_v10 = vadd.f32 %v11098_v59, %v8360_v57  ;;  %v5407_v50 = vsel %vm8891_vm15, %v5402_v3, %v5406_v24 }
 0x29f   : > { %6601 = vrot.lane.b32.xlu1 %v8126_v36, %s8657_s16  ;;  %v5996_v61 = vor.u32 %v5995_v9, %v5991_v11  ;;  %v391_v22 = vsel %vm10453_vm6, 0, %v390_v30  ;;  %v3961_v36 = vadd.f32 %v11098_v59, %v3960_v31  ;;  %v5992_v57 = vsel %vm8891_vm15, %v5987_v43, %v5991_v11  ;;  %v11457_v43 = vld [vmem:[#allocation3 + $0x6c] sm:$0xf] }
 0x2a0   : > { %6955 = vrot.lane.b32.xlu0 %v8191_v15, %s8659_s11  ;;  %v5412_v52 = vrot.slane %v5411_v32, 4  ;;  %v6001_v58 = vrot.slane %v5999_v4, 5  ;;  %v4029_v44 = vmax.f32 %v3969_v10, 0.0  ;;  %392 = vst [vmem:[#allocation3 + $0x84] sm:$0x1] %v391_v22  ;;  %v6004_v24 = vshrl.u32 %v11435_v54, 16  ;;  %v11459_v32 = vpop.permute.xlu1 %6765 }
 0x2a1   : > { %v11447_v15 = vld [vmem:[#allocation3 + $0x70] sm:$0xf]  ;;  %v5997_v5 = vrot.slane %v5996_v61, 4  ;;  %v4027_v3 = vmax.f32 %v3961_v36, 0.0  ;;  %v6007_v30 = vshll.u32 %v11435_v54, 16  ;;  %v449_v11 = vsel %vm10464_vm2, 0, %v448_v21 }
 0x2a2   : > { %v5417_v31 = vsel %vm8891_vm15, %v5412_v52, %v5416_v34  ;;  %v8281_v9 = vpack.c.bf16 %v4029_v44, %v4029_v44  ;;  %v3972_v4 = vadd.f32 %v11098_v59, %v8361_v46  ;;  %12725 = vst [vmem:[#allocation11_spill] sm:$0xff] %v11459_v32  ;;  %450 = vst [vmem:[#allocation3 + $0x98] sm:$0x1] %v449_v11  ;;  %v11466_v21 = vrot.slane %v6004_v24, 4  ;;  %v11468_v46 = vld [vmem:[#allocation3 + $0x70] sm:$0xf] }
 0x2a3   : > { %6701 = vrot.lane.b32.xlu1 %v8144_v27, %s8653_s12  ;;  %v6002_v10 = vsel %vm8891_vm15, %v5997_v5, %v6001_v58  ;;  %v8279_v61 = vpack.c.bf16 %v4027_v3, %v4027_v3  ;;  %v8190_v27 = vcombine.low %v11435_v54, %v11447_v15  ;;  %v8158_v34 = vcombine.low %v5407_v50, %v5417_v31  ;;  %v445_v44 = vld [vmem:[#allocation3 + $0x8c] sm:$0x1]  ;;  %v11471_v5 = vpop.permute.xlu0 %6687  ;;  %v4586_v24 = vld [vmem:[#allocation3 + $0x60] sm:$0xf] }
 0x2a4   : > { %v8205_v36 = vcombine.low %v5992_v57, %v6002_v10  ;;  %v4323_v52 = vshrl.u32 %v8281_v9, 16  ;;  %12726 = vst [vmem:[#allocation12_spill] sm:$0xff] %v11466_v21  ;;  %v4326_v48 = vshll.u32 %v8281_v9, 16  ;;  %v4030_v32 = vmax.f32 %v3972_v4, 0.0  ;;  %12727 = vst [vmem:[#allocation13_spill] sm:$0xff] %v11471_v5 }
 0x2a5   : > { %v4306_v38 = vshrl.u32 %v8279_v61, 16  ;;  %v5419_v58 = vshrl.u32 %v11457_v43, 16  ;;  %v4309_v50 = vshll.u32 %v8279_v61, 16  ;;  %v11475_v57 = vrot.slane %v6007_v30, 5  ;;  %v4535_v31 = vld [vmem:[#allocation3 + $0x90] sm:$0xf] }
 0x2a6   : > { %7031 = vrot.lane.b32.xlu0 %v8205_v36, %s8662_s17  ;;  %v4325_v54 = vrot.slane %v4323_v52, 7  ;;  %v8282_v9 = vpack.c.bf16 %v4030_v32, %v4030_v32  ;;  %v446_v10 = vsel %vm10464_vm2, 0, %v445_v44  ;;  %v8143_v30 = vcombine.low %v11457_v43, %v11468_v46  ;;  %v11489_v36 = vpop.permute.xlu1 %6941 }
 0x2a7   : > { %6777 = vrot.lane.b32.xlu1 %v8158_v34, %s8656_s15  ;;  %12728 = vst [vmem:[#allocation14_spill] sm:$0xff] %v11475_v57  ;;  %v11478_v11 = vrot.slane %v4306_v38, 7  ;;  %v4528_v34 = vld [vmem:[#allocation3 + $0x84] sm:$0xf]  ;;  %v11483_v5 = vrot.slane %v5419_v58, 4  ;;  %v3964_v61 = vadd.f32 %v11098_v59, %v11415_v23  ;;  %12729 = vst [vmem:[#allocation15_spill] sm:$0xff] %v11489_v36 }
 0x2a8   : > { %v4328_v22 = vor.u32 %v4326_v48, %v4325_v54  ;;  %447 = vst [vmem:[#allocation3 + $0x8c] sm:$0x1] %v446_v10  ;;  %v4329_v38 = vrot.slane %v4325_v54, 4  ;;  %v4331_v52 = vshrl.u32 %v8282_v9, 16  ;;  %v4334_v4 = vshll.u32 %v8282_v9, 16  ;;  %v11500_v9 = vpop.permute.xlu0 %6763 }
 0x2a9   : > { %v4311_v32 = vor.u32 %v4309_v50, %v11478_v11  ;;  %v4028_v44 = vmax.f32 %v3964_v61, 0.0  ;;  %v4811_v58 = vshrl.u32 %v4586_v24, 16  ;;  %v4814_v10 = vshll.u32 %v4586_v24, 16 }
 0x2aa   : > { %v4536_v48 = vsel %vm10563_vm3, %v4328_v22, %v4535_v31  ;;  %6699 = vrot.lane.b32.xlu0 %v8143_v30, %s8653_s12  ;;  %v4333_v23 = vrot.slane %v4331_v52, 7  ;;  %v4820_v54 = vshll.u32 %v11304_v14, 16  ;;  %v4824_v50 = vshrl.u32 %v11304_v14, 16  ;;  %v4539_v22 = vld [vmem:[#allocation3 + $0x98] sm:$0x1]  ;;  %v11504_v21 = vpop.permute.xlu1 %6511 }
 0x2ab   : > { %6953 = vrot.lane.b32.xlu1 %v8190_v27, %s8659_s11  ;;  %4537 = vst [vmem:[#allocation3 + $0x90] sm:$0xf] %v4536_v48  ;;  %v4529_v59 = vsel %vm10563_vm3, %v4311_v32, %v4528_v34  ;;  %v8280_v31 = vpack.c.bf16 %v4028_v44, %v4028_v44  ;;  %v4813_v27 = vrot.slane %v4811_v58, 4  ;;  %v4816_v3 = vrot.slane %v4814_v10, 5 }
 0x2ac   : > { %4530 = vst [vmem:[#allocation3 + $0x84] sm:$0xf] %v4529_v59  ;;  %v4830_v30 = vshll.u32 %v11313_v20, 16  ;;  %v4336_v61 = vor.u32 %v4334_v4, %v4333_v23  ;;  %v4338_v24 = vrot.slane %v4333_v23, 4  ;;  %v4822_v48 = vrot.slane %v4820_v54, 5 }
 0x2ad   : > { %v4826_v36 = vrot.slane %v4824_v50, 4  ;;  %v4312_v34 = vrot.slane %v11478_v11, 4  ;;  %v4314_v32 = vshrl.u32 %v8280_v31, 16  ;;  %v4317_v52 = vshll.u32 %v8280_v31, 16 }
 0x2ae   : > { %v4817_v57 = vor.u32 %v4816_v3, %v4813_v27  ;;  %v4337_v14 = vsel %vm8816_vm12, %v4329_v38, %v4336_v61  ;;  %v4540_v44 = vsel %vm10453_vm6, %v4338_v24, %v4539_v22  ;;  %v5377_v20 = vor.u32 %v11325_v16, %v11321_v53  ;;  %v11519_v22 = vpop.permute.xlu0 %7103  ;;  %v6227_v24 = vld [vmem:[#allocation3 + $0x78] sm:$0xe] }
 0x2af   : > { %v4827_v58 = vor.u32 %v4826_v36, %v4822_v48  ;;  %4538 = vst.msk [vmem:[#allocation3 + $0x94] sm:$0xf] %vm12730_vm1, %v4337_v14  ;;  %4541 = vst [vmem:[#allocation3 + $0x98] sm:$0x1] %v4540_v44  ;;  %v4316_v4 = vrot.slane %v4314_v32, 7  ;;  %v4832_v10 = vrot.slane %v4830_v30, 5  ;;  %v5962_v36 = vor.u32 %v11246_v55, %v11244_v8  ;;  %v11532_v44 = vpop.permute.xlu1 %6509 }
 0x2b0   : > { %v4818_v11 = vrot.slane %v4817_v57, 4  ;;  %v5380_v3 = vshll.u32 %v11241_v26, 16  ;;  %v4532_v59 = vld [vmem:[#allocation3 + $0x8c] sm:$0x1]  ;;  %v12731_v54 = vshrl.u32 %v11241_v26, 16  ;;  %v5390_v50 = vshll.u32 %v11369_v0, 16 }
 0x2b1   : > { %v4828_v23 = vrot.slane %v4827_v58, 4  ;;  %v4319_v53 = vor.u32 %v4317_v52, %v4316_v4  ;;  %v4321_v16 = vrot.slane %v4316_v4, 4  ;;  %v5378_v31 = vrot.slane %v5377_v20, 4  ;;  %v4584_v0 = vld [vmem:[#allocation3 + $0x54] sm:$0xf] }
 0x2b2   : > { %v5386_v38 = vrot.slane %v12731_v54, 4  ;;  %v5382_v27 = vrot.slane %v5380_v3, 5  ;;  %v4823_v57 = vsel %vm8891_vm15, %v4818_v11, %v4822_v48  ;;  %v5963_v61 = vrot.slane %v5962_v36, 4  ;;  %v11530_v14 = vld [vmem:[#allocation3 + $0x80] sm:$0x1] }
 0x2b3   : > { %v4833_v30 = vsel %vm8891_vm15, %v4828_v23, %v4832_v10  ;;  %v5965_v26 = vshll.u32 %v11213_v18, 16  ;;  %v4320_v8 = vsel %vm8816_vm12, %v4312_v34, %v4319_v53  ;;  %v4533_v55 = vsel %vm10453_vm6, %v4321_v16, %v4532_v59 }
 0x2b4   : > { %v8111_v32 = vcombine.low %v4823_v57, %v4833_v30  ;;  %v5392_v52 = vrot.slane %v5390_v50, 5  ;;  %4531 = vst.msk [vmem:[#allocation3 + $0x88] sm:$0xf] %vm12732_vm11, %v4320_v8  ;;  %4534 = vst [vmem:[#allocation3 + $0x8c] sm:$0x1] %v4533_v55  ;;  %v5387_v48 = vor.u32 %v5386_v38, %v5382_v27  ;;  %v12733_v20 = vshrl.u32 %v11213_v18, 16  ;;  %v11545_v18 = vpop.permute.xlu0 %6595 }
 0x2b5   : > { %v5967_v58 = vrot.slane %v5965_v26, 5  ;;  %v5975_v11 = vshll.u32 %v11335_v28, 16  ;;  %v5383_v34 = vsel %vm8891_vm15, %v5378_v31, %v5382_v27  ;;  %v8079_v10 = vrot.slane %v6227_v24, 9  ;;  %v11551_v26 = vld [vmem:[#allocation3 + $0x7c] sm:$0xf] }
 0x2b6   : > { %v5971_v4 = vrot.slane %v12733_v20, 4  ;;  %6523 = vrot.lane.b32.xlu1 %v8111_v32, %s8651_s10  ;;  %v6341_v3 = vrot.slane %v11399_v33, 5  ;;  %v4787_v59 = vshrl.u32 %v4584_v0, 16  ;;  %v5388_v23 = vrot.slane %v5387_v48, 4  ;;  %v11556_v32 = vld [vmem:[#allocation3 + $0x80] sm:$0x1]  ;;  %v11558_v48 = vpop.permute.xlu1 %6849 }
 0x2b7   : > { %v5968_v54 = vsel %vm8891_vm15, %v5963_v61, %v5967_v58  ;;  %v6344_v50 = vrot.slane %v11530_v14, 5  ;;  %v5977_v36 = vrot.slane %v5975_v11, 5  ;;  %v4790_v16 = vshll.u32 %v4584_v0, 16  ;;  %v5012_v0 = vld [vmem:[#allocation3 + $0x78] sm:$0xe]  ;;  %12734 = vst [vmem:[#allocation16_spill] sm:$0xff] %v11558_v48 }
 0x2b8   : > { %v5972_v38 = vor.u32 %v5971_v4, %v5967_v58  ;;  %v6343_v28 = vrot.slane %v6341_v3, 4  ;;  %v4789_v53 = vrot.slane %v4787_v59, 4  ;;  %v5393_v31 = vsel %vm8891_vm15, %v5388_v23, %v5392_v52  ;;  %v11564_v4 = vld [vmem:[#allocation3 + $0x80] sm:$0x1]  ;;  %v5619_v11 = vld [vmem:[#allocation3 + $0x78] sm:$0xe] }
 0x2b9   : > { %v4796_v57 = vshll.u32 %v11340_v41, 16  ;;  %v4800_v30 = vshrl.u32 %v11340_v41, 16  ;;  %v8157_v61 = vcombine.low %v5383_v34, %v5393_v31  ;;  %v4792_v8 = vrot.slane %v4790_v16, 5  ;;  %v11569_v31 = vpop.permute.xlu0 %7101 }
 0x2ba   : > { %v5973_v27 = vrot.slane %v5972_v38, 4  ;;  %v6345_v24 = vsel %vm8804_vm10, %v6343_v28, %v6344_v50  ;;  %v4806_v55 = vshll.u32 %v11358_v12, 16  ;;  %v6342_v41 = vsel %vm8804_vm10, %v8079_v10, %v6341_v3  ;;  %v6226_v38 = vld [vmem:[#allocation3 + $0x6c] sm:$0xe] }
 0x2bb   : > { %v4798_v58 = vrot.slane %v4796_v57, 5  ;;  %v4802_v20 = vrot.slane %v4800_v30, 4  ;;  %6775 = vrot.lane.b32.xlu0 %v8157_v61, %s8656_s15  ;;  %v8223_v12 = vcombine.low %v6342_v41, %v6345_v24  ;;  %v4793_v59 = vor.u32 %v4792_v8, %v4789_v53  ;;  %v11574_v57 = vld [vmem:[#allocation3 + $0x74] sm:$0x1]  ;;  %v11584_v41 = vld [vmem:[#allocation3 + $0x70] sm:$0xf] }
 0x2bc   : > { %v5978_v52 = vsel %vm8891_vm15, %v5973_v27, %v5977_v36  ;;  %v4808_v23 = vrot.slane %v4806_v55, 5  ;;  %v8049_v28 = vrot.slane %v5012_v0, 9  ;;  %v5138_v16 = vrot.slane %v11551_v26, 5 }
 0x2bd   : > { %v8204_v34 = vcombine.low %v5968_v54, %v5978_v52  ;;  %v4803_v50 = vor.u32 %v4802_v20, %v4798_v58  ;;  %v5141_v36 = vrot.slane %v11556_v32, 5  ;;  %v4794_v10 = vrot.slane %v4793_v59, 4  ;;  %v5011_v20 = vld [vmem:[#allocation3 + $0x6c] sm:$0xe]  ;;  %v11604_v48 = vpop.permute.xlu0 %6847 }
 0x2be   : > { %v8064_v3 = vrot.slane %v5619_v11, 9  ;;  %v5739_v27 = vrot.slane %v11377_v2, 5  ;;  %v5742_v54 = vrot.slane %v11564_v4, 5  ;;  %v5140_v30 = vrot.slane %v5138_v16, 4  ;;  %v11586_v11 = vpop.permute.xlu1 %6593 }
 0x2bf   : > { %7029 = vrot.lane.b32.xlu1 %v8204_v34, %s8662_s17  ;;  %v4804_v53 = vrot.slane %v4803_v50, 4  ;;  %v8078_v61 = vrot.slane %v6226_v38, 9  ;;  %v6334_v24 = vrot.slane %v11447_v15, 5  ;;  %7115 = vrot.lane.b32.xlu0 %v8223_v12, %s8661_s14  ;;  %v4799_v8 = vsel %vm8891_vm15, %v4794_v10, %v4798_v58  ;;  %12735 = vst [vmem:[#allocation17_spill] sm:$0xff] %v11586_v11  ;;  %v11593_v38 = vld [vmem:[#allocation3 + $0x74] sm:$0x1] }
 0x2c0   : > { %v5139_v55 = vsel %vm8804_vm10, %v8049_v28, %v5138_v16  ;;  %v5740_v0 = vsel %vm8804_vm10, %v8064_v3, %v5739_v27  ;;  %v5741_v52 = vrot.slane %v5739_v27, 4  ;;  %v5142_v12 = vsel %vm8804_vm10, %v5140_v30, %v5141_v36  ;;  %v5618_v50 = vld [vmem:[#allocation3 + $0x6c] sm:$0xe]  ;;  %v11599_v27 = vld [vmem:[#allocation3 + $0x74] sm:$0x1] }
 0x2c1   : > { %v4809_v34 = vsel %vm8891_vm15, %v4804_v53, %v4808_v23  ;;  %v6336_v59 = vrot.slane %v6334_v24, 4  ;;  %v6337_v58 = vrot.slane %v11574_v57, 5  ;;  %v8129_v16 = vcombine.low %v5139_v55, %v5142_v12 }
 0x2c2   : > { %v8110_v28 = vcombine.low %v4799_v8, %v4809_v34  ;;  %v5743_v10 = vsel %vm8804_vm10, %v5741_v52, %v5742_v54  ;;  %v6335_v3 = vsel %vm8804_vm10, %v8078_v61, %v6334_v24  ;;  %v8048_v53 = vrot.slane %v5011_v20, 9  ;;  %v5200_v24 = vld [vmem:[#allocation3 + $0x90] sm:$0xf] }
 0x2c3   : > { %v8176_v23 = vcombine.low %v5740_v0, %v5743_v10  ;;  %v6338_v36 = vsel %vm8804_vm10, %v6336_v59, %v6337_v58  ;;  %v5131_v30 = vrot.slane %v11584_v41, 5  ;;  %6607 = vrot.lane.b32.xlu0 %v8129_v16, %s8657_s16  ;;  %v5134_v54 = vrot.slane %v11593_v38, 5  ;;  %v11610_v0 = vpop.permute.xlu1 %6693  ;;  %v11625_v16 = vld [vmem:[#allocation3 + $0x94] sm:$0xf]  ;;  %v5807_v10 = vld [vmem:[#allocation3 + $0x90] sm:$0xf] }
 0x2c4   : > { %6521 = vrot.lane.b32.xlu1 %v8110_v28, %s8651_s10  ;;  %v8222_v8 = vcombine.low %v6335_v3, %v6338_v36  ;;  %v8063_v55 = vrot.slane %v5618_v50, 9  ;;  %v5732_v61 = vrot.slane %v11468_v46, 5  ;;  %12736 = vst [vmem:[#allocation18_spill] sm:$0xff] %v11610_v0  ;;  %v5735_v20 = vrot.slane %v11599_v27, 5 }
 0x2c5   : > { %v5133_v52 = vrot.slane %v5131_v30, 4  ;;  %v12737_v34 = vcombine.low %v10714_v42, %v10648_v19  ;;  %vm7275_vm0 = vcmask 326656   ;;  %v5132_v59 = vsel %vm8804_vm10, %v8048_v53, %v5131_v30 }
 0x2c6   : > { %v5733_v58 = vsel %vm8804_vm10, %v8063_v55, %v5732_v61  ;;  %v5734_v50 = vrot.slane %v5732_v61, 4  ;;  %v7244_v28 = vsel %vm3749_vm14, %v11366_v25, %v11500_v9  ;;  %v5494_v3 = vshll.u32 %v5200_v24, 16 }
 0x2c7   : > { %v7139_v12 = vsel %vm3551_vm7, %v12737_v34, %v11504_v21  ;;  %v5135_v19 = vsel %vm8804_vm10, %v5133_v52, %v5134_v54  ;;  %v5491_v21 = vshrl.u32 %v5200_v24, 16  ;;  %v8364_v36 = vpop.f32.mrb[24].mxu0  ;;  %v12738_v53 = vshll.u32 %v11457_v43, 16  ;;  %7113 = vrot.lane.b32.xlu0 %v8222_v8, %s8661_s14 }
 0x2c8   : > { %v11631_v42 = vsel %vm3617_vm9, %v7139_v12, %v11342_v56  ;;  %6861 = vrot.lane.b32.xlu1 %v8176_v23, %s8660_s13  ;;  %v8128_v25 = vcombine.low %v5132_v59, %v5135_v19  ;;  %v5736_v9 = vsel %vm8804_vm10, %v5734_v50, %v5735_v20  ;;  %v7277_v54 = vsel %vm7275_vm0, %v7244_v28, %v11379_v13  ;;  %v11643_v56 = vld [vmem:[#allocation3 + $0x94] sm:$0xf]  ;;  %v3976_v55 = vpop.f32.mrb[25].mxu0  ;;  %v11649_v23 = vpop.permute.xlu0 %6947 }
 0x2c9   : > { %v11635_v30 = vrot.slane %v12738_v53, 5  ;;  %v8175_v61 = vcombine.low %v5733_v58, %v5736_v9  ;;  %v8146_v52 = vcombine.low %v5200_v24, %v11625_v16  ;;  %v6076_v34 = vshrl.u32 %v5807_v10, 16  ;;  %v11647_v12 = vpop.f32.mrb[26].mxu0  ;;  %12739 = vst [vmem:[#allocation19_spill] sm:$0xff] %v11649_v23  ;;  %v11662_v24 = vpop.permute.xlu1 %6769 }
 0x2ca   : > { %v11651_v8 = vrot.slane %v5491_v21, 4  ;;  %v11653_v59 = vrot.slane %v5494_v3, 5  ;;  %v6079_v20 = vshll.u32 %v5807_v10, 16  ;;  %v12740_v13 = vcombine.low %v10778_v60, %v10636_v49  ;;  %v11660_v50 = vpop.f32.mrb[27].mxu0  ;;  %12741 = vst [vmem:[#allocation20_spill] sm:$0xff] %v11662_v24 }
 0x2cb   : > { %v8193_v19 = vcombine.low %v5807_v10, %v11643_v56  ;;  %v5449_v21 = vor.u32 %v11403_v6, %v11401_v62  ;;  %v5452_v3 = vshll.u32 %v11377_v2, 16  ;;  %6859 = vrot.lane.b32.xlu0 %v8175_v61, %s8660_s13  ;;  %v11671_v49 = vrot.slane %v6076_v34, 4 }
 0x2cc   : > { %v7136_v58 = vsel %vm3551_vm7, %v12740_v13, %v11532_v44  ;;  %6605 = vrot.lane.b32.xlu1 %v8128_v25, %s8657_s16  ;;  %v12742_v44 = vshrl.u32 %v11377_v2, 16  ;;  %v5462_v9 = vshll.u32 %v11564_v4, 16  ;;  %v6034_v62 = vor.u32 %v11432_v40, %v11405_v51  ;;  %v396_v40 = vld [vmem:[#allocation3 + $0x9c] sm:$0x1] }
 0x2cd   : > { %v7182_v60 = vsel %vm3617_vm9, %v7136_v58, %v11394_v35  ;;  %v5450_v10 = vrot.slane %v5449_v21, 4  ;;  %v5454_v13 = vrot.slane %v5452_v3, 5  ;;  %v6037_v6 = vshll.u32 %v11399_v33, 16  ;;  %v399_v21 = vld [vmem:[#allocation3 + $0xa8] sm:$0x1]  ;;  %v11688_v3 = vpop.permute.xlu0 %7023 }
 0x2ce   : > { %v5458_v53 = vrot.slane %v12742_v44, 4  ;;  %v11681_v25 = vrot.slane %v6079_v20, 5  ;;  %v12743_v61 = vshrl.u32 %v11399_v33, 16  ;;  %v6047_v43 = vshll.u32 %v11530_v14, 16  ;;  %v11694_v14 = vpop.permute.xlu1 %6945 }
 0x2cf   : > { %vm7308_vm8 = vcmask 392192   ;;  %v5455_v35 = vsel %vm8891_vm15, %v5450_v10, %v5454_v13  ;;  %v5464_v4 = vrot.slane %v5462_v9, 5  ;;  %v6039_v58 = vrot.slane %v6037_v6, 5  ;;  %6959 = vrot.lane.b32.xlu0 %v8193_v19, %s8659_s11  ;;  %12744 = vst [vmem:[#allocation21_spill] sm:$0xff] %v11694_v14  ;;  %v11708_v10 = vld [vmem:[#allocation3 + $0x84] sm:$0xf] }
 0x2d0   : > { %v6043_v34 = vrot.slane %v12743_v61, 4  ;;  %v5459_v2 = vor.u32 %v5458_v53, %v5454_v13  ;;  %6705 = vrot.lane.b32.xlu1 %v8146_v52, %s8653_s12  ;;  %v6035_v51 = vrot.slane %v6034_v62, 4  ;;  %v7310_v33 = vsel %vm7308_vm8, %v7277_v54, %v11265_v7  ;;  %v11705_v7 = vld [vmem:[%s12660_s3] ss:$0 sm:$0xff]  ;;  %v454_v6 = vld [vmem:[#allocation3 + $0xb0] sm:$0x1] }
 0x2d1   : > { %vm7341_vm13 = vcmask 457728   ;;  %vm7374_vm5 = vcmask 523264   ;;  %v6049_v53 = vrot.slane %v6047_v43, 5  ;;  %vm7450_vm1 = vcmask 588800   ;;  %v11710_v43 = vld [vmem:[#allocation3 + $0x88] sm:$0xf] }
 0x2d2   : > { %v5460_v20 = vrot.slane %v5459_v2, 4  ;;  %v6044_v44 = vor.u32 %v6043_v34, %v6039_v58  ;;  %v7343_v9 = vsel %vm7341_vm13, %v7310_v33, %v11443_v45  ;;  %v400_v19 = vsel %vm10453_vm6, 0, %v399_v21  ;;  %v12745_v61 = vld [vmem:[#allocation8_spill] sm:$0xff] }
 0x2d3   : > { %v7376_v52 = vsel %vm7374_vm5, %v7343_v9, %v11306_v37  ;;  %v3985_v54 = vadd.f32 %v11705_v7, %v8364_v36  ;;  %401 = vst [vmem:[#allocation3 + $0xa8] sm:$0x1] %v400_v19  ;;  %v397_v37 = vsel %vm10453_vm6, 0, %v396_v40  ;;  %v3977_v62 = vadd.f32 %v11705_v7, %v3976_v55  ;;  %v11737_v9 = vpop.permute.xlu1 %6515 }
 0x2d4   : > { %v5465_v45 = vsel %vm8891_vm15, %v5460_v20, %v5464_v4  ;;  %v6045_v13 = vrot.slane %v6044_v44, 4  ;;  %8380 = vmatprep.mubr.msk.bf16.mxu1 %vm7450_vm1, %v7376_v52  ;;  %v11720_v36 = vsel %vm3683_vm4, %v7182_v60, %v12745_v61  ;;  %v6040_v2 = vsel %vm8891_vm15, %v6035_v51, %v6039_v58  ;;  %398 = vst [vmem:[#allocation3 + $0x9c] sm:$0x1] %v397_v37  ;;  %v11724_v4 = vld [vmem:[#allocation3 + $0x84] sm:$0xf]  ;;  %v11730_v44 = vpop.permute.xlu0 %6691 }
 0x2d5   : > { %v8160_v34 = vcombine.low %v5455_v35, %v5465_v45  ;;  %v4033_v21 = vmax.f32 %v3985_v54, 0.0  ;;  %v4031_v20 = vmax.f32 %v3977_v62, 0.0  ;;  %v6052_v55 = vshrl.u32 %v11708_v10, 16  ;;  %12746 = vst [vmem:[#allocation8_spill] sm:$0xff] %v11730_v44  ;;  %v11742_v54 = vld [vmem:[#allocation3 + $0x88] sm:$0xf] }
 0x2d6   : > { %v6050_v33 = vsel %vm8891_vm15, %v6045_v13, %v6049_v53  ;;  %v455_v58 = vsel %vm10464_vm2, 0, %v454_v6  ;;  %v3988_v51 = vadd.f32 %v11705_v7, %v11647_v12  ;;  %v8192_v52 = vcombine.low %v11708_v10, %v11710_v43  ;;  %v451_v13 = vld [vmem:[#allocation3 + $0xa4] sm:$0x1]  ;;  %v4590_v61 = vld [vmem:[#allocation3 + $0x78] sm:$0xf] }
 0x2d7   : > { %6781 = vrot.lane.b32.xlu1 %v8160_v34, %s8656_s15  ;;  %v8207_v60 = vcombine.low %v6040_v2, %v6050_v33  ;;  %v8285_v35 = vpack.c.bf16 %v4033_v21, %v4033_v21  ;;  %v8283_v53 = vpack.c.bf16 %v4031_v20, %v4031_v20  ;;  %456 = vst [vmem:[#allocation3 + $0xb0] sm:$0x1] %v455_v58  ;;  %v5467_v45 = vshrl.u32 %v11724_v4, 16  ;;  %v11764_v33 = vpop.permute.xlu1 %7021 }
 0x2d8   : > { %v11746_v6 = vrot.slane %v6052_v55, 4  ;;  %v4034_v12 = vmax.f32 %v3988_v51, 0.0  ;;  %v452_v51 = vsel %vm10464_vm2, 0, %v451_v13  ;;  %v11761_v19 = vpop.permute.xlu0 %6767  ;;  %v4872_v23 = vshrl.u32 %v11551_v26, 16 }
 0x2d9   : > { %7035 = vrot.lane.b32.xlu0 %v8207_v60, %s8662_s17  ;;  %v4357_v37 = vshrl.u32 %v8285_v35, 16  ;;  %v4360_v62 = vshll.u32 %v8285_v35, 16  ;;  %v4340_v34 = vshrl.u32 %v8283_v53, 16  ;;  %v4343_v2 = vshll.u32 %v8283_v53, 16  ;;  %453 = vst [vmem:[#allocation3 + $0xa4] sm:$0x1] %v452_v51 }
 0x2da   : > { %v11748_v21 = vrot.slane %v5467_v45, 4  ;;  %v8286_v58 = vpack.c.bf16 %v4034_v12, %v4034_v12  ;;  %v8145_v60 = vcombine.low %v11724_v4, %v11742_v54  ;;  %v4549_v35 = vld [vmem:[#allocation3 + $0xa8] sm:$0xf]  ;;  %v3980_v53 = vadd.f32 %v11705_v7, %v11660_v50 }
 0x2db   : > { %v4359_v20 = vrot.slane %v4357_v37, 7  ;;  %6957 = vrot.lane.b32.xlu1 %v8192_v52, %s8659_s11  ;;  %v11755_v55 = vrot.slane %v4340_v34, 7  ;;  %v4859_v45 = vshrl.u32 %v4590_v61, 16  ;;  %v4542_v12 = vld [vmem:[#allocation3 + $0x9c] sm:$0xf] }
 0x2dc   : > { %v4365_v28 = vshrl.u32 %v8286_v58, 16  ;;  %v4368_v40 = vshll.u32 %v8286_v58, 16  ;;  %v4032_v0 = vmax.f32 %v3980_v53, 0.0  ;;  %v11775_v11 = vpop.permute.xlu0 %7107 }
 0x2dd   : > { %v4362_v37 = vor.u32 %v4360_v62, %v4359_v20  ;;  %v4363_v52 = vrot.slane %v4359_v20, 4  ;;  %6703 = vrot.lane.b32.xlu0 %v8145_v60, %s8653_s12  ;;  %v4345_v34 = vor.u32 %v4343_v2, %v11755_v55  ;;  %v4346_v13 = vrot.slane %v11755_v55, 4 }
 0x2de   : > { %v4861_v14 = vrot.slane %v4859_v45, 4  ;;  %v4367_v24 = vrot.slane %v4365_v28, 7  ;;  %v4862_v62 = vshll.u32 %v4590_v61, 16  ;;  %v4868_v20 = vshll.u32 %v11551_v26, 16  ;;  %v4553_v60 = vld [vmem:[#allocation3 + $0xb0] sm:$0x1] }
 0x2df   : > { %v4550_v50 = vsel %vm10563_vm3, %v4362_v37, %v4549_v35  ;;  %v4543_v58 = vsel %vm10563_vm3, %v4345_v34, %v4542_v12  ;;  %v8284_v51 = vpack.c.bf16 %v4032_v0, %v4032_v0  ;;  %v4878_v2 = vshll.u32 %v11556_v32, 16 }
 0x2e0   : > { %4551 = vst [vmem:[#allocation3 + $0xa8] sm:$0xf] %v4550_v50  ;;  %4544 = vst [vmem:[#allocation3 + $0x9c] sm:$0xf] %v4543_v58  ;;  %v4370_v55 = vor.u32 %v4368_v40, %v4367_v24  ;;  %v4372_v53 = vrot.slane %v4367_v24, 4  ;;  %v4864_v45 = vrot.slane %v4862_v62, 5  ;;  %v5425_v32 = vor.u32 %v11635_v30, %v11483_v5  ;;  %v11783_v40 = vpop.permute.xlu1 %6513 }
 0x2e1   : > { %v4870_v44 = vrot.slane %v4868_v20, 5  ;;  %v4348_v35 = vshrl.u32 %v8284_v51, 16  ;;  %v4351_v28 = vshll.u32 %v8284_v51, 16  ;;  %v4874_v61 = vrot.slane %v4872_v23, 4  ;;  %v12749_v51 = vld [vmem:[#allocation14_spill] sm:$0xff] }
 0x2e2   : > { %v4880_v37 = vrot.slane %v4878_v2, 5  ;;  %v4371_v12 = vsel %vm8816_vm12, %v4363_v52, %v4370_v55  ;;  %v4554_v0 = vsel %vm10453_vm6, %v4372_v53, %v4553_v60  ;;  %v4865_v26 = vor.u32 %v4864_v45, %v4861_v14  ;;  %v4546_v52 = vld [vmem:[#allocation3 + $0xa4] sm:$0x1] }
 0x2e3   : > { %4552 = vst.msk [vmem:[#allocation3 + $0xac] sm:$0xf] %vm12732_vm11, %v4371_v12  ;;  %4555 = vst [vmem:[#allocation3 + $0xb0] sm:$0x1] %v4554_v0  ;;  %v4350_v24 = vrot.slane %v4348_v35, 7  ;;  %v4875_v23 = vor.u32 %v4874_v61, %v4870_v44  ;;  %v5428_v34 = vshll.u32 %v11468_v46, 16 }
 0x2e4   : > { %v12747_v50 = vshrl.u32 %v11468_v46, 16  ;;  %v4866_v20 = vrot.slane %v4865_v26, 4  ;;  %v5426_v58 = vrot.slane %v5425_v32, 4  ;;  %v5438_v14 = vshll.u32 %v11599_v27, 16  ;;  %v12748_v60 = vld [vmem:[#allocation12_spill] sm:$0xff] }
 0x2e5   : > { %v6010_v5 = vor.u32 %v12749_v51, %v12748_v60  ;;  %v4353_v30 = vor.u32 %v4351_v28, %v4350_v24  ;;  %v4355_v2 = vrot.slane %v4350_v24, 4  ;;  %v4876_v55 = vrot.slane %v4875_v23, 4  ;;  %v6228_v0 = vld [vmem:[#allocation3 + $0x84] sm:$0xe]  ;;  %v4588_v24 = vld [vmem:[#allocation3 + $0x6c] sm:$0xf]  ;;  %v11807_v23 = vpop.permute.xlu0 %6599 }
 0x2e6   : > { %v5434_v62 = vrot.slane %v12747_v50, 4  ;;  %v5430_v53 = vrot.slane %v5428_v34, 5  ;;  %v12750_v45 = vshll.u32 %v11724_v4, 16  ;;  %v4871_v46 = vsel %vm8891_vm15, %v4866_v20, %v4870_v44  ;;  %v11805_v4 = vld [vmem:[#allocation3 + $0x8c] sm:$0x1] }
 0x2e7   : > { %v5440_v61 = vrot.slane %v5438_v14, 5  ;;  %v6013_v12 = vshll.u32 %v11447_v15, 16  ;;  %v4354_v27 = vsel %vm8816_vm12, %v4346_v13, %v4353_v30  ;;  %v4547_v28 = vsel %vm10453_vm6, %v4355_v2, %v4546_v52  ;;  %v11812_v14 = vpop.permute.xlu1 %6853 }
 0x2e8   : > { %v11794_v35 = vrot.slane %v12750_v45, 5  ;;  %v4881_v26 = vsel %vm8891_vm15, %v4876_v55, %v4880_v37  ;;  %v6011_v32 = vrot.slane %v6010_v5, 4  ;;  %4545 = vst.msk [vmem:[#allocation3 + $0xa0] sm:$0xf] %vm12732_vm11, %v4354_v27  ;;  %4548 = vst [vmem:[#allocation3 + $0xa4] sm:$0x1] %v4547_v28  ;;  %v5435_v34 = vor.u32 %v5434_v62, %v5430_v53 }
 0x2e9   : > { %v8113_v44 = vcombine.low %v4871_v46, %v4881_v26  ;;  %v6015_v50 = vrot.slane %v6013_v12, 5  ;;  %v12751_v13 = vshrl.u32 %v11447_v15, 16  ;;  %12752 = vst [vmem:[#allocation12_spill] sm:$0xff] %v11812_v14  ;;  %v5431_v37 = vsel %vm8891_vm15, %v5426_v58, %v5430_v53 }
 0x2ea   : > { %v6023_v52 = vshll.u32 %v11574_v57, 16  ;;  %v8080_v60 = vrot.slane %v6228_v0, 9  ;;  %v6348_v51 = vrot.slane %v11710_v43, 5  ;;  %v5436_v5 = vrot.slane %v5435_v34, 4  ;;  %v11830_v34 = vpop.permute.xlu0 %7105 }
 0x2eb   : > { %v6019_v20 = vrot.slane %v12751_v13, 4  ;;  %6527 = vrot.lane.b32.xlu1 %v8113_v44, %s8651_s10  ;;  %v6351_v62 = vrot.slane %v11805_v4, 5  ;;  %v4835_v2 = vshrl.u32 %v4588_v24, 16  ;;  %v6016_v15 = vsel %vm8891_vm15, %v6011_v32, %v6015_v50  ;;  %v11828_v44 = vld [vmem:[#allocation3 + $0x8c] sm:$0x1] }
 0x2ec   : > { %v6025_v55 = vrot.slane %v6023_v52, 5  ;;  %v6350_v45 = vrot.slane %v6348_v51, 4  ;;  %v4838_v46 = vshll.u32 %v4588_v24, 16  ;;  %v5441_v58 = vsel %vm8891_vm15, %v5436_v5, %v5440_v61  ;;  %v5620_v32 = vld [vmem:[#allocation3 + $0x84] sm:$0xe] }
 0x2ed   : > { %v6020_v30 = vor.u32 %v6019_v20, %v6015_v50  ;;  %v4837_v53 = vrot.slane %v4835_v2, 4  ;;  %v4844_v12 = vshll.u32 %v11584_v41, 16  ;;  %v8159_v0 = vcombine.low %v5431_v37, %v5441_v58  ;;  %v5621_v20 = vld [vmem:[#allocation3 + $0x90] sm:$0xe]  ;;  %v11837_v37 = vpop.permute.xlu1 %6597 }
 0x2ee   : > { %v6352_v27 = vsel %vm8804_vm10, %v6350_v45, %v6351_v62  ;;  %v4840_v28 = vrot.slane %v4838_v46, 5  ;;  %v4848_v26 = vshrl.u32 %v11584_v41, 16  ;;  %v6349_v61 = vsel %vm8804_vm10, %v8080_v60, %v6348_v51  ;;  %v11840_v62 = vld [vmem:[#allocation3 + $0x98] sm:$0x1] }
 0x2ef   : > { %v6021_v57 = vrot.slane %v6020_v30, 4  ;;  %v4846_v50 = vrot.slane %v4844_v12, 5  ;;  %v4854_v13 = vshll.u32 %v11593_v38, 16  ;;  %6779 = vrot.lane.b32.xlu0 %v8159_v0, %s8656_s15  ;;  %v8224_v52 = vcombine.low %v6349_v61, %v6352_v27 }
 0x2f0   : > { %v4841_v5 = vor.u32 %v4840_v28, %v4837_v53  ;;  %v4850_v30 = vrot.slane %v4848_v26, 4  ;;  %v8065_v45 = vrot.slane %v5620_v32, 9  ;;  %v5749_v60 = vrot.slane %v11828_v44, 5  ;;  %v11847_v53 = vld [vmem:[#allocation3 + $0x98] sm:$0x1] }
 0x2f1   : > { %v6026_v24 = vsel %vm8891_vm15, %v6021_v57, %v6025_v55  ;;  %v4856_v2 = vrot.slane %v4854_v13, 5  ;;  %v5746_v55 = vrot.slane %v11742_v54, 5  ;;  %v8066_v46 = vrot.slane %v5621_v20, 9 }
 0x2f2   : > { %v8206_v41 = vcombine.low %v6016_v15, %v6026_v24  ;;  %v4842_v38 = vrot.slane %v4841_v5, 4  ;;  %v4851_v51 = vor.u32 %v4850_v30, %v4846_v50  ;;  %v5753_v58 = vrot.slane %v11625_v16, 5  ;;  %v11857_v24 = vpop.permute.xlu0 %6851 }
 0x2f3   : > { %v5748_v57 = vrot.slane %v5746_v55, 4  ;;  %v5756_v15 = vrot.slane %v11840_v62, 5  ;;  %v6082_v12 = vor.u32 %v11681_v25, %v11671_v49  ;;  %v6085_v0 = vshll.u32 %v11643_v56, 16  ;;  %7117 = vrot.lane.b32.xlu0 %v8224_v52, %s8661_s14  ;;  %v11865_v52 = vpop.permute.xlu1 %6697 }
 0x2f4   : > { %7033 = vrot.lane.b32.xlu1 %v8206_v41, %s8662_s17  ;;  %v4847_v27 = vsel %vm8891_vm15, %v4842_v38, %v4846_v50  ;;  %v4852_v28 = vrot.slane %v4851_v51, 4  ;;  %v5747_v26 = vsel %vm8804_vm10, %v8065_v45, %v5746_v55  ;;  %v5755_v32 = vrot.slane %v5753_v58, 4  ;;  %v11863_v41 = vld [vmem:[#allocation3 + $0x88] sm:$0xf]  ;;  %12754 = vst [vmem:[#allocation14_spill] sm:$0xff] %v11865_v52 }
 0x2f5   : > { %v5750_v61 = vsel %vm8804_vm10, %v5748_v57, %v5749_v60  ;;  %v6083_v13 = vrot.slane %v6082_v12, 4  ;;  %v6087_v20 = vrot.slane %v6085_v0, 5  ;;  %v12753_v49 = vshrl.u32 %v11643_v56, 16  ;;  %v11872_v55 = vpop.f32.mrb[28].mxu0  ;;  %v11880_v0 = vld [vmem:[#allocation3 + $0x8c] sm:$0x1] }
 0x2f6   : > { %v4857_v50 = vsel %vm8891_vm15, %v4852_v28, %v4856_v2  ;;  %v8177_v5 = vcombine.low %v5747_v26, %v5750_v61  ;;  %v5757_v30 = vsel %vm8804_vm10, %v5755_v32, %v5756_v15  ;;  %v6095_v45 = vshll.u32 %v11847_v53, 16  ;;  %v5013_v2 = vld [vmem:[#allocation3 + $0x84] sm:$0xe]  ;;  %v11882_v28 = vpop.f32.mrb[29].mxu0 }
 0x2f7   : > { %v6091_v25 = vrot.slane %v12753_v49, 4  ;;  %v12755_v60 = vshll.u32 %v11708_v10, 16  ;;  %v8112_v51 = vcombine.low %v4847_v27, %v4857_v50  ;;  %v5754_v57 = vsel %vm8804_vm10, %v8066_v46, %v5753_v58  ;;  %v11888_v61 = vpop.f32.mrb[30].mxu0 }
 0x2f8   : > { %6863 = vrot.lane.b32.xlu0 %v8177_v5, %s8660_s13  ;;  %v8178_v15 = vcombine.low %v5754_v57, %v5757_v30  ;;  %v6088_v26 = vsel %vm8891_vm15, %v6083_v13, %v6087_v20  ;;  %v6097_v32 = vrot.slane %v6095_v45, 5  ;;  %v5145_v10 = vrot.slane %v11863_v41, 5  ;;  %v11896_v50 = vpop.f32.mrb[31].mxu0  ;;  %v11900_v45 = vpop.permute.xlu0 %6951  ;;  %v8567_v57 = vld [vmem:[#allocation3 + $0x30] sm:$0xf] }
 0x2f9   : > { %v11876_v38 = vrot.slane %v12755_v60, 5  ;;  %v6092_v12 = vor.u32 %v6091_v25, %v6087_v20  ;;  %6525 = vrot.lane.b32.xlu1 %v8112_v51, %s8651_s10  ;;  %v5473_v58 = vor.u32 %v11794_v35, %v11748_v21  ;;  %v5476_v27 = vshll.u32 %v11742_v54, 16  ;;  %v8566_v35 = vld [vmem:[#allocation3 + $0x34] sm:$0xf] }
 0x2fa   : > { %v12756_v49 = vshrl.u32 %v11742_v54, 16  ;;  %v8050_v5 = vrot.slane %v5013_v2, 9  ;;  %v5147_v13 = vrot.slane %v5145_v10, 4  ;;  %v5148_v20 = vrot.slane %v11880_v0, 5  ;;  %v11904_v54 = vpop.permute.xlu1 %6773 }
 0x2fb   : > { %v6093_v46 = vrot.slane %v6092_v12, 4  ;;  %v5486_v30 = vshll.u32 %v11828_v44, 16  ;;  %v5474_v51 = vrot.slane %v5473_v58, 4  ;;  %v5478_v21 = vrot.slane %v5476_v27, 5  ;;  %v12757_v44 = vld [vmem:[#allocation13_spill] sm:$0xff] }
 0x2fc   : > { %v5482_v25 = vrot.slane %v12756_v49, 4  ;;  %v8091_v12 = vcombine.low %v8567_v57, %v8566_v35  ;;  %v5146_v2 = vsel %vm8804_vm10, %v8050_v5, %v5145_v10  ;;  %v5149_v52 = vsel %vm8804_vm10, %v5147_v13, %v5148_v20 }
 0x2fd   : > { %v6098_v60 = vsel %vm8891_vm15, %v6093_v46, %v6097_v32  ;;  %v7216_v14 = vsel %vm3683_vm4, %v11631_v42, %v12757_v44  ;;  %6865 = vrot.lane.b32.xlu1 %v8178_v15, %s8660_s13  ;;  %v8130_v32 = vcombine.low %v5146_v2, %v5149_v52  ;;  %v5488_v58 = vrot.slane %v5486_v30, 5  ;;  %v6229_v15 = vld [vmem:[#allocation3 + $0x90] sm:$0xe]  ;;  %v8528_v52 = vld [vmem:[%s12659_s2 + $0x20] ss:$0 sps:$4 sm:$0xff]  }
 0x2fe   : > { %v8209_v49 = vcombine.low %v6088_v26, %v6098_v60  ;;  %v5483_v46 = vor.u32 %v5482_v25, %v5478_v21  ;;  %v7145_v27 = vsel %vm3551_vm7, %v8091_v12, %v11737_v9  ;;  %v7248_v26 = vsel %vm3749_vm14, %v7216_v14, %v11761_v19  ;;  %v405_v30 = vld [vmem:[#allocation3 + $0xc0] sm:$0x1]  ;;  %v11937_v60 = vpop.permute.xlu0 %7027 }
 0x2ff   : > { %v5497_v10 = vor.u32 %v11653_v59, %v11651_v8  ;;  %v5500_v5 = vshll.u32 %v11625_v16, 16  ;;  %v12758_v42 = vshrl.u32 %v11625_v16, 16  ;;  %v5479_v9 = vsel %vm8891_vm15, %v5474_v51, %v5478_v21  ;;  %v12759_v21 = vld [vmem:[#allocation9_spill] sm:$0xff] }
 0x300   : > { %7039 = vrot.lane.b32.xlu0 %v8209_v49, %s8662_s17  ;;  %v5484_v25 = vrot.slane %v5483_v46, 4  ;;  %v7281_v19 = vsel %vm7275_vm0, %v7248_v26, %v11604_v48  ;;  %v5510_v14 = vshll.u32 %v11840_v62, 16  ;;  %v11934_v8 = vsel %vm3617_vm9, %v7145_v27, %v11545_v18  ;;  %v11946_v18 = vpop.permute.xlu1 %6949  ;;  %v5809_v49 = vld [vmem:[#allocation3 + $0x9c] sm:$0xf] }
 0x301   : > { %v5506_v13 = vrot.slane %v12758_v42, 4  ;;  %v5498_v16 = vrot.slane %v5497_v10, 4  ;;  %v5502_v59 = vrot.slane %v5500_v5, 5  ;;  %v6355_v20 = vrot.slane %v11643_v56, 5  ;;  %6609 = vrot.lane.b32.xlu1 %v8130_v32, %s8657_s16  ;;  %v12760_v32 = vld [vmem:[#allocation11_spill] sm:$0xff] }
 0x302   : > { %v5489_v51 = vsel %vm8891_vm15, %v5484_v25, %v5488_v58  ;;  %v11944_v48 = vsel %vm7308_vm8, %v7281_v19, %v12759_v21  ;;  %v8081_v62 = vrot.slane %v6229_v15, 9  ;;  %vm7483_vm11 = vcmask 1043456   ;;  %v12761_v10 = vld [vmem:[#allocation7_spill] sm:$0xff]  ;;  %v11961_v42 = vld [vmem:[#allocation3 + $0xa0] sm:$0xf] }
 0x303   : > { %v8161_v35 = vcombine.low %v5479_v9, %v5489_v51  ;;  %v5507_v57 = vor.u32 %v5506_v13, %v5502_v59  ;;  %v5512_v12 = vrot.slane %v5510_v14, 5  ;;  %v6358_v56 = vrot.slane %v11847_v53, 5  ;;  %8413 = vmatprep.subr.msk.bf16.mxu1 %vm7483_vm11, %v8528_v52  ;;  %v460_v19 = vld [vmem:[#allocation3 + $0xc8] sm:$0x1]  ;;  %v11973_v51 = vpop.permute.xlu0 %6695 }
 0x304   : > { %v6357_v2 = vrot.slane %v6355_v20, 4  ;;  %v7485_v44 = vsel %vm7483_vm11, %v8528_v52, 0  ;;  %v7246_v46 = vsel %vm3749_vm14, %v11720_v36, %v12760_v32  ;;  %v406_v58 = vsel %vm10453_vm6, 0, %v405_v30  ;;  %v402_v36 = vld [vmem:[#allocation3 + $0xb4] sm:$0x1]  ;;  %v12762_v52 = vld [vmem:[#allocation15_spill] sm:$0xff] }
 0x305   : > { %6783 = vrot.lane.b32.xlu0 %v8161_v35, %s8656_s15  ;;  %v5503_v27 = vsel %vm8891_vm15, %v5498_v16, %v5502_v59  ;;  %v5508_v26 = vrot.slane %v5507_v57, 4  ;;  %8379 = vmatpush3.bf16.msra.mxu1 %v7485_v44  ;;  %v7279_v53 = vsel %vm7275_vm0, %v7246_v46, %v12761_v10  ;;  %407 = vst [vmem:[#allocation3 + $0xc0] sm:$0x1] %v406_v58  ;;  %v6100_v25 = vshrl.u32 %v5809_v49, 16  ;;  %v457_v30 = vld [vmem:[#allocation3 + $0xbc] sm:$0x1]  ;;  %v11978_v57 = vpop.permute.xlu1 %6519 }
 0x306   : > { %v4001_v5 = vadd.f32 %v11705_v7, %v11872_v55  ;;  %v6356_v13 = vsel %vm8804_vm10, %v8081_v62, %v6355_v20  ;;  %v6359_v15 = vsel %vm8804_vm10, %v6357_v2, %v6358_v56  ;;  %v7312_v9 = vsel %vm7308_vm8, %v7279_v53, %v12762_v52  ;;  %v6230_v44 = vld [vmem:[#allocation3 + $0x9c] sm:$0xe] }
 0x307   : > { %v5513_v14 = vsel %vm8891_vm15, %v5508_v26, %v5512_v12  ;;  %v8225_v16 = vcombine.low %v6356_v13, %v6359_v15  ;;  %v7345_v55 = vsel %vm7341_vm13, %v7312_v9, %v11764_v33  ;;  %v6113_v21 = vshrl.u32 %v11961_v42, 16 }
 0x308   : > { %v4037_v59 = vmax.f32 %v4001_v5, 0.0  ;;  %v8162_v20 = vcombine.low %v5503_v27, %v5513_v14  ;;  %v6103_v62 = vshll.u32 %v5809_v49, 16  ;;  %v403_v35 = vsel %vm10453_vm6, 0, %v402_v36  ;;  %v8569_v5 = vld [vmem:[#allocation3 + $0x24] sm:$0xf]  ;;  %v12003_v14 = vpop.permute.xlu0 %6771 }
 0x309   : > { %7119 = vrot.lane.b32.xlu0 %v8225_v16, %s8661_s14  ;;  %404 = vst [vmem:[#allocation3 + $0xb4] sm:$0x1] %v403_v35  ;;  %v3993_v33 = vadd.f32 %v11705_v7, %v11882_v28  ;;  %v461_v56 = vsel %vm10464_vm2, 0, %v460_v19  ;;  %v4004_v2 = vadd.f32 %v11705_v7, %v11888_v61  ;;  %v8194_v32 = vcombine.low %v5809_v49, %v11961_v42  ;;  %v8568_v61 = vld [vmem:[#allocation3 + $0x28] sm:$0xf] }
 0x30a   : > { %v8289_v12 = vpack.c.bf16 %v4037_v59, %v4037_v59  ;;  %6785 = vrot.lane.b32.xlu1 %v8162_v20, %s8656_s15  ;;  %v11989_v46 = vrot.slane %v6100_v25, 4  ;;  %462 = vst [vmem:[#allocation3 + $0xc8] sm:$0x1] %v461_v56  ;;  %v7378_v58 = vsel %vm7374_vm5, %v7345_v55, %v11569_v31  ;;  %v458_v28 = vsel %vm10464_vm2, 0, %v457_v30  ;;  %v12001_v19 = vld [vmem:[#allocation3 + $0xa4] sm:$0x1]  ;;  %v12012_v30 = vpop.permute.xlu1 %7025 }
 0x30b   : > { %v11995_v26 = vrot.slane %v6103_v62, 5  ;;  %v4035_v10 = vmax.f32 %v3993_v33, 0.0  ;;  %v4038_v53 = vmax.f32 %v4004_v2, 0.0  ;;  %8381 = vmatmul.mubr.msk.bf16.vlgmr.msra.gmra.mrb[0].mxu1 %vm7450_vm1, %v7378_v58  ;;  %459 = vst [vmem:[#allocation3 + $0xbc] sm:$0x1] %v458_v28  ;;  %v8090_v49 = vcombine.low %v8569_v5, %v8568_v61 }
 0x30c   : > { %v4391_v27 = vshrl.u32 %v8289_v12, 16  ;;  %v3996_v36 = vadd.f32 %v11705_v7, %v11896_v50  ;;  %v8082_v13 = vrot.slane %v6230_v44, 9  ;;  %v6362_v31 = vrot.slane %v11961_v42, 5  ;;  %v4563_v16 = vld [vmem:[#allocation3 + $0xc0] sm:$0xf] }
 0x30d   : > { %v4394_v52 = vshll.u32 %v8289_v12, 16  ;;  %v8287_v9 = vpack.c.bf16 %v4035_v10, %v4035_v10  ;;  %v8290_v25 = vpack.c.bf16 %v4038_v53, %v4038_v53  ;;  %v12008_v55 = vsel %vm3551_vm7, %v8090_v49, %v11783_v40  ;;  %v12024_v49 = vld [vmem:[#allocation3 + $0x94] sm:$0xf] }
 0x30e   : > { %v4393_v15 = vrot.slane %v4391_v27, 7  ;;  %6961 = vrot.lane.b32.xlu1 %v8194_v32, %s8659_s11  ;;  %v4036_v59 = vmax.f32 %v3996_v36, 0.0  ;;  %v6363_v7 = vsel %vm8804_vm10, %v8082_v13, %v6362_v31  ;;  %v6364_v50 = vrot.slane %v6362_v31, 4 }
 0x30f   : > { %v4374_v35 = vshrl.u32 %v8287_v9, 16  ;;  %v4377_v12 = vshll.u32 %v8287_v9, 16  ;;  %v4399_v33 = vshrl.u32 %v8290_v25, 16  ;;  %v4402_v56 = vshll.u32 %v8290_v25, 16 }
 0x310   : > { %v4396_v20 = vor.u32 %v4394_v52, %v4393_v15  ;;  %v4397_v62 = vrot.slane %v4393_v15, 4  ;;  %v8288_v2 = vpack.c.bf16 %v4036_v59, %v4036_v59  ;;  %v6365_v44 = vrot.slane %v12001_v19, 5  ;;  %v4556_v27 = vld [vmem:[#allocation3 + $0xb4] sm:$0xf]  ;;  %v4592_v59 = vld [vmem:[#allocation3 + $0x84] sm:$0xf] }
 0x311   : > { %v4376_v32 = vrot.slane %v4374_v35, 7  ;;  %v7347_v58 = vsel %vm7341_vm13, %v11944_v48, %v11688_v3  ;;  %v6058_v28 = vor.u32 %v11876_v38, %v11746_v6  ;;  %v4401_v10 = vrot.slane %v4399_v33, 7  ;;  %v4567_v31 = vld [vmem:[#allocation3 + $0xc8] sm:$0x1]  ;;  %v12028_v48 = vld [vmem:[#allocation3 + $0x98] sm:$0x1]  ;;  %v12030_v38 = vpop.permute.xlu0 %7111 }
 0x312   : > { %v4564_v40 = vsel %vm10563_vm3, %v4396_v20, %v4563_v16  ;;  %v4382_v53 = vshrl.u32 %v8288_v2, 16  ;;  %v4385_v61 = vshll.u32 %v8288_v2, 16  ;;  %v6366_v5 = vsel %vm8804_vm10, %v6364_v50, %v6365_v44  ;;  %v5014_v6 = vld [vmem:[#allocation3 + $0x90] sm:$0xe]  ;;  %v12033_v50 = vpop.permute.xlu1 %6517  ;;  %v4560_v20 = vld [vmem:[#allocation3 + $0xbc] sm:$0x1] }
 0x313   : > { %4565 = vst [vmem:[#allocation3 + $0xc0] sm:$0xf] %v4564_v40  ;;  %v4379_v36 = vor.u32 %v4377_v12, %v4376_v32  ;;  %v4380_v13 = vrot.slane %v4376_v32, 4  ;;  %v8226_v15 = vcombine.low %v6363_v7, %v6366_v5  ;;  %v7380_v3 = vsel %vm7374_vm5, %v7347_v58, %v11519_v22 }
 0x314   : > { %v4404_v52 = vor.u32 %v4402_v56, %v4401_v10  ;;  %v4406_v9 = vrot.slane %v4401_v10, 4  ;;  %v4384_v25 = vrot.slane %v4382_v53, 7  ;;  %8384 = vmatprep.mubr.msk.bf16.mxu1 %vm7450_vm1, %v7380_v3  ;;  %v6059_v16 = vrot.slane %v6058_v28, 4  ;;  %v5202_v10 = vld [vmem:[#allocation3 + $0x9c] sm:$0xf] }
 0x315   : > { %v4557_v7 = vsel %vm10563_vm3, %v4379_v36, %v4556_v27  ;;  %7121 = vrot.lane.b32.xlu0 %v8226_v15, %s8661_s14  ;;  %v6061_v22 = vshll.u32 %v11710_v43, 16  ;;  %v12763_v35 = vshrl.u32 %v11710_v43, 16  ;;  %v6071_v33 = vshll.u32 %v11805_v4, 16  ;;  %v12058_v39 = vpop.permute.xlu0 %6603 }
 0x316   : > { %4558 = vst [vmem:[#allocation3 + $0xb4] sm:$0xf] %v4557_v7  ;;  %v4405_v56 = vsel %vm8816_vm12, %v4397_v62, %v4404_v52  ;;  %v4568_v2 = vsel %vm10453_vm6, %v4406_v9, %v4567_v31  ;;  %v4387_v44 = vor.u32 %v4385_v61, %v4384_v25  ;;  %v4389_v1 = vrot.slane %v4384_v25, 4 }
 0x317   : > { %v6067_v12 = vrot.slane %v12763_v35, 4  ;;  %vm12764_vm3 = vcmask 60416   ;;  %4569 = vst [vmem:[#allocation3 + $0xc8] sm:$0x1] %v4568_v2  ;;  %v6063_v40 = vrot.slane %v6061_v22, 5  ;;  %v6073_v32 = vrot.slane %v6071_v33, 5 }
 0x318   : > { %4566 = vst.msk [vmem:[#allocation3 + $0xc4] sm:$0xf] %vm12764_vm3, %v4405_v56  ;;  %v8051_v58 = vrot.slane %v5014_v6, 9  ;;  %v5152_v43 = vrot.slane %v12024_v49, 5  ;;  %v4388_v4 = vsel %vm8816_vm12, %v4380_v13, %v4387_v44  ;;  %v4561_v28 = vsel %vm10453_vm6, %v4389_v1, %v4560_v20  ;;  %vm12765_vm11 = vmmov %vm12764_vm3  ;;  %v12062_v6 = vpop.permute.xlu1 %6857 }
 0x319   : > { %v5155_v62 = vrot.slane %v12028_v48, 5  ;;  %v4883_v27 = vshrl.u32 %v4592_v59, 16  ;;  %4559 = vst.msk [vmem:[#allocation3 + $0xb8] sm:$0xf] %vm12765_vm11, %v4388_v4  ;;  %4562 = vst [vmem:[#allocation3 + $0xbc] sm:$0x1] %v4561_v28  ;;  %v6064_v53 = vsel %vm8891_vm15, %v6059_v16, %v6063_v40  ;;  %v6068_v61 = vor.u32 %v6067_v12, %v6063_v40 }
 0x31a   : > { %v5153_v5 = vsel %vm8804_vm10, %v8051_v58, %v5152_v43  ;;  %v5154_v36 = vrot.slane %v5152_v43, 4  ;;  %v4886_v31 = vshll.u32 %v4592_v59, 16  ;;  %v4892_v15 = vshll.u32 %v11863_v41, 16  ;;  %v12067_v16 = vld [vmem:[#allocation3 + $0xa0] sm:$0xf] }
 0x31b   : > { %v4885_v13 = vrot.slane %v4883_v27, 4  ;;  %v4896_v3 = vshrl.u32 %v11863_v41, 16  ;;  %v6069_v52 = vrot.slane %v6068_v61, 4  ;;  %v4902_v25 = vshll.u32 %v11880_v0, 16  ;;  %v4594_v59 = vld [vmem:[#allocation3 + $0x90] sm:$0xf] }
 0x31c   : > { %v5156_v9 = vsel %vm8804_vm10, %v5154_v36, %v5155_v62  ;;  %v5515_v7 = vshrl.u32 %v5202_v10, 16  ;;  %v4888_v22 = vrot.slane %v4886_v31, 5  ;;  %v4894_v35 = vrot.slane %v4892_v15, 5  ;;  %v12074_v62 = vpop.permute.xlu0 %7109  ;;  %v5222_v15 = vld [vmem:[#allocation3 + $0xa4] sm:$0x1] }
 0x31d   : > { %v8131_v20 = vcombine.low %v5153_v5, %v5156_v9  ;;  %v4898_v12 = vrot.slane %v4896_v3, 4  ;;  %v6074_v33 = vsel %vm8891_vm15, %v6069_v52, %v6073_v32  ;;  %v4904_v41 = vrot.slane %v4902_v25, 5  ;;  %v12079_v5 = vpop.permute.xlu1 %6601 }
 0x31e   : > { %v5517_v56 = vrot.slane %v5515_v7, 4  ;;  %v5518_v2 = vshll.u32 %v5202_v10, 16  ;;  %v8208_v44 = vcombine.low %v6064_v53, %v6074_v33  ;;  %v4889_v1 = vor.u32 %v4888_v22, %v4885_v13  ;;  %v12766_v7 = vld [vmem:[#allocation17_spill] sm:$0xff] }
 0x31f   : > { %6611 = vrot.lane.b32.xlu0 %v8131_v20, %s8657_s16  ;;  %v4899_v40 = vor.u32 %v4898_v12, %v4894_v35  ;;  %v5528_v0 = vshrl.u32 %v12067_v16, 16  ;;  %v8147_v43 = vcombine.low %v5202_v10, %v12067_v16  ;;  %v4907_v4 = vshrl.u32 %v4594_v59, 16 }
 0x320   : > { %v5520_v58 = vrot.slane %v5518_v2, 5  ;;  %v4910_v28 = vshll.u32 %v4594_v59, 16  ;;  %7037 = vrot.lane.b32.xlu1 %v8208_v44, %s8662_s17  ;;  %v4890_v32 = vrot.slane %v4889_v1, 4  ;;  %v4916_v61 = vshll.u32 %v12024_v49, 16  ;;  %v12097_v1 = vpop.permute.xlu0 %6855 }
 0x321   : > { %v4900_v27 = vrot.slane %v4899_v40, 4  ;;  %v4920_v53 = vshrl.u32 %v12024_v49, 16  ;;  %v4909_v36 = vrot.slane %v4907_v4, 4  ;;  %v4926_v31 = vshll.u32 %v12028_v48, 16  ;;  %v12100_v4 = vpop.permute.xlu1 %6701 }
 0x322   : > { %v4912_v13 = vrot.slane %v4910_v28, 5  ;;  %v5521_v10 = vor.u32 %v5520_v58, %v5517_v56  ;;  %v4895_v3 = vsel %vm8891_vm15, %v4890_v32, %v4894_v35  ;;  %v4918_v9 = vrot.slane %v4916_v61, 5 }
 0x323   : > { %v4905_v52 = vsel %vm8891_vm15, %v4900_v27, %v4904_v41  ;;  %6707 = vrot.lane.b32.xlu0 %v8147_v43, %s8653_s12  ;;  %v4922_v25 = vrot.slane %v4920_v53, 4  ;;  %v7186_v49 = vsel %vm3617_vm9, %v12008_v55, %v12766_v7  ;;  %v5524_v59 = vshll.u32 %v12067_v16, 16  ;;  %v5622_v55 = vld [vmem:[#allocation3 + $0x9c] sm:$0xe] }
 0x324   : > { %v8114_v20 = vcombine.low %v4895_v3, %v4905_v52  ;;  %v4913_v22 = vor.u32 %v4912_v13, %v4909_v36  ;;  %v5522_v12 = vrot.slane %v5521_v10, 4  ;;  %v5530_v33 = vrot.slane %v5528_v0, 4  ;;  %v12104_v27 = vld [vmem:[#allocation3 + $0x9c] sm:$0xf]  ;;  %v12110_v36 = vld [vmem:[#allocation3 + $0xa0] sm:$0xf] }
 0x325   : > { %v4923_v48 = vor.u32 %v4922_v25, %v4918_v9  ;;  %v5534_v56 = vshll.u32 %v5222_v15, 16  ;;  %v6106_v41 = vor.u32 %v11995_v26, %v11989_v46  ;;  %v6109_v2 = vshll.u32 %v11961_v42, 16  ;;  %12767 = vst [vmem:[#allocation13_spill] sm:$0xff] %v12104_v27  ;;  %12768 = vst [vmem:[#allocation9_spill] sm:$0xff] %v12110_v36 }
 0x326   : > { %6529 = vrot.lane.b32.xlu1 %v8114_v20, %s8651_s10  ;;  %v4914_v35 = vrot.slane %v4913_v22, 4  ;;  %v6115_v44 = vrot.slane %v6113_v21, 4  ;;  %v4928_v58 = vrot.slane %v4926_v31, 5  ;;  %v5526_v43 = vrot.slane %v5524_v59, 5  ;;  %v12119_v59 = vpop.permute.xlu0 %6955 }
 0x327   : > { %v4924_v40 = vrot.slane %v4923_v48, 4  ;;  %v6119_v0 = vshll.u32 %v12001_v19, 16  ;;  %v5536_v32 = vrot.slane %v5534_v56, 5  ;;  %v6107_v46 = vrot.slane %v6106_v41, 4  ;;  %v5811_v48 = vld [vmem:[#allocation3 + $0xa8] sm:$0xf] }
 0x328   : > { %v4919_v28 = vsel %vm8891_vm15, %v4914_v35, %v4918_v9  ;;  %v6111_v26 = vrot.slane %v6109_v2, 5  ;;  %v5527_v21 = vsel %vm8891_vm15, %v5522_v12, %v5526_v43  ;;  %v5531_v61 = vor.u32 %v5530_v33, %v5526_v43  ;;  %v4615_v33 = vld [vmem:[#allocation3 + $0xa4] sm:$0x1]  ;;  %v12124_v2 = vpop.permute.xlu1 %6777  ;;  %v12769_v43 = vld [vmem:[#allocation10_spill] sm:$0xff] }
 0x329   : > { %v4929_v42 = vsel %vm8891_vm15, %v4924_v40, %v4928_v58  ;;  %v8067_v53 = vrot.slane %v5622_v55, 9  ;;  %v6121_v31 = vrot.slane %v6119_v0, 5  ;;  %v5760_v10 = vrot.slane %v12067_v16, 5  ;;  %v12130_v58 = vld [vmem:[#allocation3 + $0xac] sm:$0xf] }
 0x32a   : > { %v8115_v19 = vcombine.low %v4919_v28, %v4929_v42  ;;  %v6116_v13 = vor.u32 %v6115_v44, %v6111_v26  ;;  %v5532_v3 = vrot.slane %v5531_v61, 4  ;;  %v6112_v52 = vsel %vm8891_vm15, %v6107_v46, %v6111_v26 }
 0x32b   : > { %v4931_v9 = vshrl.u32 %v12104_v27, 16  ;;  %v4934_v25 = vshll.u32 %v12104_v27, 16  ;;  %v5762_v20 = vrot.slane %v5760_v10, 4  ;;  %v5763_v22 = vrot.slane %v5222_v15, 5 }
 0x32c   : > { %6531 = vrot.lane.b32.xlu1 %v8115_v19, %s8651_s10  ;;  %v6117_v7 = vrot.slane %v6116_v13, 4  ;;  %v4940_v12 = vshll.u32 %v12110_v36, 16  ;;  %v5537_v16 = vsel %vm8891_vm15, %v5532_v3, %v5536_v32  ;;  %v4944_v41 = vshrl.u32 %v12110_v36, 16  ;;  %v5015_v19 = vld [vmem:[#allocation3 + $0x9c] sm:$0xe] }
 0x32d   : > { %v4933_v56 = vrot.slane %v4931_v9, 4  ;;  %v4936_v35 = vrot.slane %v4934_v25, 5  ;;  %v8163_v44 = vcombine.low %v5527_v21, %v5537_v16  ;;  %v5764_v15 = vsel %vm8804_vm10, %v5762_v20, %v5763_v22  ;;  %v12143_v20 = vld [vmem:[#allocation3 + $0xb0] sm:$0x1] }
 0x32e   : > { %v6122_v55 = vsel %vm8891_vm15, %v6117_v7, %v6121_v31  ;;  %v4942_v40 = vrot.slane %v4940_v12, 5  ;;  %v12134_v0 = vsel %vm3683_vm4, %v7186_v49, %v12769_v43  ;;  %v4946_v46 = vrot.slane %v4944_v41, 4  ;;  %v8571_v43 = vld [vmem:[#allocation3 + $0x48] sm:$0xf] }
 0x32f   : > { %v8210_v28 = vcombine.low %v6112_v52, %v6122_v55  ;;  %v4937_v32 = vor.u32 %v4936_v35, %v4933_v56  ;;  %6787 = vrot.lane.b32.xlu0 %v8163_v44, %s8656_s15  ;;  %v5761_v26 = vsel %vm8804_vm10, %v8067_v53, %v5760_v10  ;;  %v4950_v42 = vshll.u32 %v4615_v33, 16  ;;  %v12145_v53 = vpop.permute.xlu0 %7031  ;;  %v12149_v56 = vpop.permute.xlu1 %6953 }
 0x330   : > { %v6124_v21 = vshrl.u32 %v5811_v48, 16  ;;  %v6127_v61 = vshll.u32 %v5811_v48, 16  ;;  %v8179_v13 = vcombine.low %v5761_v26, %v5764_v15  ;;  %v4947_v3 = vor.u32 %v4946_v46, %v4942_v40  ;;  %v12155_v15 = vld [vmem:[#allocation3 + $0x4c] sm:$0xf]  ;;  %v5204_v46 = vld [vmem:[#allocation3 + $0xa8] sm:$0xf] }
 0x331   : > { %7041 = vrot.lane.b32.xlu1 %v8210_v28, %s8662_s17  ;;  %v4938_v31 = vrot.slane %v4937_v32, 4  ;;  %v6137_v49 = vshrl.u32 %v12130_v58, 16  ;;  %v8195_v25 = vcombine.low %v5811_v48, %v12130_v58  ;;  %v5159_v7 = vrot.slane %v12110_v36, 5  ;;  %v12159_v26 = vld [vmem:[#allocation3 + $0xac] sm:$0xf] }
 0x332   : > { %v6126_v9 = vrot.slane %v6124_v21, 4  ;;  %v6129_v52 = vrot.slane %v6127_v61, 5  ;;  %v4948_v22 = vrot.slane %v4947_v3, 4  ;;  %v4952_v12 = vrot.slane %v4950_v42, 5  ;;  %v12770_v3 = vld [vmem:[#allocation8_spill] sm:$0xff] }
 0x333   : > { %v4943_v10 = vsel %vm8891_vm15, %v4938_v31, %v4942_v40  ;;  %v8052_v16 = vrot.slane %v5015_v19, 9  ;;  %6867 = vrot.lane.b32.xlu0 %v8179_v13, %s8660_s13  ;;  %v5161_v35 = vrot.slane %v5159_v7, 4  ;;  %v5162_v41 = vrot.slane %v4615_v33, 5 }
 0x334   : > { %v6130_v44 = vor.u32 %v6129_v52, %v6126_v9  ;;  %v6133_v48 = vshll.u32 %v12130_v58, 16  ;;  %v4953_v55 = vsel %vm8891_vm15, %v4948_v22, %v4952_v12  ;;  %v8093_v40 = vcombine.low %v8571_v43, %v12155_v15  ;;  %v6231_v22 = vld [vmem:[#allocation3 + $0xa8] sm:$0xe]  ;;  %v12173_v12 = vpop.permute.xlu0 %6699  ;;  %v12772_v15 = vld [vmem:[#allocation20_spill] sm:$0xff] }
 0x335   : > { %v6139_v28 = vrot.slane %v6137_v49, 4  ;;  %v6143_v32 = vshll.u32 %v12143_v20, 16  ;;  %v8116_v42 = vcombine.low %v4943_v10, %v4953_v55  ;;  %v5160_v33 = vsel %vm8804_vm10, %v8052_v16, %v5159_v7 }
 0x336   : > { %v5163_v21 = vsel %vm8804_vm10, %v5161_v35, %v5162_v41  ;;  %v6131_v61 = vrot.slane %v6130_v44, 4  ;;  %v6135_v13 = vrot.slane %v6133_v48, 5  ;;  %v7220_v49 = vsel %vm3683_vm4, %v11934_v8, %v12770_v3  ;;  %v12771_v44 = vld [vmem:[#allocation19_spill] sm:$0xff] }
 0x337   : > { %v8132_v19 = vcombine.low %v5160_v33, %v5163_v21  ;;  %v6145_v31 = vrot.slane %v6143_v32, 5  ;;  %6533 = vrot.lane.b32.xlu1 %v8116_v42, %s8651_s10  ;;  %6963 = vrot.lane.b32.xlu0 %v8195_v25, %s8659_s11  ;;  %v7252_v9 = vsel %vm3749_vm14, %v7220_v49, %v12003_v14  ;;  %v5539_v52 = vshrl.u32 %v5204_v46, 16  ;;  %v12180_v25 = vpop.permute.xlu1 %6523  ;;  %v12773_v42 = vld [vmem:[#allocation16_spill] sm:$0xff] }
 0x338   : > { %v5542_v7 = vshll.u32 %v5204_v46, 16  ;;  %v5552_v10 = vshrl.u32 %v12159_v26, 16  ;;  %v6136_v16 = vsel %vm8891_vm15, %v6131_v61, %v6135_v13  ;;  %v6140_v35 = vor.u32 %v6139_v28, %v6135_v13  ;;  %v12194_v13 = vld [vmem:[#allocation3 + $0xb0] sm:$0x1] }
 0x339   : > { %v7285_v8 = vsel %vm7275_vm0, %v7252_v9, %v11857_v24  ;;  %v8148_v41 = vcombine.low %v5204_v46, %v12159_v26  ;;  %v5541_v48 = vrot.slane %v5539_v52, 4  ;;  %v7250_v43 = vsel %vm3749_vm14, %v12134_v0, %v12772_v15  ;;  %v12774_v46 = vld [vmem:[#allocation21_spill] sm:$0xff]  ;;  %v6232_v52 = vld [vmem:[#allocation3 + $0xb4] sm:$0xe]  ;;  %v8573_v15 = vld [vmem:[#allocation3 + $0x3c] sm:$0xf] }
 0x33a   : > { %v7318_v14 = vsel %vm7308_vm8, %v7285_v8, %v12771_v44  ;;  %v5544_v55 = vrot.slane %v5542_v7, 5  ;;  %v6141_v32 = vrot.slane %v6140_v35, 4  ;;  %v7283_v28 = vsel %vm7275_vm0, %v7250_v43, %v12773_v42  ;;  %v12203_v8 = vld [vmem:[#allocation3 + $0xb8] sm:$0xf]  ;;  %v12205_v44 = vpop.permute.xlu0 %6775 }
 0x33b   : > { %v8083_v33 = vrot.slane %v6231_v22, 9  ;;  %v6369_v24 = vrot.slane %v12130_v58, 5  ;;  %6613 = vrot.lane.b32.xlu1 %v8132_v19, %s8657_s16  ;;  %v7316_v21 = vsel %vm7308_vm8, %v7283_v28, %v12774_v46  ;;  %v6372_v61 = vrot.slane %v12143_v20, 5 }
 0x33c   : > { %v5545_v3 = vor.u32 %v5544_v55, %v5541_v48  ;;  %v5548_v49 = vshll.u32 %v12159_v26, 16  ;;  %v6146_v0 = vsel %vm8891_vm15, %v6141_v32, %v6145_v31  ;;  %v7349_v9 = vsel %vm7341_vm13, %v7316_v21, %v12012_v30  ;;  %v8572_v55 = vld [vmem:[#allocation3 + $0x40] sm:$0xf]  ;;  %v12212_v32 = vld [vmem:[#allocation3 + $0xbc] sm:$0x1] }
 0x33d   : > { %v6370_v58 = vsel %vm8804_vm10, %v8083_v33, %v6369_v24  ;;  %v6371_v19 = vrot.slane %v6369_v24, 4  ;;  %v8211_v7 = vcombine.low %v6136_v16, %v6146_v0  ;;  %v5554_v20 = vrot.slane %v5552_v10, 4  ;;  %v12214_v16 = vpop.permute.xlu1 %7029  ;;  %v5623_v33 = vld [vmem:[#allocation3 + $0xa8] sm:$0xe] }
 0x33e   : > { %v5546_v22 = vrot.slane %v5545_v3, 4  ;;  %v5550_v35 = vrot.slane %v5548_v49, 5  ;;  %v5558_v31 = vshll.u32 %v12194_v13, 16  ;;  %v7382_v30 = vsel %vm7374_vm5, %v7349_v9, %v11830_v34  ;;  %v5016_v49 = vld [vmem:[#allocation3 + $0xa8] sm:$0xe] }
 0x33f   : > { %v6373_v48 = vsel %vm8804_vm10, %v6371_v19, %v6372_v61  ;;  %v8092_v43 = vcombine.low %v8573_v15, %v8572_v55  ;;  %v12218_v10 = vsel %vm3551_vm7, %v8093_v40, %v11978_v57  ;;  %7043 = vrot.lane.b32.xlu0 %v8211_v7, %s8662_s17  ;;  %6709 = vrot.lane.b32.xlu1 %v8148_v41, %s8653_s12  ;;  %v8084_v46 = vrot.slane %v6232_v52, 9  ;;  %v12228_v57 = vld [vmem:[#allocation3 + $0xac] sm:$0xf]  ;;  %v12239_v19 = vld [vmem:[#allocation3 + $0xb0] sm:$0x1] }
 0x340   : > { %v8227_v42 = vcombine.low %v6370_v58, %v6373_v48  ;;  %v5555_v28 = vor.u32 %v5554_v20, %v5550_v35  ;;  %v5551_v34 = vsel %vm8891_vm15, %v5546_v22, %v5550_v35  ;;  %8385 = vmatmul.mubr.msk.bf16.gmra.mrb[4].mxu1 %vm7450_vm1, %v7382_v30  ;;  %v6376_v21 = vrot.slane %v12203_v8, 5  ;;  %v5813_v7 = vld [vmem:[#allocation3 + $0xb4] sm:$0xf]  ;;  %v12249_v22 = vpop.permute.xlu0 %7115  ;;  %v12254_v30 = vld [vmem:[#allocation3 + $0xb8] sm:$0xf] }
 0x341   : > { %v7148_v24 = vsel %vm3551_vm7, %v8092_v43, %v12033_v50  ;;  %v5560_v61 = vrot.slane %v5558_v31, 5  ;;  %v6379_v41 = vrot.slane %v12212_v32, 5  ;;  %v7351_v3 = vsel %vm7341_vm13, %v7318_v14, %v11937_v60  ;;  %v5206_v31 = vld [vmem:[#allocation3 + $0xb4] sm:$0xf]  ;;  %v12256_v55 = vpop.permute.xlu1 %6521 }
 0x342   : > { %v5556_v40 = vrot.slane %v5555_v28, 4  ;;  %v12235_v0 = vsel %vm3617_vm9, %v7148_v24, %v11837_v37  ;;  %v6378_v9 = vrot.slane %v6376_v21, 4  ;;  %v7384_v50 = vsel %vm7374_vm5, %v7351_v3, %v11775_v11 }
 0x343   : > { %v8068_v58 = vrot.slane %v5623_v33, 9  ;;  %7123 = vrot.lane.b32.xlu0 %v8227_v42, %s8661_s14  ;;  %v6377_v60 = vsel %vm8804_vm10, %v8084_v46, %v6376_v21  ;;  %8388 = vmatprep.mubr.msk.bf16.mxu1 %vm7450_vm1, %v7384_v50  ;;  %v5767_v37 = vrot.slane %v12159_v26, 5  ;;  %v5770_v14 = vrot.slane %v12194_v13, 5 }
 0x344   : > { %v5561_v52 = vsel %vm8891_vm15, %v5556_v40, %v5560_v61  ;;  %v6380_v35 = vsel %vm8804_vm10, %v6378_v9, %v6379_v41  ;;  %v8053_v20 = vrot.slane %v5016_v49, 9  ;;  %v5166_v48 = vrot.slane %v12228_v57, 5  ;;  %v12270_v9 = vld [vmem:[#allocation3 + $0xbc] sm:$0x1] }
 0x345   : > { %v8164_v11 = vcombine.low %v5551_v34, %v5561_v52  ;;  %v8228_v15 = vcombine.low %v6377_v60, %v6380_v35  ;;  %v5768_v26 = vsel %vm8804_vm10, %v8068_v58, %v5767_v37  ;;  %v5769_v13 = vrot.slane %v5767_v37, 4  ;;  %v12273_v37 = vpop.permute.xlu0 %6607 }
 0x346   : > { %v5169_v43 = vrot.slane %v12239_v19, 5  ;;  %v5167_v42 = vsel %vm8804_vm10, %v8053_v20, %v5166_v48  ;;  %v5168_v28 = vrot.slane %v5166_v48, 4  ;;  %v6148_v33 = vshrl.u32 %v5813_v7, 16  ;;  %v12279_v48 = vld [vmem:[#allocation3 + $0xa8] sm:$0xf] }
 0x347   : > { %6789 = vrot.lane.b32.xlu1 %v8164_v11, %s8656_s15  ;;  %v6151_v34 = vshll.u32 %v5813_v7, 16  ;;  %7125 = vrot.lane.b32.xlu0 %v8228_v15, %s8661_s14  ;;  %v5771_v24 = vsel %vm8804_vm10, %v5769_v13, %v5770_v14  ;;  %v5563_v46 = vshrl.u32 %v5206_v31, 16  ;;  %v5566_v21 = vshll.u32 %v5206_v31, 16  ;;  %v12281_v15 = vpop.permute.xlu1 %6861 }
 0x348   : > { %v5576_v40 = vshrl.u32 %v12254_v30, 16  ;;  %v8180_v61 = vcombine.low %v5768_v26, %v5771_v24  ;;  %v5170_v41 = vsel %vm8804_vm10, %v5168_v28, %v5169_v43  ;;  %v6150_v3 = vrot.slane %v6148_v33, 4  ;;  %12775 = vst [vmem:[#allocation11_spill] sm:$0xff] %v12281_v15  ;;  %v12357_v15 = vld [vmem:[#allocation3 + $0xc4] sm:$0xf] }
 0x349   : > { %v6153_v49 = vrot.slane %v6151_v34, 5  ;;  %v8133_v50 = vcombine.low %v5167_v42, %v5170_v41  ;;  %v8196_v58 = vcombine.low %v5813_v7, %v12203_v8  ;;  %v5565_v52 = vrot.slane %v5563_v46, 4 }
 0x34a   : > { %v5568_v60 = vrot.slane %v5566_v21, 5  ;;  %v6157_v11 = vshll.u32 %v12203_v8, 16  ;;  %v6161_v35 = vshrl.u32 %v12203_v8, 16  ;;  %v6167_v20 = vshll.u32 %v12212_v32, 16 }
 0x34b   : > { %6869 = vrot.lane.b32.xlu1 %v8180_v61, %s8660_s13  ;;  %v6154_v14 = vor.u32 %v6153_v49, %v6150_v3  ;;  %6615 = vrot.lane.b32.xlu0 %v8133_v50, %s8657_s16  ;;  %v5572_v26 = vshll.u32 %v12254_v30, 16  ;;  %v5578_v13 = vrot.slane %v5576_v40, 4  ;;  %v5582_v43 = vshll.u32 %v12270_v9, 16 }
 0x34c   : > { %v5569_v7 = vor.u32 %v5568_v60, %v5565_v52  ;;  %v8149_v42 = vcombine.low %v5206_v31, %v12254_v30  ;;  %v6159_v33 = vrot.slane %v6157_v11, 5  ;;  %v6163_v34 = vrot.slane %v6161_v35, 4  ;;  %v5624_v52 = vld [vmem:[#allocation3 + $0xb4] sm:$0xe]  ;;  %v12295_v60 = vpop.permute.xlu0 %7113 }
 0x34d   : > { %v6155_v28 = vrot.slane %v6154_v14, 4  ;;  %v6169_v8 = vrot.slane %v6167_v20, 5  ;;  %v5574_v32 = vrot.slane %v5572_v26, 5  ;;  %v4955_v46 = vshrl.u32 %v12279_v48, 16  ;;  %v12298_v20 = vpop.permute.xlu1 %6605 }
 0x34e   : > { %v5570_v24 = vrot.slane %v5569_v7, 4  ;;  %v6164_v21 = vor.u32 %v6163_v34, %v6159_v33  ;;  %v5584_v61 = vrot.slane %v5582_v43, 5  ;;  %v4958_v41 = vshll.u32 %v12279_v48, 16 }
 0x34f   : > { %6965 = vrot.lane.b32.xlu1 %v8196_v58, %s8659_s11  ;;  %v4964_v40 = vshll.u32 %v12228_v57, 16  ;;  %6711 = vrot.lane.b32.xlu0 %v8149_v42, %s8653_s12  ;;  %v6160_v31 = vsel %vm8891_vm15, %v6155_v28, %v6159_v33  ;;  %v5579_v3 = vor.u32 %v5578_v13, %v5574_v32  ;;  %v4957_v49 = vrot.slane %v4955_v46, 4  ;;  %v12303_v42 = vld [vmem:[#allocation3 + $0xb4] sm:$0xf] }
 0x350   : > { %v4968_v50 = vshrl.u32 %v12228_v57, 16  ;;  %v6165_v14 = vrot.slane %v6164_v21, 4  ;;  %v4960_v58 = vrot.slane %v4958_v41, 5  ;;  %v4974_v35 = vshll.u32 %v12239_v19, 16  ;;  %v12307_v21 = vld [vmem:[#allocation3 + $0xb8] sm:$0xf] }
 0x351   : > { %v4966_v11 = vrot.slane %v4964_v40, 5  ;;  %v5575_v7 = vsel %vm8891_vm15, %v5570_v24, %v5574_v32  ;;  %v5580_v26 = vrot.slane %v5579_v3, 4  ;;  %v5774_v13 = vrot.slane %v12254_v30, 5 }
 0x352   : > { %v4970_v43 = vrot.slane %v4968_v50, 4  ;;  %v6170_v28 = vsel %vm8891_vm15, %v6165_v14, %v6169_v8  ;;  %v4961_v33 = vor.u32 %v4960_v58, %v4957_v49  ;;  %v4976_v34 = vrot.slane %v4974_v35, 5  ;;  %v4617_v50 = vld [vmem:[#allocation3 + $0xbc] sm:$0x1]  ;;  %v5815_v14 = vld [vmem:[#allocation3 + $0xc0] sm:$0xf] }
 0x353   : > { %v8069_v46 = vrot.slane %v5624_v52, 9  ;;  %v8212_v19 = vcombine.low %v6160_v31, %v6170_v28  ;;  %v5585_v41 = vsel %vm8891_vm15, %v5580_v26, %v5584_v61  ;;  %v5777_v24 = vrot.slane %v12270_v9, 5  ;;  %v12317_v61 = vpop.permute.xlu0 %6859  ;;  %v12326_v26 = vld [vmem:[#allocation3 + $0xc4] sm:$0xf] }
 0x354   : > { %v4971_v40 = vor.u32 %v4970_v43, %v4966_v11  ;;  %v8165_v32 = vcombine.low %v5575_v7, %v5585_v41  ;;  %v4962_v3 = vrot.slane %v4961_v33, 4  ;;  %v5776_v30 = vrot.slane %v5774_v13, 4  ;;  %v12328_v43 = vpop.permute.xlu1 %6705 }
 0x355   : > { %v4979_v27 = vshrl.u32 %v12303_v42, 16  ;;  %7045 = vrot.lane.b32.xlu1 %v8212_v19, %s8662_s17  ;;  %v4982_v49 = vshll.u32 %v12303_v42, 16  ;;  %v4988_v52 = vshll.u32 %v12307_v21, 16  ;;  %v4992_v31 = vshrl.u32 %v12307_v21, 16  ;;  %12776 = vst [vmem:[#allocation7_spill] sm:$0xff] %v12328_v43 }
 0x356   : > { %v4972_v8 = vrot.slane %v4971_v40, 4  ;;  %6791 = vrot.lane.b32.xlu0 %v8165_v32, %s8656_s15  ;;  %v4967_v9 = vsel %vm8891_vm15, %v4962_v3, %v4966_v11  ;;  %v5775_v58 = vsel %vm8804_vm10, %v8069_v46, %v5774_v13  ;;  %v5778_v35 = vsel %vm8804_vm10, %v5776_v30, %v5777_v24  ;;  %v5017_v30 = vld [vmem:[#allocation3 + $0xb4] sm:$0xe] }
 0x357   : > { %v4981_v7 = vrot.slane %v4979_v27, 4  ;;  %v4984_v33 = vrot.slane %v4982_v49, 5  ;;  %v4990_v19 = vrot.slane %v4988_v52, 5  ;;  %v4998_v41 = vshll.u32 %v4617_v50, 16  ;;  %v12777_v49 = vld [vmem:[#allocation18_spill] sm:$0xff] }
 0x358   : > { %v4977_v28 = vsel %vm8891_vm15, %v4972_v8, %v4976_v34  ;;  %v8181_v32 = vcombine.low %v5775_v58, %v5778_v35  ;;  %v4994_v11 = vrot.slane %v4992_v31, 4  ;;  %v6172_v3 = vshrl.u32 %v5815_v14, 16  ;;  %v12342_v35 = vpop.permute.xlu0 %6959 }
 0x359   : > { %v8117_v40 = vcombine.low %v4967_v9, %v4977_v28  ;;  %v4985_v36 = vor.u32 %v4984_v33, %v4981_v7  ;;  %v6175_v13 = vshll.u32 %v5815_v14, 16  ;;  %v6185_v46 = vshrl.u32 %v12326_v26, 16  ;;  %v12345_v28 = vld [vmem:[#allocation3 + $0xc8] sm:$0x1] }
 0x35a   : > { %v7192_v27 = vsel %vm3617_vm9, %v12218_v10, %v11807_v23  ;;  %6871 = vrot.lane.b32.xlu0 %v8181_v32, %s8660_s13  ;;  %v4995_v34 = vor.u32 %v4994_v11, %v4990_v19  ;;  %v6174_v24 = vrot.slane %v6172_v3, 4  ;;  %v5173_v8 = vrot.slane %v12307_v21, 5 }
 0x35b   : > { %6535 = vrot.lane.b32.xlu1 %v8117_v40, %s8651_s10  ;;  %v7222_v52 = vsel %vm3683_vm4, %v12235_v0, %v12777_v49  ;;  %v4986_v31 = vrot.slane %v4985_v36, 4  ;;  %v5000_v9 = vrot.slane %v4998_v41, 5  ;;  %v6177_v58 = vrot.slane %v6175_v13, 5  ;;  %v12348_v40 = vpop.permute.xlu1 %6781  ;;  %v12350_v0 = vld [vmem:[#allocation3 + $0xc0] sm:$0xf] }
 0x35c   : > { %v4996_v7 = vrot.slane %v4995_v34, 4  ;;  %v8197_v23 = vcombine.low %v5815_v14, %v12326_v26  ;;  %v5175_v10 = vrot.slane %v5173_v8, 4  ;;  %v6181_v33 = vshll.u32 %v12326_v26, 16  ;;  %v8574_v14 = vld [vmem:[#allocation3 + $0x64] sm:$0xf] }
 0x35d   : > { %v8054_v32 = vrot.slane %v5017_v30, 9  ;;  %v5176_v11 = vrot.slane %v4617_v50, 5  ;;  %v6178_v3 = vor.u32 %v6177_v58, %v6174_v24  ;;  %v6187_v43 = vrot.slane %v6185_v46, 4  ;;  %v8575_v13 = vld [vmem:[#allocation3 + $0x60] sm:$0xf] }
 0x35e   : > { %v4991_v36 = vsel %vm8891_vm15, %v4986_v31, %v4990_v19  ;;  %v5001_v41 = vsel %vm8891_vm15, %v4996_v7, %v5000_v9  ;;  %6967 = vrot.lane.b32.xlu0 %v8197_v23, %s8659_s11  ;;  %v8095_v34 = vcombine.low %v8575_v13, %v8574_v14  ;;  %v6183_v49 = vrot.slane %v6181_v33, 5 }
 0x35f   : > { %v8118_v30 = vcombine.low %v4991_v36, %v5001_v41  ;;  %v5177_v50 = vsel %vm8804_vm10, %v5175_v10, %v5176_v11  ;;  %v6179_v46 = vrot.slane %v6178_v3, 4  ;;  %v6191_v24 = vshll.u32 %v12345_v28, 16  ;;  %v6233_v11 = vld [vmem:[#allocation3 + $0xc0] sm:$0xe]  ;;  %v12376_v41 = vpop.permute.xlu1 %6957 }
 0x360   : > { %v6188_v58 = vor.u32 %v6187_v43, %v6183_v49  ;;  %v7224_v19 = vsel %vm3683_vm4, %v7192_v27, %v11973_v51  ;;  %v5587_v31 = vshrl.u32 %v12350_v0, 16  ;;  %v5590_v9 = vshll.u32 %v12350_v0, 16  ;;  %v12372_v43 = vpop.permute.xlu0 %7035 }
 0x361   : > { %6537 = vrot.lane.b32.xlu1 %v8118_v30, %s8651_s10  ;;  %v5174_v7 = vsel %vm8804_vm10, %v8054_v32, %v5173_v8  ;;  %v6193_v23 = vrot.slane %v6191_v24, 5  ;;  %v7256_v10 = vsel %vm3749_vm14, %v7224_v19, %v12205_v44  ;;  %v5600_v33 = vshrl.u32 %v12357_v15, 16  ;;  %v12778_v30 = vld [vmem:[#allocation12_spill] sm:$0xff]  ;;  %v5225_v19 = vld [vmem:[#allocation3 + $0xc8] sm:$0x1] }
 0x362   : > { %v6189_v3 = vrot.slane %v6188_v58, 4  ;;  %v7289_v51 = vsel %vm7275_vm0, %v7256_v10, %v12097_v1  ;;  %v5589_v27 = vrot.slane %v5587_v31, 4  ;;  %v5592_v36 = vrot.slane %v5590_v9, 5 }
 0x363   : > { %v8134_v14 = vcombine.low %v5174_v7, %v5177_v50  ;;  %v6184_v8 = vsel %vm8891_vm15, %v6179_v46, %v6183_v49  ;;  %v7322_v44 = vsel %vm7308_vm8, %v7289_v51, %v11900_v45  ;;  %v7254_v32 = vsel %vm3749_vm14, %v7222_v52, %v11904_v54  ;;  %v408_v51 = vld [vmem:[#allocation3 + $0xcc] sm:$0x1] }
 0x364   : > { %v6194_v13 = vsel %vm8891_vm15, %v6189_v3, %v6193_v23  ;;  %v7287_v1 = vsel %vm7275_vm0, %v7254_v32, %v12778_v30  ;;  %v8085_v24 = vrot.slane %v6233_v11, 9  ;;  %v6383_v58 = vrot.slane %v12326_v26, 5  ;;  %v12401_v10 = vpop.permute.xlu0 %6703 }
 0x365   : > { %6617 = vrot.lane.b32.xlu1 %v8134_v14, %s8657_s16  ;;  %v8213_v50 = vcombine.low %v6184_v8, %v6194_v13  ;;  %v7320_v49 = vsel %vm7308_vm8, %v7287_v1, %v11946_v18  ;;  %v5593_v45 = vor.u32 %v5592_v36, %v5589_v27  ;;  %v5596_v46 = vshll.u32 %v12357_v15, 16  ;;  %v12410_v27 = vld [vmem:[#allocation3 + $0xd0] sm:$0xf]  ;;  %v463_v13 = vld [vmem:[#allocation3 + $0xd4] sm:$0x1] }
 0x366   : > { %v7353_v54 = vsel %vm7341_vm13, %v7320_v49, %v12214_v16  ;;  %v6385_v52 = vrot.slane %v6383_v58, 4  ;;  %v6386_v31 = vrot.slane %v12345_v28, 5  ;;  %v5602_v9 = vrot.slane %v5600_v33, 4  ;;  %v8576_v28 = vld [vmem:[#allocation3 + $0x58] sm:$0xf] }
 0x367   : > { %7047 = vrot.lane.b32.xlu0 %v8213_v50, %s8662_s17  ;;  %v8150_v26 = vcombine.low %v12350_v0, %v12357_v15  ;;  %v5598_v7 = vrot.slane %v5596_v46, 5  ;;  %v5606_v23 = vshll.u32 %v5225_v19, 16  ;;  %v7386_v18 = vsel %vm7374_vm5, %v7353_v54, %v12074_v62  ;;  %v8577_v33 = vld [vmem:[#allocation3 + $0x54] sm:$0xf]  ;;  %v12412_v62 = vpop.permute.xlu1 %6527 }
 0x368   : > { %v6384_v11 = vsel %vm8804_vm10, %v8085_v24, %v6383_v58  ;;  %v6387_v16 = vsel %vm8804_vm10, %v6385_v52, %v6386_v31  ;;  %8389 = vmatmul.mubr.msk.bf16.gmra.mrb[8].mxu1 %vm7450_vm1, %v7386_v18  ;;  %v8094_v3 = vcombine.low %v8577_v33, %v8576_v28  ;;  %v7355_v0 = vsel %vm7341_vm13, %v7322_v44, %v12145_v53  ;;  %v6780_v52 = vpop.permute.xlu0 %6779 }
 0x369   : > { %v7157_v36 = vsel %vm3551_vm7, %v8095_v34, %v12180_v25  ;;  %6713 = vrot.lane.b32.xlu1 %v8150_v26, %s8653_s12  ;;  %v8229_v14 = vcombine.low %v6384_v11, %v6387_v16  ;;  %v5594_v8 = vrot.slane %v5593_v45, 4  ;;  %v5603_v32 = vor.u32 %v5602_v9, %v5598_v7  ;;  %v5625_v34 = vld [vmem:[#allocation3 + $0xc0] sm:$0xe] }
 0x36a   : > { %v5608_v30 = vrot.slane %v5606_v23, 5  ;;  %v7154_v1 = vsel %vm3551_vm7, %v8094_v3, %v12256_v55  ;;  %v7388_v53 = vsel %vm7374_vm5, %v7355_v0, %v12030_v38  ;;  %v5781_v44 = vrot.slane %v12357_v15, 5  ;;  %v12779_v38 = vld [vmem:[#allocation14_spill] sm:$0xff] }
 0x36b   : > { %7127 = vrot.lane.b32.xlu0 %v8229_v14, %s8661_s14  ;;  %v5604_v24 = vrot.slane %v5603_v32, 4  ;;  %v7194_v25 = vsel %vm3617_vm9, %v7154_v1, %v12079_v5  ;;  %8392 = vmatprep.mubr.msk.bf16.mxu1 %vm7450_vm1, %v7388_v53  ;;  %v409_v58 = vsel %vm10453_vm6, 0, %v408_v51  ;;  %v6209_v50 = vshrl.u32 %v12410_v27, 16  ;;  %v7034_v26 = vpop.permute.xlu1 %7033  ;;  %v6234_v1 = vld [vmem:[#allocation3 + $0xcc] sm:$0xe] }
 0x36c   : > { %v7196_v55 = vsel %vm3617_vm9, %v7157_v36, %v12058_v39  ;;  %v7226_v15 = vsel %vm3683_vm4, %v7194_v25, %v12779_v38  ;;  %v5783_v49 = vrot.slane %v5781_v44, 4  ;;  %410 = vst [vmem:[#allocation3 + $0xcc] sm:$0x1] %v409_v58  ;;  %v464_v45 = vsel %vm10464_vm2, 0, %v463_v13  ;;  %v12460_v14 = vpop.permute.xlu0 %7117 }
 0x36d   : > { %v5599_v5 = vsel %vm8891_vm15, %v5594_v8, %v5598_v7  ;;  %v5609_v17 = vsel %vm8891_vm15, %v5604_v24, %v5608_v30  ;;  %v5784_v46 = vrot.slane %v5225_v19, 5  ;;  %465 = vst [vmem:[#allocation3 + $0xd4] sm:$0x1] %v464_v45  ;;  %v6205_v54 = vshll.u32 %v12410_v27, 16 }
 0x36e   : > { %v8166_v39 = vcombine.low %v5599_v5, %v5609_v17  ;;  %v8070_v31 = vrot.slane %v5625_v34, 9  ;;  %v6211_v9 = vrot.slane %v6209_v50, 4  ;;  %v7228_v18 = vsel %vm3683_vm4, %v7196_v55, %v12173_v12 }
 0x36f   : > { %v5785_v23 = vsel %vm8804_vm10, %v5783_v49, %v5784_v46  ;;  %v6207_v47 = vrot.slane %v6205_v54, 5  ;;  %v7258_v7 = vsel %vm3749_vm14, %v7226_v15, %v12124_v2  ;;  %v7260_v19 = vsel %vm3749_vm14, %v7228_v18, %v6780_v52  ;;  %v6526_v13 = vpop.permute.xlu1 %6525  ;;  %v8581_v18 = vld [vmem:[#allocation3 + $0x6c] sm:$0xf] }
 0x370   : > { %6793 = vrot.lane.b32.xlu1 %v8166_v39, %s8656_s15  ;;  %v5782_v11 = vsel %vm8804_vm10, %v8070_v31, %v5781_v44  ;;  %v7293_v16 = vsel %vm7275_vm0, %v7260_v19, %v12317_v61  ;;  %v7291_v28 = vsel %vm7275_vm0, %v7258_v7, %v12062_v6  ;;  %v6390_v51 = vrot.slane %v12410_v27, 5  ;;  %v6864_v50 = vpop.permute.xlu0 %6863  ;;  %v8578_v39 = vld [vmem:[#allocation3 + $0x7c] sm:$0xf]  ;;  %v8579_v31 = vld [vmem:[#allocation3 + $0x78] sm:$0xf]  ;;  %s215_s15 = sand.u32 1, %s8640_s19  }
 0x371   : > { %v8182_v33 = vcombine.low %v5782_v11, %v5785_v23  ;;  %v6212_v3 = vor.u32 %v6211_v9, %v6207_v47  ;;  %v7326_v12 = vsel %vm7308_vm8, %v7293_v16, %v12119_v59  ;;  %v7324_v2 = vsel %vm7308_vm8, %v7291_v28, %v12149_v56  ;;  %v8580_v23 = vld [vmem:[#allocation3 + $0x70] sm:$0xf]  ;;  %s7792_s16 = sshll.u32 %s215_s15, 4  ;;  %s7715_s23 = scalar_lea.sflag [#allocation5], %s215_s15 }
 0x372   : > { %v7357_v36 = vsel %vm7341_vm13, %v7324_v2, %v7034_v26  ;;  %v7359_v61 = vsel %vm7341_vm13, %v7326_v12, %v12372_v43  ;;  %v8086_v34 = vrot.slane %v6234_v1, 9  ;;  %v6392_v58 = vrot.slane %v6390_v51, 4  ;;  %v12781_v1 = vld [vmem:[#allocation7_spill] sm:$0xff] }
 0x373   : > { %v5817_v0 = vld [vmem:[#allocation3 + $0xcc] sm:$0xf]  ;;  %v7390_v56 = vsel %vm7374_vm5, %v7357_v36, %v12295_v60  ;;  %v7392_v53 = vsel %vm7374_vm5, %v7359_v61, %v12249_v22  ;;  %v6213_v24 = vrot.slane %v6212_v3, 4  ;;  %v8101_v55 = vcombine.low %v12279_v48, %v12228_v57  ;;  %v6866_v15 = vpop.permute.xlu1 %6865 }
 0x374   : > { %6873 = vrot.lane.b32.xlu1 %v8182_v33, %s8660_s13  ;;  %v6196_v6 = vshrl.u32 %v5817_v0, 16  ;;  %v6199_v8 = vshll.u32 %v5817_v0, 16  ;;  %v8198_v32 = vcombine.low %v5817_v0, %v12410_v27  ;;  %v5834_v59 = vld [vmem:[#allocation3 + $0xd4] sm:$0x1]  ;;  %8393 = vmatmul.mubr.msk.bf16.gmra.mrb[12].mxu1 %vm7450_vm1, %v7390_v56  ;;  %v8102_v49 = vcombine.low %v12303_v42, %v12307_v21  ;;  %v7040_v52 = vpop.permute.xlu0 %7039 }
 0x375   : > { %v6215_v30 = vshll.u32 %v5834_v59, 16  ;;  %8396 = vmatprep.mubr.msk.bf16.mxu1 %vm7450_vm1, %v7392_v53  ;;  %v6393_v60 = vrot.slane %v5834_v59, 5  ;;  %v6391_v5 = vsel %vm8804_vm10, %v8086_v34, %v6390_v51  ;;  %v8097_v9 = vcombine.low %v8579_v31, %v8578_v39  ;;  %v12780_v51 = vld [vmem:[#allocation11_spill] sm:$0xff]  ;;  %v8583_v59 = vld [vmem:[#allocation3 + $0x84] sm:$0xf] }
 0x376   : > { %v6198_v44 = vrot.slane %v6196_v6, 4  ;;  %v6201_v43 = vrot.slane %v6199_v8, 5  ;;  %v8096_v7 = vcombine.low %v8581_v18, %v8580_v23 }
 0x377   : > { %v6217_v25 = vrot.slane %v6215_v30, 5  ;;  %v6394_v17 = vsel %vm8804_vm10, %v6392_v58, %v6393_v60  ;;  %v6610_v26 = vpop.permute.xlu1 %6609  ;;  %v7163_v63 = vsel %vm3551_vm7, %v8097_v9, %v12412_v62 }
 0x378   : > { %6969 = vrot.lane.b32.xlu1 %v8198_v32, %s8659_s11  ;;  %v6202_v27 = vor.u32 %v6201_v43, %v6198_v44  ;;  %v8230_v54 = vcombine.low %v6391_v5, %v6394_v17  ;;  %v7160_v29 = vsel %vm3551_vm7, %v8096_v7, %v6526_v13  ;;  %v6784_v19 = vpop.permute.xlu0 %6783  ;;  %s217_s11 = scalar_lea.vmem [#allocation4], %s7792_s16 }
 0x379   : > { %v6218_v22 = vsel %vm8891_vm15, %v6213_v24, %v6217_v25  ;;  %v7198_v11 = vsel %vm3617_vm9, %v7160_v29, %v12298_v20  ;;  %s7729_s13 = sshll.u32 %s217_s11, 4  ;;  %s12610_s13 = int_to_ptr.vmem [resolvable:$true] %s7729_s13 }
 0x37a   : > { %v6203_v38 = vrot.slane %v6202_v27, 4  ;;  %v7230_v33 = vsel %vm3683_vm4, %v7198_v11, %v12100_v4  ;;  %s8586_s25 = scalar_lea.vmem %s12610_s13, 256 }
 0x37b   : > { %p8587_p11 = scmp.ne.s32.totalorder %s12610_s13, %s8586_s25 }
 0x37c   : > { %v6208_v45 = vsel %vm8891_vm15, %v6203_v38, %v6207_v47  ;;  %v7200_v47 = vsel %vm3617_vm9, %v7163_v63, %v12273_v37  ;;  %v6786_v16 = vpop.permute.xlu1 %6785  ;;  %v7120_v3 = vpop.permute.xlu0 %7119  ;;  %v7262_v37 = vsel %vm3749_vm14, %v7230_v33, %v12348_v40  ;;  %v8584_v38 = vld [vmem:[#allocation3 + $0x94] sm:$0xf] }
 0x37d   : > { %v8214_v46 = vcombine.low %v6208_v45, %v6218_v22  ;;  %v7232_v28 = vsel %vm3683_vm4, %v7200_v47, %v12401_v10  ;;  %v7295_v36 = vsel %vm7275_vm0, %v7262_v37, %v12780_v51  ;;  %v8585_v22 = vld [vmem:[#allocation3 + $0x90] sm:$0xf]  ;;  %p8588_p12 = pnand %p8587_p11, %p8732_p5 }
 0x37e   : > { %v7264_v62 = vsel %vm3749_vm14, %v7232_v28, %v6784_v19  ;;  %v7328_v4 = vsel %vm7308_vm8, %v7295_v36, %v12376_v41  ;;  %v8099_v45 = vcombine.low %v8585_v22, %v8584_v38  ;;  %v12783_v28 = vld [vmem:[#allocation13_spill] sm:$0xff] }
 0x37f   : > { %7049 = vrot.lane.b32.xlu1 %v8214_v46, %s8662_s17  ;;  %v7297_v12 = vsel %vm7275_vm0, %v7264_v62, %v6864_v50  ;;  %p8589_p13 = pneg %p8588_p12 }
 0x380   : > { %v6962_v2 = vpop.permute.xlu1 %6961  ;;  %v7330_v0 = vsel %vm7308_vm8, %v7297_v12, %v12342_v35  ;;  %v8582_v35 = vld [vmem:[#allocation3 + $0x88] sm:$0xf] }
 0x381   : > { %v7363_v10 = vsel %vm7341_vm13, %v7330_v0, %v7040_v52  ;;  %v8098_v56 = vcombine.low %v8583_v59, %v8582_v35 }
 0x382   : > { %v7396_v40 = vsel %vm7374_vm5, %v7363_v10, %v7120_v3 }
 0x383   : > { %7129 = vrot.lane.b32.xlu1 %v8230_v54, %s8661_s14  ;;  %s8291_s14 = sshll.u32 %s8715_s22, 8  ;;  %s8663_s22 = smov [#allocation4]  }
 0x384   : > { %s12615_s9 = scalar_lea.hbm %s12662_s5, %s8291_s14  ;;  %s8590_s26 = sshll.u32 %s8663_s22, 4  ;;  %s8591_s26 = int_to_ptr.vmem [resolvable:$false] %s8590_s26 }
 0x385   : > { %s8592_s30 = scalar_lea.vmem %s8591_s26, 512  ;;  %p8593_p0 = scmp.lt.s32.totalorder %s12610_s13, %s8591_s26 }
 0x386   : > { %p8594_p1 = scmp.lt.s32.totalorder %s8592_s30, %s8586_s25 }
 0x387   : > { %v7122_v20 = vpop.permute.xlu0 %7121 }
 0x388   : > { %p8595_p2 = por %p8594_p1, %p8593_p0 }
 0x38a   : > { %p8596_p3 = pnand %p8595_p2, %p8589_p13 }
 0x391   : > { %v6612_v32 = vpop.permute.xlu0 %6611 }
 0x392   : > { %v7038_v61 = vpop.permute.xlu1 %7037 }
 0x393   : > { %v7361_v6 = vsel %vm7341_vm13, %v7328_v4, %v7038_v61 }
 0x394   : > { %v7394_v8 = vsel %vm7374_vm5, %v7361_v6, %v12460_v14 }
 0x395   : > { %8397 = vmatmul.mubr.msk.bf16.gmra.mrb[16].mxu1 %vm7450_vm1, %v7394_v8  ;;  %v6708_v44 = vpop.permute.xlu0 %6707 }
 0x396   : > { %8400 = vmatprep.mubr.msk.bf16.mxu1 %vm7450_vm1, %v7396_v40 }
 0x398   : > { %v6530_v13 = vpop.permute.xlu1 %6529 }
 0x399   : > { %v7166_v30 = vsel %vm3551_vm7, %v8098_v56, %v6530_v13 }
 0x39a   : > { %v7202_v41 = vsel %vm3617_vm9, %v7166_v30, %v6610_v26 }
 0x39b   : > { %v7234_v53 = vsel %vm3683_vm4, %v7202_v41, %v12781_v1 }
 0x39c   : > { %v7266_v14 = vsel %vm3749_vm14, %v7234_v53, %v6786_v16  ;;  %v12782_v16 = vld [vmem:[#allocation9_spill] sm:$0xff] }
 0x39d   : > { %v7299_v24 = vsel %vm7275_vm0, %v7266_v14, %v6866_v15  ;;  %v8100_v33 = vcombine.low %v12783_v28, %v12782_v16 }
 0x39e   : > { %v6532_v43 = vpop.permute.xlu1 %6531  ;;  %v7332_v27 = vsel %vm7308_vm8, %v7299_v24, %v6962_v2 }
 0x39f   : > { %v7169_v5 = vsel %vm3551_vm7, %v8099_v45, %v6532_v43 }
 0x3a0   : > { %v7204_v15 = vsel %vm3617_vm9, %v7169_v5, %v6612_v32 }
 0x3a1   : > { %v6788_v25 = vpop.permute.xlu0 %6787  ;;  %v7236_v52 = vsel %vm3683_vm4, %v7204_v15, %v6708_v44 }
 0x3a2   : > { %v7268_v31 = vsel %vm3749_vm14, %v7236_v52, %v6788_v25 }
 0x3a3   : > { %v7042_v34 = vpop.permute.xlu1 %7041 }
 0x3a4   : > { %v7365_v58 = vsel %vm7341_vm13, %v7332_v27, %v7042_v34 }
 0x3a5   : > { %v7398_v60 = vsel %vm7374_vm5, %v7365_v58, %v7122_v20  ;;  %v6868_v50 = vpop.permute.xlu0 %6867 }
 0x3a6   : > { %8401 = vmatmul.mubr.msk.bf16.gmra.mrb[20].mxu1 %vm7450_vm1, %v7398_v60  ;;  %v7301_v26 = vsel %vm7275_vm0, %v7268_v31, %v6868_v50 }
 0x3a9   : > { %v6534_v17 = vpop.permute.xlu1 %6533  ;;  %v6964_v46 = vpop.permute.xlu0 %6963 }
 0x3aa   : > { %v7334_v23 = vsel %vm7308_vm8, %v7301_v26, %v6964_v46  ;;  %v7172_v3 = vsel %vm3551_vm7, %v8100_v33, %v6534_v17 }
 0x3ad   : > { %v6614_v54 = vpop.permute.xlu1 %6613 }
 0x3ae   : > { %v7206_v2 = vsel %vm3617_vm9, %v7172_v3, %v6614_v54 }
 0x3b1   : > { %v7044_v39 = vpop.permute.xlu0 %7043  ;;  %v6710_v9 = vpop.permute.xlu1 %6709 }
 0x3b2   : > { %v7367_v18 = vsel %vm7341_vm13, %v7334_v23, %v7044_v39  ;;  %v7238_v37 = vsel %vm3683_vm4, %v7206_v2, %v6710_v9 }
 0x3b5   : > { %v7124_v7 = vpop.permute.xlu0 %7123 }
 0x3b6   : > { %v7400_v63 = vsel %vm7374_vm5, %v7367_v18, %v7124_v7 }
 0x3b7   : > { %8404 = vmatprep.mubr.msk.bf16.mxu1 %vm7450_vm1, %v7400_v63 }
 0x3b9   : > { %v6790_v29 = vpop.permute.xlu1 %6789  ;;  %v7126_v47 = vpop.permute.xlu0 %7125 }
 0x3ba   : > { %v7270_v0 = vsel %vm3749_vm14, %v7238_v37, %v6790_v29 }
 0x3bd   : > { %v6870_v19 = vpop.permute.xlu1 %6869  ;;  %v6616_v11 = vpop.permute.xlu0 %6615 }
 0x3be   : > { %v7303_v20 = vsel %vm7275_vm0, %v7270_v0, %v6870_v19 }
 0x3c1   : > { %v6966_v62 = vpop.permute.xlu1 %6965  ;;  %v6712_v12 = vpop.permute.xlu0 %6711 }
 0x3c2   : > { %v7336_v51 = vsel %vm7308_vm8, %v7303_v20, %v6966_v62 }
 0x3c7   : > { %v7046_v36 = vpop.permute.xlu1 %7045 }
 0x3c8   : > { %v7369_v10 = vsel %vm7341_vm13, %v7336_v51, %v7046_v36  ;;  %v6792_v4 = vpop.permute.xlu0 %6791 }
 0x3c9   : > { %v7402_v61 = vsel %vm7374_vm5, %v7369_v10, %v7126_v47 }
 0x3ca   : > { %8405 = vmatmul.mubr.msk.bf16.gmra.mrb[24].mxu1 %vm7450_vm1, %v7402_v61 }
 0x3cc   : > { %v6872_v40 = vpop.permute.xlu0 %6871 }
 0x3cd   : > { %v6536_v6 = vpop.permute.xlu1 %6535 }
 0x3ce   : > { %v7175_v8 = vsel %vm3551_vm7, %v8101_v55, %v6536_v6  ;;  %v12558_v55 = vld [vmem:[%s12661_s4] ss:$0 sm:$0xff] }
 0x3cf   : > { %v7208_v32 = vsel %vm3617_vm9, %v7175_v8, %v6616_v11 }
 0x3d0   : > { %v7240_v35 = vsel %vm3683_vm4, %v7208_v32, %v6712_v12  ;;  %v6968_v56 = vpop.permute.xlu0 %6967 }
 0x3d1   : > { %v7272_v13 = vsel %vm3749_vm14, %v7240_v35, %v6792_v4 }
 0x3d2   : > { %v7305_v41 = vsel %vm7275_vm0, %v7272_v13, %v6872_v40 }
 0x3d3   : > { %v6538_v59 = vpop.permute.xlu1 %6537  ;;  %v7338_v53 = vsel %vm7308_vm8, %v7305_v41, %v6968_v56 }
 0x3d4   : > { %v7178_v5 = vsel %vm3551_vm7, %v8102_v49, %v6538_v59 }
 0x3d7   : > { %v6618_v30 = vpop.permute.xlu1 %6617 }
 0x3d8   : > { %v7210_v17 = vsel %vm3617_vm9, %v7178_v5, %v6618_v30 }
 0x3d9   : > { %v7048_v1 = vpop.permute.xlu0 %7047 }
 0x3da   : > { %v7371_v57 = vsel %vm7341_vm13, %v7338_v53, %v7048_v1 }
 0x3db   : > { %v6714_v44 = vpop.permute.xlu1 %6713 }
 0x3dc   : > { %v7242_v46 = vsel %vm3683_vm4, %v7210_v17, %v6714_v44 }
 0x3dd   : > { %v7128_v48 = vpop.permute.xlu0 %7127 }
 0x3de   : > { %v7404_v14 = vsel %vm7374_vm5, %v7371_v57, %v7128_v48  ;;  %v8382_v43 = vpop.f32.mrb[0].mxu1 }
 0x3df   : > { %8408 = vmatprep.mubr.msk.bf16.mxu1 %vm7450_vm1, %v7404_v14  ;;  %v7521_v24 = vpop.f32.mrb[1].mxu1  ;;  %v7530_v38 = vadd.f32 %v8382_v43, %v12558_v55 }
 0x3e0   : > { %v7522_v25 = vadd.f32 %v12558_v55, %v7521_v24  ;;  %v8383_v27 = vpop.f32.mrb[2].mxu1 }
 0x3e1   : > { %v7524_v34 = vpop.f32.mrb[3].mxu1  ;;  %v7533_v45 = vadd.f32 %v8383_v27, %v12558_v55 }
 0x3e2   : > { %v6794_v58 = vpop.permute.xlu1 %6793  ;;  %7648 = vxpose.xlu0.b32.start [1/16] (narrow) %v7522_v25, 8  ;;  %v7525_v60 = vadd.f32 %v12558_v55, %v7524_v34 }
 0x3e3   : > { %v7274_v54 = vsel %vm3749_vm14, %v7242_v46, %v6794_v58 }
 0x3e6   : > { %v6874_v50 = vpop.permute.xlu1 %6873  ;;  %7649 = vxpose.xlu0.b32.cont [2/16] (narrow) %v7525_v60, 8 }
 0x3e7   : > { %v7307_v52 = vsel %vm7275_vm0, %v7274_v54, %v6874_v50 }
 0x3ea   : > { %7650 = vxpose.xlu0.b32.cont [3/16] (narrow) %v7530_v38, 8  ;;  %v6970_v22 = vpop.permute.xlu1 %6969 }
 0x3eb   : > { %v7340_v39 = vsel %vm7308_vm8, %v7307_v52, %v6970_v22 }
 0x3ee   : > { %7651 = vxpose.xlu0.b32.cont [4/16] (narrow) %v7533_v45, 8 }
 0x3f1   : > { %v7050_v15 = vpop.permute.xlu1 %7049 }
 0x3f2   : > { %v7373_v31 = vsel %vm7341_vm13, %v7340_v39, %v7050_v15 }
 0x3f5   : > { %v7130_v9 = vpop.permute.xlu1 %7129 }
 0x3f6   : > { %v7406_v26 = vsel %vm7374_vm5, %v7373_v31, %v7130_v9 }
 0x3f7   : > { %8409 = vmatmul.mubr.msk.bf16.gmra.mrb[28].mxu1 %vm7450_vm1, %v7406_v26 }
 0x413   : > { %v8386_v42 = vpop.f32.mrb[4].mxu1 }
 0x414   : > { %v7537_v21 = vpop.f32.mrb[5].mxu1  ;;  %v7546_v63 = vadd.f32 %v8386_v42, %v12558_v55 }
 0x415   : > { %v7538_v49 = vadd.f32 %v12558_v55, %v7537_v21  ;;  %v8387_v23 = vpop.f32.mrb[6].mxu1 }
 0x416   : > { %v7540_v18 = vpop.f32.mrb[7].mxu1  ;;  %v7549_v29 = vadd.f32 %v8387_v23, %v12558_v55 }
 0x417   : > { %7652 = vxpose.xlu0.b32.cont [5/16] (narrow) %v7538_v49, 8  ;;  %v7541_v7 = vadd.f32 %v12558_v55, %v7540_v18 }
 0x41b   : > { %7653 = vxpose.xlu0.b32.cont [6/16] (narrow) %v7541_v7, 8 }
 0x41f   : > { %7654 = vxpose.xlu0.b32.cont [7/16] (narrow) %v7546_v63, 8 }
 0x423   : > { %7655 = vxpose.xlu0.b32.cont [8/16] (narrow) %v7549_v29, 8 }
 0x43b   : > { %v8390_v47 = vpop.f32.mrb[8].mxu1 }
 0x43c   : > { %v7553_v19 = vpop.f32.mrb[9].mxu1  ;;  %v7562_v62 = vadd.f32 %v8390_v47, %v12558_v55 }
 0x43d   : > { %v7554_v11 = vadd.f32 %v12558_v55, %v7553_v19  ;;  %v8391_v16 = vpop.f32.mrb[10].mxu1 }
 0x43e   : > { %v7556_v28 = vpop.f32.mrb[11].mxu1  ;;  %v7565_v12 = vadd.f32 %v8391_v16, %v12558_v55 }
 0x43f   : > { %7656 = vxpose.xlu0.b32.cont [9/16] (narrow) %v7554_v11, 8  ;;  %v7557_v33 = vadd.f32 %v12558_v55, %v7556_v28 }
 0x443   : > { %7657 = vxpose.xlu0.b32.cont [10/16] (narrow) %v7557_v33, 8 }
 0x447   : > { %7658 = vxpose.xlu0.b32.cont [11/16] (narrow) %v7562_v62, 8  ;;  %v8394_v3 = vpop.f32.mrb[12].mxu1 }
 0x448   : > { %v7569_v2 = vpop.f32.mrb[13].mxu1  ;;  %v7578_v36 = vadd.f32 %v8394_v3, %v12558_v55 }
 0x449   : > { %v8395_v37 = vpop.f32.mrb[14].mxu1  ;;  %v7570_v0 = vadd.f32 %v12558_v55, %v7569_v2 }
 0x44a   : > { %v7572_v20 = vpop.f32.mrb[15].mxu1  ;;  %v7581_v10 = vadd.f32 %v8395_v37, %v12558_v55 }
 0x44b   : > { %7659 = vxpose.xlu0.b32.cont [12/16] (narrow) %v7565_v12, 8  ;;  %v7573_v51 = vadd.f32 %v12558_v55, %v7572_v20 }
 0x44f   : > { %7660 = vxpose.xlu0.b32.cont [13/16] (narrow) %v7570_v0, 8 }
 0x453   : > { %7661 = vxpose.xlu0.b32.cont [14/16] (narrow) %v7573_v51, 8 }
 0x457   : > { %7662 = vxpose.xlu0.b32.cont [15/16] (narrow) %v7578_v36, 8 }
 0x45b   : > { %7663 = vxpose.xlu0.b32.end [16/16] (narrow) %v7581_v10, 8 }
 0x468   : > { %v8398_v4 = vpop.f32.mrb[16].mxu1 }
 0x469   : > { %v7585_v61 = vpop.f32.mrb[17].mxu1  ;;  %v7594_v35 = vadd.f32 %v8398_v4, %v12558_v55 }
 0x46a   : > { %v7586_v6 = vadd.f32 %v12558_v55, %v7585_v61  ;;  %v8399_v8 = vpop.f32.mrb[18].mxu1 }
 0x46b   : > { %v7588_v40 = vpop.f32.mrb[19].mxu1  ;;  %v7597_v59 = vadd.f32 %v8399_v8, %v12558_v55 }
 0x46c   : > { %7680 = vxpose.xlu1.b32.start [1/16] (narrow) %v7586_v6, 8  ;;  %v7589_v32 = vadd.f32 %v12558_v55, %v7588_v40 }
 0x470   : > { %7681 = vxpose.xlu1.b32.cont [2/16] (narrow) %v7589_v32, 8 }
 0x474   : > { %7682 = vxpose.xlu1.b32.cont [3/16] (narrow) %v7594_v35, 8 }
 0x478   : > { %7683 = vxpose.xlu1.b32.cont [4/16] (narrow) %v7597_v59, 8 }
 0x479   : > { %v8402_v56 = vpop.f32.mrb[20].mxu1 }
 0x47a   : > { %v7601_v13 = vpop.f32.mrb[21].mxu1  ;;  %v7610_v44 = vadd.f32 %v8402_v56, %v12558_v55 }
 0x47b   : > { %v7602_v30 = vadd.f32 %v12558_v55, %v7601_v13  ;;  %v8403_v41 = vpop.f32.mrb[22].mxu1 }
 0x47c   : > { %v7604_v1 = vpop.f32.mrb[23].mxu1  ;;  %v7613_v57 = vadd.f32 %v8403_v41, %v12558_v55 }
 0x47d   : > { %7684 = vxpose.xlu1.b32.cont [5/16] (narrow) %v7602_v30, 8  ;;  %v7605_v53 = vadd.f32 %v12558_v55, %v7604_v1 }
 0x481   : > { %7685 = vxpose.xlu1.b32.cont [6/16] (narrow) %v7605_v53, 8 }
 0x485   : > { %7686 = vxpose.xlu1.b32.cont [7/16] (narrow) %v7610_v44, 8 }
 0x489   : > { %7687 = vxpose.xlu1.b32.cont [8/16] (narrow) %v7613_v57, 8 }
 0x49d   : > { %v8406_v48 = vpop.f32.mrb[24].mxu1 }
 0x49e   : > { %v7617_v14 = vpop.f32.mrb[25].mxu1  ;;  %v7626_v58 = vadd.f32 %v8406_v48, %v12558_v55 }
 0x49f   : > { %v7618_v43 = vadd.f32 %v12558_v55, %v7617_v14  ;;  %v8407_v24 = vpop.f32.mrb[26].mxu1  ;;  %v7664_v25 = vpop.trf.xlu0 }
 0x4a0   : > { %v7620_v27 = vpop.f32.mrb[27].mxu1  ;;  %7712 = vst [vmem:[%s217_s11] sm:$0xff] %v7664_v25  ;;  %v7629_v60 = vadd.f32 %v8407_v24, %v12558_v55 }
 0x4a1   : > { %7688 = vxpose.xlu1.b32.cont [9/16] (narrow) %v7618_v43, 8  ;;  %v7621_v34 = vadd.f32 %v12558_v55, %v7620_v27 }
 0x4a5   : > { %7689 = vxpose.xlu1.b32.cont [10/16] (narrow) %v7621_v34, 8 }
 0x4a9   : > { %7690 = vxpose.xlu1.b32.cont [11/16] (narrow) %v7626_v58, 8 }
 0x4ad   : > { %7691 = vxpose.xlu1.b32.cont [12/16] (narrow) %v7629_v60, 8 }
 0x4ca   : > { %v8410_v50 = vpop.f32.mrb[28].mxu1 }
 0x4cb   : > { %v7633_v38 = vpop.f32.mrb[29].mxu1  ;;  %v7642_v46 = vadd.f32 %v8410_v50, %v12558_v55 }
 0x4cc   : > { %v7634_v22 = vadd.f32 %v12558_v55, %v7633_v38  ;;  %v8411_v45 = vpop.f32.mrb[30].mxu1 }
 0x4cd   : > { %v7636_v5 = vpop.f32.mrb[31].mxu1  ;;  %v7645_v15 = vadd.f32 %v8411_v45, %v12558_v55 }
 0x4ce   : > { %7692 = vxpose.xlu1.b32.cont [13/16] (narrow) %v7634_v22, 8  ;;  %v7637_v17 = vadd.f32 %v12558_v55, %v7636_v5 }
 0x4d2   : > { %7693 = vxpose.xlu1.b32.cont [14/16] (narrow) %v7637_v17, 8 }
 0x4d6   : > { %7694 = vxpose.xlu1.b32.cont [15/16] (narrow) %v7642_v46, 8 }
 0x4da   : > { %7695 = vxpose.xlu1.b32.end [16/16] (narrow) %v7645_v15, 8 }
 0x51e   : > { %v7696_v54 = vpop.trf.xlu1 }
 0x51f   : > { %7713 = vst [vmem:[%s217_s11 + $0x8] sm:$0xff] %v7696_v54 }
 0x520   : > { %8599 = shalt.err (!%p8596_p3)
}
 0x521   : > { %s8600_s6 = scalar_lea.hbm %s12615_s9, 256  ;;  %s8604_s12 = scalar_lea.hbm %s12662_s5, 512 }
 0x522   : > { %p8601_p4 = scmp.ne.s32.totalorder %s12615_s9, %s8600_s6  ;;  %p8605_p9 = scmp.lt.u32.totalorder %s12615_s9, %s12662_s5 }
 0x523   : > { %p8606_p10 = scmp.lt.u32.totalorder %s8604_s12, %s8600_s6  ;;  %p8608_p12 = scmp.lt.u32.totalorder %s8600_s6, %s12615_s9 }
 0x524   : > { %p8602_p7 = pnand %p8601_p4, %p8732_p5 }
 0x525   : > { %p8607_p11 = por %p8606_p10, %p8605_p9 }
 0x526   : > { %p8603_p8 = pneg %p8602_p7 }
 0x527   : > { %p8609_p13 = por %p8608_p12, %p8607_p11 }
 0x529   : > { %p8610_p0 = pnand %p8609_p13, %p8603_p8 }
 0x52b   : > { %8613 = shalt.err (!%p8610_p0)
}
 0x52c   : > { %8414 = dma.vmem_to_hbm [thread:$0]  (%p8732_p5), %s12610_s13, 256, %s12615_s9, %s7715_s23  }
 0x52d PF: > { %p8420_p1 = scmp.ge.s32.totalorder %s8648_s21, 2  ;;  %s7741_s11 = sand.u32 1, %s8636_s18  }
 0x52e   : > { %s7742_s14 = scalar_lea.sflag [#allocation5], %s7741_s11 }
 0x52f   : > { %p8417_p2 = pnand %p8420_p1, %p8736_p6 }
 0x531   : > { %8631 = dma.done.wait (!%p8417_p2), %s7742_s14, 256  }
 0x532   : > { %8633 = vsyncadd (!%p8417_p2), %s7742_s14, 4294967040  ;;  %p15_p3 = scmp.ge.s32.totalorder %s8719_s24, 4   ;;  %s12784_s18 = smov %s8640_s19 }
 0x533   : > { %s12785_s19 = smov %s8644_s20  ;;  %s12786_s20 = smov %s8730_s27 }
 0x534   : > { %s12787_s21 = smov %s8719_s24  ;;  %17 = sbr.rel (!%p15_p3) target bundleno = 3 (0x3), region = 81 }
 0x53b   :  { %7747 = vsyncpa [#allocation5], 1 }
 0x53c   :  { %7749 = vsyncpa [#allocation5 + $0x1], 1 }

</bundles_post_ra>
